<compile_context>
chip_gen: v7x
topology: tpu7x:2x2x1
jax: 0.10.0
libtpu: 0.0.40
codegen_flags: <defaults>
</compile_context>

<pallas_src>
import functools

import jax
import jax.numpy as jnp
from jax import lax
from jax.experimental import pallas as pl
from jax.experimental.pallas import tpu as pltpu


# ----------------------------------------------------------------- fused all-blocks kernel

def _harmony_blocks_kernel(x_ref, v_ref, w_ref, b_ref, o_ref, y_ref, *, n_blk, C, H, W):
    """All HarmonyRecBlocks for one batch element, fully fused.

    x_ref : (1, C, HW)       input features, spatial flattened on the lane axis
    v_ref : (1, HW, HW)      attention -> pixel reconstruction matrix (the /4 folded in)
    w_ref : (n_blk, 9C, 2C)  3x3 conv weights, row groups ordered by tap t = dy*3 + dx
    b_ref : (n_blk, C, 1)    conv biases
    o_ref : (1, C, HW)       output of the last block
    y_ref : (9C, HW) VMEM    scratch staging the per-block tap GEMM result
    """
    HW = H * W

    # Lane-position masks for the ReflectionPad2d(1) boundary fix-ups (built once, VPU).
    lane = lax.broadcasted_iota(jnp.int32, (C, HW), 1)
    col = lane % W
    left_col = col == 0
    right_col = col == (W - 1)
    top_row = lane < W
    bot_row = lane >= (HW - W)

    def hshift(a, dxm1):
        # a[:, y, x] -> a[:, y, refl(x + dxm1)]  on the flattened lane axis.
        if dxm1 == 0:
            return a
        back = pltpu.roll(a, shift=1, axis=1)        # back[p] = a[p-1]
        fwd = pltpu.roll(a, shift=HW - 1, axis=1)    # fwd[p]  = a[p+1]
        if dxm1 < 0:
            return jnp.where(left_col, fwd, back)    # x==0 reflects to x==1
        return jnp.where(right_col, back, fwd)       # x==W-1 reflects to W-2

    def vshift(a, dym1):
        # a[:, y, x] -> a[:, refl(y + dym1), x]  on the flattened lane axis.
        if dym1 == 0:
            return a
        down = pltpu.roll(a, shift=W, axis=1)        # down[p] = a[p-W]
        up = pltpu.roll(a, shift=HW - W, axis=1)     # up[p]   = a[p+W]
        if dym1 < 0:
            return jnp.where(top_row, up, down)      # y==0 reflects to y==1
        return jnp.where(bot_row, down, up)          # y==H-1 reflects to H-2

    h = x_ref[0]                                     # (C, HW)
    v = v_ref[0]                                     # (HW, HW), resident for all blocks

    for k in range(n_blk):                           # blocks fused: h never leaves the chip
        # transposed-conv reconstruction: ACL = h @ V  (the /4 is folded into V)
        acl = jnp.dot(h, v, preferred_element_type=jnp.float32)          # (C, HW)

        # all 9 taps of the 3x3 conv over con1 = [h ; acl] as ONE GEMM, staged in VMEM
        con1 = jnp.concatenate([h, acl], axis=0)                         # (2C, HW)
        y_ref[...] = jnp.dot(w_ref[k], con1,
                             preferred_element_type=jnp.float32)         # (9C, HW)

        # reflect-pad shift-and-accumulate epilogue (XLU rolls + VPU selects, no MXU)
        acc = None
        for dy in range(3):
            base = dy * 3 * C
            hsum = (hshift(y_ref[base:base + C, :], -1)
                    + y_ref[base + C:base + 2 * C, :]
                    + hshift(y_ref[base + 2 * C:base + 3 * C, :], 1))
            contrib = vshift(hsum, dy - 1)
            acc = contrib if acc is None else acc + contrib

        # bias + ReLU + residual add
        h = jnp.maximum(acc + b_ref[k], 0.0) + h

    o_ref[0] = h                                      # single lane-dense store


def _resident_spec(shape, single_buffer):
    """BlockSpec for a grid-invariant operand; single-buffered when supported."""
    index_map = lambda b: (0,) * len(shape)
    if single_buffer:
        return pl.BlockSpec(shape, index_map, pipeline_mode=pl.Buffered(1))
    return pl.BlockSpec(shape, index_map)


def _harmony_blocks_call(h, v, w_stack, b_stack, H, W, single_buffer):
    B, C, HW = h.shape
    n_blk = w_stack.shape[0]

    # Advisory cost estimate so XLA schedules the one-time V einsum around the kernel.
    flops = 2 * B * n_blk * (C * HW * HW + (9 * C) * (2 * C) * HW)
    bytes_accessed = 4 * (2 * B * C * HW + B * HW * HW
                          + int(w_stack.size) + int(b_stack.size))

    kernel = functools.partial(_harmony_blocks_kernel, n_blk=n_blk, C=C, H=H, W=W)
    return pl.pallas_call(
        kernel,
        out_shape=jax.ShapeDtypeStruct((B, C, HW), jnp.float32),
        grid=(B,),
        in_specs=[
            pl.BlockSpec((1, C, HW), lambda b: (b, 0, 0)),                # x (per batch)
            pl.BlockSpec((1, HW, HW), lambda b: (b, 0, 0)),               # V (per batch)
            _resident_spec((n_blk, 9 * C, 2 * C), single_buffer),         # weights
            _resident_spec((n_blk, C, 1), single_buffer),                 # biases
        ],
        out_specs=pl.BlockSpec((1, C, HW), lambda b: (b, 0, 0)),
        scratch_shapes=[pltpu.VMEM((9 * C, HW), jnp.float32)],            # tap-GEMM staging
        compiler_params=pltpu.CompilerParams(
            dimension_semantics=("parallel",),
            vmem_limit_bytes=32 * 1024 * 1024),
        cost_estimate=pl.CostEstimate(flops=flops, transcendentals=0,
                                      bytes_accessed=bytes_accessed),
    )(h, v, w_stack, b_stack)


# ----------------------------------------------------------------- one-time setup (JAX)

def _same_pad_top(n, ksize, stride):
    out = -(-n // stride)
    pad = max(0, (out - 1) * stride + ksize - n)
    return pad // 2, out


def build_recon_matrices(att_score, H, W, ksize=4, stride=2, ct_pad=1):
    """V[b, p, q]: weight with which input pixel p of x contributes to output pixel q of
    conv_transpose2d(attScore[b], extract_image_patches(x[b]), stride=2, padding=1) / 4.
    Depends only on attScore, so it is shared across all HarmonyRecBlocks."""
    B, L, Hs, Ws = att_score.shape
    pr, n_r = _same_pad_top(H, ksize, stride)
    pc, n_c = _same_pad_top(W, ksize, stride)
    assert L == n_r * n_c
    assert (Hs - 1) * stride - 2 * ct_pad + ksize == H
    assert (Ws - 1) * stride - 2 * ct_pad + ksize == W

    k = jnp.arange(ksize)[:, None, None]

    def indicator(n_pix, n_idx, off):
        pix = jnp.arange(n_pix)[None, :, None]
        idx = jnp.arange(n_idx)[None, None, :]
        return (pix == stride * idx + k - off).astype(jnp.float32)   # (K, n_pix, n_idx)

    row_patch = indicator(H, n_r, pr)
    row_out = indicator(H, Hs, ct_pad)
    col_patch = indicator(W, n_c, pc)
    col_out = indicator(W, Ws, ct_pad)
    a4 = att_score.reshape(B, n_r, n_c, Hs, Ws)
    v4 = jnp.einsum('upl,uyi,vqm,vxj,nlmij->npqyx',
                    row_patch, row_out, col_patch, col_out, a4)
    return v4.reshape(B, H * W, H * W) * 0.25            # fold the /4 into V


# ----------------------------------------------------------------- forward

def harmony_rec_blocks_forward(params, x, fg_mask=None, att_score=None, *,
                               single_buffer_invariants=True):
    """params: list of (wc (C, 2C, 3, 3), bc (C,)) — one per HarmonyRecBlock.
    fg_mask is accepted for API parity but (exactly as in the PyTorch forward) unused."""
    del fg_mask
    B, C, H, W = x.shape
    HW = H * W
    n_blk = len(params)

    v = build_recon_matrices(att_score, H, W)             # (B, HW, HW) shared by all blocks
    # W_stack[k, t*C + o, i] = wc_k[o, i, dy, dx] with t = dy*3 + dx
    w_stack = jnp.stack([wc.transpose(2, 3, 0, 1).reshape(9 * C, 2 * C)
                         for wc, _ in params])            # (n_blk, 9C, 2C)
    b_stack = jnp.stack([bc for _, bc in params]).reshape(n_blk, C, 1)

    h = x.reshape(B, C, HW)
    out = _harmony_blocks_call(h, v, w_stack, b_stack, H, W, single_buffer_invariants)
    return out.reshape(B, C, H, W)


# ----------------------------------------------------------------- pure-JAX reference
# (literal transcription of the PyTorch ops, used only to validate the Pallas path)

def _extract_image_patches_ref(x, ksize, stride):
    B, C, H, W = x.shape
    pr, n_r = _same_pad_top(H, ksize, stride)
    pc, n_c = _same_pad_top(W, ksize, stride)
    pad_r = max(0, (n_r - 1) * stride + ksize - H)
    pad_c = max(0, (n_c - 1) * stride + ksize - W)
    xp = jnp.pad(x, ((0, 0), (0, 0), (pr, pad_r - pr), (pc, pad_c - pc)))
    cols = [xp[:, :, kh:kh + stride * n_r:stride, kw:kw + stride * n_c:stride]
            for kh in range(ksize) for kw in range(ksize)]
    pats = jnp.stack(cols, axis=2).reshape(B, C, ksize, ksize, n_r * n_c)
    return pats.transpose(0, 4, 1, 2, 3)                 # (B, L, C, K, K)


def _harmony_rec_block_ref(x, att, wc, bc, ksize=4, stride=2, ct_pad=1):
    B, C, H, W = x.shape
    k2 = _extract_image_patches_ref(x, ksize, stride)
    acls = []
    for ib in range(B):
        w_t = jnp.flip(k2[ib], axis=(2, 3)).transpose(1, 0, 2, 3)   # (C, L, K, K)
        y = lax.conv_general_dilated(
            att[ib:ib + 1], w_t, window_strides=(1, 1),
            padding=[(ksize - 1 - ct_pad, ksize - 1 - ct_pad)] * 2,
            lhs_dilation=(stride, stride),
            dimension_numbers=('NCHW', 'OIHW', 'NCHW'))
        acls.append(y / 4.0)
    acl = jnp.concatenate(acls, axis=0)
    con1 = jnp.concatenate([x, acl], axis=1)
    con1p = jnp.pad(con1, ((0, 0), (0, 0), (1, 1), (1, 1)), mode='reflect')
    y = lax.conv_general_dilated(con1p, wc, (1, 1), 'VALID',
                                 dimension_numbers=('NCHW', 'OIHW', 'NCHW'))
    y = jnp.maximum(y + bc[None, :, None, None], 0.0)
    return y + x


def _harmony_rec_blocks_ref(params, x, att):
    for wc, bc in params:
        x = _harmony_rec_block_ref(x, att, wc, bc)
    return x


# ----------------------------------------------------------------- main

if __name__ == "__main__":
    num_blocks = 2
    B, dim, H, W = 2, 32, 16, 16
    rate = 2
    Hs, Ws = H // rate, W // rate
    L = Hs * Ws

    key = jax.random.PRNGKey(0)
    kx, ka, kp = jax.random.split(key, 3)
    x = jax.random.normal(kx, (B, dim, H, W), jnp.float32)
    fg_mask = jnp.ones((B, 1, H, W), jnp.float32)        # dead argument (parity with torch)
    att_score = jax.nn.softmax(
        jax.random.normal(ka, (B, L, Hs, Ws), jnp.float32), axis=1)

    params = []
    wkeys = jax.random.split(kp, 2 * num_blocks)
    for i in range(num_blocks):
        fan_in = 2 * dim * 9
        wc = jax.random.normal(wkeys[2 * i], (dim, 2 * dim, 3, 3),
                               jnp.float32) / jnp.sqrt(fan_in)
        bc = 0.01 * jax.random.normal(wkeys[2 * i + 1], (dim,), jnp.float32)
        params.append((wc, bc))

    fwd = jax.jit(harmony_rec_blocks_forward,
                  static_argnames=("single_buffer_invariants",))

    out = None
    # Prefer single-buffered invariant operands; fall back to default double-buffering
    # if this jax build rejects pipeline_mode=pl.Buffered(1).
    for single_buf in (True, False):
        try:
            out = fwd(params, x, fg_mask, att_score,
                      single_buffer_invariants=single_buf)
            jax.block_until_ready(out)
            break
        except Exception:
            if not single_buf:
                raise

    ref = _harmony_rec_blocks_ref(params, x, att_score)
    assert out.shape == (B, dim, H, W)
    err = float(jnp.max(jnp.abs(out - ref)))
    assert err < 1e-3, f"max abs error {err}"

    print("KERNEL_OK")
</pallas_src>

<mosaic_0001>
module attributes {stable_mosaic.version = 11 : i64} {
  func.func @_harmony_blocks_kernel(%arg0: i32, %arg1: memref<1x32x256xf32, #tpu.memory_space<vmem>>, %arg2: memref<1x256x256xf32, #tpu.memory_space<vmem>>, %arg3: memref<2x288x64xf32, #tpu.memory_space<vmem>>, %arg4: memref<2x32x1xf32, #tpu.memory_space<vmem>>, %arg5: memref<1x32x256xf32, #tpu.memory_space<vmem>>, %arg6: memref<288x256xf32, #tpu.memory_space<vmem>>) attributes {dimension_semantics = [#tpu.dimension_semantics<parallel>], iteration_bounds = array<i64: 2>, scalar_prefetch = 0 : i64, scratch_operands = 1 : i64, tpu.core_type = #tpu.core_type<tc>, window_params = [{transform_indices = @transform_0, window_bounds = array<i64: 1, 32, 256>}, {transform_indices = @transform_1, window_bounds = array<i64: 1, 256, 256>}, {pipeline_mode = #tpu.pipeline_mode<synchronous>, transform_indices = @transform_2, window_bounds = array<i64: 2, 288, 64>}, {pipeline_mode = #tpu.pipeline_mode<synchronous>, transform_indices = @transform_3, window_bounds = array<i64: 2, 32, 1>}, {transform_indices = @transform_4, window_bounds = array<i64: 1, 32, 256>}]} {
    %0 = tpu.iota {dimensions = array<i32: 1>} : vector<32x256xi32>
    %c16_i32 = arith.constant 16 : i32
    %c0_i32 = arith.constant 0 : i32
    %1 = arith.cmpi eq, %c16_i32, %c0_i32 : i32
    %c1_i32 = arith.constant 1 : i32
    %2 = arith.select %1, %c1_i32, %c16_i32 : i32
    %3 = vector.broadcast %2 : i32 to vector<32x256xi32>
    %4 = arith.remsi %0, %3 : vector<32x256xi32>
    %c0_i32_0 = arith.constant 0 : i32
    %5 = vector.broadcast %c0_i32_0 : i32 to vector<32x256xi32>
    %6 = arith.cmpi ne, %4, %5 : vector<32x256xi32>
    %c0_i32_1 = arith.constant 0 : i32
    %7 = vector.broadcast %c0_i32_1 : i32 to vector<32x256xi32>
    %8 = arith.cmpi slt, %4, %7 : vector<32x256xi32>
    %c0_i32_2 = arith.constant 0 : i32
    %9 = arith.cmpi slt, %2, %c0_i32_2 : i32
    %10 = vector.broadcast %9 : i1 to vector<32x256xi1>
    %11 = vector.broadcast %10 : vector<32x256xi1> to vector<32x256xi1>
    %12 = arith.xori %8, %11 : vector<32x256xi1>
    %13 = arith.andi %12, %6 : vector<32x256xi1>
    %14 = vector.broadcast %2 : i32 to vector<32x256xi32>
    %15 = arith.addi %4, %14 : vector<32x256xi32>
    %16 = arith.select %13, %15, %4 : vector<32x256xi1>, vector<32x256xi32>
    %c0_i32_3 = arith.constant 0 : i32
    %17 = vector.broadcast %c0_i32_3 : i32 to vector<32x256xi32>
    %18 = arith.cmpi eq, %16, %17 : vector<32x256xi32>
    %c15_i32 = arith.constant 15 : i32
    %19 = vector.broadcast %c15_i32 : i32 to vector<32x256xi32>
    %20 = arith.cmpi eq, %16, %19 : vector<32x256xi32>
    %c16_i32_4 = arith.constant 16 : i32
    %21 = vector.broadcast %c16_i32_4 : i32 to vector<32x256xi32>
    %22 = arith.cmpi slt, %0, %21 : vector<32x256xi32>
    %c240_i32 = arith.constant 240 : i32
    %23 = vector.broadcast %c240_i32 : i32 to vector<32x256xi32>
    %24 = arith.cmpi sge, %0, %23 : vector<32x256xi32>
    %c0 = arith.constant 0 : index
    %c0_5 = arith.constant 0 : index
    %c0_6 = arith.constant 0 : index
    %25 = vector.load %arg1[%c0, %c0_5, %c0_6] : memref<1x32x256xf32, #tpu.memory_space<vmem>>, vector<1x32x256xf32>
    %26 = vector.shape_cast %25 : vector<1x32x256xf32> to vector<32x256xf32>
    %c0_7 = arith.constant 0 : index
    %c0_8 = arith.constant 0 : index
    %c0_9 = arith.constant 0 : index
    %27 = vector.load %arg2[%c0_7, %c0_8, %c0_9] : memref<1x256x256xf32, #tpu.memory_space<vmem>>, vector<1x256x256xf32>
    %28 = vector.shape_cast %27 : vector<1x256x256xf32> to vector<256x256xf32>
    %cst = arith.constant dense<0.000000e+00> : vector<32x256xf32>
    %29 = tpu.matmul %26, %28, %cst {dimension_numbers = #tpu.dot_dimension_numbers<[1], [0], [0], [1], [0, 0, 1, 1], [], []>} : vector<32x256xf32>, vector<256x256xf32>, vector<32x256xf32> -> vector<32x256xf32>
    %30 = tpu.concatenate %26, %29 in 0 : vector<32x256xf32>, vector<32x256xf32> -> vector<64x256xf32>
    %c0_10 = arith.constant 0 : index
    %c0_11 = arith.constant 0 : index
    %c0_12 = arith.constant 0 : index
    %31 = vector.load %arg3[%c0_10, %c0_11, %c0_12] : memref<2x288x64xf32, #tpu.memory_space<vmem>>, vector<1x288x64xf32>
    %32 = vector.shape_cast %31 : vector<1x288x64xf32> to vector<288x64xf32>
    %cst_13 = arith.constant dense<0.000000e+00> : vector<288x256xf32>
    %33 = tpu.matmul %32, %30, %cst_13 {dimension_numbers = #tpu.dot_dimension_numbers<[1], [0], [0], [1], [0, 0, 1, 1], [], []>} : vector<288x64xf32>, vector<64x256xf32>, vector<288x256xf32> -> vector<288x256xf32>
    %c0_14 = arith.constant 0 : index
    %c0_15 = arith.constant 0 : index
    %34 = vector.load %arg6[%c0_14, %c0_15] : memref<288x256xf32, #tpu.memory_space<vmem>>, vector<288x256xf32>
    tpu.vector_store %arg6[%c0_14, %c0_15], %33 {strides = array<i32>} : memref<288x256xf32, #tpu.memory_space<vmem>>, vector<288x256xf32>,
    %c0_16 = arith.constant 0 : index
    %c0_17 = arith.constant 0 : index
    %35 = vector.load %arg6[%c0_16, %c0_17] : memref<288x256xf32, #tpu.memory_space<vmem>>, vector<32x256xf32>
    %c1_i32_18 = arith.constant 1 : i32
    %36 = tpu.dynamic_rotate %35 by %c1_i32_18 dim 1 : vector<32x256xf32>, i32 -> vector<32x256xf32>
    %c255_i32 = arith.constant 255 : i32
    %37 = tpu.dynamic_rotate %35 by %c255_i32 dim 1 : vector<32x256xf32>, i32 -> vector<32x256xf32>
    %38 = arith.select %18, %37, %36 : vector<32x256xi1>, vector<32x256xf32>
    %c32 = arith.constant 32 : index
    %c0_19 = arith.constant 0 : index
    %39 = vector.load %arg6[%c32, %c0_19] : memref<288x256xf32, #tpu.memory_space<vmem>>, vector<32x256xf32>
    %40 = arith.addf %38, %39 : vector<32x256xf32>
    %c64 = arith.constant 64 : index
    %c0_20 = arith.constant 0 : index
    %41 = vector.load %arg6[%c64, %c0_20] : memref<288x256xf32, #tpu.memory_space<vmem>>, vector<32x256xf32>
    %c1_i32_21 = arith.constant 1 : i32
    %42 = tpu.dynamic_rotate %41 by %c1_i32_21 dim 1 : vector<32x256xf32>, i32 -> vector<32x256xf32>
    %c255_i32_22 = arith.constant 255 : i32
    %43 = tpu.dynamic_rotate %41 by %c255_i32_22 dim 1 : vector<32x256xf32>, i32 -> vector<32x256xf32>
    %44 = arith.select %20, %42, %43 : vector<32x256xi1>, vector<32x256xf32>
    %45 = arith.addf %40, %44 : vector<32x256xf32>
    %c16_i32_23 = arith.constant 16 : i32
    %46 = tpu.dynamic_rotate %45 by %c16_i32_23 dim 1 : vector<32x256xf32>, i32 -> vector<32x256xf32>
    %c240_i32_24 = arith.constant 240 : i32
    %47 = tpu.dynamic_rotate %45 by %c240_i32_24 dim 1 : vector<32x256xf32>, i32 -> vector<32x256xf32>
    %48 = arith.select %22, %47, %46 : vector<32x256xi1>, vector<32x256xf32>
    %c96 = arith.constant 96 : index
    %c0_25 = arith.constant 0 : index
    %49 = vector.load %arg6[%c96, %c0_25] : memref<288x256xf32, #tpu.memory_space<vmem>>, vector<32x256xf32>
    %c1_i32_26 = arith.constant 1 : i32
    %50 = tpu.dynamic_rotate %49 by %c1_i32_26 dim 1 : vector<32x256xf32>, i32 -> vector<32x256xf32>
    %c255_i32_27 = arith.constant 255 : i32
    %51 = tpu.dynamic_rotate %49 by %c255_i32_27 dim 1 : vector<32x256xf32>, i32 -> vector<32x256xf32>
    %52 = arith.select %18, %51, %50 : vector<32x256xi1>, vector<32x256xf32>
    %c128 = arith.constant 128 : index
    %c0_28 = arith.constant 0 : index
    %53 = vector.load %arg6[%c128, %c0_28] : memref<288x256xf32, #tpu.memory_space<vmem>>, vector<32x256xf32>
    %54 = arith.addf %52, %53 : vector<32x256xf32>
    %c160 = arith.constant 160 : index
    %c0_29 = arith.constant 0 : index
    %55 = vector.load %arg6[%c160, %c0_29] : memref<288x256xf32, #tpu.memory_space<vmem>>, vector<32x256xf32>
    %c1_i32_30 = arith.constant 1 : i32
    %56 = tpu.dynamic_rotate %55 by %c1_i32_30 dim 1 : vector<32x256xf32>, i32 -> vector<32x256xf32>
    %c255_i32_31 = arith.constant 255 : i32
    %57 = tpu.dynamic_rotate %55 by %c255_i32_31 dim 1 : vector<32x256xf32>, i32 -> vector<32x256xf32>
    %58 = arith.select %20, %56, %57 : vector<32x256xi1>, vector<32x256xf32>
    %59 = arith.addf %54, %58 : vector<32x256xf32>
    %60 = arith.addf %48, %59 : vector<32x256xf32>
    %c192 = arith.constant 192 : index
    %c0_32 = arith.constant 0 : index
    %61 = vector.load %arg6[%c192, %c0_32] : memref<288x256xf32, #tpu.memory_space<vmem>>, vector<32x256xf32>
    %c1_i32_33 = arith.constant 1 : i32
    %62 = tpu.dynamic_rotate %61 by %c1_i32_33 dim 1 : vector<32x256xf32>, i32 -> vector<32x256xf32>
    %c255_i32_34 = arith.constant 255 : i32
    %63 = tpu.dynamic_rotate %61 by %c255_i32_34 dim 1 : vector<32x256xf32>, i32 -> vector<32x256xf32>
    %64 = arith.select %18, %63, %62 : vector<32x256xi1>, vector<32x256xf32>
    %c224 = arith.constant 224 : index
    %c0_35 = arith.constant 0 : index
    %65 = vector.load %arg6[%c224, %c0_35] : memref<288x256xf32, #tpu.memory_space<vmem>>, vector<32x256xf32>
    %66 = arith.addf %64, %65 : vector<32x256xf32>
    %c256 = arith.constant 256 : index
    %c0_36 = arith.constant 0 : index
    %67 = vector.load %arg6[%c256, %c0_36] : memref<288x256xf32, #tpu.memory_space<vmem>>, vector<32x256xf32>
    %c1_i32_37 = arith.constant 1 : i32
    %68 = tpu.dynamic_rotate %67 by %c1_i32_37 dim 1 : vector<32x256xf32>, i32 -> vector<32x256xf32>
    %c255_i32_38 = arith.constant 255 : i32
    %69 = tpu.dynamic_rotate %67 by %c255_i32_38 dim 1 : vector<32x256xf32>, i32 -> vector<32x256xf32>
    %70 = arith.select %20, %68, %69 : vector<32x256xi1>, vector<32x256xf32>
    %71 = arith.addf %66, %70 : vector<32x256xf32>
    %c16_i32_39 = arith.constant 16 : i32
    %72 = tpu.dynamic_rotate %71 by %c16_i32_39 dim 1 : vector<32x256xf32>, i32 -> vector<32x256xf32>
    %c240_i32_40 = arith.constant 240 : i32
    %73 = tpu.dynamic_rotate %71 by %c240_i32_40 dim 1 : vector<32x256xf32>, i32 -> vector<32x256xf32>
    %74 = arith.select %24, %72, %73 : vector<32x256xi1>, vector<32x256xf32>
    %75 = arith.addf %60, %74 : vector<32x256xf32>
    %c0_41 = arith.constant 0 : index
    %c0_42 = arith.constant 0 : index
    %c0_43 = arith.constant 0 : index
    %76 = vector.load %arg4[%c0_41, %c0_42, %c0_43] : memref<2x32x1xf32, #tpu.memory_space<vmem>>, vector<1x32x1xf32>
    %77 = vector.shape_cast %76 : vector<1x32x1xf32> to vector<32x1xf32>
    %78 = vector.broadcast %77 : vector<32x1xf32> to vector<32x256xf32>
    %79 = arith.addf %75, %78 : vector<32x256xf32>
    %cst_44 = arith.constant 0.000000e+00 : f32
    %80 = vector.broadcast %cst_44 : f32 to vector<32x256xf32>
    %81 = arith.maximumf %79, %80 : vector<32x256xf32>
    %82 = arith.addf %81, %26 : vector<32x256xf32>
    %cst_45 = arith.constant dense<0.000000e+00> : vector<32x256xf32>
    %83 = tpu.matmul %82, %28, %cst_45 {dimension_numbers = #tpu.dot_dimension_numbers<[1], [0], [0], [1], [0, 0, 1, 1], [], []>} : vector<32x256xf32>, vector<256x256xf32>, vector<32x256xf32> -> vector<32x256xf32>
    %84 = tpu.concatenate %82, %83 in 0 : vector<32x256xf32>, vector<32x256xf32> -> vector<64x256xf32>
    %c1 = arith.constant 1 : index
    %c0_46 = arith.constant 0 : index
    %c0_47 = arith.constant 0 : index
    %85 = vector.load %arg3[%c1, %c0_46, %c0_47] : memref<2x288x64xf32, #tpu.memory_space<vmem>>, vector<1x288x64xf32>
    %86 = vector.shape_cast %85 : vector<1x288x64xf32> to vector<288x64xf32>
    %cst_48 = arith.constant dense<0.000000e+00> : vector<288x256xf32>
    %87 = tpu.matmul %86, %84, %cst_48 {dimension_numbers = #tpu.dot_dimension_numbers<[1], [0], [0], [1], [0, 0, 1, 1], [], []>} : vector<288x64xf32>, vector<64x256xf32>, vector<288x256xf32> -> vector<288x256xf32>
    %c0_49 = arith.constant 0 : index
    %c0_50 = arith.constant 0 : index
    %88 = vector.load %arg6[%c0_49, %c0_50] : memref<288x256xf32, #tpu.memory_space<vmem>>, vector<288x256xf32>
    tpu.vector_store %arg6[%c0_49, %c0_50], %87 {strides = array<i32>} : memref<288x256xf32, #tpu.memory_space<vmem>>, vector<288x256xf32>,
    %c0_51 = arith.constant 0 : index
    %c0_52 = arith.constant 0 : index
    %89 = vector.load %arg6[%c0_51, %c0_52] : memref<288x256xf32, #tpu.memory_space<vmem>>, vector<32x256xf32>
    %c1_i32_53 = arith.constant 1 : i32
    %90 = tpu.dynamic_rotate %89 by %c1_i32_53 dim 1 : vector<32x256xf32>, i32 -> vector<32x256xf32>
    %c255_i32_54 = arith.constant 255 : i32
    %91 = tpu.dynamic_rotate %89 by %c255_i32_54 dim 1 : vector<32x256xf32>, i32 -> vector<32x256xf32>
    %92 = arith.select %18, %91, %90 : vector<32x256xi1>, vector<32x256xf32>
    %c32_55 = arith.constant 32 : index
    %c0_56 = arith.constant 0 : index
    %93 = vector.load %arg6[%c32_55, %c0_56] : memref<288x256xf32, #tpu.memory_space<vmem>>, vector<32x256xf32>
    %94 = arith.addf %92, %93 : vector<32x256xf32>
    %c64_57 = arith.constant 64 : index
    %c0_58 = arith.constant 0 : index
    %95 = vector.load %arg6[%c64_57, %c0_58] : memref<288x256xf32, #tpu.memory_space<vmem>>, vector<32x256xf32>
    %c1_i32_59 = arith.constant 1 : i32
    %96 = tpu.dynamic_rotate %95 by %c1_i32_59 dim 1 : vector<32x256xf32>, i32 -> vector<32x256xf32>
    %c255_i32_60 = arith.constant 255 : i32
    %97 = tpu.dynamic_rotate %95 by %c255_i32_60 dim 1 : vector<32x256xf32>, i32 -> vector<32x256xf32>
    %98 = arith.select %20, %96, %97 : vector<32x256xi1>, vector<32x256xf32>
    %99 = arith.addf %94, %98 : vector<32x256xf32>
    %c16_i32_61 = arith.constant 16 : i32
    %100 = tpu.dynamic_rotate %99 by %c16_i32_61 dim 1 : vector<32x256xf32>, i32 -> vector<32x256xf32>
    %c240_i32_62 = arith.constant 240 : i32
    %101 = tpu.dynamic_rotate %99 by %c240_i32_62 dim 1 : vector<32x256xf32>, i32 -> vector<32x256xf32>
    %102 = arith.select %22, %101, %100 : vector<32x256xi1>, vector<32x256xf32>
    %c96_63 = arith.constant 96 : index
    %c0_64 = arith.constant 0 : index
    %103 = vector.load %arg6[%c96_63, %c0_64] : memref<288x256xf32, #tpu.memory_space<vmem>>, vector<32x256xf32>
    %c1_i32_65 = arith.constant 1 : i32
    %104 = tpu.dynamic_rotate %103 by %c1_i32_65 dim 1 : vector<32x256xf32>, i32 -> vector<32x256xf32>
    %c255_i32_66 = arith.constant 255 : i32
    %105 = tpu.dynamic_rotate %103 by %c255_i32_66 dim 1 : vector<32x256xf32>, i32 -> vector<32x256xf32>
    %106 = arith.select %18, %105, %104 : vector<32x256xi1>, vector<32x256xf32>
    %c128_67 = arith.constant 128 : index
    %c0_68 = arith.constant 0 : index
    %107 = vector.load %arg6[%c128_67, %c0_68] : memref<288x256xf32, #tpu.memory_space<vmem>>, vector<32x256xf32>
    %108 = arith.addf %106, %107 : vector<32x256xf32>
    %c160_69 = arith.constant 160 : index
    %c0_70 = arith.constant 0 : index
    %109 = vector.load %arg6[%c160_69, %c0_70] : memref<288x256xf32, #tpu.memory_space<vmem>>, vector<32x256xf32>
    %c1_i32_71 = arith.constant 1 : i32
    %110 = tpu.dynamic_rotate %109 by %c1_i32_71 dim 1 : vector<32x256xf32>, i32 -> vector<32x256xf32>
    %c255_i32_72 = arith.constant 255 : i32
    %111 = tpu.dynamic_rotate %109 by %c255_i32_72 dim 1 : vector<32x256xf32>, i32 -> vector<32x256xf32>
    %112 = arith.select %20, %110, %111 : vector<32x256xi1>, vector<32x256xf32>
    %113 = arith.addf %108, %112 : vector<32x256xf32>
    %114 = arith.addf %102, %113 : vector<32x256xf32>
    %c192_73 = arith.constant 192 : index
    %c0_74 = arith.constant 0 : index
    %115 = vector.load %arg6[%c192_73, %c0_74] : memref<288x256xf32, #tpu.memory_space<vmem>>, vector<32x256xf32>
    %c1_i32_75 = arith.constant 1 : i32
    %116 = tpu.dynamic_rotate %115 by %c1_i32_75 dim 1 : vector<32x256xf32>, i32 -> vector<32x256xf32>
    %c255_i32_76 = arith.constant 255 : i32
    %117 = tpu.dynamic_rotate %115 by %c255_i32_76 dim 1 : vector<32x256xf32>, i32 -> vector<32x256xf32>
    %118 = arith.select %18, %117, %116 : vector<32x256xi1>, vector<32x256xf32>
    %c224_77 = arith.constant 224 : index
    %c0_78 = arith.constant 0 : index
    %119 = vector.load %arg6[%c224_77, %c0_78] : memref<288x256xf32, #tpu.memory_space<vmem>>, vector<32x256xf32>
    %120 = arith.addf %118, %119 : vector<32x256xf32>
    %c256_79 = arith.constant 256 : index
    %c0_80 = arith.constant 0 : index
    %121 = vector.load %arg6[%c256_79, %c0_80] : memref<288x256xf32, #tpu.memory_space<vmem>>, vector<32x256xf32>
    %c1_i32_81 = arith.constant 1 : i32
    %122 = tpu.dynamic_rotate %121 by %c1_i32_81 dim 1 : vector<32x256xf32>, i32 -> vector<32x256xf32>
    %c255_i32_82 = arith.constant 255 : i32
    %123 = tpu.dynamic_rotate %121 by %c255_i32_82 dim 1 : vector<32x256xf32>, i32 -> vector<32x256xf32>
    %124 = arith.select %20, %122, %123 : vector<32x256xi1>, vector<32x256xf32>
    %125 = arith.addf %120, %124 : vector<32x256xf32>
    %c16_i32_83 = arith.constant 16 : i32
    %126 = tpu.dynamic_rotate %125 by %c16_i32_83 dim 1 : vector<32x256xf32>, i32 -> vector<32x256xf32>
    %c240_i32_84 = arith.constant 240 : i32
    %127 = tpu.dynamic_rotate %125 by %c240_i32_84 dim 1 : vector<32x256xf32>, i32 -> vector<32x256xf32>
    %128 = arith.select %24, %126, %127 : vector<32x256xi1>, vector<32x256xf32>
    %129 = arith.addf %114, %128 : vector<32x256xf32>
    %c1_85 = arith.constant 1 : index
    %c0_86 = arith.constant 0 : index
    %c0_87 = arith.constant 0 : index
    %130 = vector.load %arg4[%c1_85, %c0_86, %c0_87] : memref<2x32x1xf32, #tpu.memory_space<vmem>>, vector<1x32x1xf32>
    %131 = vector.shape_cast %130 : vector<1x32x1xf32> to vector<32x1xf32>
    %132 = vector.broadcast %131 : vector<32x1xf32> to vector<32x256xf32>
    %133 = arith.addf %129, %132 : vector<32x256xf32>
    %cst_88 = arith.constant 0.000000e+00 : f32
    %134 = vector.broadcast %cst_88 : f32 to vector<32x256xf32>
    %135 = arith.maximumf %133, %134 : vector<32x256xf32>
    %136 = arith.addf %135, %82 : vector<32x256xf32>
    %c0_89 = arith.constant 0 : index
    %c0_90 = arith.constant 0 : index
    %c0_91 = arith.constant 0 : index
    %137 = vector.load %arg5[%c0_89, %c0_90, %c0_91] : memref<1x32x256xf32, #tpu.memory_space<vmem>>, vector<1x32x256xf32>
    %138 = vector.shape_cast %137 : vector<1x32x256xf32> to vector<32x256xf32>
    %139 = vector.shape_cast %136 : vector<32x256xf32> to vector<1x32x256xf32>
    tpu.vector_store %arg5[%c0_89, %c0_90, %c0_91], %139 {strides = array<i32>} : memref<1x32x256xf32, #tpu.memory_space<vmem>>, vector<1x32x256xf32>,
    return
  }
  func.func @transform_0(%arg0: i32) -> (i32, i32, i32) {
    %c0_i32 = arith.constant 0 : i32
    %c0_i32_0 = arith.constant 0 : i32
    %c0_i32_1 = arith.constant 0 : i32
    return %arg0, %c0_i32, %c0_i32_0 : i32, i32, i32
  }
  func.func @transform_1(%arg0: i32) -> (i32, i32, i32) {
    %c0_i32 = arith.constant 0 : i32
    %c0_i32_0 = arith.constant 0 : i32
    %c0_i32_1 = arith.constant 0 : i32
    return %arg0, %c0_i32, %c0_i32_0 : i32, i32, i32
  }
  func.func @transform_2(%arg0: i32) -> (i32, i32, i32) {
    %c0_i32 = arith.constant 0 : i32
    %c0_i32_0 = arith.constant 0 : i32
    %c0_i32_1 = arith.constant 0 : i32
    %c0_i32_2 = arith.constant 0 : i32
    return %c0_i32, %c0_i32_0, %c0_i32_1 : i32, i32, i32
  }
  func.func @transform_3(%arg0: i32) -> (i32, i32, i32) {
    %c0_i32 = arith.constant 0 : i32
    %c0_i32_0 = arith.constant 0 : i32
    %c0_i32_1 = arith.constant 0 : i32
    %c0_i32_2 = arith.constant 0 : i32
    return %c0_i32, %c0_i32_0, %c0_i32_1 : i32, i32, i32
  }
  func.func @transform_4(%arg0: i32) -> (i32, i32, i32) {
    %c0_i32 = arith.constant 0 : i32
    %c0_i32_0 = arith.constant 0 : i32
    %c0_i32_1 = arith.constant 0 : i32
    return %arg0, %c0_i32, %c0_i32_0 : i32, i32, i32
  }
}

module attributes {stable_mosaic.version = 11 : i64} {
  func.func @_harmony_blocks_kernel(%arg0: i32, %arg1: memref<1x32x256xf32, #tpu.memory_space<vmem>>, %arg2: memref<1x256x256xf32, #tpu.memory_space<vmem>>, %arg3: memref<2x288x64xf32, #tpu.memory_space<vmem>>, %arg4: memref<2x32x1xf32, #tpu.memory_space<vmem>>, %arg5: memref<1x32x256xf32, #tpu.memory_space<vmem>>, %arg6: memref<288x256xf32, #tpu.memory_space<vmem>>) attributes {dimension_semantics = [#tpu.dimension_semantics<parallel>], iteration_bounds = array<i64: 2>, scalar_prefetch = 0 : i64, scratch_operands = 1 : i64, tpu.core_type = #tpu.core_type<tc>, window_params = [{transform_indices = @transform_0, window_bounds = array<i64: 1, 32, 256>}, {transform_indices = @transform_1, window_bounds = array<i64: 1, 256, 256>}, {pipeline_mode = #tpu.pipeline_mode<synchronous>, transform_indices = @transform_2, window_bounds = array<i64: 2, 288, 64>}, {pipeline_mode = #tpu.pipeline_mode<synchronous>, transform_indices = @transform_3, window_bounds = array<i64: 2, 32, 1>}, {transform_indices = @transform_4, window_bounds = array<i64: 1, 32, 256>}]} {
    %0 = tpu.iota {dimensions = array<i32: 1>} : vector<32x256xi32>
    %c16_i32 = arith.constant 16 : i32
    %c0_i32 = arith.constant 0 : i32
    %1 = arith.cmpi eq, %c16_i32, %c0_i32 : i32
    %c1_i32 = arith.constant 1 : i32
    %2 = arith.select %1, %c1_i32, %c16_i32 : i32
    %3 = vector.broadcast %2 : i32 to vector<32x256xi32>
    %4 = arith.remsi %0, %3 : vector<32x256xi32>
    %c0_i32_0 = arith.constant 0 : i32
    %5 = vector.broadcast %c0_i32_0 : i32 to vector<32x256xi32>
    %6 = arith.cmpi ne, %4, %5 : vector<32x256xi32>
    %c0_i32_1 = arith.constant 0 : i32
    %7 = vector.broadcast %c0_i32_1 : i32 to vector<32x256xi32>
    %8 = arith.cmpi slt, %4, %7 : vector<32x256xi32>
    %c0_i32_2 = arith.constant 0 : i32
    %9 = arith.cmpi slt, %2, %c0_i32_2 : i32
    %10 = vector.broadcast %9 : i1 to vector<32x256xi1>
    %11 = vector.broadcast %10 : vector<32x256xi1> to vector<32x256xi1>
    %12 = arith.xori %8, %11 : vector<32x256xi1>
    %13 = arith.andi %12, %6 : vector<32x256xi1>
    %14 = vector.broadcast %2 : i32 to vector<32x256xi32>
    %15 = arith.addi %4, %14 : vector<32x256xi32>
    %16 = arith.select %13, %15, %4 : vector<32x256xi1>, vector<32x256xi32>
    %c0_i32_3 = arith.constant 0 : i32
    %17 = vector.broadcast %c0_i32_3 : i32 to vector<32x256xi32>
    %18 = arith.cmpi eq, %16, %17 : vector<32x256xi32>
    %c15_i32 = arith.constant 15 : i32
    %19 = vector.broadcast %c15_i32 : i32 to vector<32x256xi32>
    %20 = arith.cmpi eq, %16, %19 : vector<32x256xi32>
    %c16_i32_4 = arith.constant 16 : i32
    %21 = vector.broadcast %c16_i32_4 : i32 to vector<32x256xi32>
    %22 = arith.cmpi slt, %0, %21 : vector<32x256xi32>
    %c240_i32 = arith.constant 240 : i32
    %23 = vector.broadcast %c240_i32 : i32 to vector<32x256xi32>
    %24 = arith.cmpi sge, %0, %23 : vector<32x256xi32>
    %c0 = arith.constant 0 : index
    %c0_5 = arith.constant 0 : index
    %c0_6 = arith.constant 0 : index
    %25 = vector.load %arg1[%c0, %c0_5, %c0_6] : memref<1x32x256xf32, #tpu.memory_space<vmem>>, vector<1x32x256xf32>
    %26 = vector.shape_cast %25 : vector<1x32x256xf32> to vector<32x256xf32>
    %c0_7 = arith.constant 0 : index
    %c0_8 = arith.constant 0 : index
    %c0_9 = arith.constant 0 : index
    %27 = vector.load %arg2[%c0_7, %c0_8, %c0_9] : memref<1x256x256xf32, #tpu.memory_space<vmem>>, vector<1x256x256xf32>
    %28 = vector.shape_cast %27 : vector<1x256x256xf32> to vector<256x256xf32>
    %cst = arith.constant dense<0.000000e+00> : vector<32x256xf32>
    %29 = tpu.matmul %26, %28, %cst {dimension_numbers = #tpu.dot_dimension_numbers<[1], [0], [0], [1], [0, 0, 1, 1], [], []>} : vector<32x256xf32>, vector<256x256xf32>, vector<32x256xf32> -> vector<32x256xf32>
    %30 = tpu.concatenate %26, %29 in 0 : vector<32x256xf32>, vector<32x256xf32> -> vector<64x256xf32>
    %c0_10 = arith.constant 0 : index
    %c0_11 = arith.constant 0 : index
    %c0_12 = arith.constant 0 : index
    %31 = vector.load %arg3[%c0_10, %c0_11, %c0_12] : memref<2x288x64xf32, #tpu.memory_space<vmem>>, vector<1x288x64xf32>
    %32 = vector.shape_cast %31 : vector<1x288x64xf32> to vector<288x64xf32>
    %cst_13 = arith.constant dense<0.000000e+00> : vector<288x256xf32>
    %33 = tpu.matmul %32, %30, %cst_13 {dimension_numbers = #tpu.dot_dimension_numbers<[1], [0], [0], [1], [0, 0, 1, 1], [], []>} : vector<288x64xf32>, vector<64x256xf32>, vector<288x256xf32> -> vector<288x256xf32>
    %c0_14 = arith.constant 0 : index
    %c0_15 = arith.constant 0 : index
    %34 = vector.load %arg6[%c0_14, %c0_15] : memref<288x256xf32, #tpu.memory_space<vmem>>, vector<288x256xf32>
    tpu.vector_store %arg6[%c0_14, %c0_15], %33 {strides = array<i32>} : memref<288x256xf32, #tpu.memory_space<vmem>>, vector<288x256xf32>,
    %c0_16 = arith.constant 0 : index
    %c0_17 = arith.constant 0 : index
    %35 = vector.load %arg6[%c0_16, %c0_17] : memref<288x256xf32, #tpu.memory_space<vmem>>, vector<32x256xf32>
    %c1_i32_18 = arith.constant 1 : i32
    %36 = tpu.dynamic_rotate %35 by %c1_i32_18 dim 1 : vector<32x256xf32>, i32 -> vector<32x256xf32>
    %c255_i32 = arith.constant 255 : i32
    %37 = tpu.dynamic_rotate %35 by %c255_i32 dim 1 : vector<32x256xf32>, i32 -> vector<32x256xf32>
    %38 = arith.select %18, %37, %36 : vector<32x256xi1>, vector<32x256xf32>
    %c32 = arith.constant 32 : index
    %c0_19 = arith.constant 0 : index
    %39 = vector.load %arg6[%c32, %c0_19] : memref<288x256xf32, #tpu.memory_space<vmem>>, vector<32x256xf32>
    %40 = arith.addf %38, %39 : vector<32x256xf32>
    %c64 = arith.constant 64 : index
    %c0_20 = arith.constant 0 : index
    %41 = vector.load %arg6[%c64, %c0_20] : memref<288x256xf32, #tpu.memory_space<vmem>>, vector<32x256xf32>
    %c1_i32_21 = arith.constant 1 : i32
    %42 = tpu.dynamic_rotate %41 by %c1_i32_21 dim 1 : vector<32x256xf32>, i32 -> vector<32x256xf32>
    %c255_i32_22 = arith.constant 255 : i32
    %43 = tpu.dynamic_rotate %41 by %c255_i32_22 dim 1 : vector<32x256xf32>, i32 -> vector<32x256xf32>
    %44 = arith.select %20, %42, %43 : vector<32x256xi1>, vector<32x256xf32>
    %45 = arith.addf %40, %44 : vector<32x256xf32>
    %c16_i32_23 = arith.constant 16 : i32
    %46 = tpu.dynamic_rotate %45 by %c16_i32_23 dim 1 : vector<32x256xf32>, i32 -> vector<32x256xf32>
    %c240_i32_24 = arith.constant 240 : i32
    %47 = tpu.dynamic_rotate %45 by %c240_i32_24 dim 1 : vector<32x256xf32>, i32 -> vector<32x256xf32>
    %48 = arith.select %22, %47, %46 : vector<32x256xi1>, vector<32x256xf32>
    %c96 = arith.constant 96 : index
    %c0_25 = arith.constant 0 : index
    %49 = vector.load %arg6[%c96, %c0_25] : memref<288x256xf32, #tpu.memory_space<vmem>>, vector<32x256xf32>
    %c1_i32_26 = arith.constant 1 : i32
    %50 = tpu.dynamic_rotate %49 by %c1_i32_26 dim 1 : vector<32x256xf32>, i32 -> vector<32x256xf32>
    %c255_i32_27 = arith.constant 255 : i32
    %51 = tpu.dynamic_rotate %49 by %c255_i32_27 dim 1 : vector<32x256xf32>, i32 -> vector<32x256xf32>
    %52 = arith.select %18, %51, %50 : vector<32x256xi1>, vector<32x256xf32>
    %c128 = arith.constant 128 : index
    %c0_28 = arith.constant 0 : index
    %53 = vector.load %arg6[%c128, %c0_28] : memref<288x256xf32, #tpu.memory_space<vmem>>, vector<32x256xf32>
    %54 = arith.addf %52, %53 : vector<32x256xf32>
    %c160 = arith.constant 160 : index
    %c0_29 = arith.constant 0 : index
    %55 = vector.load %arg6[%c160, %c0_29] : memref<288x256xf32, #tpu.memory_space<vmem>>, vector<32x256xf32>
    %c1_i32_30 = arith.constant 1 : i32
    %56 = tpu.dynamic_rotate %55 by %c1_i32_30 dim 1 : vector<32x256xf32>, i32 -> vector<32x256xf32>
    %c255_i32_31 = arith.constant 255 : i32
    %57 = tpu.dynamic_rotate %55 by %c255_i32_31 dim 1 : vector<32x256xf32>, i32 -> vector<32x256xf32>
    %58 = arith.select %20, %56, %57 : vector<32x256xi1>, vector<32x256xf32>
    %59 = arith.addf %54, %58 : vector<32x256xf32>
    %60 = arith.addf %48, %59 : vector<32x256xf32>
    %c192 = arith.constant 192 : index
    %c0_32 = arith.constant 0 : index
    %61 = vector.load %arg6[%c192, %c0_32] : memref<288x256xf32, #tpu.memory_space<vmem>>, vector<32x256xf32>
    %c1_i32_33 = arith.constant 1 : i32
    %62 = tpu.dynamic_rotate %61 by %c1_i32_33 dim 1 : vector<32x256xf32>, i32 -> vector<32x256xf32>
    %c255_i32_34 = arith.constant 255 : i32
    %63 = tpu.dynamic_rotate %61 by %c255_i32_34 dim 1 : vector<32x256xf32>, i32 -> vector<32x256xf32>
    %64 = arith.select %18, %63, %62 : vector<32x256xi1>, vector<32x256xf32>
    %c224 = arith.constant 224 : index
    %c0_35 = arith.constant 0 : index
    %65 = vector.load %arg6[%c224, %c0_35] : memref<288x256xf32, #tpu.memory_space<vmem>>, vector<32x256xf32>
    %66 = arith.addf %64, %65 : vector<32x256xf32>
    %c256 = arith.constant 256 : index
    %c0_36 = arith.constant 0 : index
    %67 = vector.load %arg6[%c256, %c0_36] : memref<288x256xf32, #tpu.memory_space<vmem>>, vector<32x256xf32>
    %c1_i32_37 = arith.constant 1 : i32
    %68 = tpu.dynamic_rotate %67 by %c1_i32_37 dim 1 : vector<32x256xf32>, i32 -> vector<32x256xf32>
    %c255_i32_38 = arith.constant 255 : i32
    %69 = tpu.dynamic_rotate %67 by %c255_i32_38 dim 1 : vector<32x256xf32>, i32 -> vector<32x256xf32>
    %70 = arith.select %20, %68, %69 : vector<32x256xi1>, vector<32x256xf32>
    %71 = arith.addf %66, %70 : vector<32x256xf32>
    %c16_i32_39 = arith.constant 16 : i32
    %72 = tpu.dynamic_rotate %71 by %c16_i32_39 dim 1 : vector<32x256xf32>, i32 -> vector<32x256xf32>
    %c240_i32_40 = arith.constant 240 : i32
    %73 = tpu.dynamic_rotate %71 by %c240_i32_40 dim 1 : vector<32x256xf32>, i32 -> vector<32x256xf32>
    %74 = arith.select %24, %72, %73 : vector<32x256xi1>, vector<32x256xf32>
    %75 = arith.addf %60, %74 : vector<32x256xf32>
    %c0_41 = arith.constant 0 : index
    %c0_42 = arith.constant 0 : index
    %c0_43 = arith.constant 0 : index
    %76 = vector.load %arg4[%c0_41, %c0_42, %c0_43] : memref<2x32x1xf32, #tpu.memory_space<vmem>>, vector<1x32x1xf32>
    %77 = vector.shape_cast %76 : vector<1x32x1xf32> to vector<32x1xf32>
    %78 = vector.broadcast %77 : vector<32x1xf32> to vector<32x256xf32>
    %79 = arith.addf %75, %78 : vector<32x256xf32>
    %cst_44 = arith.constant 0.000000e+00 : f32
    %80 = vector.broadcast %cst_44 : f32 to vector<32x256xf32>
    %81 = arith.maximumf %79, %80 : vector<32x256xf32>
    %82 = arith.addf %81, %26 : vector<32x256xf32>
    %cst_45 = arith.constant dense<0.000000e+00> : vector<32x256xf32>
    %83 = tpu.matmul %82, %28, %cst_45 {dimension_numbers = #tpu.dot_dimension_numbers<[1], [0], [0], [1], [0, 0, 1, 1], [], []>} : vector<32x256xf32>, vector<256x256xf32>, vector<32x256xf32> -> vector<32x256xf32>
    %84 = tpu.concatenate %82, %83 in 0 : vector<32x256xf32>, vector<32x256xf32> -> vector<64x256xf32>
    %c1 = arith.constant 1 : index
    %c0_46 = arith.constant 0 : index
    %c0_47 = arith.constant 0 : index
    %85 = vector.load %arg3[%c1, %c0_46, %c0_47] : memref<2x288x64xf32, #tpu.memory_space<vmem>>, vector<1x288x64xf32>
    %86 = vector.shape_cast %85 : vector<1x288x64xf32> to vector<288x64xf32>
    %cst_48 = arith.constant dense<0.000000e+00> : vector<288x256xf32>
    %87 = tpu.matmul %86, %84, %cst_48 {dimension_numbers = #tpu.dot_dimension_numbers<[1], [0], [0], [1], [0, 0, 1, 1], [], []>} : vector<288x64xf32>, vector<64x256xf32>, vector<288x256xf32> -> vector<288x256xf32>
    %c0_49 = arith.constant 0 : index
    %c0_50 = arith.constant 0 : index
    %88 = vector.load %arg6[%c0_49, %c0_50] : memref<288x256xf32, #tpu.memory_space<vmem>>, vector<288x256xf32>
    tpu.vector_store %arg6[%c0_49, %c0_50], %87 {strides = array<i32>} : memref<288x256xf32, #tpu.memory_space<vmem>>, vector<288x256xf32>,
    %c0_51 = arith.constant 0 : index
    %c0_52 = arith.constant 0 : index
    %89 = vector.load %arg6[%c0_51, %c0_52] : memref<288x256xf32, #tpu.memory_space<vmem>>, vector<32x256xf32>
    %c1_i32_53 = arith.constant 1 : i32
    %90 = tpu.dynamic_rotate %89 by %c1_i32_53 dim 1 : vector<32x256xf32>, i32 -> vector<32x256xf32>
    %c255_i32_54 = arith.constant 255 : i32
    %91 = tpu.dynamic_rotate %89 by %c255_i32_54 dim 1 : vector<32x256xf32>, i32 -> vector<32x256xf32>
    %92 = arith.select %18, %91, %90 : vector<32x256xi1>, vector<32x256xf32>
    %c32_55 = arith.constant 32 : index
    %c0_56 = arith.constant 0 : index
    %93 = vector.load %arg6[%c32_55, %c0_56] : memref<288x256xf32, #tpu.memory_space<vmem>>, vector<32x256xf32>
    %94 = arith.addf %92, %93 : vector<32x256xf32>
    %c64_57 = arith.constant 64 : index
    %c0_58 = arith.constant 0 : index
    %95 = vector.load %arg6[%c64_57, %c0_58] : memref<288x256xf32, #tpu.memory_space<vmem>>, vector<32x256xf32>
    %c1_i32_59 = arith.constant 1 : i32
    %96 = tpu.dynamic_rotate %95 by %c1_i32_59 dim 1 : vector<32x256xf32>, i32 -> vector<32x256xf32>
    %c255_i32_60 = arith.constant 255 : i32
    %97 = tpu.dynamic_rotate %95 by %c255_i32_60 dim 1 : vector<32x256xf32>, i32 -> vector<32x256xf32>
    %98 = arith.select %20, %96, %97 : vector<32x256xi1>, vector<32x256xf32>
    %99 = arith.addf %94, %98 : vector<32x256xf32>
    %c16_i32_61 = arith.constant 16 : i32
    %100 = tpu.dynamic_rotate %99 by %c16_i32_61 dim 1 : vector<32x256xf32>, i32 -> vector<32x256xf32>
    %c240_i32_62 = arith.constant 240 : i32
    %101 = tpu.dynamic_rotate %99 by %c240_i32_62 dim 1 : vector<32x256xf32>, i32 -> vector<32x256xf32>
    %102 = arith.select %22, %101, %100 : vector<32x256xi1>, vector<32x256xf32>
    %c96_63 = arith.constant 96 : index
    %c0_64 = arith.constant 0 : index
    %103 = vector.load %arg6[%c96_63, %c0_64] : memref<288x256xf32, #tpu.memory_space<vmem>>, vector<32x256xf32>
    %c1_i32_65 = arith.constant 1 : i32
    %104 = tpu.dynamic_rotate %103 by %c1_i32_65 dim 1 : vector<32x256xf32>, i32 -> vector<32x256xf32>
    %c255_i32_66 = arith.constant 255 : i32
    %105 = tpu.dynamic_rotate %103 by %c255_i32_66 dim 1 : vector<32x256xf32>, i32 -> vector<32x256xf32>
    %106 = arith.select %18, %105, %104 : vector<32x256xi1>, vector<32x256xf32>
    %c128_67 = arith.constant 128 : index
    %c0_68 = arith.constant 0 : index
    %107 = vector.load %arg6[%c128_67, %c0_68] : memref<288x256xf32, #tpu.memory_space<vmem>>, vector<32x256xf32>
    %108 = arith.addf %106, %107 : vector<32x256xf32>
    %c160_69 = arith.constant 160 : index
    %c0_70 = arith.constant 0 : index
    %109 = vector.load %arg6[%c160_69, %c0_70] : memref<288x256xf32, #tpu.memory_space<vmem>>, vector<32x256xf32>
    %c1_i32_71 = arith.constant 1 : i32
    %110 = tpu.dynamic_rotate %109 by %c1_i32_71 dim 1 : vector<32x256xf32>, i32 -> vector<32x256xf32>
    %c255_i32_72 = arith.constant 255 : i32
    %111 = tpu.dynamic_rotate %109 by %c255_i32_72 dim 1 : vector<32x256xf32>, i32 -> vector<32x256xf32>
    %112 = arith.select %20, %110, %111 : vector<32x256xi1>, vector<32x256xf32>
    %113 = arith.addf %108, %112 : vector<32x256xf32>
    %114 = arith.addf %102, %113 : vector<32x256xf32>
    %c192_73 = arith.constant 192 : index
    %c0_74 = arith.constant 0 : index
    %115 = vector.load %arg6[%c192_73, %c0_74] : memref<288x256xf32, #tpu.memory_space<vmem>>, vector<32x256xf32>
    %c1_i32_75 = arith.constant 1 : i32
    %116 = tpu.dynamic_rotate %115 by %c1_i32_75 dim 1 : vector<32x256xf32>, i32 -> vector<32x256xf32>
    %c255_i32_76 = arith.constant 255 : i32
    %117 = tpu.dynamic_rotate %115 by %c255_i32_76 dim 1 : vector<32x256xf32>, i32 -> vector<32x256xf32>
    %118 = arith.select %18, %117, %116 : vector<32x256xi1>, vector<32x256xf32>
    %c224_77 = arith.constant 224 : index
    %c0_78 = arith.constant 0 : index
    %119 = vector.load %arg6[%c224_77, %c0_78] : memref<288x256xf32, #tpu.memory_space<vmem>>, vector<32x256xf32>
    %120 = arith.addf %118, %119 : vector<32x256xf32>
    %c256_79 = arith.constant 256 : index
    %c0_80 = arith.constant 0 : index
    %121 = vector.load %arg6[%c256_79, %c0_80] : memref<288x256xf32, #tpu.memory_space<vmem>>, vector<32x256xf32>
    %c1_i32_81 = arith.constant 1 : i32
    %122 = tpu.dynamic_rotate %121 by %c1_i32_81 dim 1 : vector<32x256xf32>, i32 -> vector<32x256xf32>
    %c255_i32_82 = arith.constant 255 : i32
    %123 = tpu.dynamic_rotate %121 by %c255_i32_82 dim 1 : vector<32x256xf32>, i32 -> vector<32x256xf32>
    %124 = arith.select %20, %122, %123 : vector<32x256xi1>, vector<32x256xf32>
    %125 = arith.addf %120, %124 : vector<32x256xf32>
    %c16_i32_83 = arith.constant 16 : i32
    %126 = tpu.dynamic_rotate %125 by %c16_i32_83 dim 1 : vector<32x256xf32>, i32 -> vector<32x256xf32>
    %c240_i32_84 = arith.constant 240 : i32
    %127 = tpu.dynamic_rotate %125 by %c240_i32_84 dim 1 : vector<32x256xf32>, i32 -> vector<32x256xf32>
    %128 = arith.select %24, %126, %127 : vector<32x256xi1>, vector<32x256xf32>
    %129 = arith.addf %114, %128 : vector<32x256xf32>
    %c1_85 = arith.constant 1 : index
    %c0_86 = arith.constant 0 : index
    %c0_87 = arith.constant 0 : index
    %130 = vector.load %arg4[%c1_85, %c0_86, %c0_87] : memref<2x32x1xf32, #tpu.memory_space<vmem>>, vector<1x32x1xf32>
    %131 = vector.shape_cast %130 : vector<1x32x1xf32> to vector<32x1xf32>
    %132 = vector.broadcast %131 : vector<32x1xf32> to vector<32x256xf32>
    %133 = arith.addf %129, %132 : vector<32x256xf32>
    %cst_88 = arith.constant 0.000000e+00 : f32
    %134 = vector.broadcast %cst_88 : f32 to vector<32x256xf32>
    %135 = arith.maximumf %133, %134 : vector<32x256xf32>
    %136 = arith.addf %135, %82 : vector<32x256xf32>
    %c0_89 = arith.constant 0 : index
    %c0_90 = arith.constant 0 : index
    %c0_91 = arith.constant 0 : index
    %137 = vector.load %arg5[%c0_89, %c0_90, %c0_91] : memref<1x32x256xf32, #tpu.memory_space<vmem>>, vector<1x32x256xf32>
    %138 = vector.shape_cast %137 : vector<1x32x256xf32> to vector<32x256xf32>
    %139 = vector.shape_cast %136 : vector<32x256xf32> to vector<1x32x256xf32>
    tpu.vector_store %arg5[%c0_89, %c0_90, %c0_91], %139 {strides = array<i32>} : memref<1x32x256xf32, #tpu.memory_space<vmem>>, vector<1x32x256xf32>,
    return
  }
  func.func @transform_0(%arg0: i32) -> (i32, i32, i32) {
    %c0_i32 = arith.constant 0 : i32
    %c0_i32_0 = arith.constant 0 : i32
    %c0_i32_1 = arith.constant 0 : i32
    return %arg0, %c0_i32, %c0_i32_0 : i32, i32, i32
  }
  func.func @transform_1(%arg0: i32) -> (i32, i32, i32) {
    %c0_i32 = arith.constant 0 : i32
    %c0_i32_0 = arith.constant 0 : i32
    %c0_i32_1 = arith.constant 0 : i32
    return %arg0, %c0_i32, %c0_i32_0 : i32, i32, i32
  }
  func.func @transform_2(%arg0: i32) -> (i32, i32, i32) {
    %c0_i32 = arith.constant 0 : i32
    %c0_i32_0 = arith.constant 0 : i32
    %c0_i32_1 = arith.constant 0 : i32
    %c0_i32_2 = arith.constant 0 : i32
    return %c0_i32, %c0_i32_0, %c0_i32_1 : i32, i32, i32
  }
  func.func @transform_3(%arg0: i32) -> (i32, i32, i32) {
    %c0_i32 = arith.constant 0 : i32
    %c0_i32_0 = arith.constant 0 : i32
    %c0_i32_1 = arith.constant 0 : i32
    %c0_i32_2 = arith.constant 0 : i32
    return %c0_i32, %c0_i32_0, %c0_i32_1 : i32, i32, i32
  }
  func.func @transform_4(%arg0: i32) -> (i32, i32, i32) {
    %c0_i32 = arith.constant 0 : i32
    %c0_i32_0 = arith.constant 0 : i32
    %c0_i32_1 = arith.constant 0 : i32
    return %arg0, %c0_i32, %c0_i32_0 : i32, i32, i32
  }
}

</mosaic_0001>

<bundles_post_ra>
// kernel: harmony_rec_blocks_forward.1
= control target key start
LH: loop header
LB: loop body
LE: loop exit
PB: predicated region body
PF: predicated region fallthrough
CT: control target
= control target key end

     0   :  { %s3193_s15 = smov 0   ;;  %s5435_s0 = inlined_call_operand.vmem [shape: f32[2,32,256], index: 0, kind: input, shape index: {}]   ;;  %s5436_s1 = inlined_call_operand.vmem [shape: f32[2,256,256], index: 1, kind: input, shape index: {}]   ;;  %s5437_s2 = inlined_call_operand.vmem [shape: f32[2,288,64], index: 2, kind: input, shape index: {}]   ;;  %s5438_s3 = inlined_call_operand.vmem [shape: f32[2,32,1], index: 3, kind: input, shape index: {}]   ;;  %s5439_s4 = inlined_call_operand.vmem [shape: f32[2,32,256], index: 4, kind: output, shape index: {}]  }
   0x1 LB: > { %s2842_s16 = sadd.s32 4294967295, %s3160_s15   ;;  %p2846_p0 = scmp.ge.s32.totalorder %s3160_s15, 1  ;;  %s3160_s15 = sphi %s3193_s15, %s14_s15  }
   0x2   : > { %p172_p1 = scmp.lt.s32.totalorder %s3160_s15, 3 }
   0x4   : > { %p173_p2 = pnand %p2846_p0, %p172_p1 }
   0x6   : > { %176 = sbr.rel (%p173_p2) target bundleno = 1850 (0x73a), region = 36 }
   0xd   : > { %p203_p3 = scmp.lt.s32.totalorder %s2842_s16, 1  ;;  %vm450_vm0 = vcmask 523264   ;;  %s3164_s13 = smov 127  }
   0xe   : > { %s3165_s14 = smov 1   ;;  %s3167_s18 = smov 112  }
   0xf   : > { %s5581_s16 = smov (!%p203_p3, %s2842_s16), 1 }
  0x10   : > { %s2968_s17 = sshll.u32 %s5581_s16, 9  ;;  %s2967_s21 = sshll.u32 %s5581_s16, 6 }
  0x11   : > { %s3207_s20 = scalar_lea.vmem %s5436_s1, %s2968_s17  ;;  %s3241_s24 = scalar_lea.vmem %s5435_s0, %s2967_s21 }
  0x12   : > { %v262_v0 = vld [vmem:[%s3207_s20 + $0x8] sm:$0xff]  ;;  %v264_v1 = vld [vmem:[%s3207_s20 + $0x18] sm:$0xff]  ;;  %v261_v2 = vld [vmem:[%s3207_s20] sm:$0xff]  ;;  %s3166_s17 = smov 16  }
  0x13   : > { %v2970_v3 = vpack.c.bf16 %v264_v1, %v262_v0  ;;  %v263_v4 = vld [vmem:[%s3207_s20 + $0x10] sm:$0xff]  ;;  %v266_v5 = vld [vmem:[%s3207_s20 + $0x28] sm:$0xff]  ;;  %v268_v6 = vld [vmem:[%s3207_s20 + $0x38] sm:$0xff] }
  0x14   : > { %v2972_v7 = vpack.c.bf16 %v263_v4, %v261_v2  ;;  %v2974_v8 = vpack.c.bf16 %v268_v6, %v266_v5  ;;  %v265_v9 = vld [vmem:[%s3207_s20 + $0x20] sm:$0xff]  ;;  %v267_v10 = vld [vmem:[%s3207_s20 + $0x30] sm:$0xff]  ;;  %v270_v11 = vld [vmem:[%s3207_s20 + $0x48] sm:$0xff] }
  0x15   : > { %2971 = vmatprep.subr.bf16.mxu1 %v2970_v3  ;;  %v272_v12 = vld [vmem:[%s3207_s20 + $0x58] sm:$0xff]  ;;  %3051 = vmatprep.subr.bf16.mxu0 %v2970_v3  ;;  %v2976_v13 = vpack.c.bf16 %v267_v10, %v265_v9  ;;  %v269_v15 = vld [vmem:[%s3207_s20 + $0x40] sm:$0xff]  ;;  %v271_v16 = vld [vmem:[%s3207_s20 + $0x50] sm:$0xff] }
  0x16   : > { %2973 = vmatpush1.bf16.msra.mxu1 %v2972_v7  ;;  %3053 = vmatpush1.bf16.msra.mxu0 %v2972_v7  ;;  %v2978_v14 = vpack.c.bf16 %v272_v12, %v270_v11  ;;  %v274_v17 = vld [vmem:[%s3207_s20 + $0x68] sm:$0xff]  ;;  %v276_v18 = vld [vmem:[%s3207_s20 + $0x78] sm:$0xff]  ;;  %v2980_v19 = vpack.c.bf16 %v271_v16, %v269_v15  ;;  %v273_v21 = vld [vmem:[%s3207_s20 + $0x60] sm:$0xff] }
  0x17   : > { %2975 = vmatprep.subr.bf16.mxu1 %v2974_v8  ;;  %3055 = vmatprep.subr.bf16.mxu0 %v2974_v8  ;;  %v2982_v20 = vpack.c.bf16 %v276_v18, %v274_v17  ;;  %v275_v22 = vld [vmem:[%s3207_s20 + $0x70] sm:$0xff]  ;;  %v278_v23 = vld [vmem:[%s3207_s20 + $0x88] sm:$0xff]  ;;  %v280_v24 = vld [vmem:[%s3207_s20 + $0x98] sm:$0xff] }
  0x18   : > { %v2984_v25 = vpack.c.bf16 %v275_v22, %v273_v21  ;;  %v2986_v26 = vpack.c.bf16 %v280_v24, %v278_v23  ;;  %v277_v27 = vld [vmem:[%s3207_s20 + $0x80] sm:$0xff]  ;;  %v279_v28 = vld [vmem:[%s3207_s20 + $0x90] sm:$0xff]  ;;  %v282_v29 = vld [vmem:[%s3207_s20 + $0xa8] sm:$0xff] }
  0x19   : > { %v284_v30 = vld [vmem:[%s3207_s20 + $0xb8] sm:$0xff]  ;;  %v2988_v31 = vpack.c.bf16 %v279_v28, %v277_v27  ;;  %v281_v33 = vld [vmem:[%s3207_s20 + $0xa0] sm:$0xff]  ;;  %v283_v34 = vld [vmem:[%s3207_s20 + $0xb0] sm:$0xff] }
  0x1a   : > { %2977 = vmatpush1.bf16.msra.mxu1 %v2976_v13  ;;  %3057 = vmatpush1.bf16.msra.mxu0 %v2976_v13  ;;  %v2990_v32 = vpack.c.bf16 %v284_v30, %v282_v29  ;;  %v286_v35 = vld [vmem:[%s3207_s20 + $0xc8] sm:$0xff]  ;;  %v288_v36 = vld [vmem:[%s3207_s20 + $0xd8] sm:$0xff]  ;;  %v2992_v37 = vpack.c.bf16 %v283_v34, %v281_v33  ;;  %v285_v39 = vld [vmem:[%s3207_s20 + $0xc0] sm:$0xff] }
  0x1b   : > { %2979 = vmatprep.subr.bf16.mxu1 %v2978_v14  ;;  %3059 = vmatprep.subr.bf16.mxu0 %v2978_v14  ;;  %v2994_v38 = vpack.c.bf16 %v288_v36, %v286_v35  ;;  %v287_v40 = vld [vmem:[%s3207_s20 + $0xd0] sm:$0xff]  ;;  %v3246_v41 = vld [vmem:[%s3241_s24 + $0x8] sm:$0xff]  ;;  %v292_v43 = vld [vmem:[%s3207_s20 + $0xf8] sm:$0xff] }
  0x1c   : > { %v290_v42 = vld [vmem:[%s3207_s20 + $0xe8] sm:$0xff]  ;;  %389 = vmatprep.mubr.f32.mxu1 %v3246_v41  ;;  %v2996_v44 = vpack.c.bf16 %v287_v40, %v285_v39  ;;  %v289_v46 = vld [vmem:[%s3207_s20 + $0xe0] sm:$0xff]  ;;  %v291_v47 = vld [vmem:[%s3207_s20 + $0xf0] sm:$0xff] }
  0x1d   : > { %v2998_v45 = vpack.c.bf16 %v292_v43, %v290_v42  ;;  %v294_v48 = vld [vmem:[%s3207_s20 + $0x108] sm:$0xff]  ;;  %v296_v49 = vld [vmem:[%s3207_s20 + $0x118] sm:$0xff]  ;;  %v3000_v50 = vpack.c.bf16 %v291_v47, %v289_v46  ;;  %v293_v52 = vld [vmem:[%s3207_s20 + $0x100] sm:$0xff] }
  0x1e   : > { %2981 = vmatpush1.bf16.msra.mxu1 %v2980_v19  ;;  %3061 = vmatpush1.bf16.msra.mxu0 %v2980_v19  ;;  %v3002_v51 = vpack.c.bf16 %v296_v49, %v294_v48  ;;  %v295_v53 = vld [vmem:[%s3207_s20 + $0x110] sm:$0xff]  ;;  %v298_v54 = vld [vmem:[%s3207_s20 + $0x128] sm:$0xff]  ;;  %v300_v55 = vld [vmem:[%s3207_s20 + $0x138] sm:$0xff] }
  0x1f   : > { %2983 = vmatprep.subr.bf16.mxu1 %v2982_v20  ;;  %3063 = vmatprep.subr.bf16.mxu0 %v2982_v20  ;;  %v3004_v56 = vpack.c.bf16 %v295_v53, %v293_v52  ;;  %v3006_v57 = vpack.c.bf16 %v300_v55, %v298_v54  ;;  %v297_v58 = vld [vmem:[%s3207_s20 + $0x120] sm:$0xff]  ;;  %v299_v59 = vld [vmem:[%s3207_s20 + $0x130] sm:$0xff]  ;;  %v302_v60 = vld [vmem:[%s3207_s20 + $0x148] sm:$0xff] }
  0x20   : > { %v304_v61 = vld [vmem:[%s3207_s20 + $0x158] sm:$0xff]  ;;  %v3008_v62 = vpack.c.bf16 %v299_v59, %v297_v58  ;;  %v301_v0 = vld [vmem:[%s3207_s20 + $0x140] sm:$0xff]  ;;  %v303_v1 = vld [vmem:[%s3207_s20 + $0x150] sm:$0xff] }
  0x21   : > { %v3010_v63 = vpack.c.bf16 %v304_v61, %v302_v60  ;;  %v306_v2 = vld [vmem:[%s3207_s20 + $0x168] sm:$0xff]  ;;  %v308_v3 = vld [vmem:[%s3207_s20 + $0x178] sm:$0xff]  ;;  %v3012_v4 = vpack.c.bf16 %v303_v1, %v301_v0  ;;  %v305_v6 = vld [vmem:[%s3207_s20 + $0x160] sm:$0xff]  ;;  %v3163_v0 = vmov 0  }
  0x22   : > { %2985 = vmatpush1.bf16.msra.mxu1 %v2984_v25  ;;  %3065 = vmatpush1.bf16.msra.mxu0 %v2984_v25  ;;  %v3014_v5 = vpack.c.bf16 %v308_v3, %v306_v2  ;;  %v307_v7 = vld [vmem:[%s3207_s20 + $0x170] sm:$0xff]  ;;  %v310_v8 = vld [vmem:[%s3207_s20 + $0x188] sm:$0xff]  ;;  %v312_v9 = vld [vmem:[%s3207_s20 + $0x198] sm:$0xff] }
  0x23   : > { %2987 = vmatprep.subr.bf16.mxu1 %v2986_v26  ;;  %3067 = vmatprep.subr.bf16.mxu0 %v2986_v26  ;;  %v3016_v10 = vpack.c.bf16 %v307_v7, %v305_v6  ;;  %v3018_v11 = vpack.c.bf16 %v312_v9, %v310_v8  ;;  %v309_v12 = vld [vmem:[%s3207_s20 + $0x180] sm:$0xff]  ;;  %v311_v13 = vld [vmem:[%s3207_s20 + $0x190] sm:$0xff]  ;;  %v314_v14 = vld [vmem:[%s3207_s20 + $0x1a8] sm:$0xff] }
  0x24   : > { %v316_v15 = vld [vmem:[%s3207_s20 + $0x1b8] sm:$0xff]  ;;  %v3020_v16 = vpack.c.bf16 %v311_v13, %v309_v12  ;;  %v313_v18 = vld [vmem:[%s3207_s20 + $0x1a0] sm:$0xff]  ;;  %v315_v19 = vld [vmem:[%s3207_s20 + $0x1b0] sm:$0xff]  ;;  %3144 = vset.pattern.permute.xlu0 %v3163_v0  ;;  %3145 = vset.pattern.permute.xlu1 %v3163_v0 }
  0x25   : > { %v3022_v17 = vpack.c.bf16 %v316_v15, %v314_v14  ;;  %v318_v20 = vld [vmem:[%s3207_s20 + $0x1c8] sm:$0xff]  ;;  %v320_v21 = vld [vmem:[%s3207_s20 + $0x1d8] sm:$0xff]  ;;  %v3024_v22 = vpack.c.bf16 %v315_v19, %v313_v18  ;;  %v317_v24 = vld [vmem:[%s3207_s20 + $0x1c0] sm:$0xff] }
  0x26   : > { %2989 = vmatpush1.bf16.msra.mxu1 %v2988_v31  ;;  %3069 = vmatpush1.bf16.msra.mxu0 %v2988_v31  ;;  %v3026_v23 = vpack.c.bf16 %v320_v21, %v318_v20  ;;  %v319_v25 = vld [vmem:[%s3207_s20 + $0x1d0] sm:$0xff]  ;;  %v322_v26 = vld [vmem:[%s3207_s20 + $0x1e8] sm:$0xff]  ;;  %v324_v27 = vld [vmem:[%s3207_s20 + $0x1f8] sm:$0xff] }
  0x27   : > { %2991 = vmatprep.subr.bf16.mxu1 %v2990_v32  ;;  %3071 = vmatprep.subr.bf16.mxu0 %v2990_v32  ;;  %v3028_v28 = vpack.c.bf16 %v319_v25, %v317_v24  ;;  %v3030_v29 = vpack.c.bf16 %v324_v27, %v322_v26  ;;  %v321_v30 = vld [vmem:[%s3207_s20 + $0x1e0] sm:$0xff]  ;;  %v323_v31 = vld [vmem:[%s3207_s20 + $0x1f0] sm:$0xff]  ;;  %v256_v34 = vld [vmem:[%s3241_s24 + $0x18] sm:$0xff] }
  0x28   : > { %v3032_v32 = vpack.c.bf16 %v323_v31, %v321_v30  ;;  %v253_v33 = vld [vmem:[%s3241_s24] sm:$0xff]  ;;  %v255_v35 = vld [vmem:[%s3241_s24 + $0x10] sm:$0xff]  ;;  %v258_v36 = vld [vmem:[%s3241_s24 + $0x28] sm:$0xff]  ;;  %v3034_v42 = vpack.c.bf16 %v256_v34, %v3246_v41 }
  0x29   : > { %v259_v39 = vld [vmem:[%s3241_s24 + $0x30] sm:$0xff]  ;;  %v3036_v40 = vpack.c.bf16 %v255_v35, %v253_v33  ;;  %v415_v58 = vld [vmem:[%s5437_s2 + $0x8] sm:$0xff]  ;;  %v417_v60 = vld [vmem:[%s5437_s2 + $0x18] sm:$0xff] }
  0x2a   : > { %2993 = vmatpush1.bf16.msra.mxu1 %v2992_v37  ;;  %3073 = vmatpush1.bf16.msra.mxu0 %v2992_v37  ;;  %v257_v37 = vld [vmem:[%s3241_s24 + $0x20] sm:$0xff]  ;;  %v416_v59 = vld [vmem:[%s5437_s2 + $0x10] sm:$0xff]  ;;  %v1500_v1 = vld [vmem:[%s5438_s3 + $0x8] sm:$0xff] }
  0x2b   : > { %2995 = vmatprep.subr.bf16.mxu1 %v2994_v38  ;;  %3075 = vmatprep.subr.bf16.mxu0 %v2994_v38  ;;  %v260_v38 = vld [vmem:[%s3241_s24 + $0x38] sm:$0xff]  ;;  %v3040_v43 = vpack.c.bf16 %v259_v39, %v257_v37  ;;  %v1499_v61 = vld [vmem:[%s5438_s3] sm:$0xff]  ;;  %v419_v2 = vld [vmem:[%s5437_s2 + $0x28] sm:$0xff] }
  0x2c   : > { %1505 = vperm.xlu0 %3144, %v1499_v61   ;;  %v1502_v3 = vld [vmem:[%s5438_s3 + $0x18] sm:$0xff]  ;;  %v422_v6 = vld [vmem:[%s5437_s2 + $0x40] sm:$0xff]  ;;  %v423_v7 = vld [vmem:[%s5437_s2 + $0x48] sm:$0xff] }
  0x2d   : > { %v424_v8 = vld [vmem:[%s5437_s2 + $0x50] sm:$0xff]  ;;  %v425_v9 = vld [vmem:[%s5437_s2 + $0x58] sm:$0xff]  ;;  %v430_v14 = vld [vmem:[%s5437_s2 + $0x80] sm:$0xff] }
  0x2e   : > { %2997 = vmatpush1.bf16.msra.mxu1 %v2996_v44  ;;  %3077 = vmatpush1.bf16.msra.mxu0 %v2996_v44  ;;  %v3038_v44 = vpack.c.bf16 %v260_v38, %v258_v36  ;;  %v428_v12 = vld [vmem:[%s5437_s2 + $0x70] sm:$0xff]  ;;  %v429_v13 = vld [vmem:[%s5437_s2 + $0x78] sm:$0xff]  ;;  %v431_v15 = vld [vmem:[%s5437_s2 + $0x88] sm:$0xff] }
  0x2f   : > { %2999 = vmatprep.subr.bf16.mxu1 %v2998_v45  ;;  %3079 = vmatprep.subr.bf16.mxu0 %v2998_v45  ;;  %v5440_v45 = vmov 0.0   ;;  %v434_v18 = vld [vmem:[%s5437_s2 + $0xa0] sm:$0xff]  ;;  %v435_v19 = vld [vmem:[%s5437_s2 + $0xa8] sm:$0xff]  ;;  %v436_v20 = vld [vmem:[%s5437_s2 + $0xb0] sm:$0xff] }
  0x30   : > { %1510 = vperm.xlu0 %3144, %v1500_v1   ;;  %v437_v21 = vld [vmem:[%s5437_s2 + $0xb8] sm:$0xff]  ;;  %v440_v24 = vld [vmem:[%s5437_s2 + $0xd0] sm:$0xff]  ;;  %v442_v26 = vld [vmem:[%s5437_s2 + $0xe0] sm:$0xff] }
  0x31   : > { %v441_v25 = vld [vmem:[%s5437_s2 + $0xd8] sm:$0xff]  ;;  %v443_v27 = vld [vmem:[%s5437_s2 + $0xe8] sm:$0xff]  ;;  %v446_v30 = vld [vmem:[%s5437_s2 + $0x100] sm:$0xff] }
  0x32   : > { %3001 = vmatpush1.bf16.msra.mxu1 %v3000_v50  ;;  %3081 = vmatpush1.bf16.msra.mxu0 %v3000_v50  ;;  %v447_v31 = vld [vmem:[%s5437_s2 + $0x108] sm:$0xff] }
  0x33   : > { %3003 = vmatprep.subr.bf16.mxu1 %v3002_v51  ;;  %3083 = vmatprep.subr.bf16.mxu0 %v3002_v51 }
  0x34   : > { %1520 = vperm.xlu0 %3144, %v1502_v3  }
  0x36   : > { %3005 = vmatpush1.bf16.msra.mxu1 %v3004_v56  ;;  %3085 = vmatpush1.bf16.msra.mxu0 %v3004_v56 }
  0x37   : > { %3007 = vmatprep.subr.bf16.mxu1 %v3006_v57  ;;  %3087 = vmatprep.subr.bf16.mxu0 %v3006_v57  ;;  %v414_v57 = vld [vmem:[%s5437_s2] sm:$0xff] }
  0x3a   : > { %3009 = vmatpush1.bf16.msra.mxu1 %v3008_v62  ;;  %3089 = vmatpush1.bf16.msra.mxu0 %v3008_v62  ;;  %v1501_v62 = vld [vmem:[%s5438_s3 + $0x10] sm:$0xff] }
  0x3b   : > { %3011 = vmatprep.subr.bf16.mxu1 %v3010_v63  ;;  %3091 = vmatprep.subr.bf16.mxu0 %v3010_v63  ;;  %v418_v63 = vld [vmem:[%s5437_s2 + $0x20] sm:$0xff] }
  0x3c   : > { %1515 = vperm.xlu1 %3145, %v1501_v62  }
  0x3e   : > { %3013 = vmatpush1.bf16.msra.mxu1 %v3012_v4  ;;  %3093 = vmatpush1.bf16.msra.mxu0 %v3012_v4  ;;  %v420_v4 = vld [vmem:[%s5437_s2 + $0x30] sm:$0xff] }
  0x3f   : > { %3015 = vmatprep.subr.bf16.mxu1 %v3014_v5  ;;  %3095 = vmatprep.subr.bf16.mxu0 %v3014_v5  ;;  %v421_v5 = vld [vmem:[%s5437_s2 + $0x38] sm:$0xff] }
  0x42   : > { %3017 = vmatpush1.bf16.msra.mxu1 %v3016_v10  ;;  %3097 = vmatpush1.bf16.msra.mxu0 %v3016_v10  ;;  %v426_v10 = vld [vmem:[%s5437_s2 + $0x60] sm:$0xff] }
  0x43   : > { %3019 = vmatprep.subr.bf16.mxu1 %v3018_v11  ;;  %3099 = vmatprep.subr.bf16.mxu0 %v3018_v11  ;;  %v427_v11 = vld [vmem:[%s5437_s2 + $0x68] sm:$0xff] }
  0x46   : > { %3021 = vmatpush1.bf16.msra.mxu1 %v3020_v16  ;;  %3101 = vmatpush1.bf16.msra.mxu0 %v3020_v16  ;;  %v432_v16 = vld [vmem:[%s5437_s2 + $0x90] sm:$0xff] }
  0x47   : > { %3023 = vmatprep.subr.bf16.mxu1 %v3022_v17  ;;  %3103 = vmatprep.subr.bf16.mxu0 %v3022_v17  ;;  %v433_v17 = vld [vmem:[%s5437_s2 + $0x98] sm:$0xff] }
  0x4a   : > { %3025 = vmatpush1.bf16.msra.mxu1 %v3024_v22  ;;  %3105 = vmatpush1.bf16.msra.mxu0 %v3024_v22  ;;  %v438_v22 = vld [vmem:[%s5437_s2 + $0xc0] sm:$0xff] }
  0x4b   : > { %3027 = vmatprep.subr.bf16.mxu1 %v3026_v23  ;;  %3107 = vmatprep.subr.bf16.mxu0 %v3026_v23  ;;  %v439_v23 = vld [vmem:[%s5437_s2 + $0xc8] sm:$0xff] }
  0x4e   : > { %3029 = vmatpush1.bf16.msra.mxu1 %v3028_v28  ;;  %3109 = vmatpush1.bf16.msra.mxu0 %v3028_v28  ;;  %v444_v28 = vld [vmem:[%s5437_s2 + $0xf0] sm:$0xff] }
  0x4f   : > { %3031 = vmatprep.subr.bf16.mxu1 %v3030_v29  ;;  %3111 = vmatprep.subr.bf16.mxu0 %v3030_v29  ;;  %v445_v29 = vld [vmem:[%s5437_s2 + $0xf8] sm:$0xff] }
  0x52   : > { %3033 = vmatpush1.bf16.msra.mxu1 %v3032_v32  ;;  %3113 = vmatpush1.bf16.msra.mxu0 %v3032_v32  ;;  %v448_v32 = vld [vmem:[%s5437_s2 + $0x110] sm:$0xff] }
  0x53   : > { %3035 = vmatprep.subr.bf16.mxu1 %v3034_v42 }
  0x55   : > { %390 = vmatmul.mubr.f32.vlgmr.msra.gmra.mrb[0].mxu1 %v253_v33  ;;  %v449_v33 = vld [vmem:[%s5437_s2 + $0x118] sm:$0xff] }
  0x56   : > { %395 = vmatprep.mubr.f32.mxu1 %v256_v34  ;;  %3037 = vmatpush1.bf16.msra.mxu1 %v3036_v40 }
  0x57   : > { %3039 = vmatprep.subr.bf16.mxu1 %v3038_v44 }
  0x59   : > { %396 = vmatmul.mubr.f32.gmra.mrb[2].mxu1 %v255_v35 }
  0x5a   : > { %401 = vmatprep.mubr.f32.mxu1 %v258_v36  ;;  %3041 = vmatpush1.bf16.msra.mxu1 %v3040_v43 }
  0x5d   : > { %402 = vmatmul.mubr.f32.gmra.mrb[4].mxu1 %v257_v37 }
  0x5e   : > { %407 = vmatprep.mubr.f32.mxu1 %v260_v38 }
  0x61   : > { %408 = vmatmul.mubr.f32.gmra.mrb[6].mxu1 %v259_v39 }
  0x62   : > { %623 = vmatprep.mubr.f32.mxu1 %v5440_v45 }
 0x128   : > { %v391_v46 = vpop.f32.mrb[0].mxu1 }
 0x129   : > { %v393_v47 = vpop.f32.mrb[1].mxu1 }
 0x12c   : > { %v397_v48 = vpop.f32.mrb[2].mxu1 }
 0x12d   : > { %v3044_v49 = vpack.c.bf16 %v397_v48, %v391_v46  ;;  %v399_v50 = vpop.f32.mrb[3].mxu1 }
 0x12e   : > { %v3042_v51 = vpack.c.bf16 %v399_v50, %v393_v47 }
 0x130   : > { %v403_v52 = vpop.f32.mrb[4].mxu1  ;;  %3043 = vmatprep.subr.bf16.mxu1 %v3042_v51 }
 0x131   : > { %v405_v53 = vpop.f32.mrb[5].mxu1  ;;  %3045 = vmatpush1.bf16.msra.mxu1 %v3044_v49 }
 0x134   : > { %v409_v41 = vpop.f32.mrb[6].mxu1 }
 0x135   : > { %v3048_v54 = vpack.c.bf16 %v409_v41, %v403_v52  ;;  %v411_v55 = vpop.f32.mrb[7].mxu1 }
 0x136   : > { %v3046_v56 = vpack.c.bf16 %v411_v55, %v405_v53 }
 0x138   : > { %3047 = vmatprep.subr.bf16.mxu1 %v3046_v56 }
 0x139   : > { %3049 = vmatpush1.bf16.msra.mxu1 %v3048_v54 }
 0x13c   : > { %2853 = vmatmul.mubr.msk.f32.vlgmr.msra.gmra.mrb[8].mxu1 %vm450_vm0, %v414_v57 }
 0x13d   : > { %629 = vmatprep.mubr.f32.mxu1 %v5440_v45 }
 0x140   : > { %2854 = vmatmul.mubr.msk.f32.gmra.mrb[10].mxu1 %vm450_vm0, %v415_v58 }
 0x141   : > { %635 = vmatprep.mubr.f32.mxu1 %v5440_v45 }
 0x144   : > { %2855 = vmatmul.mubr.msk.f32.gmra.mrb[12].mxu1 %vm450_vm0, %v416_v59 }
 0x145   : > { %641 = vmatprep.mubr.f32.mxu1 %v5440_v45 }
 0x148   : > { %2856 = vmatmul.mubr.msk.f32.gmra.mrb[14].mxu1 %vm450_vm0, %v417_v60 }
 0x149   : > { %647 = vmatprep.mubr.f32.mxu1 %v5440_v45 }
 0x14c   : > { %2857 = vmatmul.mubr.msk.f32.gmra.mrb[16].mxu1 %vm450_vm0, %v418_v63 }
 0x14d   : > { %653 = vmatprep.mubr.f32.mxu1 %v5440_v45 }
 0x150   : > { %2858 = vmatmul.mubr.msk.f32.gmra.mrb[18].mxu1 %vm450_vm0, %v419_v2 }
 0x151   : > { %659 = vmatprep.mubr.f32.mxu1 %v5440_v45 }
 0x154   : > { %2859 = vmatmul.mubr.msk.f32.gmra.mrb[20].mxu1 %vm450_vm0, %v420_v4 }
 0x155   : > { %665 = vmatprep.mubr.f32.mxu1 %v5440_v45 }
 0x158   : > { %2860 = vmatmul.mubr.msk.f32.gmra.mrb[22].mxu1 %vm450_vm0, %v421_v5 }
 0x159   : > { %671 = vmatprep.mubr.f32.mxu1 %v5440_v45 }
 0x15c   : > { %2861 = vmatmul.mubr.msk.f32.gmra.mrb[24].mxu1 %vm450_vm0, %v422_v6 }
 0x15d   : > { %677 = vmatprep.mubr.f32.mxu1 %v5440_v45 }
 0x160   : > { %2862 = vmatmul.mubr.msk.f32.gmra.mrb[26].mxu1 %vm450_vm0, %v423_v7 }
 0x161   : > { %683 = vmatprep.mubr.f32.mxu1 %v5440_v45 }
 0x164   : > { %2863 = vmatmul.mubr.msk.f32.gmra.mrb[28].mxu1 %vm450_vm0, %v424_v8 }
 0x165   : > { %689 = vmatprep.mubr.f32.mxu1 %v5440_v45 }
 0x168   : > { %2864 = vmatmul.mubr.msk.f32.gmra.mrb[30].mxu1 %vm450_vm0, %v425_v9 }
 0x169   : > { %695 = vmatprep.mubr.f32.mxu1 %v5440_v45 }
 0x16c   : > { %2865 = vmatmul.mubr.msk.f32.gmra.mrb[32].mxu1 %vm450_vm0, %v426_v10 }
 0x16d   : > { %701 = vmatprep.mubr.f32.mxu1 %v5440_v45 }
 0x170   : > { %2866 = vmatmul.mubr.msk.f32.gmra.mrb[34].mxu1 %vm450_vm0, %v427_v11 }
 0x171   : > { %707 = vmatprep.mubr.f32.mxu1 %v5440_v45 }
 0x174   : > { %2867 = vmatmul.mubr.msk.f32.gmra.mrb[36].mxu1 %vm450_vm0, %v428_v12 }
 0x175   : > { %713 = vmatprep.mubr.f32.mxu1 %v5440_v45 }
 0x178   : > { %2868 = vmatmul.mubr.msk.f32.gmra.mrb[38].mxu1 %vm450_vm0, %v429_v13 }
 0x179   : > { %719 = vmatprep.mubr.f32.mxu1 %v5440_v45 }
 0x17c   : > { %2869 = vmatmul.mubr.msk.f32.gmra.mrb[40].mxu1 %vm450_vm0, %v430_v14 }
 0x17d   : > { %725 = vmatprep.mubr.f32.mxu1 %v5440_v45 }
 0x180   : > { %2870 = vmatmul.mubr.msk.f32.gmra.mrb[42].mxu1 %vm450_vm0, %v431_v15 }
 0x181   : > { %731 = vmatprep.mubr.f32.mxu1 %v5440_v45 }
 0x184   : > { %2871 = vmatmul.mubr.msk.f32.gmra.mrb[44].mxu1 %vm450_vm0, %v432_v16 }
 0x185   : > { %737 = vmatprep.mubr.f32.mxu1 %v5440_v45 }
 0x188   : > { %2872 = vmatmul.mubr.msk.f32.gmra.mrb[46].mxu1 %vm450_vm0, %v433_v17 }
 0x189   : > { %743 = vmatprep.mubr.f32.mxu1 %v5440_v45 }
 0x18c   : > { %2873 = vmatmul.mubr.msk.f32.gmra.mrb[48].mxu1 %vm450_vm0, %v434_v18 }
 0x18d   : > { %749 = vmatprep.mubr.f32.mxu1 %v5440_v45 }
 0x190   : > { %2874 = vmatmul.mubr.msk.f32.gmra.mrb[50].mxu1 %vm450_vm0, %v435_v19 }
 0x191   : > { %755 = vmatprep.mubr.f32.mxu1 %v5440_v45 }
 0x194   : > { %2875 = vmatmul.mubr.msk.f32.gmra.mrb[52].mxu1 %vm450_vm0, %v436_v20  ;;  %v3566_v20 = vpop.permute.xlu0 %1505 }
 0x195   : > { %761 = vmatprep.mubr.f32.mxu1 %v5440_v45  ;;  %5479 = vst [vmem:[#allocation11_spill] sm:$0xff] %v3566_v20 }
 0x198   : > { %2876 = vmatmul.mubr.msk.f32.gmra.mrb[54].mxu1 %vm450_vm0, %v437_v21 }
 0x199   : > { %767 = vmatprep.mubr.f32.mxu1 %v5440_v45 }
 0x19c   : > { %2877 = vmatmul.mubr.msk.f32.gmra.mrb[56].mxu1 %vm450_vm0, %v438_v22 }
 0x19d   : > { %773 = vmatprep.mubr.f32.mxu1 %v5440_v45 }
 0x1a0   : > { %2878 = vmatmul.mubr.msk.f32.gmra.mrb[58].mxu1 %vm450_vm0, %v439_v23 }
 0x1a1   : > { %779 = vmatprep.mubr.f32.mxu1 %v5440_v45 }
 0x1a4   : > { %2879 = vmatmul.mubr.msk.f32.gmra.mrb[60].mxu1 %vm450_vm0, %v440_v24  ;;  %v3571_v24 = vpop.permute.xlu0 %1510 }
 0x1a5   : > { %785 = vmatprep.mubr.f32.mxu1 %v5440_v45  ;;  %5480 = vst [vmem:[#allocation12_spill] sm:$0xff] %v3571_v24 }
 0x1a8   : > { %2880 = vmatmul.mubr.msk.f32.gmra.mrb[62].mxu1 %vm450_vm0, %v441_v25 }
 0x1a9   : > { %791 = vmatprep.mubr.f32.mxu1 %v5440_v45 }
 0x1ac   : > { %2881 = vmatmul.mubr.msk.f32.gmra.mrb[64].mxu1 %vm450_vm0, %v442_v26 }
 0x1ad   : > { %797 = vmatprep.mubr.f32.mxu1 %v5440_v45 }
 0x1b0   : > { %2882 = vmatmul.mubr.msk.f32.gmra.mrb[66].mxu1 %vm450_vm0, %v443_v27  ;;  %v3577_v27 = vpop.permute.xlu1 %1515 }
 0x1b1   : > { %803 = vmatprep.mubr.f32.mxu1 %v5440_v45  ;;  %5481 = vst [vmem:[#allocation13_spill] sm:$0xff] %v3577_v27  ;;  %v218_v27 = vlaneseq }
 0x1b4   : > { %2883 = vmatmul.mubr.msk.f32.gmra.mrb[68].mxu1 %vm450_vm0, %v444_v28 }
 0x1b5   : > { %809 = vmatprep.mubr.f32.mxu1 %v5440_v45 }
 0x1b8   : > { %2884 = vmatmul.mubr.msk.f32.gmra.mrb[70].mxu1 %vm450_vm0, %v445_v29  ;;  %v3580_v29 = vpop.permute.xlu0 %1520 }
 0x1b9   : > { %815 = vmatprep.mubr.f32.mxu1 %v5440_v45  ;;  %5482 = vst [vmem:[#allocation14_spill] sm:$0xff] %v3580_v29 }
 0x1bc   : > { %2885 = vmatmul.mubr.msk.f32.gmra.mrb[72].mxu1 %vm450_vm0, %v446_v30 }
 0x1bd   : > { %821 = vmatprep.mubr.f32.mxu1 %v5440_v45 }
 0x1c0   : > { %2886 = vmatmul.mubr.msk.f32.gmra.mrb[74].mxu1 %vm450_vm0, %v447_v31 }
 0x1c1   : > { %827 = vmatprep.mubr.f32.mxu1 %v5440_v45 }
 0x1c4   : > { %2887 = vmatmul.mubr.msk.f32.gmra.mrb[76].mxu1 %vm450_vm0, %v448_v32 }
 0x1c5   : > { %833 = vmatprep.mubr.f32.mxu1 %v5440_v45 }
 0x1c8   : > { %2888 = vmatmul.mubr.msk.f32.gmra.mrb[78].mxu1 %vm450_vm0, %v449_v33 }
 0x20f   : > { %v625_v34 = vpop.f32.mrb[8].mxu1 }
 0x210   : > { %945 = vrot.lane.b32.xlu1 %v625_v34, %s3164_s13  ;;  %920 = vrot.lane.b32.xlu0 %v625_v34, %s3165_s14  ;;  %v627_v35 = vpop.f32.mrb[9].mxu1 }
 0x213   : > { %v631_v36 = vpop.f32.mrb[10].mxu1 }
 0x214   : > { %953 = vrot.lane.b32.xlu1 %v627_v35, %s3164_s13  ;;  %928 = vrot.lane.b32.xlu0 %v627_v35, %s3165_s14  ;;  %v633_v37 = vpop.f32.mrb[11].mxu1 }
 0x217   : > { %v637_v38 = vpop.f32.mrb[12].mxu1 }
 0x218   : > { %922 = vrot.lane.b32.xlu0 %v631_v36, %s3165_s14  ;;  %930 = vrot.lane.b32.xlu1 %v633_v37, %s3165_s14  ;;  %v639_v39 = vpop.f32.mrb[13].mxu1 }
 0x21b   : > { %v643_v40 = vpop.f32.mrb[14].mxu1 }
 0x21c   : > { %947 = vrot.lane.b32.xlu0 %v631_v36, %s3164_s13  ;;  %955 = vrot.lane.b32.xlu1 %v633_v37, %s3164_s13  ;;  %v645_v42 = vpop.f32.mrb[15].mxu1 }
 0x21f   : > { %v3493_v43 = vpop.f32.mrb[16].mxu1 }
 0x220   : > { %924 = vrot.lane.b32.xlu0 %v637_v38, %s3165_s14  ;;  %932 = vrot.lane.b32.xlu1 %v639_v39, %s3165_s14  ;;  %v3497_v44 = vpop.f32.mrb[17].mxu1 }
 0x223   : > { %v3499_v46 = vpop.f32.mrb[18].mxu1 }
 0x224   : > { %949 = vrot.lane.b32.xlu0 %v637_v38, %s3164_s13  ;;  %957 = vrot.lane.b32.xlu1 %v639_v39, %s3164_s13  ;;  %v3503_v47 = vpop.f32.mrb[19].mxu1 }
 0x227   : > { %v3505_v48 = vpop.f32.mrb[20].mxu1 }
 0x228   : > { %926 = vrot.lane.b32.xlu0 %v643_v40, %s3165_s14  ;;  %934 = vrot.lane.b32.xlu1 %v645_v42, %s3165_s14  ;;  %v3509_v49 = vpop.f32.mrb[21].mxu1 }
 0x22b   : > { %v3511_v50 = vpop.f32.mrb[22].mxu1 }
 0x22c   : > { %951 = vrot.lane.b32.xlu0 %v643_v40, %s3164_s13  ;;  %959 = vrot.lane.b32.xlu1 %v645_v42, %s3164_s13  ;;  %v3515_v51 = vpop.f32.mrb[23].mxu1 }
 0x22f   : > { %v673_v52 = vpop.f32.mrb[24].mxu1 }
 0x230   : > { %1002 = vrot.lane.b32.xlu0 %v673_v52, %s3165_s14  ;;  %v675_v53 = vpop.f32.mrb[25].mxu1 }
 0x231   : > { %1010 = vrot.lane.b32.xlu1 %v675_v53, %s3165_s14 }
 0x233   : > { %v679_v41 = vpop.f32.mrb[26].mxu1 }
 0x234   : > { %1026 = vrot.lane.b32.xlu0 %v673_v52, %s3164_s13  ;;  %v681_v54 = vpop.f32.mrb[27].mxu1 }
 0x235   : > { %1034 = vrot.lane.b32.xlu1 %v675_v53, %s3164_s13 }
 0x237   : > { %v685_v55 = vpop.f32.mrb[28].mxu1 }
 0x238   : > { %1004 = vrot.lane.b32.xlu0 %v679_v41, %s3165_s14  ;;  %v687_v56 = vpop.f32.mrb[29].mxu1 }
 0x239   : > { %1012 = vrot.lane.b32.xlu1 %v681_v54, %s3165_s14 }
 0x23b   : > { %v691_v57 = vpop.f32.mrb[30].mxu1 }
 0x23c   : > { %1028 = vrot.lane.b32.xlu0 %v679_v41, %s3164_s13  ;;  %v693_v58 = vpop.f32.mrb[31].mxu1 }
 0x23d   : > { %1036 = vrot.lane.b32.xlu1 %v681_v54, %s3164_s13 }
 0x23f   : > { %v697_v59 = vpop.f32.mrb[32].mxu1 }
 0x240   : > { %1006 = vrot.lane.b32.xlu0 %v685_v55, %s3165_s14  ;;  %v699_v60 = vpop.f32.mrb[33].mxu1 }
 0x241   : > { %1014 = vrot.lane.b32.xlu1 %v687_v56, %s3165_s14 }
 0x243   : > { %v703_v61 = vpop.f32.mrb[34].mxu1 }
 0x244   : > { %1030 = vrot.lane.b32.xlu0 %v685_v55, %s3164_s13  ;;  %v705_v62 = vpop.f32.mrb[35].mxu1 }
 0x245   : > { %1038 = vrot.lane.b32.xlu1 %v687_v56, %s3164_s13 }
 0x247   : > { %v709_v63 = vpop.f32.mrb[36].mxu1 }
 0x248   : > { %1008 = vrot.lane.b32.xlu0 %v691_v57, %s3165_s14  ;;  %v711_v0 = vpop.f32.mrb[37].mxu1 }
 0x249   : > { %1016 = vrot.lane.b32.xlu1 %v693_v58, %s3165_s14 }
 0x24b   : > { %v715_v1 = vpop.f32.mrb[38].mxu1 }
 0x24c   : > { %1032 = vrot.lane.b32.xlu0 %v691_v57, %s3164_s13  ;;  %v717_v2 = vpop.f32.mrb[39].mxu1 }
 0x24d   : > { %1040 = vrot.lane.b32.xlu1 %v693_v58, %s3164_s13 }
 0x24f   : > { %v3533_v3 = vpop.f32.mrb[40].mxu1 }
 0x250   : > { %5471 = vst [vmem:[#allocation3_spill] sm:$0xff] %v3533_v3  ;;  %1131 = vrot.lane.b32.xlu0 %v697_v59, %s3165_s14  ;;  %v3536_v4 = vpop.f32.mrb[41].mxu1 }
 0x251   : > { %5472 = vst [vmem:[#allocation4_spill] sm:$0xff] %v3536_v4  ;;  %1139 = vrot.lane.b32.xlu1 %v699_v60, %s3165_s14 }
 0x253   : > { %v3539_v5 = vpop.f32.mrb[42].mxu1 }
 0x254   : > { %5473 = vst [vmem:[#allocation5_spill] sm:$0xff] %v3539_v5  ;;  %1155 = vrot.lane.b32.xlu0 %v697_v59, %s3164_s13  ;;  %v3542_v6 = vpop.f32.mrb[43].mxu1 }
 0x255   : > { %5474 = vst [vmem:[#allocation6_spill] sm:$0xff] %v3542_v6  ;;  %1163 = vrot.lane.b32.xlu1 %v699_v60, %s3164_s13 }
 0x257   : > { %v3545_v7 = vpop.f32.mrb[44].mxu1 }
 0x258   : > { %5475 = vst [vmem:[#allocation7_spill] sm:$0xff] %v3545_v7  ;;  %1157 = vrot.lane.b32.xlu0 %v703_v61, %s3164_s13  ;;  %v3548_v8 = vpop.f32.mrb[45].mxu1 }
 0x259   : > { %5476 = vst [vmem:[#allocation8_spill] sm:$0xff] %v3548_v8  ;;  %1133 = vrot.lane.b32.xlu1 %v703_v61, %s3165_s14 }
 0x25b   : > { %v3551_v9 = vpop.f32.mrb[46].mxu1 }
 0x25c   : > { %5477 = vst [vmem:[#allocation9_spill] sm:$0xff] %v3551_v9  ;;  %1143 = vrot.lane.b32.xlu0 %v711_v0, %s3165_s14  ;;  %v3554_v10 = vpop.f32.mrb[47].mxu1 }
 0x25d   : > { %5478 = vst [vmem:[#allocation10_spill] sm:$0xff] %v3554_v10  ;;  %1141 = vrot.lane.b32.xlu1 %v705_v62, %s3165_s14  ;;  %v3699_v10 = vand.u32 127, %v218_v27 }
 0x25f   : > { %v745_v11 = vpop.f32.mrb[48].mxu1  ;;  %v225_v9 = vand.u32 15, %v3699_v10  ;;  %vm961_vm1 = vcmp.lt.s32.totalorder %v3699_v10, 127  ;;  %vm936_vm2 = vcmp.lt.s32.totalorder %v3699_v10, 1  ;;  %vm1106_vm7 = vcmp.lt.s32.totalorder %v3699_v10, 112 }
 0x260   : > { %1167 = vrot.lane.b32.xlu0 %v711_v0, %s3164_s13  ;;  %v747_v12 = vpop.f32.mrb[49].mxu1  ;;  %vm249_vm8 = vcmp.lt.s32.totalorder %v3699_v10, 16 }
 0x261   : > { %1165 = vrot.lane.b32.xlu1 %v705_v62, %s3164_s13  ;;  %vm3716_vm3 = vcmp.eq.s32.totalorder %v225_v9, 0  ;;  %vm3731_vm4 = vcmp.eq.s32.totalorder %v225_v9, 15 }
 0x263   : > { %v751_v13 = vpop.f32.mrb[50].mxu1 }
 0x264   : > { %1137 = vrot.lane.b32.xlu0 %v715_v1, %s3165_s14  ;;  %v753_v14 = vpop.f32.mrb[51].mxu1 }
 0x265   : > { %1135 = vrot.lane.b32.xlu1 %v709_v63, %s3165_s14 }
 0x267   : > { %v757_v15 = vpop.f32.mrb[52].mxu1 }
 0x268   : > { %1161 = vrot.lane.b32.xlu0 %v715_v1, %s3164_s13  ;;  %v759_v16 = vpop.f32.mrb[53].mxu1 }
 0x269   : > { %1159 = vrot.lane.b32.xlu1 %v709_v63, %s3164_s13 }
 0x26b   : > { %v763_v17 = vpop.f32.mrb[54].mxu1 }
 0x26c   : > { %1211 = vrot.lane.b32.xlu0 %v745_v11, %s3165_s14  ;;  %v765_v18 = vpop.f32.mrb[55].mxu1 }
 0x26d   : > { %1145 = vrot.lane.b32.xlu1 %v717_v2, %s3165_s14 }
 0x26f   : > { %v769_v19 = vpop.f32.mrb[56].mxu1 }
 0x270   : > { %1235 = vrot.lane.b32.xlu0 %v745_v11, %s3164_s13  ;;  %v771_v21 = vpop.f32.mrb[57].mxu1 }
 0x271   : > { %1169 = vrot.lane.b32.xlu1 %v717_v2, %s3164_s13 }
 0x273   : > { %v775_v22 = vpop.f32.mrb[58].mxu1 }
 0x274   : > { %1213 = vrot.lane.b32.xlu0 %v751_v13, %s3165_s14  ;;  %v777_v23 = vpop.f32.mrb[59].mxu1 }
 0x275   : > { %1219 = vrot.lane.b32.xlu1 %v747_v12, %s3165_s14 }
 0x277   : > { %v781_v25 = vpop.f32.mrb[60].mxu1 }
 0x278   : > { %1237 = vrot.lane.b32.xlu0 %v751_v13, %s3164_s13  ;;  %v3574_v26 = vpop.f32.mrb[61].mxu1 }
 0x279   : > { %1243 = vrot.lane.b32.xlu1 %v747_v12, %s3164_s13 }
 0x27b   : > { %v787_v28 = vpop.f32.mrb[62].mxu1 }
 0x27c   : > { %1223 = vrot.lane.b32.xlu0 %v759_v16, %s3165_s14  ;;  %v3582_v30 = vpop.f32.mrb[63].mxu1 }
 0x27d   : > { %1221 = vrot.lane.b32.xlu1 %v753_v14, %s3165_s14 }
 0x27f   : > { %v3585_v31 = vpop.f32.mrb[64].mxu1 }
 0x280   : > { %1247 = vrot.lane.b32.xlu0 %v759_v16, %s3164_s13  ;;  %v3588_v32 = vpop.f32.mrb[65].mxu1 }
 0x281   : > { %1245 = vrot.lane.b32.xlu1 %v753_v14, %s3164_s13 }
 0x282   : > { %v3591_v33 = vpop.permute.xlu1 %945  ;;  %v3593_v34 = vpop.permute.xlu0 %920 }
 0x283   : > { %v3595_v35 = vpop.f32.mrb[66].mxu1 }
 0x284   : > { %1217 = vrot.lane.b32.xlu0 %v763_v17, %s3165_s14  ;;  %v3598_v36 = vpop.f32.mrb[67].mxu1 }
 0x285   : > { %1215 = vrot.lane.b32.xlu1 %v757_v15, %s3165_s14 }
 0x286   : > { %v3601_v37 = vpop.permute.xlu1 %953  ;;  %v3603_v38 = vpop.permute.xlu0 %928 }
 0x287   : > { %v3605_v39 = vpop.f32.mrb[68].mxu1  ;;  %v962_v27 = vsel %vm961_vm1, %v3591_v33, %v3601_v37  ;;  %v941_v8 = vsel %vm936_vm2, %v3603_v38, %v3593_v34 }
 0x288   : > { %1241 = vrot.lane.b32.xlu0 %v763_v17, %s3164_s13  ;;  %v3608_v40 = vpop.f32.mrb[69].mxu1  ;;  %v970_v5 = vsel %vm3716_vm3, %v962_v27, %v941_v8 }
 0x289   : > { %1239 = vrot.lane.b32.xlu1 %v757_v15, %s3164_s13 }
 0x28a   : > { %v3611_v42 = vpop.permute.xlu0 %922  ;;  %v3613_v52 = vpop.permute.xlu1 %930 }
 0x28b   : > { %v3615_v53 = vpop.f32.mrb[70].mxu1 }
 0x28c   : > { %1291 = vrot.lane.b32.xlu0 %v769_v19, %s3165_s14  ;;  %v3618_v41 = vpop.f32.mrb[71].mxu1 }
 0x28d   : > { %5483 = vst [vmem:[#allocation15_spill] sm:$0xff] %v3618_v41  ;;  %1225 = vrot.lane.b32.xlu1 %v765_v18, %s3165_s14  ;;  %v986_v41 = vadd.f32 %v970_v5, %v3493_v43  ;;  %v937_v5 = vsel %vm936_vm2, %v3593_v34, %v3603_v38 }
 0x28e   : > { %v3621_v54 = vpop.permute.xlu0 %947  ;;  %v3623_v55 = vpop.permute.xlu1 %955 }
 0x28f   : > { %v817_v56 = vpop.f32.mrb[72].mxu1  ;;  %v967_v8 = vsel %vm961_vm1, %v3623_v55, %v3621_v54 }
 0x290   : > { %1315 = vrot.lane.b32.xlu0 %v769_v19, %s3164_s13  ;;  %v819_v57 = vpop.f32.mrb[73].mxu1 }
 0x291   : > { %1249 = vrot.lane.b32.xlu1 %v765_v18, %s3164_s13 }
 0x292   : > { %v3627_v58 = vpop.permute.xlu0 %924  ;;  %v3629_v59 = vpop.permute.xlu1 %932 }
 0x293   : > { %v823_v60 = vpop.f32.mrb[74].mxu1 }
 0x294   : > { %1293 = vrot.lane.b32.xlu0 %v775_v22, %s3165_s14  ;;  %v825_v61 = vpop.f32.mrb[75].mxu1 }
 0x295   : > { %1299 = vrot.lane.b32.xlu1 %v771_v21, %s3165_s14 }
 0x296   : > { %v3633_v62 = vpop.permute.xlu0 %949  ;;  %v3635_v63 = vpop.permute.xlu1 %957 }
 0x297   : > { %v829_v0 = vpop.f32.mrb[76].mxu1 }
 0x298   : > { %1317 = vrot.lane.b32.xlu0 %v775_v22, %s3164_s13  ;;  %v3638_v1 = vpop.f32.mrb[77].mxu1 }
 0x299   : > { %1323 = vrot.lane.b32.xlu1 %v771_v21, %s3164_s13 }
 0x29a   : > { %v3641_v2 = vpop.permute.xlu0 %926  ;;  %v3643_v11 = vpop.permute.xlu1 %934 }
 0x29b   : > { %v835_v12 = vpop.f32.mrb[78].mxu1 }
 0x29c   : > { %1295 = vrot.lane.b32.xlu0 %v781_v25, %s3165_s14  ;;  %v3646_v13 = vpop.f32.mrb[79].mxu1 }
 0x29d   : > { %1301 = vrot.lane.b32.xlu1 %v777_v23, %s3165_s14 }
 0x29e   : > { %v3649_v14 = vpop.permute.xlu0 %951  ;;  %v3651_v15 = vpop.permute.xlu1 %959 }
 0x2a0   : > { %1319 = vrot.lane.b32.xlu0 %v781_v25, %s3164_s13 }
 0x2a1   : > { %1325 = vrot.lane.b32.xlu1 %v777_v23, %s3164_s13 }
 0x2a2   : > { %v3655_v16 = vpop.permute.xlu0 %1002 }
 0x2a3   : > { %v3657_v17 = vpop.permute.xlu1 %1010 }
 0x2a4   : > { %1297 = vrot.lane.b32.xlu0 %v787_v28, %s3165_s14  ;;  %v1022_v9 = vsel %vm936_vm2, %v3657_v17, %v3655_v16 }
 0x2a5   : > { %1303 = vrot.lane.b32.xlu1 %v3574_v26, %s3165_s14 }
 0x2a6   : > { %v3662_v18 = vpop.permute.xlu0 %1026 }
 0x2a7   : > { %v3664_v19 = vpop.permute.xlu1 %1034 }
 0x2a8   : > { %1321 = vrot.lane.b32.xlu0 %v787_v28, %s3164_s13  ;;  %v1042_v6 = vsel %vm961_vm1, %v3662_v18, %v3664_v19  ;;  %v1046_v38 = vsel %vm961_vm1, %v3664_v19, %v3662_v18 }
 0x2a9   : > { %1327 = vrot.lane.b32.xlu1 %v3574_v26, %s3164_s13 }
 0x2aa   : > { %v3669_v21 = vpop.permute.xlu0 %1004 }
 0x2ab   : > { %v3671_v22 = vpop.permute.xlu1 %1012 }
 0x2ac   : > { %1371 = vrot.lane.b32.xlu0 %v817_v56, %s3165_s14 }
 0x2ad   : > { %1305 = vrot.lane.b32.xlu1 %v3582_v30, %s3165_s14 }
 0x2ae   : > { %v3676_v23 = vpop.permute.xlu0 %1028 }
 0x2af   : > { %v3678_v25 = vpop.permute.xlu1 %1036 }
 0x2b0   : > { %1395 = vrot.lane.b32.xlu0 %v817_v56, %s3164_s13 }
 0x2b1   : > { %1329 = vrot.lane.b32.xlu1 %v3582_v30, %s3164_s13 }
 0x2b2   : > { %v3683_v28 = vpop.permute.xlu0 %1006 }
 0x2b3   : > { %v3685_v26 = vpop.permute.xlu1 %1014 }
 0x2b4   : > { %1373 = vrot.lane.b32.xlu0 %v823_v60, %s3165_s14 }
 0x2b5   : > { %1379 = vrot.lane.b32.xlu1 %v819_v57, %s3165_s14 }
 0x2b6   : > { %v3689_v45 = vpop.permute.xlu0 %1030 }
 0x2b7   : > { %v3691_v29 = vpop.permute.xlu1 %1038 }
 0x2b8   : > { %1397 = vrot.lane.b32.xlu0 %v823_v60, %s3164_s13 }
 0x2b9   : > { %1403 = vrot.lane.b32.xlu1 %v819_v57, %s3164_s13 }
 0x2ba   : > { %v3695_v56 = vpop.permute.xlu0 %1008 }
 0x2bb   : > { %v3697_v30 = vpop.permute.xlu1 %1016 }
 0x2bc   : > { %1375 = vrot.lane.b32.xlu0 %v829_v0, %s3165_s14 }
 0x2bd   : > { %1381 = vrot.lane.b32.xlu1 %v825_v61, %s3165_s14 }
 0x2be   : > { %v3704_v24 = vpop.permute.xlu0 %1032 }
 0x2bf   : > { %v3708_v60 = vpop.permute.xlu1 %1040 }
 0x2c0   : > { %1399 = vrot.lane.b32.xlu0 %v829_v0, %s3164_s13  ;;  %v3727_v0 = vadd.s32 128, %v3699_v10 }
 0x2c1   : > { %1405 = vrot.lane.b32.xlu1 %v825_v61, %s3164_s13 }
 0x2c2   : > { %v3724_v7 = vpop.permute.xlu0 %1131  ;;  %5487 = vst [vmem:[#allocation17_spill] sm:$0xff] %v3727_v0  ;;  %v232_v3 = vand.u32 15, %v3727_v0  ;;  %vm252_vm9 = vcmp.ge.s32.totalorder %v3727_v0, 240 }
 0x2c3   : > { %5486 = vst [vmem:[#allocation16_spill] sm:$0xff] %v3724_v7  ;;  %v3729_v61 = vpop.permute.xlu1 %1139 }
 0x2c4   : > { %5488 = vst [vmem:[#allocation18_spill] sm:$0xff] %v3729_v61  ;;  %1377 = vrot.lane.b32.xlu0 %v835_v12, %s3165_s14  ;;  %v1050_v61 = vsel %vm3731_vm4, %v1022_v9, %v1042_v6  ;;  %v966_v6 = vsel %vm961_vm1, %v3601_v37, %v3591_v33  ;;  %vm3769_vm5 = vcmp.eq.s32.totalorder %v232_v3, 0  ;;  %v1047_v33 = vsel %vm961_vm1, %v3678_v25, %v3676_v23 }
 0x2c5   : > { %1383 = vrot.lane.b32.xlu1 %v3638_v1, %s3165_s14  ;;  %v1058_v27 = vadd.f32 %v1050_v61, %v986_v41  ;;  %v938_v41 = vsel %vm936_vm2, %v3611_v42, %v3613_v52  ;;  %vm3790_vm6 = vcmp.eq.s32.totalorder %v232_v3, 15  ;;  %v1019_v61 = vsel %vm936_vm2, %v3669_v21, %v3671_v22 }
 0x2c6   : > { %v3748_v4 = vpop.permute.xlu0 %1155  ;;  %v973_v37 = vsel %vm3769_vm5, %v967_v8, %v938_v41  ;;  %v1018_v9 = vsel %vm936_vm2, %v3655_v16, %v3657_v17  ;;  %v1053_v18 = vsel %vm3790_vm6, %v1019_v61, %v1047_v33  ;;  %v964_v16 = vsel %vm961_vm1, %v3633_v62, %v3635_v63 }
 0x2c7   : > { %5491 = vst [vmem:[#allocation19_spill] sm:$0xff] %v3748_v4  ;;  %v3753_v7 = vpop.permute.xlu1 %1163  ;;  %v989_v8 = vadd.f32 %v973_v37, %v3503_v47  ;;  %v963_v47 = vsel %vm961_vm1, %v3621_v54, %v3623_v55  ;;  %v942_v54 = vsel %vm936_vm2, %v3613_v52, %v3611_v42  ;;  %v1043_v37 = vsel %vm961_vm1, %v3676_v23, %v3678_v25 }
 0x2c8   : > { %1401 = vrot.lane.b32.xlu0 %v835_v12, %s3164_s13  ;;  %v971_v12 = vsel %vm3769_vm5, %v966_v6, %v937_v5  ;;  %v1051_v6 = vsel %vm3790_vm6, %v1018_v9, %v1046_v38  ;;  %v972_v38 = vsel %vm3716_vm3, %v963_v47, %v942_v54  ;;  %v1023_v42 = vsel %vm936_vm2, %v3671_v22, %v3669_v21 }
 0x2c9   : > { %1407 = vrot.lane.b32.xlu1 %v3638_v1, %s3164_s13  ;;  %v987_v5 = vadd.f32 %v971_v12, %v3497_v44  ;;  %v1061_v17 = vadd.f32 %v1053_v18, %v989_v8  ;;  %v943_v44 = vsel %vm936_vm2, %v3629_v59, %v3627_v58  ;;  %v1024_v12 = vsel %vm936_vm2, %v3685_v26, %v3683_v28 }
 0x2ca   : > { %v3763_v4 = vpop.permute.xlu0 %1157  ;;  %v974_v55 = vsel %vm3716_vm3, %v964_v16, %v943_v44  ;;  %v1052_v9 = vsel %vm3731_vm4, %v1023_v42, %v1043_v37  ;;  %v988_v18 = vadd.f32 %v972_v38, %v3499_v46  ;;  %v969_v21 = vsel %vm961_vm1, %v3651_v15, %v3649_v14 }
 0x2cb   : > { %v3777_v1 = vpop.permute.xlu1 %1133  ;;  %v1059_v33 = vadd.f32 %v1051_v6, %v987_v5  ;;  %v990_v25 = vadd.f32 %v974_v55, %v3505_v48  ;;  %v968_v48 = vsel %vm961_vm1, %v3635_v63, %v3633_v62  ;;  %v940_v46 = vsel %vm936_vm2, %v3641_v2, %v3643_v11 }
 0x2cc   : > { %1066 = vrot.lane.b32.xlu0 %v1058_v27, %s3166_s17  ;;  %v1060_v6 = vadd.f32 %v1052_v9, %v988_v18  ;;  %v1049_v16 = vsel %vm961_vm1, %v3708_v60, %v3704_v24  ;;  %v939_v62 = vsel %vm936_vm2, %v3627_v58, %v3629_v59  ;;  %v977_v63 = vsel %vm3769_vm5, %v969_v21, %v940_v46 }
 0x2cd   : > { %1385 = vrot.lane.b32.xlu1 %v3646_v13, %s3165_s14  ;;  %v975_v47 = vsel %vm3769_vm5, %v968_v48, %v939_v62  ;;  %v1020_v58 = vsel %vm936_vm2, %v3683_v28, %v3685_v26  ;;  %v993_v59 = vadd.f32 %v977_v63, %v3515_v51  ;;  %v965_v28 = vsel %vm961_vm1, %v3649_v14, %v3651_v15 }
 0x2ce   : > { %v3806_v3 = vpop.permute.xlu0 %1143  ;;  %v991_v54 = vadd.f32 %v975_v47, %v3509_v49  ;;  %v944_v49 = vsel %vm936_vm2, %v3643_v11, %v3641_v2  ;;  %v1045_v51 = vsel %vm961_vm1, %v3704_v24, %v3708_v60 }
 0x2cf   : > { %v3814_v19 = vpop.permute.xlu1 %1141  ;;  %v976_v14 = vsel %vm3716_vm3, %v965_v28, %v944_v49 }
 0x2d0   : > { %1090 = vrot.lane.b32.xlu0 %v1058_v27, %s3167_s18  ;;  %v992_v24 = vadd.f32 %v976_v14, %v3511_v50 }
 0x2d1   : > { %1409 = vrot.lane.b32.xlu1 %v3646_v13, %s3164_s13  ;;  %v1044_v13 = vsel %vm961_vm1, %v3689_v45, %v3691_v29 }
 0x2d2   : > { %v3827_v41 = vpop.permute.xlu0 %1167  ;;  %v1054_v52 = vsel %vm3731_vm4, %v1024_v12, %v1044_v13  ;;  %v1025_v12 = vsel %vm936_vm2, %v3697_v30, %v3695_v56 }
 0x2d3   : > { %v3833_v27 = vpop.permute.xlu1 %1165  ;;  %v1062_v22 = vadd.f32 %v1054_v52, %v990_v25  ;;  %v1056_v2 = vsel %vm3731_vm4, %v1025_v12, %v1045_v51 }
 0x2d4   : > { %1076 = vrot.lane.b32.xlu0 %v1061_v17, %s3166_s17  ;;  %v1064_v60 = vadd.f32 %v1056_v2, %v992_v24 }
 0x2d5   : > { %1074 = vrot.lane.b32.xlu1 %v1059_v33, %s3166_s17 }
 0x2d6   : > { %v3861_v61 = vpop.permute.xlu0 %1137 }
 0x2d7   : > { %v3869_v23 = vpop.permute.xlu1 %1135 }
 0x2d8   : > { %1100 = vrot.lane.b32.xlu0 %v1061_v17, %s3167_s18  ;;  %v1048_v17 = vsel %vm961_vm1, %v3691_v29, %v3689_v45 }
 0x2d9   : > { %1098 = vrot.lane.b32.xlu1 %v1059_v33, %s3167_s18  ;;  %v1021_v33 = vsel %vm936_vm2, %v3695_v56, %v3697_v30  ;;  %v1055_v13 = vsel %vm3790_vm6, %v1020_v58, %v1048_v17 }
 0x2da   : > { %v3881_v8 = vpop.permute.xlu0 %1161  ;;  %v1057_v45 = vsel %vm3790_vm6, %v1021_v33, %v1049_v16  ;;  %v1063_v26 = vadd.f32 %v1055_v13, %v991_v54 }
 0x2db   : > { %v3887_v5 = vpop.permute.xlu1 %1159  ;;  %v1065_v55 = vadd.f32 %v1057_v45, %v993_v59 }
 0x2dc   : > { %1070 = vrot.lane.b32.xlu0 %v1062_v22, %s3166_s17 }
 0x2dd   : > { %1068 = vrot.lane.b32.xlu1 %v1060_v6, %s3166_s17 }
 0x2de   : > { %v3915_v44 = vpop.permute.xlu0 %1211 }
 0x2df   : > { %v3923_v29 = vpop.permute.xlu1 %1145 }
 0x2e0   : > { %1094 = vrot.lane.b32.xlu0 %v1062_v22, %s3167_s18 }
 0x2e1   : > { %1092 = vrot.lane.b32.xlu1 %v1060_v6, %s3167_s18 }
 0x2e2   : > { %v3931_v37 = vpop.permute.xlu0 %1235 }
 0x2e3   : > { %v3937_v38 = vpop.permute.xlu1 %1169 }
 0x2e4   : > { %1080 = vrot.lane.b32.xlu0 %v1065_v55, %s3166_s17 }
 0x2e5   : > { %1078 = vrot.lane.b32.xlu1 %v1063_v26, %s3166_s17 }
 0x2e6   : > { %v3951_v15 = vpop.permute.xlu0 %1213 }
 0x2e7   : > { %v3957_v42 = vpop.permute.xlu1 %1219 }
 0x2e8   : > { %1104 = vrot.lane.b32.xlu0 %v1065_v55, %s3167_s18 }
 0x2e9   : > { %1102 = vrot.lane.b32.xlu1 %v1063_v26, %s3167_s18 }
 0x2ea   : > { %v3964_v11 = vpop.permute.xlu0 %1237 }
 0x2eb   : > { %v3966_v52 = vpop.permute.xlu1 %1243 }
 0x2ed   : > { %1072 = vrot.lane.b32.xlu1 %v1064_v60, %s3166_s17 }
 0x2ee   : > { %v3969_v25 = vpop.permute.xlu0 %1223 }
 0x2ef   : > { %5496 = vst [vmem:[#allocation20_spill] sm:$0xff] %v3969_v25  ;;  %v3971_v56 = vpop.permute.xlu1 %1221 }
 0x2f1   : > { %1096 = vrot.lane.b32.xlu1 %v1064_v60, %s3167_s18 }
 0x2f2   : > { %v3974_v30 = vpop.permute.xlu0 %1247 }
 0x2f3   : > { %5497 = vst [vmem:[#allocation21_spill] sm:$0xff] %v3974_v30  ;;  %v3976_v9 = vpop.permute.xlu1 %1245 }
 0x2f6   : > { %v3978_v50 = vpop.permute.xlu0 %1217 }
 0x2f7   : > { %5498 = vst [vmem:[#allocation22_spill] sm:$0xff] %v3978_v50  ;;  %v3980_v18 = vpop.permute.xlu1 %1215 }
 0x2f8   : > { %5499 = vst [vmem:[#allocation23_spill] sm:$0xff] %v3980_v18 }
 0x2fa   : > { %v3982_v21 = vpop.permute.xlu0 %1241 }
 0x2fb   : > { %5500 = vst [vmem:[#allocation24_spill] sm:$0xff] %v3982_v21  ;;  %v3984_v22 = vpop.permute.xlu1 %1239 }
 0x2fc   : > { %5501 = vst [vmem:[#allocation25_spill] sm:$0xff] %v3984_v22 }
 0x2fe   : > { %v1292_v48 = vpop.permute.xlu0 %1291 }
 0x2ff   : > { %v3986_v6 = vpop.permute.xlu1 %1225 }
 0x300   : > { %5502 = vst [vmem:[#allocation26_spill] sm:$0xff] %v3986_v6 }
 0x302   : > { %v1316_v46 = vpop.permute.xlu0 %1315 }
 0x303   : > { %v3988_v16 = vpop.permute.xlu1 %1249 }
 0x304   : > { %5503 = vst [vmem:[#allocation27_spill] sm:$0xff] %v3988_v16 }
 0x306   : > { %v1294_v62 = vpop.permute.xlu0 %1293 }
 0x307   : > { %v1300_v63 = vpop.permute.xlu1 %1299 }
 0x308   : > { %v1307_v60 = vsel %vm936_vm2, %v1292_v48, %v1300_v63  ;;  %v1311_v21 = vsel %vm936_vm2, %v1300_v63, %v1292_v48 }
 0x30a   : > { %v1318_v17 = vpop.permute.xlu0 %1317 }
 0x30b   : > { %v1324_v47 = vpop.permute.xlu1 %1323 }
 0x30c   : > { %v1331_v12 = vsel %vm961_vm1, %v1316_v46, %v1324_v47  ;;  %v1335_v2 = vsel %vm961_vm1, %v1324_v47, %v1316_v46 }
 0x30d   : > { %v1339_v50 = vsel %vm3716_vm3, %v1331_v12, %v1311_v21  ;;  %v1340_v6 = vsel %vm3769_vm5, %v1335_v2, %v1307_v60 }
 0x30e   : > { %v1296_v33 = vpop.permute.xlu0 %1295  ;;  %v1355_v22 = vadd.f32 %v1339_v50, %v3585_v31  ;;  %v1356_v30 = vadd.f32 %v1340_v6, %v3588_v32 }
 0x30f   : > { %v1302_v58 = vpop.permute.xlu1 %1301 }
 0x312   : > { %v1320_v45 = vpop.permute.xlu0 %1319 }
 0x313   : > { %v1326_v59 = vpop.permute.xlu1 %1325 }
 0x314   : > { %v1332_v63 = vsel %vm961_vm1, %v1318_v17, %v1326_v59  ;;  %v1336_v31 = vsel %vm961_vm1, %v1326_v59, %v1318_v17 }
 0x316   : > { %v3990_v13 = vpop.permute.xlu0 %1297 }
 0x317   : > { %v1304_v54 = vpop.permute.xlu1 %1303 }
 0x31a   : > { %v3992_v55 = vpop.permute.xlu0 %1321 }
 0x31b   : > { %v1328_v28 = vpop.permute.xlu1 %1327 }
 0x31e   : > { %v1372_v26 = vpop.permute.xlu0 %1371 }
 0x31f   : > { %v3994_v49 = vpop.permute.xlu1 %1305 }
 0x322   : > { %v1396_v51 = vpop.permute.xlu0 %1395 }
 0x323   : > { %v3996_v14 = vpop.permute.xlu1 %1329 }
 0x326   : > { %v1374_v24 = vpop.permute.xlu0 %1373 }
 0x327   : > { %v1380_v16 = vpop.permute.xlu1 %1379 }
 0x328   : > { %v1387_v47 = vsel %vm936_vm2, %v1372_v26, %v1380_v16  ;;  %v1391_v25 = vsel %vm936_vm2, %v1380_v16, %v1372_v26  ;;  %v1308_v26 = vsel %vm936_vm2, %v1294_v62, %v1302_v58 }
 0x329   : > { %v1342_v17 = vsel %vm3769_vm5, %v1336_v31, %v1308_v26 }
 0x32a   : > { %v1398_v18 = vpop.permute.xlu0 %1397 }
 0x32b   : > { %v1404_v46 = vpop.permute.xlu1 %1403 }
 0x32c   : > { %v1411_v48 = vsel %vm961_vm1, %v1396_v51, %v1404_v46  ;;  %v1415_v21 = vsel %vm961_vm1, %v1404_v46, %v1396_v51  ;;  %v1312_v51 = vsel %vm936_vm2, %v1302_v58, %v1294_v62 }
 0x32d   : > { %v1419_v32 = vsel %vm3731_vm4, %v1391_v25, %v1411_v48  ;;  %v1420_v50 = vsel %vm3790_vm6, %v1387_v47, %v1415_v21  ;;  %v1341_v2 = vsel %vm3716_vm3, %v1332_v63, %v1312_v51  ;;  %v1313_v63 = vsel %vm936_vm2, %v1304_v54, %v1296_v33 }
 0x32e   : > { %v1427_v6 = vadd.f32 %v1419_v32, %v1355_v22  ;;  %v1428_v16 = vadd.f32 %v1420_v50, %v1356_v30  ;;  %v1376_v25 = vpop.permute.xlu0 %1375  ;;  %v1357_v30 = vadd.f32 %v1341_v2, %v3595_v35  ;;  %v1358_v22 = vadd.f32 %v1342_v17, %v3598_v36 }
 0x32f   : > { %v1382_v12 = vpop.permute.xlu1 %1381  ;;  %v1333_v35 = vsel %vm961_vm1, %v1320_v45, %v1328_v28  ;;  %v1337_v36 = vsel %vm961_vm1, %v1328_v28, %v1320_v45 }
 0x330   : > { %1435 = vrot.lane.b32.xlu0 %v1427_v6, %s3166_s17  ;;  %1443 = vrot.lane.b32.xlu1 %v1428_v16, %s3166_s17  ;;  %v1388_v59 = vsel %vm936_vm2, %v1374_v24, %v1382_v12  ;;  %v1392_v58 = vsel %vm936_vm2, %v1382_v12, %v1374_v24  ;;  %v1343_v50 = vsel %vm3716_vm3, %v1333_v35, %v1313_v63  ;;  %v2962_v63 = vld [vmem:[%s5438_s3 + $0x28] sm:$0xff] }
 0x331   : > { %v1359_v28 = vadd.f32 %v1343_v50, %v3605_v39  ;;  %v1334_v39 = vsel %vm961_vm1, %v3992_v55, %v3996_v14  ;;  %v2963_v50 = vld [vmem:[%s5438_s3 + $0x30] sm:$0xff] }
 0x332   : > { %v1400_v31 = vpop.permute.xlu0 %1399 }
 0x333   : > { %v1406_v62 = vpop.permute.xlu1 %1405 }
 0x334   : > { %v1412_v60 = vsel %vm961_vm1, %v1398_v18, %v1406_v62  ;;  %v1416_v46 = vsel %vm961_vm1, %v1406_v62, %v1398_v18  ;;  %1459 = vrot.lane.b32.xlu0 %v1427_v6, %s3167_s18  ;;  %1467 = vrot.lane.b32.xlu1 %v1428_v16, %s3167_s18  ;;  %v1309_v18 = vsel %vm936_vm2, %v1296_v33, %v1304_v54 }
 0x335   : > { %v1421_v47 = vsel %vm3731_vm4, %v1392_v58, %v1412_v60  ;;  %v1422_v24 = vsel %vm3790_vm6, %v1388_v59, %v1416_v46  ;;  %v1344_v45 = vsel %vm3769_vm5, %v1337_v36, %v1309_v18  ;;  %v1314_v59 = vsel %vm936_vm2, %v3994_v49, %v3990_v13  ;;  %v5504_v60 = vld [vmem:[#allocation15_spill] sm:$0xff] }
 0x336   : > { %v1429_v48 = vadd.f32 %v1421_v47, %v1357_v30  ;;  %v1430_v21 = vadd.f32 %v1422_v24, %v1358_v22  ;;  %v1360_v6 = vadd.f32 %v1344_v45, %v3608_v40  ;;  %v1338_v40 = vsel %vm961_vm1, %v3996_v14, %v3992_v55  ;;  %v1378_v12 = vpop.permute.xlu0 %1377 }
 0x337   : > { %v1384_v32 = vpop.permute.xlu1 %1383  ;;  %v1310_v22 = vsel %vm936_vm2, %v3990_v13, %v3994_v49  ;;  %v1345_v14 = vsel %vm3716_vm3, %v1334_v39, %v1314_v59 }
 0x338   : > { %1445 = vrot.lane.b32.xlu0 %v1430_v21, %s3166_s17  ;;  %1437 = vrot.lane.b32.xlu1 %v1429_v48, %s3166_s17  ;;  %v1389_v16 = vsel %vm936_vm2, %v1376_v25, %v1384_v32  ;;  %v1393_v54 = vsel %vm936_vm2, %v1384_v32, %v1376_v25  ;;  %v1346_v62 = vsel %vm3769_vm5, %v1338_v40, %v1310_v22  ;;  %v2964_v32 = vld [vmem:[%s5438_s3 + $0x38] sm:$0xff] }
 0x339   : > { %v1361_v58 = vadd.f32 %v1345_v14, %v3615_v53  ;;  %v1362_v46 = vadd.f32 %v1346_v62, %v5504_v60  ;;  %v5507_v14 = vld [vmem:[#allocation18_spill] sm:$0xff] }
 0x33a   : > { %v1402_v35 = vpop.permute.xlu0 %1401 }
 0x33b   : > { %v1408_v33 = vpop.permute.xlu1 %1407 }
 0x33c   : > { %v1413_v26 = vsel %vm961_vm1, %v1400_v31, %v1408_v33  ;;  %v1417_v51 = vsel %vm961_vm1, %v1408_v33, %v1400_v31  ;;  %1469 = vrot.lane.b32.xlu0 %v1430_v21, %s3167_s18  ;;  %1461 = vrot.lane.b32.xlu1 %v1429_v48, %s3167_s18  ;;  %v2961_v31 = vld [vmem:[%s5438_s3 + $0x20] sm:$0xff] }
 0x33d   : > { %v1423_v2 = vsel %vm3731_vm4, %v1393_v54, %v1413_v26  ;;  %v1424_v17 = vsel %vm3790_vm6, %v1389_v16, %v1417_v51 }
 0x33e   : > { %v1431_v25 = vadd.f32 %v1423_v2, %v1359_v28  ;;  %v1432_v30 = vadd.f32 %v1424_v17, %v1360_v6  ;;  %v1067_v45 = vpop.permute.xlu0 %1066 }
 0x33f   : > { %v1386_v55 = vpop.permute.xlu1 %1385 }
 0x340   : > { %1439 = vrot.lane.b32.xlu0 %v1431_v25, %s3166_s17  ;;  %1447 = vrot.lane.b32.xlu1 %v1432_v30, %s3166_s17  ;;  %v1390_v36 = vsel %vm936_vm2, %v1378_v12, %v1386_v55  ;;  %v1394_v49 = vsel %vm936_vm2, %v1386_v55, %v1378_v12  ;;  %v5506_v55 = vld [vmem:[#allocation16_spill] sm:$0xff] }
 0x341   : > { %v1151_v62 = vsel %vm936_vm2, %v5507_v14, %v5506_v55 }
 0x342   : > { %v1091_v6 = vpop.permute.xlu0 %1090 }
 0x343   : > { %v1410_v13 = vpop.permute.xlu1 %1409 }
 0x344   : > { %v1414_v47 = vsel %vm961_vm1, %v1402_v35, %v1410_v13  ;;  %v1418_v24 = vsel %vm961_vm1, %v1410_v13, %v1402_v35  ;;  %1463 = vrot.lane.b32.xlu0 %v1431_v25, %s3167_s18  ;;  %1471 = vrot.lane.b32.xlu1 %v1432_v30, %s3167_s18  ;;  %v5505_v30 = vld [vmem:[#allocation19_spill] sm:$0xff] }
 0x345   : > { %v1425_v53 = vsel %vm3731_vm4, %v1394_v49, %v1414_v47  ;;  %v1426_v48 = vsel %vm3790_vm6, %v1390_v36, %v1418_v24  ;;  %v1171_v22 = vsel %vm961_vm1, %v5505_v30, %v3753_v7  ;;  %v1175_v59 = vsel %vm961_vm1, %v3753_v7, %v5505_v30 }
 0x346   : > { %v1433_v21 = vadd.f32 %v1425_v53, %v1361_v58  ;;  %v1434_v18 = vadd.f32 %v1426_v48, %v1362_v46  ;;  %v4138_v33 = vpop.permute.xlu0 %1076  ;;  %v1147_v58 = vsel %vm936_vm2, %v5506_v55, %v5507_v14  ;;  %v1179_v60 = vsel %vm3716_vm3, %v1171_v22, %v1151_v62 }
 0x347   : > { %v1075_v28 = vpop.permute.xlu1 %1074  ;;  %v1172_v7 = vsel %vm961_vm1, %v3763_v4, %v3833_v27  ;;  %v1251_v46 = vsel %vm961_vm1, %v3931_v37, %v3966_v52  ;;  %v1180_v13 = vsel %vm3769_vm5, %v1175_v59, %v1147_v58  ;;  %v1255_v49 = vsel %vm961_vm1, %v3966_v52, %v3931_v37 }
 0x348   : > { %1449 = vrot.lane.b32.xlu0 %v1434_v18, %s3166_s17  ;;  %1441 = vrot.lane.b32.xlu1 %v1433_v21, %s3166_s17  ;;  %v1152_v47 = vsel %vm936_vm2, %v3814_v19, %v3777_v1  ;;  %v1176_v24 = vsel %vm961_vm1, %v3833_v27, %v3763_v4  ;;  %v1231_v53 = vsel %vm936_vm2, %v3957_v42, %v3915_v44 }
 0x349   : > { %v1181_v52 = vsel %vm3716_vm3, %v1172_v7, %v1152_v47  ;;  %v1259_v4 = vsel %vm3731_vm4, %v1231_v53, %v1251_v46  ;;  %v1148_v27 = vsel %vm936_vm2, %v3777_v1, %v3814_v19  ;;  %v5510_v19 = vld [vmem:[#allocation5_spill] sm:$0xff]  ;;  %v1153_v22 = vsel %vm936_vm2, %v3806_v3, %v3869_v23 }
 0x34a   : > { %v1101_v26 = vpop.permute.xlu0 %1100  ;;  %v1197_v30 = vadd.f32 %v1181_v52, %v5510_v19  ;;  %v1082_v55 = vsel %vm249_vm8, %v1067_v45, %v1075_v28  ;;  %v1177_v14 = vsel %vm961_vm1, %v3827_v41, %v3887_v5 }
 0x34b   : > { %v1099_v16 = vpop.permute.xlu1 %1098 }
 0x34c   : > { %1473 = vrot.lane.b32.xlu0 %v1434_v18, %s3167_s18  ;;  %1465 = vrot.lane.b32.xlu1 %v1433_v21, %s3167_s18  ;;  %v1107_v48 = vsel %vm1106_vm7, %v1091_v6, %v1099_v16  ;;  %v5508_v21 = vld [vmem:[#allocation3_spill] sm:$0xff]  ;;  %v1227_v18 = vsel %vm936_vm2, %v3915_v44, %v3957_v42  ;;  %v1182_v16 = vsel %vm3769_vm5, %v1176_v24, %v1148_v27 }
 0x34d   : > { %v1195_v37 = vadd.f32 %v1179_v60, %v5508_v21  ;;  %v1228_v60 = vsel %vm936_vm2, %v3951_v15, %v3971_v56  ;;  %v1232_v24 = vsel %vm936_vm2, %v3971_v56, %v3951_v15  ;;  %v5511_v15 = vld [vmem:[#allocation6_spill] sm:$0xff]  ;;  %v5513_v27 = vld [vmem:[#allocation7_spill] sm:$0xff] }
 0x34e   : > { %v4142_v39 = vpop.permute.xlu0 %1070  ;;  %v1198_v56 = vadd.f32 %v1182_v16, %v5511_v15 }
 0x34f   : > { %v4140_v54 = vpop.permute.xlu1 %1068  ;;  %v1267_v59 = vadd.f32 %v1259_v4, %v1195_v37 }
 0x350   : > { %2730 = vperm.xlu0 %3144, %v2962_v63   ;;  %2725 = vperm.xlu1 %3145, %v2961_v31   ;;  %v1173_v63 = vsel %vm961_vm1, %v3887_v5, %v3827_v41  ;;  %v1260_v31 = vsel %vm3790_vm6, %v1227_v18, %v1255_v49  ;;  %v1256_v41 = vsel %vm961_vm1, %v3976_v9, %v3964_v11 }
 0x351   : > { %v1183_v62 = vsel %vm3716_vm3, %v1173_v63, %v1153_v22  ;;  %v1262_v37 = vsel %vm3790_vm6, %v1228_v60, %v1256_v41 }
 0x352   : > { %v4146_v12 = vpop.permute.xlu0 %1094  ;;  %v1199_v63 = vadd.f32 %v1183_v62, %v5513_v27 }
 0x353   : > { %v1093_v51 = vpop.permute.xlu1 %1092 }
 0x354   : > { %2740 = vperm.xlu0 %3144, %v2964_v32   ;;  %2735 = vperm.xlu1 %3145, %v2963_v50   ;;  %v1086_v32 = vsel %vm249_vm8, %v1075_v28, %v1067_v45  ;;  %v5509_v50 = vld [vmem:[#allocation4_spill] sm:$0xff]  ;;  %v1252_v45 = vsel %vm961_vm1, %v3964_v11, %v3976_v9  ;;  %v1108_v11 = vsel %vm1106_vm7, %v1093_v51, %v1101_v26 }
 0x355   : > { %v1196_v6 = vadd.f32 %v1180_v13, %v5509_v50  ;;  %v1115_v1 = vsel %vm249_vm8, %v1107_v48, %v1086_v32  ;;  %v1149_v48 = vsel %vm936_vm2, %v3869_v23, %v3806_v3  ;;  %v1261_v21 = vsel %vm3731_vm4, %v1232_v24, %v1252_v45  ;;  %v5512_v3 = vld [vmem:[#allocation11_spill] sm:$0xff] }
 0x356   : > { %v4150_v17 = vpop.permute.xlu0 %1080  ;;  %v1275_v5 = vadd.f32 %v1267_v59, %v1115_v1  ;;  %v1184_v26 = vsel %vm3769_vm5, %v1177_v14, %v1149_v48  ;;  %v1087_v51 = vsel %vm249_vm8, %v4138_v33, %v4140_v54  ;;  %v1269_v50 = vadd.f32 %v1261_v21, %v1197_v30  ;;  %v5516_v59 = vld [vmem:[#allocation21_spill] sm:$0xff] }
 0x357   : > { %v4144_v40 = vpop.permute.xlu1 %1078  ;;  %v1268_v58 = vadd.f32 %v1260_v31, %v1196_v6  ;;  %v1083_v31 = vsel %vm249_vm8, %v4140_v54, %v4138_v33  ;;  %v1117_v32 = vsel %vm249_vm8, %v1108_v11, %v1087_v51  ;;  %v1270_v6 = vadd.f32 %v1262_v37, %v1198_v56  ;;  %v5514_v33 = vld [vmem:[#allocation20_spill] sm:$0xff]  ;;  %v5515_v54 = vld [vmem:[#allocation23_spill] sm:$0xff] }
 0x358   : > { %v1174_v1 = vsel %vm961_vm1, %v3881_v8, %v3937_v38  ;;  %v1229_v19 = vsel %vm936_vm2, %v5515_v54, %v5514_v33  ;;  %v1233_v22 = vsel %vm936_vm2, %v5514_v33, %v5515_v54  ;;  %v1277_v60 = vadd.f32 %v1269_v50, %v1117_v32  ;;  %v3147_v11 = vld [vmem:[%s3241_s24] sm:$0xff]  ;;  %v5521_v56 = vld [vmem:[#allocation12_spill] sm:$0xff] }
 0x359   : > { %v1276_v46 = vadd.f32 %v1268_v58, %v1082_v55  ;;  %v5517_v55 = vld [vmem:[#allocation25_spill] sm:$0xff]  ;;  %v1278_v58 = vadd.f32 %v1270_v6, %v1083_v31  ;;  %v1088_v15 = vsel %vm249_vm8, %v4144_v40, %v4142_v39  ;;  %v5526_v50 = vld [vmem:[#allocation24_spill] sm:$0xff] }
 0x35a   : > { %v4181_v35 = vpop.permute.xlu0 %1104  ;;  %v1253_v14 = vsel %vm961_vm1, %v5517_v55, %v5516_v59  ;;  %v1257_v62 = vsel %vm961_vm1, %v5516_v59, %v5517_v55 }
 0x35b   : > { %v4148_v2 = vpop.permute.xlu1 %1102  ;;  %v1263_v48 = vsel %vm3731_vm4, %v1233_v22, %v1253_v14  ;;  %v1264_v21 = vsel %vm3790_vm6, %v1229_v19, %v1257_v62  ;;  %v3148_v22 = vld [vmem:[%s3241_s24 + $0x10] sm:$0xff]  ;;  %v3149_v62 = vld [vmem:[%s3241_s24 + $0x18] sm:$0xff] }
 0x35c   : > { %v1271_v27 = vadd.f32 %v1263_v48, %v1199_v63  ;;  %v5530_v48 = vld [vmem:[#allocation13_spill] sm:$0xff] }
 0x35f   : > { %v4152_v25 = vpop.permute.xlu1 %1072 }
 0x363   : > { %v4183_v36 = vpop.permute.xlu1 %1096 }
 0x3a2   : > { %v1436_v44 = vpop.permute.xlu0 %1435  ;;  %v1444_v42 = vpop.permute.xlu1 %1443 }
 0x3a3   : > { %v1451_v13 = vsel %vm249_vm8, %v1436_v44, %v1444_v42  ;;  %v1154_v42 = vsel %vm936_vm2, %v3923_v29, %v3861_v61 }
 0x3a6   : > { %v1460_v28 = vpop.permute.xlu0 %1459  ;;  %v1468_v7 = vpop.permute.xlu1 %1467 }
 0x3a7   : > { %v1475_v49 = vsel %vm1106_vm7, %v1460_v28, %v1468_v7  ;;  %v1479_v47 = vsel %vm1106_vm7, %v1468_v7, %v1460_v28 }
 0x3a8   : > { %v1484_v9 = vsel %vm252_vm9, %v1451_v13, %v1479_v47  ;;  %v1491_v53 = vadd.f32 %v1475_v49, %v1275_v5  ;;  %v1109_v49 = vsel %vm1106_vm7, %v4146_v12, %v4148_v2  ;;  %v5520_v12 = vld [vmem:[#allocation8_spill] sm:$0xff] }
 0x3a9   : > { %v1492_v52 = vadd.f32 %v1484_v9, %v1276_v46  ;;  %v3146_v46 = vld [vmem:[%s3241_s24 + $0x8] sm:$0xff]  ;;  %v1200_v2 = vadd.f32 %v1184_v26, %v5520_v12  ;;  %v1084_v26 = vsel %vm249_vm8, %v4142_v39, %v4144_v40  ;;  %v5525_v40 = vld [vmem:[#allocation27_spill] sm:$0xff] }
 0x3aa   : > { %v1446_v18 = vpop.permute.xlu0 %1445  ;;  %v1438_v4 = vpop.permute.xlu1 %1437  ;;  %v1523_v23 = vadd.f32 %v5512_v3, %v1491_v53  ;;  %v1178_v53 = vsel %vm961_vm1, %v3937_v38, %v3881_v8  ;;  %v1254_v6 = vsel %vm961_vm1, %v5526_v50, %v5525_v40  ;;  %v1258_v63 = vsel %vm961_vm1, %v5525_v40, %v5526_v50 }
 0x3ab   : > { %v1524_v44 = vadd.f32 %v5512_v3, %v1492_v52  ;;  %v1452_v5 = vsel %vm249_vm8, %v1438_v4, %v1446_v18  ;;  %v1185_v52 = vsel %vm3716_vm3, %v1174_v1, %v1154_v42  ;;  %v1150_v18 = vsel %vm936_vm2, %v3861_v61, %v3923_v29  ;;  %v5523_v29 = vld [vmem:[#allocation26_spill] sm:$0xff] }
 0x3ac   : > { %v1531_v16 = vmax.f32 %v1523_v23, 0.0  ;;  %v1119_v4 = vsel %vm249_vm8, %v1109_v49, %v1088_v15  ;;  %v1186_v23 = vsel %vm3769_vm5, %v1178_v53, %v1150_v18  ;;  %v1272_v31 = vadd.f32 %v1264_v21, %v1200_v2  ;;  %v5524_v42 = vld [vmem:[#allocation22_spill] sm:$0xff] }
 0x3ad   : > { %v1532_v30 = vmax.f32 %v1524_v44, 0.0  ;;  %v5522_v44 = vld [vmem:[#allocation9_spill] sm:$0xff]  ;;  %v1230_v39 = vsel %vm936_vm2, %v5524_v42, %v5523_v29  ;;  %v1279_v33 = vadd.f32 %v1271_v27, %v1119_v4 }
 0x3ae   : > { %v1470_v45 = vpop.permute.xlu0 %1469  ;;  %v1462_v41 = vpop.permute.xlu1 %1461  ;;  %v4336_v9 = vadd.f32 %v3147_v11, %v1531_v16  ;;  %v1201_v61 = vadd.f32 %v1185_v52, %v5522_v44  ;;  %v1280_v1 = vadd.f32 %v1272_v31, %v1084_v26 }
 0x3af   : > { %v1476_v28 = vsel %vm1106_vm7, %v1462_v41, %v1470_v45  ;;  %v1480_v7 = vsel %vm1106_vm7, %v1470_v45, %v1462_v41  ;;  %v4327_v13 = vadd.f32 %v3146_v46, %v1532_v30  ;;  %v1110_v45 = vsel %vm1106_vm7, %v4183_v36, %v4181_v35 }
 0x3b0   : > { %v1486_v47 = vsel %vm252_vm9, %v1452_v5, %v1480_v7  ;;  %v1493_v24 = vadd.f32 %v1476_v28, %v1277_v60  ;;  %5519 = vst [vmem:[#allocation19_spill] sm:$0xff] %v4336_v9  ;;  %v1234_v60 = vsel %vm936_vm2, %v5523_v29, %v5524_v42  ;;  %v1266_v7 = vsel %vm3790_vm6, %v1230_v39, %v1258_v63  ;;  %v5533_v29 = vld [vmem:[#allocation14_spill] sm:$0xff] }
 0x3b1   : > { %5518 = vst [vmem:[#allocation15_spill] sm:$0xff] %v4327_v13  ;;  %v1494_v37 = vadd.f32 %v1486_v47, %v1278_v58  ;;  %1611 = vmatprep.mubr.f32.mxu0 %v4327_v13  ;;  %v1265_v28 = vsel %vm3731_vm4, %v1234_v60, %v1254_v6  ;;  %v5529_v47 = vld [vmem:[#allocation10_spill] sm:$0xff]  ;;  %v1089_v35 = vsel %vm249_vm8, %v4150_v17, %v4152_v25  ;;  %v3152_v6 = vld [vmem:[%s3241_s24 + $0x30] sm:$0xff] }
 0x3b2   : > { %v1440_v8 = vpop.permute.xlu0 %1439  ;;  %1612 = vmatmul.mubr.f32.vlgmr.msra.gmra.mrb[0].mxu0 %v4336_v9  ;;  %v1448_v38 = vpop.permute.xlu1 %1447  ;;  %v1525_v51 = vadd.f32 %v5521_v56, %v1493_v24  ;;  %v1202_v24 = vadd.f32 %v1186_v23, %v5529_v47  ;;  %v1121_v12 = vsel %vm249_vm8, %v1110_v45, %v1089_v35  ;;  %v1273_v52 = vadd.f32 %v1265_v28, %v1201_v61  ;;  %v3153_v63 = vld [vmem:[%s3241_s24 + $0x38] sm:$0xff]  ;;  %v2890_v47 = vld [vmem:[%s5437_s2 + $0x128] sm:$0xff] }
 0x3b3   : > { %v1526_v3 = vadd.f32 %v5521_v56, %v1494_v37  ;;  %v1453_v59 = vsel %vm249_vm8, %v1440_v8, %v1448_v38  ;;  %v1085_v37 = vsel %vm249_vm8, %v4152_v25, %v4150_v17  ;;  %v2892_v35 = vld [vmem:[%s5437_s2 + $0x138] sm:$0xff] }
 0x3b4   : > { %v1533_v32 = vmax.f32 %v1525_v51, 0.0  ;;  %v1274_v15 = vadd.f32 %v1266_v7, %v1202_v24  ;;  %v1281_v51 = vadd.f32 %v1273_v52, %v1121_v12  ;;  %v2891_v24 = vld [vmem:[%s5437_s2 + $0x130] sm:$0xff]  ;;  %v2901_v52 = vld [vmem:[%s5437_s2 + $0x180] sm:$0xff] }
 0x3b5   : > { %v1534_v16 = vmax.f32 %v1526_v3, 0.0  ;;  %v3150_v3 = vld [vmem:[%s3241_s24 + $0x28] sm:$0xff]  ;;  %v2899_v12 = vld [vmem:[%s5437_s2 + $0x170] sm:$0xff] }
 0x3b6   : > { %v1464_v54 = vpop.permute.xlu0 %1463  ;;  %v1472_v19 = vpop.permute.xlu1 %1471  ;;  %v4383_v30 = vadd.f32 %v3148_v22, %v1533_v32  ;;  %v1282_v56 = vadd.f32 %v1274_v15, %v1085_v37  ;;  %v3151_v32 = vld [vmem:[%s3241_s24 + $0x20] sm:$0xff]  ;;  %v2898_v37 = vld [vmem:[%s5437_s2 + $0x168] sm:$0xff] }
 0x3b7   : > { %v1477_v55 = vsel %vm1106_vm7, %v1464_v54, %v1472_v19  ;;  %v1481_v14 = vsel %vm1106_vm7, %v1472_v19, %v1464_v54  ;;  %v4392_v58 = vadd.f32 %v3149_v62, %v1534_v16  ;;  %v5536_v19 = vmov 0.0   ;;  %v2902_v15 = vld [vmem:[%s5437_s2 + $0x188] sm:$0xff] }
 0x3b8   : > { %5527 = vst [vmem:[#allocation16_spill] sm:$0xff] %v4383_v30  ;;  %v1488_v41 = vsel %vm252_vm9, %v1453_v59, %v1481_v14  ;;  %v1495_v5 = vadd.f32 %v1477_v55, %v1279_v33  ;;  %v3116_v53 = vpack.c.bf16 %v4383_v30, %v4336_v9 }
 0x3b9   : > { %5528 = vst [vmem:[#allocation18_spill] sm:$0xff] %v4392_v58  ;;  %v1496_v46 = vadd.f32 %v1488_v41, %v1280_v1  ;;  %1617 = vmatprep.mubr.f32.mxu0 %v4392_v58  ;;  %v3114_v49 = vpack.c.bf16 %v4392_v58, %v4327_v13 }
 0x3ba   : > { %v1450_v36 = vpop.permute.xlu0 %1449  ;;  %1618 = vmatmul.mubr.f32.gmra.mrb[2].mxu0 %v4383_v30  ;;  %v1442_v11 = vpop.permute.xlu1 %1441  ;;  %v1527_v21 = vadd.f32 %v5530_v48, %v1495_v5 }
 0x3bb   : > { %3115 = vmatprep.subr.bf16.mxu0 %v3114_v49  ;;  %v1528_v2 = vadd.f32 %v5530_v48, %v1496_v46  ;;  %v1454_v17 = vsel %vm249_vm8, %v1442_v11, %v1450_v36  ;;  %v2889_v49 = vld [vmem:[%s5437_s2 + $0x120] sm:$0xff]  ;;  %v2894_v11 = vld [vmem:[%s5437_s2 + $0x148] sm:$0xff]  ;;  %v2896_v48 = vld [vmem:[%s5437_s2 + $0x158] sm:$0xff] }
 0x3bc   : > { %3117 = vmatpush1.bf16.msra.mxu0 %v3116_v53  ;;  %v1535_v8 = vmax.f32 %v1527_v21, 0.0  ;;  %v2893_v36 = vld [vmem:[%s5437_s2 + $0x140] sm:$0xff]  ;;  %v2895_v53 = vld [vmem:[%s5437_s2 + $0x150] sm:$0xff] }
 0x3bd   : > { %v1536_v38 = vmax.f32 %v1528_v2, 0.0  ;;  %v2897_v21 = vld [vmem:[%s5437_s2 + $0x160] sm:$0xff]  ;;  %v2900_v2 = vld [vmem:[%s5437_s2 + $0x178] sm:$0xff] }
 0x3be   : > { %v1474_v18 = vpop.permute.xlu0 %1473  ;;  %v1466_v26 = vpop.permute.xlu1 %1465  ;;  %v4439_v44 = vadd.f32 %v3151_v32, %v1535_v8  ;;  %v2903_v8 = vld [vmem:[%s5437_s2 + $0x190] sm:$0xff] }
 0x3bf   : > { %v1478_v25 = vsel %vm1106_vm7, %v1466_v26, %v1474_v18  ;;  %v1482_v4 = vsel %vm1106_vm7, %v1474_v18, %v1466_v26  ;;  %v4434_v23 = vadd.f32 %v3150_v3, %v1536_v38  ;;  %v2904_v38 = vld [vmem:[%s5437_s2 + $0x198] sm:$0xff]  ;;  %v2907_v18 = vld [vmem:[%s5437_s2 + $0x1b0] sm:$0xff] }
 0x3c0   : > { %v1490_v27 = vsel %vm252_vm9, %v1454_v17, %v1482_v4  ;;  %v1497_v31 = vadd.f32 %v1478_v25, %v1281_v51  ;;  %5532 = vst [vmem:[#allocation4_spill] sm:$0xff] %v4439_v44  ;;  %v2906_v51 = vld [vmem:[%s5437_s2 + $0x1a8] sm:$0xff]  ;;  %v2908_v26 = vld [vmem:[%s5437_s2 + $0x1b8] sm:$0xff]  ;;  %v2909_v17 = vld [vmem:[%s5437_s2 + $0x1c0] sm:$0xff] }
 0x3c1   : > { %5531 = vst [vmem:[#allocation3_spill] sm:$0xff] %v4434_v23  ;;  %v1498_v61 = vadd.f32 %v1490_v27, %v1282_v56  ;;  %1623 = vmatprep.mubr.f32.mxu0 %v4434_v23  ;;  %v2905_v56 = vld [vmem:[%s5437_s2 + $0x1a0] sm:$0xff]  ;;  %v2910_v25 = vld [vmem:[%s5437_s2 + $0x1c8] sm:$0xff]  ;;  %v2911_v4 = vld [vmem:[%s5437_s2 + $0x1d0] sm:$0xff] }
 0x3c2   : > { %1624 = vmatmul.mubr.f32.gmra.mrb[4].mxu0 %v4439_v44  ;;  %v1529_v42 = vadd.f32 %v5533_v29, %v1497_v31  ;;  %v2912_v3 = vld [vmem:[%s5437_s2 + $0x1d8] sm:$0xff]  ;;  %v2913_v27 = vld [vmem:[%s5437_s2 + $0x1e0] sm:$0xff]  ;;  %v2914_v31 = vld [vmem:[%s5437_s2 + $0x1e8] sm:$0xff] }
 0x3c3   : > { %v1530_v39 = vadd.f32 %v5533_v29, %v1498_v61  ;;  %v2915_v32 = vld [vmem:[%s5437_s2 + $0x1f0] sm:$0xff]  ;;  %v2916_v61 = vld [vmem:[%s5437_s2 + $0x1f8] sm:$0xff]  ;;  %v2917_v29 = vld [vmem:[%s5437_s2 + $0x200] sm:$0xff] }
 0x3c4   : > { %v1537_v40 = vmax.f32 %v1529_v42, 0.0  ;;  %v2918_v42 = vld [vmem:[%s5437_s2 + $0x208] sm:$0xff] }
 0x3c5   : > { %v1538_v50 = vmax.f32 %v1530_v39, 0.0  ;;  %v2919_v39 = vld [vmem:[%s5437_s2 + $0x210] sm:$0xff] }
 0x3c6   : > { %v4446_v16 = vadd.f32 %v3152_v6, %v1537_v40  ;;  %v2920_v40 = vld [vmem:[%s5437_s2 + $0x218] sm:$0xff]  ;;  %v2922_v6 = vld [vmem:[%s5437_s2 + $0x228] sm:$0xff] }
 0x3c7   : > { %v4449_v1 = vadd.f32 %v3153_v63, %v1538_v50  ;;  %v2921_v50 = vld [vmem:[%s5437_s2 + $0x220] sm:$0xff]  ;;  %v2923_v63 = vld [vmem:[%s5437_s2 + $0x230] sm:$0xff] }
 0x3c8   : > { %5534 = vst [vmem:[#allocation5_spill] sm:$0xff] %v4446_v16  ;;  %v3120_v54 = vpack.c.bf16 %v4446_v16, %v4439_v44 }
 0x3c9   : > { %5535 = vst [vmem:[#allocation6_spill] sm:$0xff] %v4449_v1  ;;  %1629 = vmatprep.mubr.f32.mxu0 %v4449_v1  ;;  %v3118_v33 = vpack.c.bf16 %v4449_v1, %v4434_v23 }
 0x3ca   : > { %1630 = vmatmul.mubr.f32.gmra.mrb[6].mxu0 %v4446_v16 }
 0x3cb   : > { %3119 = vmatprep.subr.bf16.mxu0 %v3118_v33  ;;  %1845 = vmatprep.mubr.f32.mxu0 %v5536_v19  ;;  %v2924_v33 = vld [vmem:[%s5437_s2 + $0x238] sm:$0xff] }
 0x3cc   : > { %3121 = vmatpush1.bf16.msra.mxu0 %v3120_v54 }
 0x485   : > { %v1613_v22 = vpop.f32.mrb[0].mxu0 }
 0x486   : > { %v1615_v59 = vpop.f32.mrb[1].mxu0 }
 0x48d   : > { %v1619_v55 = vpop.f32.mrb[2].mxu0 }
 0x48e   : > { %v3124_v14 = vpack.c.bf16 %v1619_v55, %v1613_v22  ;;  %v1621_v62 = vpop.f32.mrb[3].mxu0 }
 0x48f   : > { %v3122_v60 = vpack.c.bf16 %v1621_v62, %v1615_v59 }
 0x491   : > { %3123 = vmatprep.subr.bf16.mxu0 %v3122_v60 }
 0x492   : > { %3125 = vmatpush1.bf16.msra.mxu0 %v3124_v14 }
 0x495   : > { %v1625_v45 = vpop.f32.mrb[4].mxu0 }
 0x496   : > { %v1627_v41 = vpop.f32.mrb[5].mxu0 }
 0x49d   : > { %v1631_v5 = vpop.f32.mrb[6].mxu0 }
 0x49e   : > { %v3128_v28 = vpack.c.bf16 %v1631_v5, %v1625_v45  ;;  %v1633_v7 = vpop.f32.mrb[7].mxu0 }
 0x49f   : > { %v3126_v46 = vpack.c.bf16 %v1633_v7, %v1627_v41 }
 0x4a1   : > { %3127 = vmatprep.subr.bf16.mxu0 %v3126_v46 }
 0x4a2   : > { %3129 = vmatpush1.bf16.msra.mxu0 %v3128_v28 }
 0x4a5   : > { %2925 = vmatmul.mubr.msk.f32.vlgmr.msra.gmra.mrb[8].mxu0 %vm450_vm0, %v2889_v49 }
 0x4a6   : > { %1851 = vmatprep.mubr.f32.mxu0 %v5536_v19 }
 0x4a9   : > { %2926 = vmatmul.mubr.msk.f32.gmra.mrb[10].mxu0 %vm450_vm0, %v2890_v47 }
 0x4aa   : > { %1857 = vmatprep.mubr.f32.mxu0 %v5536_v19 }
 0x4ad   : > { %2927 = vmatmul.mubr.msk.f32.gmra.mrb[12].mxu0 %vm450_vm0, %v2891_v24 }
 0x4ae   : > { %1863 = vmatprep.mubr.f32.mxu0 %v5536_v19 }
 0x4b1   : > { %2928 = vmatmul.mubr.msk.f32.gmra.mrb[14].mxu0 %vm450_vm0, %v2892_v35 }
 0x4b2   : > { %1869 = vmatprep.mubr.f32.mxu0 %v5536_v19 }
 0x4b5   : > { %2929 = vmatmul.mubr.msk.f32.gmra.mrb[16].mxu0 %vm450_vm0, %v2893_v36 }
 0x4b6   : > { %1875 = vmatprep.mubr.f32.mxu0 %v5536_v19 }
 0x4b9   : > { %2930 = vmatmul.mubr.msk.f32.gmra.mrb[18].mxu0 %vm450_vm0, %v2894_v11 }
 0x4ba   : > { %1881 = vmatprep.mubr.f32.mxu0 %v5536_v19 }
 0x4bd   : > { %2931 = vmatmul.mubr.msk.f32.gmra.mrb[20].mxu0 %vm450_vm0, %v2895_v53 }
 0x4be   : > { %1887 = vmatprep.mubr.f32.mxu0 %v5536_v19 }
 0x4c1   : > { %2932 = vmatmul.mubr.msk.f32.gmra.mrb[22].mxu0 %vm450_vm0, %v2896_v48 }
 0x4c2   : > { %1893 = vmatprep.mubr.f32.mxu0 %v5536_v19 }
 0x4c5   : > { %2933 = vmatmul.mubr.msk.f32.gmra.mrb[24].mxu0 %vm450_vm0, %v2897_v21 }
 0x4c6   : > { %1899 = vmatprep.mubr.f32.mxu0 %v5536_v19 }
 0x4c9   : > { %2934 = vmatmul.mubr.msk.f32.gmra.mrb[26].mxu0 %vm450_vm0, %v2898_v37 }
 0x4ca   : > { %1905 = vmatprep.mubr.f32.mxu0 %v5536_v19 }
 0x4cd   : > { %2935 = vmatmul.mubr.msk.f32.gmra.mrb[28].mxu0 %vm450_vm0, %v2899_v12 }
 0x4ce   : > { %1911 = vmatprep.mubr.f32.mxu0 %v5536_v19 }
 0x4d1   : > { %2936 = vmatmul.mubr.msk.f32.gmra.mrb[30].mxu0 %vm450_vm0, %v2900_v2 }
 0x4d2   : > { %1917 = vmatprep.mubr.f32.mxu0 %v5536_v19 }
 0x4d5   : > { %2937 = vmatmul.mubr.msk.f32.gmra.mrb[32].mxu0 %vm450_vm0, %v2901_v52 }
 0x4d6   : > { %1923 = vmatprep.mubr.f32.mxu0 %v5536_v19 }
 0x4d9   : > { %2938 = vmatmul.mubr.msk.f32.gmra.mrb[34].mxu0 %vm450_vm0, %v2902_v15 }
 0x4da   : > { %1929 = vmatprep.mubr.f32.mxu0 %v5536_v19 }
 0x4dd   : > { %2939 = vmatmul.mubr.msk.f32.gmra.mrb[36].mxu0 %vm450_vm0, %v2903_v8 }
 0x4de   : > { %1935 = vmatprep.mubr.f32.mxu0 %v5536_v19 }
 0x4e1   : > { %2940 = vmatmul.mubr.msk.f32.gmra.mrb[38].mxu0 %vm450_vm0, %v2904_v38 }
 0x4e2   : > { %1941 = vmatprep.mubr.f32.mxu0 %v5536_v19 }
 0x4e5   : > { %2941 = vmatmul.mubr.msk.f32.gmra.mrb[40].mxu0 %vm450_vm0, %v2905_v56 }
 0x4e6   : > { %1947 = vmatprep.mubr.f32.mxu0 %v5536_v19 }
 0x4e9   : > { %2942 = vmatmul.mubr.msk.f32.gmra.mrb[42].mxu0 %vm450_vm0, %v2906_v51 }
 0x4ea   : > { %1953 = vmatprep.mubr.f32.mxu0 %v5536_v19 }
 0x4ed   : > { %2943 = vmatmul.mubr.msk.f32.gmra.mrb[44].mxu0 %vm450_vm0, %v2907_v18 }
 0x4ee   : > { %1959 = vmatprep.mubr.f32.mxu0 %v5536_v19 }
 0x4f1   : > { %2944 = vmatmul.mubr.msk.f32.gmra.mrb[46].mxu0 %vm450_vm0, %v2908_v26 }
 0x4f2   : > { %1965 = vmatprep.mubr.f32.mxu0 %v5536_v19 }
 0x4f5   : > { %2945 = vmatmul.mubr.msk.f32.gmra.mrb[48].mxu0 %vm450_vm0, %v2909_v17 }
 0x4f6   : > { %1971 = vmatprep.mubr.f32.mxu0 %v5536_v19 }
 0x4f9   : > { %2946 = vmatmul.mubr.msk.f32.gmra.mrb[50].mxu0 %vm450_vm0, %v2910_v25 }
 0x4fa   : > { %1977 = vmatprep.mubr.f32.mxu0 %v5536_v19 }
 0x4fd   : > { %2947 = vmatmul.mubr.msk.f32.gmra.mrb[52].mxu0 %vm450_vm0, %v2911_v4 }
 0x4fe   : > { %1983 = vmatprep.mubr.f32.mxu0 %v5536_v19 }
 0x501   : > { %2948 = vmatmul.mubr.msk.f32.gmra.mrb[54].mxu0 %vm450_vm0, %v2912_v3 }
 0x502   : > { %1989 = vmatprep.mubr.f32.mxu0 %v5536_v19 }
 0x505   : > { %2949 = vmatmul.mubr.msk.f32.gmra.mrb[56].mxu0 %vm450_vm0, %v2913_v27 }
 0x506   : > { %1995 = vmatprep.mubr.f32.mxu0 %v5536_v19 }
 0x509   : > { %2950 = vmatmul.mubr.msk.f32.gmra.mrb[58].mxu0 %vm450_vm0, %v2914_v31 }
 0x50a   : > { %2001 = vmatprep.mubr.f32.mxu0 %v5536_v19 }
 0x50d   : > { %2951 = vmatmul.mubr.msk.f32.gmra.mrb[60].mxu0 %vm450_vm0, %v2915_v32 }
 0x50e   : > { %2007 = vmatprep.mubr.f32.mxu0 %v5536_v19 }
 0x511   : > { %2952 = vmatmul.mubr.msk.f32.gmra.mrb[62].mxu0 %vm450_vm0, %v2916_v61 }
 0x512   : > { %2013 = vmatprep.mubr.f32.mxu0 %v5536_v19 }
 0x515   : > { %2953 = vmatmul.mubr.msk.f32.gmra.mrb[64].mxu0 %vm450_vm0, %v2917_v29 }
 0x516   : > { %2019 = vmatprep.mubr.f32.mxu0 %v5536_v19 }
 0x519   : > { %2954 = vmatmul.mubr.msk.f32.gmra.mrb[66].mxu0 %vm450_vm0, %v2918_v42 }
 0x51a   : > { %2025 = vmatprep.mubr.f32.mxu0 %v5536_v19 }
 0x51d   : > { %2955 = vmatmul.mubr.msk.f32.gmra.mrb[68].mxu0 %vm450_vm0, %v2919_v39 }
 0x51e   : > { %2031 = vmatprep.mubr.f32.mxu0 %v5536_v19 }
 0x521   : > { %2956 = vmatmul.mubr.msk.f32.gmra.mrb[70].mxu0 %vm450_vm0, %v2920_v40 }
 0x522   : > { %2037 = vmatprep.mubr.f32.mxu0 %v5536_v19 }
 0x525   : > { %2957 = vmatmul.mubr.msk.f32.gmra.mrb[72].mxu0 %vm450_vm0, %v2921_v50 }
 0x526   : > { %2043 = vmatprep.mubr.f32.mxu0 %v5536_v19 }
 0x529   : > { %2958 = vmatmul.mubr.msk.f32.gmra.mrb[74].mxu0 %vm450_vm0, %v2922_v6 }
 0x52a   : > { %2049 = vmatprep.mubr.f32.mxu0 %v5536_v19 }
 0x52d   : > { %2959 = vmatmul.mubr.msk.f32.gmra.mrb[76].mxu0 %vm450_vm0, %v2923_v63 }
 0x52e   : > { %2055 = vmatprep.mubr.f32.mxu0 %v5536_v19 }
 0x531   : > { %2960 = vmatmul.mubr.msk.f32.gmra.mrb[78].mxu0 %vm450_vm0, %v2924_v33 }
 0x578   : > { %v1847_v54 = vpop.f32.mrb[8].mxu0 }
 0x579   : > { %2142 = vrot.lane.b32.xlu1 %v1847_v54, %s3165_s14  ;;  %v1849_v22 = vpop.f32.mrb[9].mxu0 }
 0x57c   : > { %v1853_v59 = vpop.f32.mrb[10].mxu0 }
 0x57d   : > { %2166 = vrot.lane.b32.xlu1 %v1847_v54, %s3164_s13  ;;  %2144 = vrot.lane.b32.xlu0 %v1853_v59, %s3165_s14  ;;  %v1855_v55 = vpop.f32.mrb[11].mxu0 }
 0x580   : > { %v1859_v14 = vpop.f32.mrb[12].mxu0 }
 0x581   : > { %2150 = vrot.lane.b32.xlu1 %v1849_v22, %s3165_s14  ;;  %2168 = vrot.lane.b32.xlu0 %v1853_v59, %s3164_s13  ;;  %v1861_v19 = vpop.f32.mrb[13].mxu0 }
 0x584   : > { %v1865_v62 = vpop.f32.mrb[14].mxu0 }
 0x585   : > { %2174 = vrot.lane.b32.xlu1 %v1849_v22, %s3164_s13  ;;  %2152 = vrot.lane.b32.xlu0 %v1855_v55, %s3165_s14  ;;  %v1867_v60 = vpop.f32.mrb[15].mxu0 }
 0x588   : > { %v4644_v45 = vpop.f32.mrb[16].mxu0 }
 0x589   : > { %2176 = vrot.lane.b32.xlu0 %v1855_v55, %s3164_s13  ;;  %2146 = vrot.lane.b32.xlu1 %v1859_v14, %s3165_s14  ;;  %v4648_v41 = vpop.f32.mrb[17].mxu0  ;;  %v4720_v55 = vpop.permute.xlu1 %2725 }
 0x58a   : > { %5542 = vst [vmem:[#allocation25_spill] sm:$0xff] %v4720_v55 }
 0x58c   : > { %v4650_v5 = vpop.f32.mrb[18].mxu0 }
 0x58d   : > { %2170 = vrot.lane.b32.xlu1 %v1859_v14, %s3164_s13  ;;  %2148 = vrot.lane.b32.xlu0 %v1865_v62, %s3165_s14  ;;  %v4654_v28 = vpop.f32.mrb[19].mxu0 }
 0x590   : > { %v4656_v7 = vpop.f32.mrb[20].mxu0 }
 0x591   : > { %2154 = vrot.lane.b32.xlu1 %v1861_v19, %s3165_s14  ;;  %2172 = vrot.lane.b32.xlu0 %v1865_v62, %s3164_s13  ;;  %v4660_v46 = vpop.f32.mrb[21].mxu0  ;;  %v4726_v62 = vpop.permute.xlu0 %2730 }
 0x592   : > { %5543 = vst [vmem:[#allocation8_spill] sm:$0xff] %v4726_v62 }
 0x594   : > { %v4662_v49 = vpop.f32.mrb[22].mxu0 }
 0x595   : > { %2178 = vrot.lane.b32.xlu1 %v1861_v19, %s3164_s13  ;;  %2156 = vrot.lane.b32.xlu0 %v1867_v60, %s3165_s14  ;;  %v4666_v47 = vpop.f32.mrb[23].mxu0 }
 0x596   : > { %5537 = vst [vmem:[#allocation11_spill] sm:$0xff] %v4666_v47 }
 0x598   : > { %v1895_v24 = vpop.f32.mrb[24].mxu0 }
 0x599   : > { %2180 = vrot.lane.b32.xlu0 %v1867_v60, %s3164_s13  ;;  %2222 = vrot.lane.b32.xlu1 %v1895_v24, %s3165_s14  ;;  %v1897_v35 = vpop.f32.mrb[25].mxu0 }
 0x59c   : > { %v1901_v36 = vpop.f32.mrb[26].mxu0 }
 0x59d   : > { %2246 = vrot.lane.b32.xlu1 %v1895_v24, %s3164_s13  ;;  %2224 = vrot.lane.b32.xlu0 %v1901_v36, %s3165_s14  ;;  %v1903_v11 = vpop.f32.mrb[27].mxu0  ;;  %v4732_v24 = vpop.permute.xlu1 %2735 }
 0x59e   : > { %5544 = vst [vmem:[#allocation12_spill] sm:$0xff] %v4732_v24 }
 0x5a0   : > { %v1907_v53 = vpop.f32.mrb[28].mxu0 }
 0x5a1   : > { %2230 = vrot.lane.b32.xlu1 %v1897_v35, %s3165_s14  ;;  %2248 = vrot.lane.b32.xlu0 %v1901_v36, %s3164_s13  ;;  %v1909_v48 = vpop.f32.mrb[29].mxu0 }
 0x5a4   : > { %v1913_v21 = vpop.f32.mrb[30].mxu0 }
 0x5a5   : > { %2254 = vrot.lane.b32.xlu1 %v1897_v35, %s3164_s13  ;;  %2232 = vrot.lane.b32.xlu0 %v1903_v11, %s3165_s14  ;;  %v1915_v37 = vpop.f32.mrb[31].mxu0 }
 0x5a8   : > { %v1919_v12 = vpop.f32.mrb[32].mxu0 }
 0x5a9   : > { %2256 = vrot.lane.b32.xlu0 %v1903_v11, %s3164_s13  ;;  %2226 = vrot.lane.b32.xlu1 %v1907_v53, %s3165_s14  ;;  %v1921_v2 = vpop.f32.mrb[33].mxu0  ;;  %v4740_v11 = vpop.permute.xlu0 %2740 }
 0x5aa   : > { %5547 = vst [vmem:[#allocation22_spill] sm:$0xff] %v4740_v11 }
 0x5ac   : > { %v1925_v52 = vpop.f32.mrb[34].mxu0 }
 0x5ad   : > { %2250 = vrot.lane.b32.xlu1 %v1907_v53, %s3164_s13  ;;  %2228 = vrot.lane.b32.xlu0 %v1913_v21, %s3165_s14  ;;  %v1927_v15 = vpop.f32.mrb[35].mxu0 }
 0x5b0   : > { %v1931_v8 = vpop.f32.mrb[36].mxu0 }
 0x5b1   : > { %2234 = vrot.lane.b32.xlu1 %v1909_v48, %s3165_s14  ;;  %2252 = vrot.lane.b32.xlu0 %v1913_v21, %s3164_s13  ;;  %v1933_v38 = vpop.f32.mrb[37].mxu0 }
 0x5b4   : > { %v1937_v56 = vpop.f32.mrb[38].mxu0 }
 0x5b5   : > { %2258 = vrot.lane.b32.xlu1 %v1909_v48, %s3164_s13  ;;  %2236 = vrot.lane.b32.xlu0 %v1915_v37, %s3165_s14  ;;  %v1939_v51 = vpop.f32.mrb[39].mxu0 }
 0x5b8   : > { %v4684_v18 = vpop.f32.mrb[40].mxu0 }
 0x5b9   : > { %2260 = vrot.lane.b32.xlu0 %v1915_v37, %s3164_s13  ;;  %2350 = vrot.lane.b32.xlu1 %v1919_v12, %s3165_s14  ;;  %v4688_v26 = vpop.f32.mrb[41].mxu0 }
 0x5bc   : > { %v4690_v17 = vpop.f32.mrb[42].mxu0 }
 0x5bd   : > { %2374 = vrot.lane.b32.xlu1 %v1919_v12, %s3164_s13  ;;  %2352 = vrot.lane.b32.xlu0 %v1925_v52, %s3165_s14  ;;  %v4694_v25 = vpop.f32.mrb[43].mxu0 }
 0x5c0   : > { %v4696_v4 = vpop.f32.mrb[44].mxu0 }
 0x5c1   : > { %5538 = vst [vmem:[#allocation7_spill] sm:$0xff] %v4696_v4  ;;  %2358 = vrot.lane.b32.xlu1 %v1921_v2, %s3165_s14  ;;  %2376 = vrot.lane.b32.xlu0 %v1925_v52, %s3164_s13  ;;  %v4700_v3 = vpop.f32.mrb[45].mxu0 }
 0x5c2   : > { %5539 = vst [vmem:[#allocation20_spill] sm:$0xff] %v4700_v3 }
 0x5c4   : > { %v4702_v27 = vpop.f32.mrb[46].mxu0 }
 0x5c5   : > { %5540 = vst [vmem:[#allocation23_spill] sm:$0xff] %v4702_v27  ;;  %2382 = vrot.lane.b32.xlu1 %v1921_v2, %s3164_s13  ;;  %2360 = vrot.lane.b32.xlu0 %v1927_v15, %s3165_s14  ;;  %v4706_v31 = vpop.f32.mrb[47].mxu0 }
 0x5c6   : > { %5541 = vst [vmem:[#allocation21_spill] sm:$0xff] %v4706_v31 }
 0x5c8   : > { %v1967_v32 = vpop.f32.mrb[48].mxu0 }
 0x5c9   : > { %2384 = vrot.lane.b32.xlu0 %v1927_v15, %s3164_s13  ;;  %2354 = vrot.lane.b32.xlu1 %v1931_v8, %s3165_s14  ;;  %v1969_v61 = vpop.f32.mrb[49].mxu0 }
 0x5cc   : > { %v1973_v29 = vpop.f32.mrb[50].mxu0 }
 0x5cd   : > { %2378 = vrot.lane.b32.xlu1 %v1931_v8, %s3164_s13  ;;  %2356 = vrot.lane.b32.xlu0 %v1937_v56, %s3165_s14  ;;  %v1975_v42 = vpop.f32.mrb[51].mxu0 }
 0x5d0   : > { %v1979_v39 = vpop.f32.mrb[52].mxu0 }
 0x5d1   : > { %2362 = vrot.lane.b32.xlu1 %v1933_v38, %s3165_s14  ;;  %2380 = vrot.lane.b32.xlu0 %v1937_v56, %s3164_s13  ;;  %v1981_v40 = vpop.f32.mrb[53].mxu0 }
 0x5d4   : > { %v1985_v50 = vpop.f32.mrb[54].mxu0 }
 0x5d5   : > { %2386 = vrot.lane.b32.xlu1 %v1933_v38, %s3164_s13  ;;  %2364 = vrot.lane.b32.xlu0 %v1939_v51, %s3165_s14  ;;  %v1987_v6 = vpop.f32.mrb[55].mxu0 }
 0x5d8   : > { %v1991_v63 = vpop.f32.mrb[56].mxu0 }
 0x5d9   : > { %2388 = vrot.lane.b32.xlu0 %v1939_v51, %s3164_s13  ;;  %2430 = vrot.lane.b32.xlu1 %v1967_v32, %s3165_s14  ;;  %v1993_v33 = vpop.f32.mrb[57].mxu0 }
 0x5dc   : > { %v1997_v54 = vpop.f32.mrb[58].mxu0 }
 0x5dd   : > { %2454 = vrot.lane.b32.xlu1 %v1967_v32, %s3164_s13  ;;  %2432 = vrot.lane.b32.xlu0 %v1973_v29, %s3165_s14  ;;  %v1999_v22 = vpop.f32.mrb[59].mxu0 }
 0x5e0   : > { %v2003_v59 = vpop.f32.mrb[60].mxu0 }
 0x5e1   : > { %2438 = vrot.lane.b32.xlu1 %v1969_v61, %s3165_s14  ;;  %2456 = vrot.lane.b32.xlu0 %v1973_v29, %s3164_s13  ;;  %v4724_v14 = vpop.f32.mrb[61].mxu0 }
 0x5e4   : > { %v2009_v19 = vpop.f32.mrb[62].mxu0 }
 0x5e5   : > { %2462 = vrot.lane.b32.xlu1 %v1969_v61, %s3164_s13  ;;  %2440 = vrot.lane.b32.xlu0 %v1975_v42, %s3165_s14  ;;  %v4730_v60 = vpop.f32.mrb[63].mxu0 }
 0x5e8   : > { %v4734_v35 = vpop.f32.mrb[64].mxu0 }
 0x5e9   : > { %5545 = vst [vmem:[#allocation9_spill] sm:$0xff] %v4734_v35  ;;  %2464 = vrot.lane.b32.xlu0 %v1975_v42, %s3164_s13  ;;  %2434 = vrot.lane.b32.xlu1 %v1979_v39, %s3165_s14  ;;  %v4738_v36 = vpop.f32.mrb[65].mxu0 }
 0x5ea   : > { %5546 = vst [vmem:[#allocation26_spill] sm:$0xff] %v4738_v36 }
 0x5eb   : > { %v4742_v53 = vpop.permute.xlu1 %2142 }
 0x5ec   : > { %v4744_v48 = vpop.f32.mrb[66].mxu0 }
 0x5ed   : > { %5548 = vst [vmem:[#allocation27_spill] sm:$0xff] %v4744_v48  ;;  %2458 = vrot.lane.b32.xlu1 %v1979_v39, %s3164_s13  ;;  %2436 = vrot.lane.b32.xlu0 %v1985_v50, %s3165_s14  ;;  %v4748_v21 = vpop.f32.mrb[67].mxu0 }
 0x5ee   : > { %5549 = vst [vmem:[#allocation24_spill] sm:$0xff] %v4748_v21 }
 0x5ef   : > { %v4750_v37 = vpop.permute.xlu0 %2144  ;;  %v4752_v12 = vpop.permute.xlu1 %2166 }
 0x5f0   : > { %v4754_v2 = vpop.f32.mrb[68].mxu0 }
 0x5f1   : > { %5550 = vst [vmem:[#allocation10_spill] sm:$0xff] %v4754_v2  ;;  %2442 = vrot.lane.b32.xlu1 %v1981_v40, %s3165_s14  ;;  %2460 = vrot.lane.b32.xlu0 %v1985_v50, %s3164_s13  ;;  %v4758_v52 = vpop.f32.mrb[69].mxu0 }
 0x5f2   : > { %5551 = vst [vmem:[#allocation13_spill] sm:$0xff] %v4758_v52 }
 0x5f3   : > { %v4760_v15 = vpop.permute.xlu0 %2168  ;;  %v4762_v8 = vpop.permute.xlu1 %2150 }
 0x5f4   : > { %v4764_v38 = vpop.f32.mrb[70].mxu0 }
 0x5f5   : > { %5552 = vst [vmem:[#allocation14_spill] sm:$0xff] %v4764_v38  ;;  %2466 = vrot.lane.b32.xlu1 %v1981_v40, %s3164_s13  ;;  %2444 = vrot.lane.b32.xlu0 %v1987_v6, %s3165_s14  ;;  %v4768_v56 = vpop.f32.mrb[71].mxu0 }
 0x5f6   : > { %5553 = vst [vmem:[#allocation28_spill] sm:$0xff] %v4768_v56 }
 0x5f7   : > { %v4770_v51 = vpop.permute.xlu0 %2152  ;;  %v4772_v32 = vpop.permute.xlu1 %2174 }
 0x5f8   : > { %v2039_v61 = vpop.f32.mrb[72].mxu0 }
 0x5f9   : > { %2468 = vrot.lane.b32.xlu0 %v1987_v6, %s3164_s13  ;;  %2510 = vrot.lane.b32.xlu1 %v1991_v63, %s3165_s14  ;;  %v2041_v29 = vpop.f32.mrb[73].mxu0 }
 0x5fb   : > { %v4776_v42 = vpop.permute.xlu0 %2176  ;;  %v4778_v39 = vpop.permute.xlu1 %2146 }
 0x5fc   : > { %v2045_v50 = vpop.f32.mrb[74].mxu0  ;;  %v2183_v36 = vsel %vm961_vm1, %v4760_v15, %v4776_v42 }
 0x5fd   : > { %2534 = vrot.lane.b32.xlu1 %v1991_v63, %s3164_s13  ;;  %2512 = vrot.lane.b32.xlu0 %v1997_v54, %s3165_s14  ;;  %v2047_v40 = vpop.f32.mrb[75].mxu0 }
 0x5ff   : > { %v4782_v1 = vpop.permute.xlu0 %2148  ;;  %v4784_v16 = vpop.permute.xlu1 %2170 }
 0x600   : > { %v2051_v23 = vpop.f32.mrb[76].mxu0 }
 0x601   : > { %2518 = vrot.lane.b32.xlu1 %v1993_v33, %s3165_s14  ;;  %2536 = vrot.lane.b32.xlu0 %v1997_v54, %s3164_s13  ;;  %v4788_v6 = vpop.f32.mrb[77].mxu0 }
 0x603   : > { %v4790_v44 = vpop.permute.xlu0 %2172  ;;  %v4792_v11 = vpop.permute.xlu1 %2154 }
 0x604   : > { %v2057_v24 = vpop.f32.mrb[78].mxu0 }
 0x605   : > { %2542 = vrot.lane.b32.xlu1 %v1993_v33, %s3164_s13  ;;  %2520 = vrot.lane.b32.xlu0 %v1999_v22, %s3165_s14  ;;  %v4796_v63 = vpop.f32.mrb[79].mxu0 }
 0x607   : > { %v4798_v58 = vpop.permute.xlu0 %2156  ;;  %v4800_v30 = vpop.permute.xlu1 %2178 }
 0x609   : > { %2544 = vrot.lane.b32.xlu0 %v1999_v22, %s3164_s13  ;;  %2514 = vrot.lane.b32.xlu1 %v2003_v59, %s3165_s14 }
 0x60b   : > { %v4804_v54 = vpop.permute.xlu0 %2180  ;;  %v4806_v13 = vpop.permute.xlu1 %2222 }
 0x60d   : > { %2538 = vrot.lane.b32.xlu1 %v2003_v59, %s3164_s13  ;;  %2516 = vrot.lane.b32.xlu0 %v2009_v19, %s3165_s14 }
 0x60f   : > { %v4810_v33 = vpop.permute.xlu0 %2224  ;;  %v2247_v9 = vpop.permute.xlu1 %2246 }
 0x611   : > { %2522 = vrot.lane.b32.xlu1 %v4724_v14, %s3165_s14  ;;  %2540 = vrot.lane.b32.xlu0 %v2009_v19, %s3164_s13 }
 0x613   : > { %v4815_v62 = vpop.permute.xlu0 %2248  ;;  %v2231_v22 = vpop.permute.xlu1 %2230 }
 0x615   : > { %2546 = vrot.lane.b32.xlu1 %v4724_v14, %s3164_s13  ;;  %2524 = vrot.lane.b32.xlu0 %v4730_v60, %s3165_s14 }
 0x617   : > { %v4821_v59 = vpop.permute.xlu0 %2232  ;;  %v2255_v55 = vpop.permute.xlu1 %2254 }
 0x618   : > { %v2262_v35 = vsel %vm961_vm1, %v2247_v9, %v2255_v55 }
 0x619   : > { %2548 = vrot.lane.b32.xlu0 %v4730_v60, %s3164_s13  ;;  %2590 = vrot.lane.b32.xlu1 %v2039_v61, %s3165_s14 }
 0x61b   : > { %v2257_v0 = vpop.permute.xlu0 %2256  ;;  %v4826_v56 = vpop.permute.xlu1 %2226 }
 0x61d   : > { %2614 = vrot.lane.b32.xlu1 %v2039_v61, %s3164_s13  ;;  %2592 = vrot.lane.b32.xlu0 %v2045_v50, %s3165_s14 }
 0x61f   : > { %v4830_v19 = vpop.permute.xlu0 %2228  ;;  %v4832_v14 = vpop.permute.xlu1 %2250 }
 0x621   : > { %2598 = vrot.lane.b32.xlu1 %v2041_v29, %s3165_s14  ;;  %2616 = vrot.lane.b32.xlu0 %v2045_v50, %s3164_s13 }
 0x623   : > { %v4836_v52 = vpop.permute.xlu0 %2252  ;;  %v4838_v60 = vpop.permute.xlu1 %2234 }
 0x625   : > { %2622 = vrot.lane.b32.xlu1 %v2041_v29, %s3164_s13  ;;  %2600 = vrot.lane.b32.xlu0 %v2047_v40, %s3165_s14  ;;  %v2182_v29 = vsel %vm961_vm1, %v4752_v12, %v4772_v32 }
 0x627   : > { %v4842_v38 = vpop.permute.xlu0 %2236  ;;  %v4844_v61 = vpop.permute.xlu1 %2258 }
 0x629   : > { %2624 = vrot.lane.b32.xlu0 %v2047_v40, %s3164_s13  ;;  %2594 = vrot.lane.b32.xlu1 %v2051_v23, %s3165_s14  ;;  %v2186_v40 = vsel %vm961_vm1, %v4772_v32, %v4752_v12  ;;  %v2158_v12 = vsel %vm936_vm2, %v4742_v53, %v4762_v8  ;;  %v2163_v32 = vsel %vm936_vm2, %v4770_v51, %v4750_v37 }
 0x62a   : > { %v2191_v27 = vsel %vm3769_vm5, %v2186_v40, %v2158_v12  ;;  %v2192_v47 = vsel %vm3716_vm3, %v2183_v36, %v2163_v32 }
 0x62b   : > { %v4848_v2 = vpop.permute.xlu0 %2260  ;;  %v2351_v21 = vpop.permute.xlu1 %2350 }
 0x62d   : > { %2618 = vrot.lane.b32.xlu1 %v2051_v23, %s3164_s13  ;;  %2596 = vrot.lane.b32.xlu0 %v2057_v24, %s3165_s14  ;;  %v2162_v23 = vsel %vm936_vm2, %v4762_v8, %v4742_v53  ;;  %v2266_v53 = vsel %vm961_vm1, %v2255_v55, %v2247_v9  ;;  %v2159_v9 = vsel %vm936_vm2, %v4750_v37, %v4770_v51 }
 0x62e   : > { %v2190_v31 = vsel %vm3716_vm3, %v2182_v29, %v2162_v23  ;;  %v2263_v29 = vsel %vm961_vm1, %v4815_v62, %v2257_v0 }
 0x62f   : > { %v2353_v50 = vpop.permute.xlu0 %2352  ;;  %v2375_v48 = vpop.permute.xlu1 %2374  ;;  %v2206_v55 = vadd.f32 %v2190_v31, %v4644_v45  ;;  %v2243_v45 = vsel %vm936_vm2, %v4821_v59, %v4810_v33  ;;  %v2208_v31 = vadd.f32 %v2192_v47, %v4650_v5  ;;  %v2267_v47 = vsel %vm961_vm1, %v2257_v0, %v4815_v62 }
 0x630   : > { %v2239_v0 = vsel %vm936_vm2, %v4810_v33, %v4821_v59 }
 0x631   : > { %2602 = vrot.lane.b32.xlu1 %v4788_v6, %s3165_s14  ;;  %2620 = vrot.lane.b32.xlu0 %v2057_v24, %s3164_s13  ;;  %v2242_v24 = vsel %vm936_vm2, %v2231_v22, %v4806_v13 }
 0x632   : > { %v2270_v4 = vsel %vm3731_vm4, %v2242_v24, %v2262_v35  ;;  %v2207_v35 = vadd.f32 %v2191_v27, %v4648_v41  ;;  %v2272_v27 = vsel %vm3731_vm4, %v2243_v45, %v2263_v29  ;;  %v2273_v24 = vsel %vm3790_vm6, %v2239_v0, %v2267_v47 }
 0x633   : > { %v2377_v8 = vpop.permute.xlu0 %2376  ;;  %v2359_v3 = vpop.permute.xlu1 %2358  ;;  %v2278_v41 = vadd.f32 %v2270_v4, %v2206_v55  ;;  %v2280_v12 = vadd.f32 %v2272_v27, %v2208_v31  ;;  %v2188_v55 = vsel %vm961_vm1, %v4800_v30, %v4784_v16  ;;  %v2244_v31 = vsel %vm936_vm2, %v4838_v60, %v4826_v56 }
 0x634   : > { %v2366_v40 = vsel %vm936_vm2, %v2351_v21, %v2359_v3  ;;  %v2370_v36 = vsel %vm936_vm2, %v2359_v3, %v2351_v21  ;;  %v2187_v3 = vsel %vm961_vm1, %v4776_v42, %v4760_v15  ;;  %v2238_v21 = vsel %vm936_vm2, %v4806_v13, %v2231_v22 }
 0x635   : > { %2604 = vrot.lane.b32.xlu0 %v4796_v63, %s3165_s14  ;;  %2626 = vrot.lane.b32.xlu1 %v4788_v6, %s3164_s13  ;;  %v2271_v37 = vsel %vm3790_vm6, %v2238_v21, %v2266_v53  ;;  %v2265_v27 = vsel %vm961_vm1, %v4836_v52, %v4848_v2 }
 0x636   : > { %v2279_v62 = vadd.f32 %v2271_v37, %v2207_v35  ;;  %v2264_v35 = vsel %vm961_vm1, %v4832_v14, %v4844_v61 }
 0x637   : > { %v2361_v51 = vpop.permute.xlu0 %2360  ;;  %v2383_v15 = vpop.permute.xlu1 %2382 }
 0x638   : > { %v2367_v42 = vsel %vm936_vm2, %v2353_v50, %v2361_v51  ;;  %v2371_v13 = vsel %vm936_vm2, %v2361_v51, %v2353_v50  ;;  %v2390_v6 = vsel %vm961_vm1, %v2375_v48, %v2383_v15  ;;  %v2394_v5 = vsel %vm961_vm1, %v2383_v15, %v2375_v48 }
 0x639   : > { %v2398_v4 = vsel %vm3716_vm3, %v2390_v6, %v2370_v36  ;;  %v2399_v22 = vsel %vm3769_vm5, %v2394_v5, %v2366_v40  ;;  %2628 = vrot.lane.b32.xlu0 %v4796_v63, %s3164_s13  ;;  %2286 = vrot.lane.b32.xlu1 %v2278_v41, %s3166_s17  ;;  %v2193_v50 = vsel %vm3769_vm5, %v2187_v3, %v2159_v9 }
 0x63a   : > { %v4948_v48 = vadd.f32 %v2398_v4, %v4684_v18  ;;  %v4951_v23 = vadd.f32 %v2399_v22, %v4688_v26  ;;  %v2209_v26 = vadd.f32 %v2193_v50, %v4654_v28  ;;  %v2184_v28 = vsel %vm961_vm1, %v4784_v16, %v4800_v30 }
 0x63b   : > { %v2385_v32 = vpop.permute.xlu0 %2384  ;;  %v2355_v63 = vpop.permute.xlu1 %2354  ;;  %v2160_v30 = vsel %vm936_vm2, %v4778_v39, %v4792_v11  ;;  %v2165_v16 = vsel %vm936_vm2, %v4798_v58, %v4782_v1  ;;  %v2240_v6 = vsel %vm936_vm2, %v4826_v56, %v4838_v60  ;;  %v2269_v4 = vsel %vm961_vm1, %v4848_v2, %v4836_v52 }
 0x63c   : > { %v2391_v53 = vsel %vm961_vm1, %v2377_v8, %v2385_v32  ;;  %v2395_v18 = vsel %vm961_vm1, %v2385_v32, %v2377_v8  ;;  %v2281_v8 = vadd.f32 %v2273_v24, %v2209_v26  ;;  %v2195_v21 = vsel %vm3769_vm5, %v2188_v55, %v2160_v30  ;;  %v5555_v32 = vld [vmem:[#allocation20_spill] sm:$0xff]  ;;  %v5558_v55 = vld [vmem:[#allocation21_spill] sm:$0xff] }
 0x63d   : > { %v2400_v29 = vsel %vm3716_vm3, %v2391_v53, %v2371_v13  ;;  %v2401_v33 = vsel %vm3769_vm5, %v2395_v18, %v2367_v42  ;;  %2288 = vrot.lane.b32.xlu0 %v2280_v12, %s3166_s17  ;;  %2294 = vrot.lane.b32.xlu1 %v2279_v62, %s3166_s17  ;;  %v2211_v42 = vadd.f32 %v2195_v21, %v4660_v46 }
 0x63e   : > { %v4971_v59 = vadd.f32 %v2400_v29, %v4690_v17  ;;  %v4974_v40 = vadd.f32 %v2401_v33, %v4694_v25  ;;  %v2185_v17 = vsel %vm961_vm1, %v4790_v44, %v4804_v54  ;;  %v2164_v25 = vsel %vm936_vm2, %v4792_v11, %v4778_v39 }
 0x63f   : > { %v2357_v36 = vpop.permute.xlu0 %2356  ;;  %v2379_v9 = vpop.permute.xlu1 %2378  ;;  %v2194_v3 = vsel %vm3716_vm3, %v2184_v28, %v2164_v25  ;;  %v2196_v45 = vsel %vm3716_vm3, %v2185_v17, %v2165_v16  ;;  %v2268_v11 = vsel %vm961_vm1, %v4844_v61, %v4832_v14  ;;  %v2161_v14 = vsel %vm936_vm2, %v4782_v1, %v4798_v58  ;;  %v5556_v28 = vld [vmem:[#allocation11_spill] sm:$0xff] }
 0x640   : > { %v2210_v61 = vadd.f32 %v2194_v3, %v4656_v7  ;;  %v2189_v13 = vsel %vm961_vm1, %v4804_v54, %v4790_v44  ;;  %v2245_v58 = vsel %vm936_vm2, %v4842_v38, %v4830_v19  ;;  %v2212_v1 = vadd.f32 %v2196_v45, %v4662_v49 }
 0x641   : > { %2296 = vrot.lane.b32.xlu0 %v2281_v8, %s3166_s17  ;;  %2310 = vrot.lane.b32.xlu1 %v2278_v41, %s3167_s18  ;;  %v2274_v41 = vsel %vm3731_vm4, %v2244_v31, %v2264_v35  ;;  %v2275_v7 = vsel %vm3790_vm6, %v2240_v6, %v2268_v11  ;;  %v2276_v5 = vsel %vm3731_vm4, %v2245_v58, %v2265_v27 }
 0x642   : > { %v2282_v46 = vadd.f32 %v2274_v41, %v2210_v61  ;;  %v2197_v0 = vsel %vm3769_vm5, %v2189_v13, %v2161_v14  ;;  %v2241_v2 = vsel %vm936_vm2, %v4830_v19, %v4842_v38  ;;  %v2283_v52 = vadd.f32 %v2275_v7, %v2211_v42  ;;  %v5557_v19 = vld [vmem:[#allocation23_spill] sm:$0xff] }
 0x643   : > { %v2381_v39 = vpop.permute.xlu0 %2380  ;;  %v2363_v37 = vpop.permute.xlu1 %2362  ;;  %v2284_v24 = vadd.f32 %v2276_v5, %v2212_v1  ;;  %v2277_v26 = vsel %vm3790_vm6, %v2241_v2, %v2269_v4 }
 0x644   : > { %v2368_v51 = vsel %vm936_vm2, %v2355_v63, %v2363_v37  ;;  %v2372_v15 = vsel %vm936_vm2, %v2363_v37, %v2355_v63 }
 0x645   : > { %2312 = vrot.lane.b32.xlu0 %v2280_v12, %s3167_s18  ;;  %2318 = vrot.lane.b32.xlu1 %v2279_v62, %s3167_s18  ;;  %v5554_v62 = vld [vmem:[#allocation7_spill] sm:$0xff] }
 0x647   : > { %v2365_v44 = vpop.permute.xlu0 %2364  ;;  %v2387_v54 = vpop.permute.xlu1 %2386 }
 0x648   : > { %v2369_v47 = vsel %vm936_vm2, %v2357_v36, %v2365_v44  ;;  %v2373_v56 = vsel %vm936_vm2, %v2365_v44, %v2357_v36  ;;  %v2392_v60 = vsel %vm961_vm1, %v2379_v9, %v2387_v54  ;;  %v2396_v49 = vsel %vm961_vm1, %v2387_v54, %v2379_v9 }
 0x649   : > { %v2402_v22 = vsel %vm3716_vm3, %v2392_v60, %v2372_v15  ;;  %v2403_v50 = vsel %vm3769_vm5, %v2396_v49, %v2368_v51  ;;  %2320 = vrot.lane.b32.xlu0 %v2281_v8, %s3167_s18  ;;  %2290 = vrot.lane.b32.xlu1 %v2282_v46, %s3166_s17  ;;  %v2213_v8 = vadd.f32 %v2197_v0, %v5556_v28 }
 0x64a   : > { %v2418_v12 = vadd.f32 %v2402_v22, %v5554_v62  ;;  %v2419_v63 = vadd.f32 %v2403_v50, %v5555_v32 }
 0x64b   : > { %v2389_v53 = vpop.permute.xlu0 %2388  ;;  %v2431_v18 = vpop.permute.xlu1 %2430  ;;  %v2285_v25 = vadd.f32 %v2277_v26, %v2213_v8 }
 0x64c   : > { %v2393_v29 = vsel %vm961_vm1, %v2381_v39, %v2389_v53  ;;  %v2397_v33 = vsel %vm961_vm1, %v2389_v53, %v2381_v39 }
 0x64d   : > { %v2404_v36 = vsel %vm3716_vm3, %v2393_v29, %v2373_v56  ;;  %v2405_v38 = vsel %vm3769_vm5, %v2397_v33, %v2369_v47  ;;  %2292 = vrot.lane.b32.xlu0 %v2284_v24, %s3166_s17  ;;  %2298 = vrot.lane.b32.xlu1 %v2283_v52, %s3166_s17 }
 0x64e   : > { %v2420_v9 = vadd.f32 %v2404_v36, %v5557_v19  ;;  %v2421_v17 = vadd.f32 %v2405_v38, %v5558_v55 }
 0x64f   : > { %v2433_v35 = vpop.permute.xlu0 %2432  ;;  %v2455_v30 = vpop.permute.xlu1 %2454 }
 0x651   : > { %2300 = vrot.lane.b32.xlu0 %v2285_v25, %s3166_s17  ;;  %2314 = vrot.lane.b32.xlu1 %v2282_v46, %s3167_s18 }
 0x653   : > { %v2457_v16 = vpop.permute.xlu0 %2456  ;;  %v2439_v3 = vpop.permute.xlu1 %2438 }
 0x654   : > { %v2446_v21 = vsel %vm936_vm2, %v2431_v18, %v2439_v3  ;;  %v2450_v45 = vsel %vm936_vm2, %v2439_v3, %v2431_v18 }
 0x655   : > { %2316 = vrot.lane.b32.xlu0 %v2284_v24, %s3167_s18  ;;  %2322 = vrot.lane.b32.xlu1 %v2283_v52, %s3167_s18 }
 0x657   : > { %v2441_v31 = vpop.permute.xlu0 %2440  ;;  %v2463_v11 = vpop.permute.xlu1 %2462 }
 0x658   : > { %v2447_v39 = vsel %vm936_vm2, %v2433_v35, %v2441_v31  ;;  %v2451_v37 = vsel %vm936_vm2, %v2441_v31, %v2433_v35  ;;  %v2470_v41 = vsel %vm961_vm1, %v2455_v30, %v2463_v11  ;;  %v2474_v27 = vsel %vm961_vm1, %v2463_v11, %v2455_v30 }
 0x659   : > { %v2478_v51 = vsel %vm3731_vm4, %v2450_v45, %v2470_v41  ;;  %v2479_v15 = vsel %vm3790_vm6, %v2446_v21, %v2474_v27  ;;  %2324 = vrot.lane.b32.xlu0 %v2285_v25, %s3167_s18 }
 0x65a   : > { %v5118_v14 = vadd.f32 %v2478_v51, %v4948_v48  ;;  %v5121_v61 = vadd.f32 %v2479_v15, %v4951_v23 }
 0x65b   : > { %v2465_v42 = vpop.permute.xlu0 %2464  ;;  %v2435_v13 = vpop.permute.xlu1 %2434 }
 0x65c   : > { %v2471_v6 = vsel %vm961_vm1, %v2457_v16, %v2465_v42  ;;  %v2475_v58 = vsel %vm961_vm1, %v2465_v42, %v2457_v16 }
 0x65d   : > { %v2480_v1 = vsel %vm3731_vm4, %v2451_v37, %v2471_v6  ;;  %v2481_v7 = vsel %vm3790_vm6, %v2447_v39, %v2475_v58 }
 0x65e   : > { %v5132_v48 = vadd.f32 %v2480_v1, %v4971_v59  ;;  %v5135_v23 = vadd.f32 %v2481_v7, %v4974_v40  ;;  %v5559_v7 = vld [vmem:[#allocation9_spill] sm:$0xff] }
 0x65f   : > { %v2437_v46 = vpop.permute.xlu0 %2436  ;;  %v2459_v5 = vpop.permute.xlu1 %2458 }
 0x663   : > { %v2461_v44 = vpop.permute.xlu0 %2460  ;;  %v2443_v54 = vpop.permute.xlu1 %2442 }
 0x664   : > { %v2448_v47 = vsel %vm936_vm2, %v2435_v13, %v2443_v54  ;;  %v2452_v56 = vsel %vm936_vm2, %v2443_v54, %v2435_v13 }
 0x667   : > { %v2445_v60 = vpop.permute.xlu0 %2444  ;;  %v2467_v49 = vpop.permute.xlu1 %2466 }
 0x668   : > { %v2449_v4 = vsel %vm936_vm2, %v2437_v46, %v2445_v60  ;;  %v2453_v59 = vsel %vm936_vm2, %v2445_v60, %v2437_v46  ;;  %v2472_v40 = vsel %vm961_vm1, %v2459_v5, %v2467_v49  ;;  %v2476_v22 = vsel %vm961_vm1, %v2467_v49, %v2459_v5 }
 0x669   : > { %v2482_v50 = vsel %vm3731_vm4, %v2452_v56, %v2472_v40  ;;  %v2483_v0 = vsel %vm3790_vm6, %v2448_v47, %v2476_v22  ;;  %v5560_v40 = vld [vmem:[#allocation26_spill] sm:$0xff] }
 0x66a   : > { %v5153_v62 = vadd.f32 %v2482_v50, %v2418_v12  ;;  %v5155_v32 = vadd.f32 %v2483_v0, %v2419_v63 }
 0x66b   : > { %v2469_v2 = vpop.permute.xlu0 %2468  ;;  %v2511_v52 = vpop.permute.xlu1 %2510 }
 0x66c   : > { %v2473_v24 = vsel %vm961_vm1, %v2461_v44, %v2469_v2  ;;  %v2477_v53 = vsel %vm961_vm1, %v2469_v2, %v2461_v44 }
 0x66d   : > { %v2484_v18 = vsel %vm3731_vm4, %v2453_v59, %v2473_v24  ;;  %v2485_v26 = vsel %vm3790_vm6, %v2449_v4, %v2477_v53 }
 0x66e   : > { %v5165_v29 = vadd.f32 %v2484_v18, %v2420_v9  ;;  %v5167_v12 = vadd.f32 %v2485_v26, %v2421_v17 }
 0x66f   : > { %v2513_v63 = vpop.permute.xlu0 %2512  ;;  %v2535_v33 = vpop.permute.xlu1 %2534 }
 0x673   : > { %v2537_v28 = vpop.permute.xlu0 %2536  ;;  %v2519_v8 = vpop.permute.xlu1 %2518 }
 0x674   : > { %v2530_v41 = vsel %vm936_vm2, %v2519_v8, %v2511_v52  ;;  %v2526_v15 = vsel %vm936_vm2, %v2511_v52, %v2519_v8  ;;  %v5561_v52 = vld [vmem:[#allocation27_spill] sm:$0xff] }
 0x677   : > { %v2521_v36 = vpop.permute.xlu0 %2520  ;;  %v2543_v38 = vpop.permute.xlu1 %2542 }
 0x678   : > { %v2550_v11 = vsel %vm961_vm1, %v2535_v33, %v2543_v38  ;;  %v2554_v27 = vsel %vm961_vm1, %v2543_v38, %v2535_v33  ;;  %v2531_v13 = vsel %vm936_vm2, %v2521_v36, %v2513_v63  ;;  %v2527_v59 = vsel %vm936_vm2, %v2513_v63, %v2521_v36 }
 0x679   : > { %v2558_v51 = vsel %vm3716_vm3, %v2550_v11, %v2530_v41  ;;  %v2559_v6 = vsel %vm3769_vm5, %v2554_v27, %v2526_v15 }
 0x67a   : > { %v2574_v46 = vadd.f32 %v2558_v51, %v5559_v7  ;;  %v2575_v22 = vadd.f32 %v2559_v6, %v5560_v40 }
 0x67b   : > { %v2545_v19 = vpop.permute.xlu0 %2544  ;;  %v5169_v55 = vpop.permute.xlu1 %2514 }
 0x67c   : > { %v2551_v42 = vsel %vm961_vm1, %v2537_v28, %v2545_v19  ;;  %v2555_v60 = vsel %vm961_vm1, %v2545_v19, %v2537_v28 }
 0x67d   : > { %v2560_v47 = vsel %vm3716_vm3, %v2551_v42, %v2531_v13  ;;  %v2561_v63 = vsel %vm3769_vm5, %v2555_v60, %v2527_v59 }
 0x67e   : > { %v2576_v24 = vadd.f32 %v2560_v47, %v5561_v52 }
 0x67f   : > { %v5171_v25 = vpop.permute.xlu0 %2516  ;;  %v2539_v35 = vpop.permute.xlu1 %2538 }
 0x683   : > { %v5173_v30 = vpop.permute.xlu0 %2540  ;;  %v5175_v16 = vpop.permute.xlu1 %2522 }
 0x687   : > { %v5177_v9 = vpop.permute.xlu0 %2524  ;;  %v2547_v17 = vpop.permute.xlu1 %2546 }
 0x688   : > { %v2533_v42 = vsel %vm936_vm2, %v5177_v9, %v5171_v25  ;;  %v2556_v13 = vsel %vm961_vm1, %v2547_v17, %v2539_v35 }
 0x68b   : > { %v5179_v3 = vpop.permute.xlu0 %2548  ;;  %v2591_v21 = vpop.permute.xlu1 %2590 }
 0x68c   : > { %v2553_v15 = vsel %vm961_vm1, %v5173_v30, %v5179_v3  ;;  %v2557_v47 = vsel %vm961_vm1, %v5179_v3, %v5173_v30 }
 0x68f   : > { %v2593_v45 = vpop.permute.xlu0 %2592  ;;  %v2615_v31 = vpop.permute.xlu1 %2614 }
 0x693   : > { %v2617_v39 = vpop.permute.xlu0 %2616  ;;  %v2599_v37 = vpop.permute.xlu1 %2598 }
 0x694   : > { %v2610_v5 = vsel %vm936_vm2, %v2599_v37, %v2591_v21  ;;  %v2606_v49 = vsel %vm936_vm2, %v2591_v21, %v2599_v37 }
 0x697   : > { %v2601_v58 = vpop.permute.xlu0 %2600  ;;  %v2623_v1 = vpop.permute.xlu1 %2622 }
 0x698   : > { %v2630_v44 = vsel %vm961_vm1, %v2615_v31, %v2623_v1  ;;  %v2634_v54 = vsel %vm961_vm1, %v2623_v1, %v2615_v31  ;;  %v2611_v53 = vsel %vm936_vm2, %v2601_v58, %v2593_v45  ;;  %v2607_v28 = vsel %vm936_vm2, %v2593_v45, %v2601_v58  ;;  %v5562_v31 = vld [vmem:[#allocation24_spill] sm:$0xff]  ;;  %v5563_v1 = vld [vmem:[#allocation10_spill] sm:$0xff] }
 0x699   : > { %v2638_v56 = vsel %vm3731_vm4, %v2610_v5, %v2630_v44  ;;  %v2639_v50 = vsel %vm3790_vm6, %v2606_v49, %v2634_v54  ;;  %v2577_v11 = vadd.f32 %v2561_v63, %v5562_v31  ;;  %v2532_v45 = vsel %vm936_vm2, %v5175_v16, %v5169_v55 }
 0x69a   : > { %v2646_v4 = vadd.f32 %v2638_v56, %v2574_v46  ;;  %v2647_v8 = vadd.f32 %v2639_v50, %v2575_v22  ;;  %v2564_v46 = vsel %vm3716_vm3, %v2553_v15, %v2533_v42 }
 0x69b   : > { %v2625_v0 = vpop.permute.xlu0 %2624  ;;  %v2595_v2 = vpop.permute.xlu1 %2594 }
 0x69c   : > { %v2631_v18 = vsel %vm961_vm1, %v2617_v39, %v2625_v0  ;;  %v2635_v26 = vsel %vm961_vm1, %v2625_v0, %v2617_v39  ;;  %2654 = vrot.lane.b32.xlu1 %v2646_v4, %s3166_s17  ;;  %v2552_v39 = vsel %vm961_vm1, %v2539_v35, %v2547_v17  ;;  %v2528_v35 = vsel %vm936_vm2, %v5169_v55, %v5175_v16  ;;  %v5564_v16 = vld [vmem:[#allocation14_spill] sm:$0xff] }
 0x69d   : > { %v2640_v33 = vsel %vm3731_vm4, %v2611_v53, %v2631_v18  ;;  %v2641_v38 = vsel %vm3790_vm6, %v2607_v28, %v2635_v26  ;;  %v2562_v51 = vsel %vm3716_vm3, %v2552_v39, %v2532_v45  ;;  %v2563_v54 = vsel %vm3769_vm5, %v2556_v13, %v2528_v35  ;;  %v5566_v53 = vld [vmem:[#allocation28_spill] sm:$0xff] }
 0x69e   : > { %v2648_v36 = vadd.f32 %v2640_v33, %v2576_v24  ;;  %v2649_v37 = vadd.f32 %v2641_v38, %v2577_v11  ;;  %v2578_v7 = vadd.f32 %v2562_v51, %v5563_v1  ;;  %v2529_v55 = vsel %vm936_vm2, %v5171_v25, %v5177_v9  ;;  %v5565_v25 = vld [vmem:[#allocation13_spill] sm:$0xff] }
 0x69f   : > { %v2597_v19 = vpop.permute.xlu0 %2596  ;;  %v2619_v21 = vpop.permute.xlu1 %2618  ;;  %v2580_v60 = vadd.f32 %v2564_v46, %v5564_v16  ;;  %v2579_v9 = vadd.f32 %v2563_v54, %v5565_v25  ;;  %v2565_v22 = vsel %vm3769_vm5, %v2557_v47, %v2529_v55  ;;  %v5578_v16 = vld [vmem:[#allocation5_spill] sm:$0xff] }
 0x6a0   : > { %2656 = vrot.lane.b32.xlu0 %v2648_v36, %s3166_s17  ;;  %2662 = vrot.lane.b32.xlu1 %v2647_v8, %s3166_s17  ;;  %v2581_v18 = vadd.f32 %v2565_v22, %v5566_v53 }
 0x6a3   : > { %v2621_v41 = vpop.permute.xlu0 %2620  ;;  %v2603_v27 = vpop.permute.xlu1 %2602 }
 0x6a4   : > { %2664 = vrot.lane.b32.xlu0 %v2649_v37, %s3166_s17  ;;  %2678 = vrot.lane.b32.xlu1 %v2646_v4, %s3167_s18  ;;  %v2612_v5 = vsel %vm936_vm2, %v2603_v27, %v2595_v2  ;;  %v2608_v49 = vsel %vm936_vm2, %v2595_v2, %v2603_v27 }
 0x6a7   : > { %v2605_v6 = vpop.permute.xlu0 %2604  ;;  %v2627_v58 = vpop.permute.xlu1 %2626 }
 0x6a8   : > { %v2632_v44 = vsel %vm961_vm1, %v2619_v21, %v2627_v58  ;;  %2680 = vrot.lane.b32.xlu0 %v2648_v36, %s3167_s18  ;;  %v2636_v17 = vsel %vm961_vm1, %v2627_v58, %v2619_v21  ;;  %2686 = vrot.lane.b32.xlu1 %v2647_v8, %s3167_s18  ;;  %v2613_v59 = vsel %vm936_vm2, %v2605_v6, %v2597_v19 }
 0x6a9   : > { %v2642_v57 = vsel %vm3731_vm4, %v2612_v5, %v2632_v44  ;;  %v2643_v40 = vsel %vm3790_vm6, %v2608_v49, %v2636_v17  ;;  %v2609_v0 = vsel %vm936_vm2, %v2597_v19, %v2605_v6 }
 0x6aa   : > { %v2650_v56 = vadd.f32 %v2642_v57, %v2578_v7  ;;  %v2651_v52 = vadd.f32 %v2643_v40, %v2579_v9 }
 0x6ab   : > { %v2629_v4 = vpop.permute.xlu0 %2628  ;;  %v2287_v20 = vpop.permute.xlu1 %2286 }
 0x6ac   : > { %v2633_v30 = vsel %vm961_vm1, %v2621_v41, %v2629_v4  ;;  %v2637_v3 = vsel %vm961_vm1, %v2629_v4, %v2621_v41  ;;  %2688 = vrot.lane.b32.xlu0 %v2649_v37, %s3167_s18  ;;  %2658 = vrot.lane.b32.xlu1 %v2650_v56, %s3166_s17 }
 0x6ad   : > { %v2644_v50 = vsel %vm3731_vm4, %v2613_v59, %v2633_v30  ;;  %v2645_v24 = vsel %vm3790_vm6, %v2609_v0, %v2637_v3  ;;  %v5568_v30 = vld [vmem:[#allocation25_spill] sm:$0xff] }
 0x6ae   : > { %v2652_v2 = vadd.f32 %v2644_v50, %v2580_v60  ;;  %v2653_v43 = vadd.f32 %v2645_v24, %v2581_v18  ;;  %v5569_v24 = vld [vmem:[#allocation8_spill] sm:$0xff] }
 0x6af   : > { %v2289_v34 = vpop.permute.xlu0 %2288  ;;  %v2295_v26 = vpop.permute.xlu1 %2294 }
 0x6b0   : > { %2660 = vrot.lane.b32.xlu0 %v2652_v2, %s3166_s17  ;;  %2666 = vrot.lane.b32.xlu1 %v2651_v52, %s3166_s17  ;;  %v2306_v6 = vsel %vm249_vm8, %v2295_v26, %v2287_v20  ;;  %v2302_v7 = vsel %vm249_vm8, %v2287_v20, %v2295_v26 }
 0x6b1   : > { %v2495_v54 = vadd.f32 %v5121_v61, %v2302_v7 }
 0x6b3   : > { %v2297_v63 = vpop.permute.xlu0 %2296  ;;  %v2311_v33 = vpop.permute.xlu1 %2310 }
 0x6b4   : > { %2668 = vrot.lane.b32.xlu0 %v2653_v43, %s3166_s17  ;;  %2682 = vrot.lane.b32.xlu1 %v2650_v56, %s3167_s18  ;;  %v2307_v46 = vsel %vm249_vm8, %v2297_v63, %v2289_v34  ;;  %v2303_v44 = vsel %vm249_vm8, %v2289_v34, %v2297_v63  ;;  %s5364_s17 = scalar_lea.vmem %s5439_s4, %s2967_s21  ;;  %v5571_v63 = vld [vmem:[#allocation15_spill] sm:$0xff] }
 0x6b5   : > { %v2497_v4 = vadd.f32 %v5135_v23, %v2303_v44 }
 0x6b7   : > { %v2313_v28 = vpop.permute.xlu0 %2312  ;;  %v2319_v8 = vpop.permute.xlu1 %2318 }
 0x6b8   : > { %2684 = vrot.lane.b32.xlu0 %v2652_v2, %s3167_s18  ;;  %2690 = vrot.lane.b32.xlu1 %v2651_v52, %s3167_s18  ;;  %v2326_v15 = vsel %vm1106_vm7, %v2311_v33, %v2319_v8 }
 0x6b9   : > { %v2334_v58 = vsel %vm249_vm8, %v2326_v15, %v2306_v6 }
 0x6ba   : > { %v2494_v17 = vadd.f32 %v5118_v14, %v2334_v58 }
 0x6bb   : > { %v2321_v36 = vpop.permute.xlu0 %2320  ;;  %v5313_v38 = vpop.permute.xlu1 %2290 }
 0x6bc   : > { %2692 = vrot.lane.b32.xlu0 %v2653_v43, %s3167_s18  ;;  %v2327_v1 = vsel %vm1106_vm7, %v2313_v28, %v2321_v36  ;;  %v5570_v43 = vld [vmem:[#allocation19_spill] sm:$0xff] }
 0x6bd   : > { %v2336_v35 = vsel %vm249_vm8, %v2327_v1, %v2307_v46 }
 0x6be   : > { %v2496_v59 = vadd.f32 %v5132_v48, %v2336_v35 }
 0x6bf   : > { %v5315_v19 = vpop.permute.xlu0 %2292  ;;  %v5317_v21 = vpop.permute.xlu1 %2298 }
 0x6c0   : > { %v2308_v15 = vsel %vm249_vm8, %v5317_v21, %v5313_v38 }
 0x6c3   : > { %v5319_v31 = vpop.permute.xlu0 %2300  ;;  %v2315_v11 = vpop.permute.xlu1 %2314 }
 0x6c4   : > { %v2309_v1 = vsel %vm249_vm8, %v5319_v31, %v5315_v19  ;;  %v2305_v46 = vsel %vm249_vm8, %v5315_v19, %v5319_v31 }
 0x6c7   : > { %v2317_v39 = vpop.permute.xlu0 %2316  ;;  %v2323_v37 = vpop.permute.xlu1 %2322 }
 0x6c8   : > { %v2328_v8 = vsel %vm1106_vm7, %v2315_v11, %v2323_v37  ;;  %v2304_v37 = vsel %vm249_vm8, %v5313_v38, %v5317_v21 }
 0x6c9   : > { %v2338_v58 = vsel %vm249_vm8, %v2328_v8, %v2308_v15  ;;  %v2499_v38 = vadd.f32 %v5155_v32, %v2304_v37 }
 0x6cb   : > { %v2325_v41 = vpop.permute.xlu0 %2324 }
 0x6cc   : > { %v2329_v11 = vsel %vm1106_vm7, %v2317_v39, %v2325_v41  ;;  %v2498_v41 = vadd.f32 %v5153_v62, %v2338_v58 }
 0x6cd   : > { %v2340_v39 = vsel %vm249_vm8, %v2329_v11, %v2309_v1 }
 0x6ce   : > { %v2500_v62 = vadd.f32 %v5165_v29, %v2340_v39 }
 0x70e   : > { %v2655_v27 = vpop.permute.xlu1 %2654 }
 0x712   : > { %v2657_v45 = vpop.permute.xlu0 %2656  ;;  %v2663_v51 = vpop.permute.xlu1 %2662 }
 0x713   : > { %v2670_v47 = vsel %vm249_vm8, %v2655_v27, %v2663_v51  ;;  %v5572_v27 = vld [vmem:[#allocation16_spill] sm:$0xff] }
 0x716   : > { %v2665_v42 = vpop.permute.xlu0 %2664  ;;  %v2679_v13 = vpop.permute.xlu1 %2678 }
 0x717   : > { %v2671_v40 = vsel %vm249_vm8, %v2657_v45, %v2665_v42  ;;  %v5573_v42 = vld [vmem:[#allocation18_spill] sm:$0xff] }
 0x71a   : > { %v2681_v5 = vpop.permute.xlu0 %2680  ;;  %v2687_v57 = vpop.permute.xlu1 %2686 }
 0x71b   : > { %v2694_v56 = vsel %vm1106_vm7, %v2679_v13, %v2687_v57  ;;  %v2698_v55 = vsel %vm1106_vm7, %v2687_v57, %v2679_v13 }
 0x71c   : > { %v2703_v60 = vsel %vm252_vm9, %v2670_v47, %v2698_v55  ;;  %v2710_v49 = vadd.f32 %v2694_v56, %v2494_v17  ;;  %v2501_v17 = vadd.f32 %v5167_v12, %v2305_v46  ;;  %v5574_v47 = vld [vmem:[#allocation12_spill] sm:$0xff] }
 0x71d   : > { %v2711_v14 = vadd.f32 %v2703_v60, %v2495_v54 }
 0x71e   : > { %v2689_v61 = vpop.permute.xlu0 %2688  ;;  %v2743_v3 = vadd.f32 %v5568_v30, %v2710_v49  ;;  %v2659_v22 = vpop.permute.xlu1 %2658 }
 0x71f   : > { %v2695_v25 = vsel %vm1106_vm7, %v2681_v5, %v2689_v61  ;;  %v2699_v9 = vsel %vm1106_vm7, %v2689_v61, %v2681_v5  ;;  %v2744_v50 = vadd.f32 %v5568_v30, %v2711_v14  ;;  %v5575_v61 = vld [vmem:[#allocation22_spill] sm:$0xff]  ;;  %v5576_v30 = vld [vmem:[#allocation4_spill] sm:$0xff] }
 0x720   : > { %v2705_v23 = vsel %vm252_vm9, %v2671_v40, %v2699_v9  ;;  %v2712_v0 = vadd.f32 %v2695_v25, %v2496_v59  ;;  %v2751_v48 = vmax.f32 %v2743_v3, 0.0  ;;  %v5577_v9 = vld [vmem:[#allocation3_spill] sm:$0xff] }
 0x721   : > { %v2713_v2 = vadd.f32 %v2705_v23, %v2497_v4  ;;  %v2752_v52 = vmax.f32 %v2744_v50, 0.0 }
 0x722   : > { %v2745_v53 = vadd.f32 %v5569_v24, %v2712_v0  ;;  %v2661_v18 = vpop.permute.xlu0 %2660  ;;  %v2759_v20 = vadd.f32 %v2751_v48, %v5570_v43  ;;  %v2667_v26 = vpop.permute.xlu1 %2666  ;;  %v5579_v0 = vld [vmem:[#allocation6_spill] sm:$0xff] }
 0x723   : > { %v2746_v34 = vadd.f32 %v5569_v24, %v2713_v2  ;;  %v2760_v33 = vadd.f32 %v2752_v52, %v5571_v63  ;;  %v2672_v21 = vsel %vm249_vm8, %v2659_v22, %v2667_v26 }
 0x724   : > { %v2753_v28 = vmax.f32 %v2745_v53, 0.0  ;;  %2767 = vst [vmem:[%s5364_s17] sm:$0xff] %v2759_v20 }
 0x725   : > { %v2754_v36 = vmax.f32 %v2746_v34, 0.0  ;;  %2768 = vst [vmem:[%s5364_s17 + $0x8] sm:$0xff] %v2760_v33 }
 0x726   : > { %v2761_v45 = vadd.f32 %v2753_v28, %v5572_v27  ;;  %v2669_v51 = vpop.permute.xlu0 %2668  ;;  %v2683_v6 = vpop.permute.xlu1 %2682 }
 0x727   : > { %v2762_v13 = vadd.f32 %v2754_v36, %v5573_v42  ;;  %v2673_v32 = vsel %vm249_vm8, %v2661_v18, %v2669_v51 }
 0x728   : > { %2769 = vst [vmem:[%s5364_s17 + $0x10] sm:$0xff] %v2761_v45 }
 0x729   : > { %2770 = vst [vmem:[%s5364_s17 + $0x18] sm:$0xff] %v2762_v13 }
 0x72a   : > { %v2685_v7 = vpop.permute.xlu0 %2684  ;;  %v2691_v5 = vpop.permute.xlu1 %2690 }
 0x72b   : > { %v2696_v44 = vsel %vm1106_vm7, %v2683_v6, %v2691_v5  ;;  %v2700_v35 = vsel %vm1106_vm7, %v2691_v5, %v2683_v6 }
 0x72c   : > { %v2707_v19 = vsel %vm252_vm9, %v2672_v21, %v2700_v35  ;;  %v2714_v31 = vadd.f32 %v2696_v44, %v2498_v41 }
 0x72d   : > { %v2715_v57 = vadd.f32 %v2707_v19, %v2499_v38 }
 0x72e   : > { %v2693_v54 = vpop.permute.xlu0 %2692  ;;  %v2747_v56 = vadd.f32 %v5574_v47, %v2714_v31 }
 0x72f   : > { %v2697_v55 = vsel %vm1106_vm7, %v2685_v7, %v2693_v54  ;;  %v2701_v60 = vsel %vm1106_vm7, %v2693_v54, %v2685_v7  ;;  %v2748_v49 = vadd.f32 %v5574_v47, %v2715_v57 }
 0x730   : > { %v2709_v29 = vsel %vm252_vm9, %v2673_v32, %v2701_v60  ;;  %v2716_v12 = vadd.f32 %v2697_v55, %v2500_v62  ;;  %v2755_v4 = vmax.f32 %v2747_v56, 0.0 }
 0x731   : > { %v2717_v14 = vadd.f32 %v2709_v29, %v2501_v17  ;;  %v2756_v59 = vmax.f32 %v2748_v49, 0.0 }
 0x732   : > { %v2749_v40 = vadd.f32 %v5575_v61, %v2716_v12  ;;  %v2763_v3 = vadd.f32 %v2755_v4, %v5576_v30 }
 0x733   : > { %v2750_v25 = vadd.f32 %v5575_v61, %v2717_v14  ;;  %v2764_v10 = vadd.f32 %v2756_v59, %v5577_v9 }
 0x734   : > { %v2757_v22 = vmax.f32 %v2749_v40, 0.0  ;;  %2771 = vst [vmem:[%s5364_s17 + $0x20] sm:$0xff] %v2763_v3 }
 0x735   : > { %v2758_v50 = vmax.f32 %v2750_v25, 0.0  ;;  %2772 = vst [vmem:[%s5364_s17 + $0x28] sm:$0xff] %v2764_v10 }
 0x736   : > { %v2765_v23 = vadd.f32 %v2757_v22, %v5578_v16 }
 0x737   : > { %v2766_v48 = vadd.f32 %v2758_v50, %v5579_v0 }
 0x738   : > { %2773 = vst [vmem:[%s5364_s17 + $0x30] sm:$0xff] %v2765_v23 }
 0x739   : > { %2774 = vst [vmem:[%s5364_s17 + $0x38] sm:$0xff] %v2766_v48 }
 0x73a PF: > { %s14_s15 = sadd.s32 1, %s3160_s15  }
 0x73b   : > { %p11_p4 = scmp.ge.s32.totalorder %s14_s15, 4  }
 0x73d   :  { %13 = sbr.rel (!%p11_p4) target bundleno = 1 (0x1), region = 71 }

// kernel: harmony_rec_blocks_forward.1
= control target key start
LH: loop header
LB: loop body
LE: loop exit
PB: predicated region body
PF: predicated region fallthrough
CT: control target
= control target key end

     0   :  { %s3193_s15 = smov 0   ;;  %s5435_s0 = inlined_call_operand.vmem [shape: f32[2,32,256], index: 0, kind: input, shape index: {}]   ;;  %s5436_s1 = inlined_call_operand.vmem [shape: f32[2,256,256], index: 1, kind: input, shape index: {}]   ;;  %s5437_s2 = inlined_call_operand.vmem [shape: f32[2,288,64], index: 2, kind: input, shape index: {}]   ;;  %s5438_s3 = inlined_call_operand.vmem [shape: f32[2,32,1], index: 3, kind: input, shape index: {}]   ;;  %s5439_s4 = inlined_call_operand.vmem [shape: f32[2,32,256], index: 4, kind: output, shape index: {}]  }
   0x1 LB: > { %s2842_s16 = sadd.s32 4294967295, %s3160_s15   ;;  %p2846_p0 = scmp.ge.s32.totalorder %s3160_s15, 1  ;;  %s3160_s15 = sphi %s3193_s15, %s14_s15  }
   0x2   : > { %p172_p1 = scmp.lt.s32.totalorder %s3160_s15, 3 }
   0x4   : > { %p173_p2 = pnand %p2846_p0, %p172_p1 }
   0x6   : > { %176 = sbr.rel (%p173_p2) target bundleno = 1850 (0x73a), region = 36 }
   0xd   : > { %p203_p3 = scmp.lt.s32.totalorder %s2842_s16, 1  ;;  %vm450_vm0 = vcmask 523264   ;;  %s3164_s13 = smov 127  }
   0xe   : > { %s3165_s14 = smov 1   ;;  %s3167_s18 = smov 112  }
   0xf   : > { %s5581_s16 = smov (!%p203_p3, %s2842_s16), 1 }
  0x10   : > { %s2968_s17 = sshll.u32 %s5581_s16, 9  ;;  %s2967_s21 = sshll.u32 %s5581_s16, 6 }
  0x11   : > { %s3207_s20 = scalar_lea.vmem %s5436_s1, %s2968_s17  ;;  %s3241_s24 = scalar_lea.vmem %s5435_s0, %s2967_s21 }
  0x12   : > { %v262_v0 = vld [vmem:[%s3207_s20 + $0x8] sm:$0xff]  ;;  %v264_v1 = vld [vmem:[%s3207_s20 + $0x18] sm:$0xff]  ;;  %v261_v2 = vld [vmem:[%s3207_s20] sm:$0xff]  ;;  %s3166_s17 = smov 16  }
  0x13   : > { %v2970_v3 = vpack.c.bf16 %v264_v1, %v262_v0  ;;  %v263_v4 = vld [vmem:[%s3207_s20 + $0x10] sm:$0xff]  ;;  %v266_v5 = vld [vmem:[%s3207_s20 + $0x28] sm:$0xff]  ;;  %v268_v6 = vld [vmem:[%s3207_s20 + $0x38] sm:$0xff] }
  0x14   : > { %v2972_v7 = vpack.c.bf16 %v263_v4, %v261_v2  ;;  %v2974_v8 = vpack.c.bf16 %v268_v6, %v266_v5  ;;  %v265_v9 = vld [vmem:[%s3207_s20 + $0x20] sm:$0xff]  ;;  %v267_v10 = vld [vmem:[%s3207_s20 + $0x30] sm:$0xff]  ;;  %v270_v11 = vld [vmem:[%s3207_s20 + $0x48] sm:$0xff] }
  0x15   : > { %2971 = vmatprep.subr.bf16.mxu1 %v2970_v3  ;;  %v272_v12 = vld [vmem:[%s3207_s20 + $0x58] sm:$0xff]  ;;  %3051 = vmatprep.subr.bf16.mxu0 %v2970_v3  ;;  %v2976_v13 = vpack.c.bf16 %v267_v10, %v265_v9  ;;  %v269_v15 = vld [vmem:[%s3207_s20 + $0x40] sm:$0xff]  ;;  %v271_v16 = vld [vmem:[%s3207_s20 + $0x50] sm:$0xff] }
  0x16   : > { %2973 = vmatpush1.bf16.msra.mxu1 %v2972_v7  ;;  %3053 = vmatpush1.bf16.msra.mxu0 %v2972_v7  ;;  %v2978_v14 = vpack.c.bf16 %v272_v12, %v270_v11  ;;  %v274_v17 = vld [vmem:[%s3207_s20 + $0x68] sm:$0xff]  ;;  %v276_v18 = vld [vmem:[%s3207_s20 + $0x78] sm:$0xff]  ;;  %v2980_v19 = vpack.c.bf16 %v271_v16, %v269_v15  ;;  %v273_v21 = vld [vmem:[%s3207_s20 + $0x60] sm:$0xff] }
  0x17   : > { %2975 = vmatprep.subr.bf16.mxu1 %v2974_v8  ;;  %3055 = vmatprep.subr.bf16.mxu0 %v2974_v8  ;;  %v2982_v20 = vpack.c.bf16 %v276_v18, %v274_v17  ;;  %v275_v22 = vld [vmem:[%s3207_s20 + $0x70] sm:$0xff]  ;;  %v278_v23 = vld [vmem:[%s3207_s20 + $0x88] sm:$0xff]  ;;  %v280_v24 = vld [vmem:[%s3207_s20 + $0x98] sm:$0xff] }
  0x18   : > { %v2984_v25 = vpack.c.bf16 %v275_v22, %v273_v21  ;;  %v2986_v26 = vpack.c.bf16 %v280_v24, %v278_v23  ;;  %v277_v27 = vld [vmem:[%s3207_s20 + $0x80] sm:$0xff]  ;;  %v279_v28 = vld [vmem:[%s3207_s20 + $0x90] sm:$0xff]  ;;  %v282_v29 = vld [vmem:[%s3207_s20 + $0xa8] sm:$0xff] }
  0x19   : > { %v284_v30 = vld [vmem:[%s3207_s20 + $0xb8] sm:$0xff]  ;;  %v2988_v31 = vpack.c.bf16 %v279_v28, %v277_v27  ;;  %v281_v33 = vld [vmem:[%s3207_s20 + $0xa0] sm:$0xff]  ;;  %v283_v34 = vld [vmem:[%s3207_s20 + $0xb0] sm:$0xff] }
  0x1a   : > { %2977 = vmatpush1.bf16.msra.mxu1 %v2976_v13  ;;  %3057 = vmatpush1.bf16.msra.mxu0 %v2976_v13  ;;  %v2990_v32 = vpack.c.bf16 %v284_v30, %v282_v29  ;;  %v286_v35 = vld [vmem:[%s3207_s20 + $0xc8] sm:$0xff]  ;;  %v288_v36 = vld [vmem:[%s3207_s20 + $0xd8] sm:$0xff]  ;;  %v2992_v37 = vpack.c.bf16 %v283_v34, %v281_v33  ;;  %v285_v39 = vld [vmem:[%s3207_s20 + $0xc0] sm:$0xff] }
  0x1b   : > { %2979 = vmatprep.subr.bf16.mxu1 %v2978_v14  ;;  %3059 = vmatprep.subr.bf16.mxu0 %v2978_v14  ;;  %v2994_v38 = vpack.c.bf16 %v288_v36, %v286_v35  ;;  %v287_v40 = vld [vmem:[%s3207_s20 + $0xd0] sm:$0xff]  ;;  %v3246_v41 = vld [vmem:[%s3241_s24 + $0x8] sm:$0xff]  ;;  %v292_v43 = vld [vmem:[%s3207_s20 + $0xf8] sm:$0xff] }
  0x1c   : > { %v290_v42 = vld [vmem:[%s3207_s20 + $0xe8] sm:$0xff]  ;;  %389 = vmatprep.mubr.f32.mxu1 %v3246_v41  ;;  %v2996_v44 = vpack.c.bf16 %v287_v40, %v285_v39  ;;  %v289_v46 = vld [vmem:[%s3207_s20 + $0xe0] sm:$0xff]  ;;  %v291_v47 = vld [vmem:[%s3207_s20 + $0xf0] sm:$0xff] }
  0x1d   : > { %v2998_v45 = vpack.c.bf16 %v292_v43, %v290_v42  ;;  %v294_v48 = vld [vmem:[%s3207_s20 + $0x108] sm:$0xff]  ;;  %v296_v49 = vld [vmem:[%s3207_s20 + $0x118] sm:$0xff]  ;;  %v3000_v50 = vpack.c.bf16 %v291_v47, %v289_v46  ;;  %v293_v52 = vld [vmem:[%s3207_s20 + $0x100] sm:$0xff] }
  0x1e   : > { %2981 = vmatpush1.bf16.msra.mxu1 %v2980_v19  ;;  %3061 = vmatpush1.bf16.msra.mxu0 %v2980_v19  ;;  %v3002_v51 = vpack.c.bf16 %v296_v49, %v294_v48  ;;  %v295_v53 = vld [vmem:[%s3207_s20 + $0x110] sm:$0xff]  ;;  %v298_v54 = vld [vmem:[%s3207_s20 + $0x128] sm:$0xff]  ;;  %v300_v55 = vld [vmem:[%s3207_s20 + $0x138] sm:$0xff] }
  0x1f   : > { %2983 = vmatprep.subr.bf16.mxu1 %v2982_v20  ;;  %3063 = vmatprep.subr.bf16.mxu0 %v2982_v20  ;;  %v3004_v56 = vpack.c.bf16 %v295_v53, %v293_v52  ;;  %v3006_v57 = vpack.c.bf16 %v300_v55, %v298_v54  ;;  %v297_v58 = vld [vmem:[%s3207_s20 + $0x120] sm:$0xff]  ;;  %v299_v59 = vld [vmem:[%s3207_s20 + $0x130] sm:$0xff]  ;;  %v302_v60 = vld [vmem:[%s3207_s20 + $0x148] sm:$0xff] }
  0x20   : > { %v304_v61 = vld [vmem:[%s3207_s20 + $0x158] sm:$0xff]  ;;  %v3008_v62 = vpack.c.bf16 %v299_v59, %v297_v58  ;;  %v301_v0 = vld [vmem:[%s3207_s20 + $0x140] sm:$0xff]  ;;  %v303_v1 = vld [vmem:[%s3207_s20 + $0x150] sm:$0xff] }
  0x21   : > { %v3010_v63 = vpack.c.bf16 %v304_v61, %v302_v60  ;;  %v306_v2 = vld [vmem:[%s3207_s20 + $0x168] sm:$0xff]  ;;  %v308_v3 = vld [vmem:[%s3207_s20 + $0x178] sm:$0xff]  ;;  %v3012_v4 = vpack.c.bf16 %v303_v1, %v301_v0  ;;  %v305_v6 = vld [vmem:[%s3207_s20 + $0x160] sm:$0xff]  ;;  %v3163_v0 = vmov 0  }
  0x22   : > { %2985 = vmatpush1.bf16.msra.mxu1 %v2984_v25  ;;  %3065 = vmatpush1.bf16.msra.mxu0 %v2984_v25  ;;  %v3014_v5 = vpack.c.bf16 %v308_v3, %v306_v2  ;;  %v307_v7 = vld [vmem:[%s3207_s20 + $0x170] sm:$0xff]  ;;  %v310_v8 = vld [vmem:[%s3207_s20 + $0x188] sm:$0xff]  ;;  %v312_v9 = vld [vmem:[%s3207_s20 + $0x198] sm:$0xff] }
  0x23   : > { %2987 = vmatprep.subr.bf16.mxu1 %v2986_v26  ;;  %3067 = vmatprep.subr.bf16.mxu0 %v2986_v26  ;;  %v3016_v10 = vpack.c.bf16 %v307_v7, %v305_v6  ;;  %v3018_v11 = vpack.c.bf16 %v312_v9, %v310_v8  ;;  %v309_v12 = vld [vmem:[%s3207_s20 + $0x180] sm:$0xff]  ;;  %v311_v13 = vld [vmem:[%s3207_s20 + $0x190] sm:$0xff]  ;;  %v314_v14 = vld [vmem:[%s3207_s20 + $0x1a8] sm:$0xff] }
  0x24   : > { %v316_v15 = vld [vmem:[%s3207_s20 + $0x1b8] sm:$0xff]  ;;  %v3020_v16 = vpack.c.bf16 %v311_v13, %v309_v12  ;;  %v313_v18 = vld [vmem:[%s3207_s20 + $0x1a0] sm:$0xff]  ;;  %v315_v19 = vld [vmem:[%s3207_s20 + $0x1b0] sm:$0xff]  ;;  %3144 = vset.pattern.permute.xlu0 %v3163_v0  ;;  %3145 = vset.pattern.permute.xlu1 %v3163_v0 }
  0x25   : > { %v3022_v17 = vpack.c.bf16 %v316_v15, %v314_v14  ;;  %v318_v20 = vld [vmem:[%s3207_s20 + $0x1c8] sm:$0xff]  ;;  %v320_v21 = vld [vmem:[%s3207_s20 + $0x1d8] sm:$0xff]  ;;  %v3024_v22 = vpack.c.bf16 %v315_v19, %v313_v18  ;;  %v317_v24 = vld [vmem:[%s3207_s20 + $0x1c0] sm:$0xff] }
  0x26   : > { %2989 = vmatpush1.bf16.msra.mxu1 %v2988_v31  ;;  %3069 = vmatpush1.bf16.msra.mxu0 %v2988_v31  ;;  %v3026_v23 = vpack.c.bf16 %v320_v21, %v318_v20  ;;  %v319_v25 = vld [vmem:[%s3207_s20 + $0x1d0] sm:$0xff]  ;;  %v322_v26 = vld [vmem:[%s3207_s20 + $0x1e8] sm:$0xff]  ;;  %v324_v27 = vld [vmem:[%s3207_s20 + $0x1f8] sm:$0xff] }
  0x27   : > { %2991 = vmatprep.subr.bf16.mxu1 %v2990_v32  ;;  %3071 = vmatprep.subr.bf16.mxu0 %v2990_v32  ;;  %v3028_v28 = vpack.c.bf16 %v319_v25, %v317_v24  ;;  %v3030_v29 = vpack.c.bf16 %v324_v27, %v322_v26  ;;  %v321_v30 = vld [vmem:[%s3207_s20 + $0x1e0] sm:$0xff]  ;;  %v323_v31 = vld [vmem:[%s3207_s20 + $0x1f0] sm:$0xff]  ;;  %v256_v34 = vld [vmem:[%s3241_s24 + $0x18] sm:$0xff] }
  0x28   : > { %v3032_v32 = vpack.c.bf16 %v323_v31, %v321_v30  ;;  %v253_v33 = vld [vmem:[%s3241_s24] sm:$0xff]  ;;  %v255_v35 = vld [vmem:[%s3241_s24 + $0x10] sm:$0xff]  ;;  %v258_v36 = vld [vmem:[%s3241_s24 + $0x28] sm:$0xff]  ;;  %v3034_v42 = vpack.c.bf16 %v256_v34, %v3246_v41 }
  0x29   : > { %v259_v39 = vld [vmem:[%s3241_s24 + $0x30] sm:$0xff]  ;;  %v3036_v40 = vpack.c.bf16 %v255_v35, %v253_v33  ;;  %v415_v58 = vld [vmem:[%s5437_s2 + $0x8] sm:$0xff]  ;;  %v417_v60 = vld [vmem:[%s5437_s2 + $0x18] sm:$0xff] }
  0x2a   : > { %2993 = vmatpush1.bf16.msra.mxu1 %v2992_v37  ;;  %3073 = vmatpush1.bf16.msra.mxu0 %v2992_v37  ;;  %v257_v37 = vld [vmem:[%s3241_s24 + $0x20] sm:$0xff]  ;;  %v416_v59 = vld [vmem:[%s5437_s2 + $0x10] sm:$0xff]  ;;  %v1500_v1 = vld [vmem:[%s5438_s3 + $0x8] sm:$0xff] }
  0x2b   : > { %2995 = vmatprep.subr.bf16.mxu1 %v2994_v38  ;;  %3075 = vmatprep.subr.bf16.mxu0 %v2994_v38  ;;  %v260_v38 = vld [vmem:[%s3241_s24 + $0x38] sm:$0xff]  ;;  %v3040_v43 = vpack.c.bf16 %v259_v39, %v257_v37  ;;  %v1499_v61 = vld [vmem:[%s5438_s3] sm:$0xff]  ;;  %v419_v2 = vld [vmem:[%s5437_s2 + $0x28] sm:$0xff] }
  0x2c   : > { %1505 = vperm.xlu0 %3144, %v1499_v61   ;;  %v1502_v3 = vld [vmem:[%s5438_s3 + $0x18] sm:$0xff]  ;;  %v422_v6 = vld [vmem:[%s5437_s2 + $0x40] sm:$0xff]  ;;  %v423_v7 = vld [vmem:[%s5437_s2 + $0x48] sm:$0xff] }
  0x2d   : > { %v424_v8 = vld [vmem:[%s5437_s2 + $0x50] sm:$0xff]  ;;  %v425_v9 = vld [vmem:[%s5437_s2 + $0x58] sm:$0xff]  ;;  %v430_v14 = vld [vmem:[%s5437_s2 + $0x80] sm:$0xff] }
  0x2e   : > { %2997 = vmatpush1.bf16.msra.mxu1 %v2996_v44  ;;  %3077 = vmatpush1.bf16.msra.mxu0 %v2996_v44  ;;  %v3038_v44 = vpack.c.bf16 %v260_v38, %v258_v36  ;;  %v428_v12 = vld [vmem:[%s5437_s2 + $0x70] sm:$0xff]  ;;  %v429_v13 = vld [vmem:[%s5437_s2 + $0x78] sm:$0xff]  ;;  %v431_v15 = vld [vmem:[%s5437_s2 + $0x88] sm:$0xff] }
  0x2f   : > { %2999 = vmatprep.subr.bf16.mxu1 %v2998_v45  ;;  %3079 = vmatprep.subr.bf16.mxu0 %v2998_v45  ;;  %v5440_v45 = vmov 0.0   ;;  %v434_v18 = vld [vmem:[%s5437_s2 + $0xa0] sm:$0xff]  ;;  %v435_v19 = vld [vmem:[%s5437_s2 + $0xa8] sm:$0xff]  ;;  %v436_v20 = vld [vmem:[%s5437_s2 + $0xb0] sm:$0xff] }
  0x30   : > { %1510 = vperm.xlu0 %3144, %v1500_v1   ;;  %v437_v21 = vld [vmem:[%s5437_s2 + $0xb8] sm:$0xff]  ;;  %v440_v24 = vld [vmem:[%s5437_s2 + $0xd0] sm:$0xff]  ;;  %v442_v26 = vld [vmem:[%s5437_s2 + $0xe0] sm:$0xff] }
  0x31   : > { %v441_v25 = vld [vmem:[%s5437_s2 + $0xd8] sm:$0xff]  ;;  %v443_v27 = vld [vmem:[%s5437_s2 + $0xe8] sm:$0xff]  ;;  %v446_v30 = vld [vmem:[%s5437_s2 + $0x100] sm:$0xff] }
  0x32   : > { %3001 = vmatpush1.bf16.msra.mxu1 %v3000_v50  ;;  %3081 = vmatpush1.bf16.msra.mxu0 %v3000_v50  ;;  %v447_v31 = vld [vmem:[%s5437_s2 + $0x108] sm:$0xff] }
  0x33   : > { %3003 = vmatprep.subr.bf16.mxu1 %v3002_v51  ;;  %3083 = vmatprep.subr.bf16.mxu0 %v3002_v51 }
  0x34   : > { %1520 = vperm.xlu0 %3144, %v1502_v3  }
  0x36   : > { %3005 = vmatpush1.bf16.msra.mxu1 %v3004_v56  ;;  %3085 = vmatpush1.bf16.msra.mxu0 %v3004_v56 }
  0x37   : > { %3007 = vmatprep.subr.bf16.mxu1 %v3006_v57  ;;  %3087 = vmatprep.subr.bf16.mxu0 %v3006_v57  ;;  %v414_v57 = vld [vmem:[%s5437_s2] sm:$0xff] }
  0x3a   : > { %3009 = vmatpush1.bf16.msra.mxu1 %v3008_v62  ;;  %3089 = vmatpush1.bf16.msra.mxu0 %v3008_v62  ;;  %v1501_v62 = vld [vmem:[%s5438_s3 + $0x10] sm:$0xff] }
  0x3b   : > { %3011 = vmatprep.subr.bf16.mxu1 %v3010_v63  ;;  %3091 = vmatprep.subr.bf16.mxu0 %v3010_v63  ;;  %v418_v63 = vld [vmem:[%s5437_s2 + $0x20] sm:$0xff] }
  0x3c   : > { %1515 = vperm.xlu1 %3145, %v1501_v62  }
  0x3e   : > { %3013 = vmatpush1.bf16.msra.mxu1 %v3012_v4  ;;  %3093 = vmatpush1.bf16.msra.mxu0 %v3012_v4  ;;  %v420_v4 = vld [vmem:[%s5437_s2 + $0x30] sm:$0xff] }
  0x3f   : > { %3015 = vmatprep.subr.bf16.mxu1 %v3014_v5  ;;  %3095 = vmatprep.subr.bf16.mxu0 %v3014_v5  ;;  %v421_v5 = vld [vmem:[%s5437_s2 + $0x38] sm:$0xff] }
  0x42   : > { %3017 = vmatpush1.bf16.msra.mxu1 %v3016_v10  ;;  %3097 = vmatpush1.bf16.msra.mxu0 %v3016_v10  ;;  %v426_v10 = vld [vmem:[%s5437_s2 + $0x60] sm:$0xff] }
  0x43   : > { %3019 = vmatprep.subr.bf16.mxu1 %v3018_v11  ;;  %3099 = vmatprep.subr.bf16.mxu0 %v3018_v11  ;;  %v427_v11 = vld [vmem:[%s5437_s2 + $0x68] sm:$0xff] }
  0x46   : > { %3021 = vmatpush1.bf16.msra.mxu1 %v3020_v16  ;;  %3101 = vmatpush1.bf16.msra.mxu0 %v3020_v16  ;;  %v432_v16 = vld [vmem:[%s5437_s2 + $0x90] sm:$0xff] }
  0x47   : > { %3023 = vmatprep.subr.bf16.mxu1 %v3022_v17  ;;  %3103 = vmatprep.subr.bf16.mxu0 %v3022_v17  ;;  %v433_v17 = vld [vmem:[%s5437_s2 + $0x98] sm:$0xff] }
  0x4a   : > { %3025 = vmatpush1.bf16.msra.mxu1 %v3024_v22  ;;  %3105 = vmatpush1.bf16.msra.mxu0 %v3024_v22  ;;  %v438_v22 = vld [vmem:[%s5437_s2 + $0xc0] sm:$0xff] }
  0x4b   : > { %3027 = vmatprep.subr.bf16.mxu1 %v3026_v23  ;;  %3107 = vmatprep.subr.bf16.mxu0 %v3026_v23  ;;  %v439_v23 = vld [vmem:[%s5437_s2 + $0xc8] sm:$0xff] }
  0x4e   : > { %3029 = vmatpush1.bf16.msra.mxu1 %v3028_v28  ;;  %3109 = vmatpush1.bf16.msra.mxu0 %v3028_v28  ;;  %v444_v28 = vld [vmem:[%s5437_s2 + $0xf0] sm:$0xff] }
  0x4f   : > { %3031 = vmatprep.subr.bf16.mxu1 %v3030_v29  ;;  %3111 = vmatprep.subr.bf16.mxu0 %v3030_v29  ;;  %v445_v29 = vld [vmem:[%s5437_s2 + $0xf8] sm:$0xff] }
  0x52   : > { %3033 = vmatpush1.bf16.msra.mxu1 %v3032_v32  ;;  %3113 = vmatpush1.bf16.msra.mxu0 %v3032_v32  ;;  %v448_v32 = vld [vmem:[%s5437_s2 + $0x110] sm:$0xff] }
  0x53   : > { %3035 = vmatprep.subr.bf16.mxu1 %v3034_v42 }
  0x55   : > { %390 = vmatmul.mubr.f32.vlgmr.msra.gmra.mrb[0].mxu1 %v253_v33  ;;  %v449_v33 = vld [vmem:[%s5437_s2 + $0x118] sm:$0xff] }
  0x56   : > { %395 = vmatprep.mubr.f32.mxu1 %v256_v34  ;;  %3037 = vmatpush1.bf16.msra.mxu1 %v3036_v40 }
  0x57   : > { %3039 = vmatprep.subr.bf16.mxu1 %v3038_v44 }
  0x59   : > { %396 = vmatmul.mubr.f32.gmra.mrb[2].mxu1 %v255_v35 }
  0x5a   : > { %401 = vmatprep.mubr.f32.mxu1 %v258_v36  ;;  %3041 = vmatpush1.bf16.msra.mxu1 %v3040_v43 }
  0x5d   : > { %402 = vmatmul.mubr.f32.gmra.mrb[4].mxu1 %v257_v37 }
  0x5e   : > { %407 = vmatprep.mubr.f32.mxu1 %v260_v38 }
  0x61   : > { %408 = vmatmul.mubr.f32.gmra.mrb[6].mxu1 %v259_v39 }
  0x62   : > { %623 = vmatprep.mubr.f32.mxu1 %v5440_v45 }
 0x128   : > { %v391_v46 = vpop.f32.mrb[0].mxu1 }
 0x129   : > { %v393_v47 = vpop.f32.mrb[1].mxu1 }
 0x12c   : > { %v397_v48 = vpop.f32.mrb[2].mxu1 }
 0x12d   : > { %v3044_v49 = vpack.c.bf16 %v397_v48, %v391_v46  ;;  %v399_v50 = vpop.f32.mrb[3].mxu1 }
 0x12e   : > { %v3042_v51 = vpack.c.bf16 %v399_v50, %v393_v47 }
 0x130   : > { %v403_v52 = vpop.f32.mrb[4].mxu1  ;;  %3043 = vmatprep.subr.bf16.mxu1 %v3042_v51 }
 0x131   : > { %v405_v53 = vpop.f32.mrb[5].mxu1  ;;  %3045 = vmatpush1.bf16.msra.mxu1 %v3044_v49 }
 0x134   : > { %v409_v41 = vpop.f32.mrb[6].mxu1 }
 0x135   : > { %v3048_v54 = vpack.c.bf16 %v409_v41, %v403_v52  ;;  %v411_v55 = vpop.f32.mrb[7].mxu1 }
 0x136   : > { %v3046_v56 = vpack.c.bf16 %v411_v55, %v405_v53 }
 0x138   : > { %3047 = vmatprep.subr.bf16.mxu1 %v3046_v56 }
 0x139   : > { %3049 = vmatpush1.bf16.msra.mxu1 %v3048_v54 }
 0x13c   : > { %2853 = vmatmul.mubr.msk.f32.vlgmr.msra.gmra.mrb[8].mxu1 %vm450_vm0, %v414_v57 }
 0x13d   : > { %629 = vmatprep.mubr.f32.mxu1 %v5440_v45 }
 0x140   : > { %2854 = vmatmul.mubr.msk.f32.gmra.mrb[10].mxu1 %vm450_vm0, %v415_v58 }
 0x141   : > { %635 = vmatprep.mubr.f32.mxu1 %v5440_v45 }
 0x144   : > { %2855 = vmatmul.mubr.msk.f32.gmra.mrb[12].mxu1 %vm450_vm0, %v416_v59 }
 0x145   : > { %641 = vmatprep.mubr.f32.mxu1 %v5440_v45 }
 0x148   : > { %2856 = vmatmul.mubr.msk.f32.gmra.mrb[14].mxu1 %vm450_vm0, %v417_v60 }
 0x149   : > { %647 = vmatprep.mubr.f32.mxu1 %v5440_v45 }
 0x14c   : > { %2857 = vmatmul.mubr.msk.f32.gmra.mrb[16].mxu1 %vm450_vm0, %v418_v63 }
 0x14d   : > { %653 = vmatprep.mubr.f32.mxu1 %v5440_v45 }
 0x150   : > { %2858 = vmatmul.mubr.msk.f32.gmra.mrb[18].mxu1 %vm450_vm0, %v419_v2 }
 0x151   : > { %659 = vmatprep.mubr.f32.mxu1 %v5440_v45 }
 0x154   : > { %2859 = vmatmul.mubr.msk.f32.gmra.mrb[20].mxu1 %vm450_vm0, %v420_v4 }
 0x155   : > { %665 = vmatprep.mubr.f32.mxu1 %v5440_v45 }
 0x158   : > { %2860 = vmatmul.mubr.msk.f32.gmra.mrb[22].mxu1 %vm450_vm0, %v421_v5 }
 0x159   : > { %671 = vmatprep.mubr.f32.mxu1 %v5440_v45 }
 0x15c   : > { %2861 = vmatmul.mubr.msk.f32.gmra.mrb[24].mxu1 %vm450_vm0, %v422_v6 }
 0x15d   : > { %677 = vmatprep.mubr.f32.mxu1 %v5440_v45 }
 0x160   : > { %2862 = vmatmul.mubr.msk.f32.gmra.mrb[26].mxu1 %vm450_vm0, %v423_v7 }
 0x161   : > { %683 = vmatprep.mubr.f32.mxu1 %v5440_v45 }
 0x164   : > { %2863 = vmatmul.mubr.msk.f32.gmra.mrb[28].mxu1 %vm450_vm0, %v424_v8 }
 0x165   : > { %689 = vmatprep.mubr.f32.mxu1 %v5440_v45 }
 0x168   : > { %2864 = vmatmul.mubr.msk.f32.gmra.mrb[30].mxu1 %vm450_vm0, %v425_v9 }
 0x169   : > { %695 = vmatprep.mubr.f32.mxu1 %v5440_v45 }
 0x16c   : > { %2865 = vmatmul.mubr.msk.f32.gmra.mrb[32].mxu1 %vm450_vm0, %v426_v10 }
 0x16d   : > { %701 = vmatprep.mubr.f32.mxu1 %v5440_v45 }
 0x170   : > { %2866 = vmatmul.mubr.msk.f32.gmra.mrb[34].mxu1 %vm450_vm0, %v427_v11 }
 0x171   : > { %707 = vmatprep.mubr.f32.mxu1 %v5440_v45 }
 0x174   : > { %2867 = vmatmul.mubr.msk.f32.gmra.mrb[36].mxu1 %vm450_vm0, %v428_v12 }
 0x175   : > { %713 = vmatprep.mubr.f32.mxu1 %v5440_v45 }
 0x178   : > { %2868 = vmatmul.mubr.msk.f32.gmra.mrb[38].mxu1 %vm450_vm0, %v429_v13 }
 0x179   : > { %719 = vmatprep.mubr.f32.mxu1 %v5440_v45 }
 0x17c   : > { %2869 = vmatmul.mubr.msk.f32.gmra.mrb[40].mxu1 %vm450_vm0, %v430_v14 }
 0x17d   : > { %725 = vmatprep.mubr.f32.mxu1 %v5440_v45 }
 0x180   : > { %2870 = vmatmul.mubr.msk.f32.gmra.mrb[42].mxu1 %vm450_vm0, %v431_v15 }
 0x181   : > { %731 = vmatprep.mubr.f32.mxu1 %v5440_v45 }
 0x184   : > { %2871 = vmatmul.mubr.msk.f32.gmra.mrb[44].mxu1 %vm450_vm0, %v432_v16 }
 0x185   : > { %737 = vmatprep.mubr.f32.mxu1 %v5440_v45 }
 0x188   : > { %2872 = vmatmul.mubr.msk.f32.gmra.mrb[46].mxu1 %vm450_vm0, %v433_v17 }
 0x189   : > { %743 = vmatprep.mubr.f32.mxu1 %v5440_v45 }
 0x18c   : > { %2873 = vmatmul.mubr.msk.f32.gmra.mrb[48].mxu1 %vm450_vm0, %v434_v18 }
 0x18d   : > { %749 = vmatprep.mubr.f32.mxu1 %v5440_v45 }
 0x190   : > { %2874 = vmatmul.mubr.msk.f32.gmra.mrb[50].mxu1 %vm450_vm0, %v435_v19 }
 0x191   : > { %755 = vmatprep.mubr.f32.mxu1 %v5440_v45 }
 0x194   : > { %2875 = vmatmul.mubr.msk.f32.gmra.mrb[52].mxu1 %vm450_vm0, %v436_v20  ;;  %v3566_v20 = vpop.permute.xlu0 %1505 }
 0x195   : > { %761 = vmatprep.mubr.f32.mxu1 %v5440_v45  ;;  %5479 = vst [vmem:[#allocation11_spill] sm:$0xff] %v3566_v20 }
 0x198   : > { %2876 = vmatmul.mubr.msk.f32.gmra.mrb[54].mxu1 %vm450_vm0, %v437_v21 }
 0x199   : > { %767 = vmatprep.mubr.f32.mxu1 %v5440_v45 }
 0x19c   : > { %2877 = vmatmul.mubr.msk.f32.gmra.mrb[56].mxu1 %vm450_vm0, %v438_v22 }
 0x19d   : > { %773 = vmatprep.mubr.f32.mxu1 %v5440_v45 }
 0x1a0   : > { %2878 = vmatmul.mubr.msk.f32.gmra.mrb[58].mxu1 %vm450_vm0, %v439_v23 }
 0x1a1   : > { %779 = vmatprep.mubr.f32.mxu1 %v5440_v45 }
 0x1a4   : > { %2879 = vmatmul.mubr.msk.f32.gmra.mrb[60].mxu1 %vm450_vm0, %v440_v24  ;;  %v3571_v24 = vpop.permute.xlu0 %1510 }
 0x1a5   : > { %785 = vmatprep.mubr.f32.mxu1 %v5440_v45  ;;  %5480 = vst [vmem:[#allocation12_spill] sm:$0xff] %v3571_v24 }
 0x1a8   : > { %2880 = vmatmul.mubr.msk.f32.gmra.mrb[62].mxu1 %vm450_vm0, %v441_v25 }
 0x1a9   : > { %791 = vmatprep.mubr.f32.mxu1 %v5440_v45 }
 0x1ac   : > { %2881 = vmatmul.mubr.msk.f32.gmra.mrb[64].mxu1 %vm450_vm0, %v442_v26 }
 0x1ad   : > { %797 = vmatprep.mubr.f32.mxu1 %v5440_v45 }
 0x1b0   : > { %2882 = vmatmul.mubr.msk.f32.gmra.mrb[66].mxu1 %vm450_vm0, %v443_v27  ;;  %v3577_v27 = vpop.permute.xlu1 %1515 }
 0x1b1   : > { %803 = vmatprep.mubr.f32.mxu1 %v5440_v45  ;;  %5481 = vst [vmem:[#allocation13_spill] sm:$0xff] %v3577_v27  ;;  %v218_v27 = vlaneseq }
 0x1b4   : > { %2883 = vmatmul.mubr.msk.f32.gmra.mrb[68].mxu1 %vm450_vm0, %v444_v28 }
 0x1b5   : > { %809 = vmatprep.mubr.f32.mxu1 %v5440_v45 }
 0x1b8   : > { %2884 = vmatmul.mubr.msk.f32.gmra.mrb[70].mxu1 %vm450_vm0, %v445_v29  ;;  %v3580_v29 = vpop.permute.xlu0 %1520 }
 0x1b9   : > { %815 = vmatprep.mubr.f32.mxu1 %v5440_v45  ;;  %5482 = vst [vmem:[#allocation14_spill] sm:$0xff] %v3580_v29 }
 0x1bc   : > { %2885 = vmatmul.mubr.msk.f32.gmra.mrb[72].mxu1 %vm450_vm0, %v446_v30 }
 0x1bd   : > { %821 = vmatprep.mubr.f32.mxu1 %v5440_v45 }
 0x1c0   : > { %2886 = vmatmul.mubr.msk.f32.gmra.mrb[74].mxu1 %vm450_vm0, %v447_v31 }
 0x1c1   : > { %827 = vmatprep.mubr.f32.mxu1 %v5440_v45 }
 0x1c4   : > { %2887 = vmatmul.mubr.msk.f32.gmra.mrb[76].mxu1 %vm450_vm0, %v448_v32 }
 0x1c5   : > { %833 = vmatprep.mubr.f32.mxu1 %v5440_v45 }
 0x1c8   : > { %2888 = vmatmul.mubr.msk.f32.gmra.mrb[78].mxu1 %vm450_vm0, %v449_v33 }
 0x20f   : > { %v625_v34 = vpop.f32.mrb[8].mxu1 }
 0x210   : > { %945 = vrot.lane.b32.xlu1 %v625_v34, %s3164_s13  ;;  %920 = vrot.lane.b32.xlu0 %v625_v34, %s3165_s14  ;;  %v627_v35 = vpop.f32.mrb[9].mxu1 }
 0x213   : > { %v631_v36 = vpop.f32.mrb[10].mxu1 }
 0x214   : > { %953 = vrot.lane.b32.xlu1 %v627_v35, %s3164_s13  ;;  %928 = vrot.lane.b32.xlu0 %v627_v35, %s3165_s14  ;;  %v633_v37 = vpop.f32.mrb[11].mxu1 }
 0x217   : > { %v637_v38 = vpop.f32.mrb[12].mxu1 }
 0x218   : > { %922 = vrot.lane.b32.xlu0 %v631_v36, %s3165_s14  ;;  %930 = vrot.lane.b32.xlu1 %v633_v37, %s3165_s14  ;;  %v639_v39 = vpop.f32.mrb[13].mxu1 }
 0x21b   : > { %v643_v40 = vpop.f32.mrb[14].mxu1 }
 0x21c   : > { %947 = vrot.lane.b32.xlu0 %v631_v36, %s3164_s13  ;;  %955 = vrot.lane.b32.xlu1 %v633_v37, %s3164_s13  ;;  %v645_v42 = vpop.f32.mrb[15].mxu1 }
 0x21f   : > { %v3493_v43 = vpop.f32.mrb[16].mxu1 }
 0x220   : > { %924 = vrot.lane.b32.xlu0 %v637_v38, %s3165_s14  ;;  %932 = vrot.lane.b32.xlu1 %v639_v39, %s3165_s14  ;;  %v3497_v44 = vpop.f32.mrb[17].mxu1 }
 0x223   : > { %v3499_v46 = vpop.f32.mrb[18].mxu1 }
 0x224   : > { %949 = vrot.lane.b32.xlu0 %v637_v38, %s3164_s13  ;;  %957 = vrot.lane.b32.xlu1 %v639_v39, %s3164_s13  ;;  %v3503_v47 = vpop.f32.mrb[19].mxu1 }
 0x227   : > { %v3505_v48 = vpop.f32.mrb[20].mxu1 }
 0x228   : > { %926 = vrot.lane.b32.xlu0 %v643_v40, %s3165_s14  ;;  %934 = vrot.lane.b32.xlu1 %v645_v42, %s3165_s14  ;;  %v3509_v49 = vpop.f32.mrb[21].mxu1 }
 0x22b   : > { %v3511_v50 = vpop.f32.mrb[22].mxu1 }
 0x22c   : > { %951 = vrot.lane.b32.xlu0 %v643_v40, %s3164_s13  ;;  %959 = vrot.lane.b32.xlu1 %v645_v42, %s3164_s13  ;;  %v3515_v51 = vpop.f32.mrb[23].mxu1 }
 0x22f   : > { %v673_v52 = vpop.f32.mrb[24].mxu1 }
 0x230   : > { %1002 = vrot.lane.b32.xlu0 %v673_v52, %s3165_s14  ;;  %v675_v53 = vpop.f32.mrb[25].mxu1 }
 0x231   : > { %1010 = vrot.lane.b32.xlu1 %v675_v53, %s3165_s14 }
 0x233   : > { %v679_v41 = vpop.f32.mrb[26].mxu1 }
 0x234   : > { %1026 = vrot.lane.b32.xlu0 %v673_v52, %s3164_s13  ;;  %v681_v54 = vpop.f32.mrb[27].mxu1 }
 0x235   : > { %1034 = vrot.lane.b32.xlu1 %v675_v53, %s3164_s13 }
 0x237   : > { %v685_v55 = vpop.f32.mrb[28].mxu1 }
 0x238   : > { %1004 = vrot.lane.b32.xlu0 %v679_v41, %s3165_s14  ;;  %v687_v56 = vpop.f32.mrb[29].mxu1 }
 0x239   : > { %1012 = vrot.lane.b32.xlu1 %v681_v54, %s3165_s14 }
 0x23b   : > { %v691_v57 = vpop.f32.mrb[30].mxu1 }
 0x23c   : > { %1028 = vrot.lane.b32.xlu0 %v679_v41, %s3164_s13  ;;  %v693_v58 = vpop.f32.mrb[31].mxu1 }
 0x23d   : > { %1036 = vrot.lane.b32.xlu1 %v681_v54, %s3164_s13 }
 0x23f   : > { %v697_v59 = vpop.f32.mrb[32].mxu1 }
 0x240   : > { %1006 = vrot.lane.b32.xlu0 %v685_v55, %s3165_s14  ;;  %v699_v60 = vpop.f32.mrb[33].mxu1 }
 0x241   : > { %1014 = vrot.lane.b32.xlu1 %v687_v56, %s3165_s14 }
 0x243   : > { %v703_v61 = vpop.f32.mrb[34].mxu1 }
 0x244   : > { %1030 = vrot.lane.b32.xlu0 %v685_v55, %s3164_s13  ;;  %v705_v62 = vpop.f32.mrb[35].mxu1 }
 0x245   : > { %1038 = vrot.lane.b32.xlu1 %v687_v56, %s3164_s13 }
 0x247   : > { %v709_v63 = vpop.f32.mrb[36].mxu1 }
 0x248   : > { %1008 = vrot.lane.b32.xlu0 %v691_v57, %s3165_s14  ;;  %v711_v0 = vpop.f32.mrb[37].mxu1 }
 0x249   : > { %1016 = vrot.lane.b32.xlu1 %v693_v58, %s3165_s14 }
 0x24b   : > { %v715_v1 = vpop.f32.mrb[38].mxu1 }
 0x24c   : > { %1032 = vrot.lane.b32.xlu0 %v691_v57, %s3164_s13  ;;  %v717_v2 = vpop.f32.mrb[39].mxu1 }
 0x24d   : > { %1040 = vrot.lane.b32.xlu1 %v693_v58, %s3164_s13 }
 0x24f   : > { %v3533_v3 = vpop.f32.mrb[40].mxu1 }
 0x250   : > { %5471 = vst [vmem:[#allocation3_spill] sm:$0xff] %v3533_v3  ;;  %1131 = vrot.lane.b32.xlu0 %v697_v59, %s3165_s14  ;;  %v3536_v4 = vpop.f32.mrb[41].mxu1 }
 0x251   : > { %5472 = vst [vmem:[#allocation4_spill] sm:$0xff] %v3536_v4  ;;  %1139 = vrot.lane.b32.xlu1 %v699_v60, %s3165_s14 }
 0x253   : > { %v3539_v5 = vpop.f32.mrb[42].mxu1 }
 0x254   : > { %5473 = vst [vmem:[#allocation5_spill] sm:$0xff] %v3539_v5  ;;  %1155 = vrot.lane.b32.xlu0 %v697_v59, %s3164_s13  ;;  %v3542_v6 = vpop.f32.mrb[43].mxu1 }
 0x255   : > { %5474 = vst [vmem:[#allocation6_spill] sm:$0xff] %v3542_v6  ;;  %1163 = vrot.lane.b32.xlu1 %v699_v60, %s3164_s13 }
 0x257   : > { %v3545_v7 = vpop.f32.mrb[44].mxu1 }
 0x258   : > { %5475 = vst [vmem:[#allocation7_spill] sm:$0xff] %v3545_v7  ;;  %1157 = vrot.lane.b32.xlu0 %v703_v61, %s3164_s13  ;;  %v3548_v8 = vpop.f32.mrb[45].mxu1 }
 0x259   : > { %5476 = vst [vmem:[#allocation8_spill] sm:$0xff] %v3548_v8  ;;  %1133 = vrot.lane.b32.xlu1 %v703_v61, %s3165_s14 }
 0x25b   : > { %v3551_v9 = vpop.f32.mrb[46].mxu1 }
 0x25c   : > { %5477 = vst [vmem:[#allocation9_spill] sm:$0xff] %v3551_v9  ;;  %1143 = vrot.lane.b32.xlu0 %v711_v0, %s3165_s14  ;;  %v3554_v10 = vpop.f32.mrb[47].mxu1 }
 0x25d   : > { %5478 = vst [vmem:[#allocation10_spill] sm:$0xff] %v3554_v10  ;;  %1141 = vrot.lane.b32.xlu1 %v705_v62, %s3165_s14  ;;  %v3699_v10 = vand.u32 127, %v218_v27 }
 0x25f   : > { %v745_v11 = vpop.f32.mrb[48].mxu1  ;;  %v225_v9 = vand.u32 15, %v3699_v10  ;;  %vm961_vm1 = vcmp.lt.s32.totalorder %v3699_v10, 127  ;;  %vm936_vm2 = vcmp.lt.s32.totalorder %v3699_v10, 1  ;;  %vm1106_vm7 = vcmp.lt.s32.totalorder %v3699_v10, 112 }
 0x260   : > { %1167 = vrot.lane.b32.xlu0 %v711_v0, %s3164_s13  ;;  %v747_v12 = vpop.f32.mrb[49].mxu1  ;;  %vm249_vm8 = vcmp.lt.s32.totalorder %v3699_v10, 16 }
 0x261   : > { %1165 = vrot.lane.b32.xlu1 %v705_v62, %s3164_s13  ;;  %vm3716_vm3 = vcmp.eq.s32.totalorder %v225_v9, 0  ;;  %vm3731_vm4 = vcmp.eq.s32.totalorder %v225_v9, 15 }
 0x263   : > { %v751_v13 = vpop.f32.mrb[50].mxu1 }
 0x264   : > { %1137 = vrot.lane.b32.xlu0 %v715_v1, %s3165_s14  ;;  %v753_v14 = vpop.f32.mrb[51].mxu1 }
 0x265   : > { %1135 = vrot.lane.b32.xlu1 %v709_v63, %s3165_s14 }
 0x267   : > { %v757_v15 = vpop.f32.mrb[52].mxu1 }
 0x268   : > { %1161 = vrot.lane.b32.xlu0 %v715_v1, %s3164_s13  ;;  %v759_v16 = vpop.f32.mrb[53].mxu1 }
 0x269   : > { %1159 = vrot.lane.b32.xlu1 %v709_v63, %s3164_s13 }
 0x26b   : > { %v763_v17 = vpop.f32.mrb[54].mxu1 }
 0x26c   : > { %1211 = vrot.lane.b32.xlu0 %v745_v11, %s3165_s14  ;;  %v765_v18 = vpop.f32.mrb[55].mxu1 }
 0x26d   : > { %1145 = vrot.lane.b32.xlu1 %v717_v2, %s3165_s14 }
 0x26f   : > { %v769_v19 = vpop.f32.mrb[56].mxu1 }
 0x270   : > { %1235 = vrot.lane.b32.xlu0 %v745_v11, %s3164_s13  ;;  %v771_v21 = vpop.f32.mrb[57].mxu1 }
 0x271   : > { %1169 = vrot.lane.b32.xlu1 %v717_v2, %s3164_s13 }
 0x273   : > { %v775_v22 = vpop.f32.mrb[58].mxu1 }
 0x274   : > { %1213 = vrot.lane.b32.xlu0 %v751_v13, %s3165_s14  ;;  %v777_v23 = vpop.f32.mrb[59].mxu1 }
 0x275   : > { %1219 = vrot.lane.b32.xlu1 %v747_v12, %s3165_s14 }
 0x277   : > { %v781_v25 = vpop.f32.mrb[60].mxu1 }
 0x278   : > { %1237 = vrot.lane.b32.xlu0 %v751_v13, %s3164_s13  ;;  %v3574_v26 = vpop.f32.mrb[61].mxu1 }
 0x279   : > { %1243 = vrot.lane.b32.xlu1 %v747_v12, %s3164_s13 }
 0x27b   : > { %v787_v28 = vpop.f32.mrb[62].mxu1 }
 0x27c   : > { %1223 = vrot.lane.b32.xlu0 %v759_v16, %s3165_s14  ;;  %v3582_v30 = vpop.f32.mrb[63].mxu1 }
 0x27d   : > { %1221 = vrot.lane.b32.xlu1 %v753_v14, %s3165_s14 }
 0x27f   : > { %v3585_v31 = vpop.f32.mrb[64].mxu1 }
 0x280   : > { %1247 = vrot.lane.b32.xlu0 %v759_v16, %s3164_s13  ;;  %v3588_v32 = vpop.f32.mrb[65].mxu1 }
 0x281   : > { %1245 = vrot.lane.b32.xlu1 %v753_v14, %s3164_s13 }
 0x282   : > { %v3591_v33 = vpop.permute.xlu1 %945  ;;  %v3593_v34 = vpop.permute.xlu0 %920 }
 0x283   : > { %v3595_v35 = vpop.f32.mrb[66].mxu1 }
 0x284   : > { %1217 = vrot.lane.b32.xlu0 %v763_v17, %s3165_s14  ;;  %v3598_v36 = vpop.f32.mrb[67].mxu1 }
 0x285   : > { %1215 = vrot.lane.b32.xlu1 %v757_v15, %s3165_s14 }
 0x286   : > { %v3601_v37 = vpop.permute.xlu1 %953  ;;  %v3603_v38 = vpop.permute.xlu0 %928 }
 0x287   : > { %v3605_v39 = vpop.f32.mrb[68].mxu1  ;;  %v962_v27 = vsel %vm961_vm1, %v3591_v33, %v3601_v37  ;;  %v941_v8 = vsel %vm936_vm2, %v3603_v38, %v3593_v34 }
 0x288   : > { %1241 = vrot.lane.b32.xlu0 %v763_v17, %s3164_s13  ;;  %v3608_v40 = vpop.f32.mrb[69].mxu1  ;;  %v970_v5 = vsel %vm3716_vm3, %v962_v27, %v941_v8 }
 0x289   : > { %1239 = vrot.lane.b32.xlu1 %v757_v15, %s3164_s13 }
 0x28a   : > { %v3611_v42 = vpop.permute.xlu0 %922  ;;  %v3613_v52 = vpop.permute.xlu1 %930 }
 0x28b   : > { %v3615_v53 = vpop.f32.mrb[70].mxu1 }
 0x28c   : > { %1291 = vrot.lane.b32.xlu0 %v769_v19, %s3165_s14  ;;  %v3618_v41 = vpop.f32.mrb[71].mxu1 }
 0x28d   : > { %5483 = vst [vmem:[#allocation15_spill] sm:$0xff] %v3618_v41  ;;  %1225 = vrot.lane.b32.xlu1 %v765_v18, %s3165_s14  ;;  %v986_v41 = vadd.f32 %v970_v5, %v3493_v43  ;;  %v937_v5 = vsel %vm936_vm2, %v3593_v34, %v3603_v38 }
 0x28e   : > { %v3621_v54 = vpop.permute.xlu0 %947  ;;  %v3623_v55 = vpop.permute.xlu1 %955 }
 0x28f   : > { %v817_v56 = vpop.f32.mrb[72].mxu1  ;;  %v967_v8 = vsel %vm961_vm1, %v3623_v55, %v3621_v54 }
 0x290   : > { %1315 = vrot.lane.b32.xlu0 %v769_v19, %s3164_s13  ;;  %v819_v57 = vpop.f32.mrb[73].mxu1 }
 0x291   : > { %1249 = vrot.lane.b32.xlu1 %v765_v18, %s3164_s13 }
 0x292   : > { %v3627_v58 = vpop.permute.xlu0 %924  ;;  %v3629_v59 = vpop.permute.xlu1 %932 }
 0x293   : > { %v823_v60 = vpop.f32.mrb[74].mxu1 }
 0x294   : > { %1293 = vrot.lane.b32.xlu0 %v775_v22, %s3165_s14  ;;  %v825_v61 = vpop.f32.mrb[75].mxu1 }
 0x295   : > { %1299 = vrot.lane.b32.xlu1 %v771_v21, %s3165_s14 }
 0x296   : > { %v3633_v62 = vpop.permute.xlu0 %949  ;;  %v3635_v63 = vpop.permute.xlu1 %957 }
 0x297   : > { %v829_v0 = vpop.f32.mrb[76].mxu1 }
 0x298   : > { %1317 = vrot.lane.b32.xlu0 %v775_v22, %s3164_s13  ;;  %v3638_v1 = vpop.f32.mrb[77].mxu1 }
 0x299   : > { %1323 = vrot.lane.b32.xlu1 %v771_v21, %s3164_s13 }
 0x29a   : > { %v3641_v2 = vpop.permute.xlu0 %926  ;;  %v3643_v11 = vpop.permute.xlu1 %934 }
 0x29b   : > { %v835_v12 = vpop.f32.mrb[78].mxu1 }
 0x29c   : > { %1295 = vrot.lane.b32.xlu0 %v781_v25, %s3165_s14  ;;  %v3646_v13 = vpop.f32.mrb[79].mxu1 }
 0x29d   : > { %1301 = vrot.lane.b32.xlu1 %v777_v23, %s3165_s14 }
 0x29e   : > { %v3649_v14 = vpop.permute.xlu0 %951  ;;  %v3651_v15 = vpop.permute.xlu1 %959 }
 0x2a0   : > { %1319 = vrot.lane.b32.xlu0 %v781_v25, %s3164_s13 }
 0x2a1   : > { %1325 = vrot.lane.b32.xlu1 %v777_v23, %s3164_s13 }
 0x2a2   : > { %v3655_v16 = vpop.permute.xlu0 %1002 }
 0x2a3   : > { %v3657_v17 = vpop.permute.xlu1 %1010 }
 0x2a4   : > { %1297 = vrot.lane.b32.xlu0 %v787_v28, %s3165_s14  ;;  %v1022_v9 = vsel %vm936_vm2, %v3657_v17, %v3655_v16 }
 0x2a5   : > { %1303 = vrot.lane.b32.xlu1 %v3574_v26, %s3165_s14 }
 0x2a6   : > { %v3662_v18 = vpop.permute.xlu0 %1026 }
 0x2a7   : > { %v3664_v19 = vpop.permute.xlu1 %1034 }
 0x2a8   : > { %1321 = vrot.lane.b32.xlu0 %v787_v28, %s3164_s13  ;;  %v1042_v6 = vsel %vm961_vm1, %v3662_v18, %v3664_v19  ;;  %v1046_v38 = vsel %vm961_vm1, %v3664_v19, %v3662_v18 }
 0x2a9   : > { %1327 = vrot.lane.b32.xlu1 %v3574_v26, %s3164_s13 }
 0x2aa   : > { %v3669_v21 = vpop.permute.xlu0 %1004 }
 0x2ab   : > { %v3671_v22 = vpop.permute.xlu1 %1012 }
 0x2ac   : > { %1371 = vrot.lane.b32.xlu0 %v817_v56, %s3165_s14 }
 0x2ad   : > { %1305 = vrot.lane.b32.xlu1 %v3582_v30, %s3165_s14 }
 0x2ae   : > { %v3676_v23 = vpop.permute.xlu0 %1028 }
 0x2af   : > { %v3678_v25 = vpop.permute.xlu1 %1036 }
 0x2b0   : > { %1395 = vrot.lane.b32.xlu0 %v817_v56, %s3164_s13 }
 0x2b1   : > { %1329 = vrot.lane.b32.xlu1 %v3582_v30, %s3164_s13 }
 0x2b2   : > { %v3683_v28 = vpop.permute.xlu0 %1006 }
 0x2b3   : > { %v3685_v26 = vpop.permute.xlu1 %1014 }
 0x2b4   : > { %1373 = vrot.lane.b32.xlu0 %v823_v60, %s3165_s14 }
 0x2b5   : > { %1379 = vrot.lane.b32.xlu1 %v819_v57, %s3165_s14 }
 0x2b6   : > { %v3689_v45 = vpop.permute.xlu0 %1030 }
 0x2b7   : > { %v3691_v29 = vpop.permute.xlu1 %1038 }
 0x2b8   : > { %1397 = vrot.lane.b32.xlu0 %v823_v60, %s3164_s13 }
 0x2b9   : > { %1403 = vrot.lane.b32.xlu1 %v819_v57, %s3164_s13 }
 0x2ba   : > { %v3695_v56 = vpop.permute.xlu0 %1008 }
 0x2bb   : > { %v3697_v30 = vpop.permute.xlu1 %1016 }
 0x2bc   : > { %1375 = vrot.lane.b32.xlu0 %v829_v0, %s3165_s14 }
 0x2bd   : > { %1381 = vrot.lane.b32.xlu1 %v825_v61, %s3165_s14 }
 0x2be   : > { %v3704_v24 = vpop.permute.xlu0 %1032 }
 0x2bf   : > { %v3708_v60 = vpop.permute.xlu1 %1040 }
 0x2c0   : > { %1399 = vrot.lane.b32.xlu0 %v829_v0, %s3164_s13  ;;  %v3727_v0 = vadd.s32 128, %v3699_v10 }
 0x2c1   : > { %1405 = vrot.lane.b32.xlu1 %v825_v61, %s3164_s13 }
 0x2c2   : > { %v3724_v7 = vpop.permute.xlu0 %1131  ;;  %5487 = vst [vmem:[#allocation17_spill] sm:$0xff] %v3727_v0  ;;  %v232_v3 = vand.u32 15, %v3727_v0  ;;  %vm252_vm9 = vcmp.ge.s32.totalorder %v3727_v0, 240 }
 0x2c3   : > { %5486 = vst [vmem:[#allocation16_spill] sm:$0xff] %v3724_v7  ;;  %v3729_v61 = vpop.permute.xlu1 %1139 }
 0x2c4   : > { %5488 = vst [vmem:[#allocation18_spill] sm:$0xff] %v3729_v61  ;;  %1377 = vrot.lane.b32.xlu0 %v835_v12, %s3165_s14  ;;  %v1050_v61 = vsel %vm3731_vm4, %v1022_v9, %v1042_v6  ;;  %v966_v6 = vsel %vm961_vm1, %v3601_v37, %v3591_v33  ;;  %vm3769_vm5 = vcmp.eq.s32.totalorder %v232_v3, 0  ;;  %v1047_v33 = vsel %vm961_vm1, %v3678_v25, %v3676_v23 }
 0x2c5   : > { %1383 = vrot.lane.b32.xlu1 %v3638_v1, %s3165_s14  ;;  %v1058_v27 = vadd.f32 %v1050_v61, %v986_v41  ;;  %v938_v41 = vsel %vm936_vm2, %v3611_v42, %v3613_v52  ;;  %vm3790_vm6 = vcmp.eq.s32.totalorder %v232_v3, 15  ;;  %v1019_v61 = vsel %vm936_vm2, %v3669_v21, %v3671_v22 }
 0x2c6   : > { %v3748_v4 = vpop.permute.xlu0 %1155  ;;  %v973_v37 = vsel %vm3769_vm5, %v967_v8, %v938_v41  ;;  %v1018_v9 = vsel %vm936_vm2, %v3655_v16, %v3657_v17  ;;  %v1053_v18 = vsel %vm3790_vm6, %v1019_v61, %v1047_v33  ;;  %v964_v16 = vsel %vm961_vm1, %v3633_v62, %v3635_v63 }
 0x2c7   : > { %5491 = vst [vmem:[#allocation19_spill] sm:$0xff] %v3748_v4  ;;  %v3753_v7 = vpop.permute.xlu1 %1163  ;;  %v989_v8 = vadd.f32 %v973_v37, %v3503_v47  ;;  %v963_v47 = vsel %vm961_vm1, %v3621_v54, %v3623_v55  ;;  %v942_v54 = vsel %vm936_vm2, %v3613_v52, %v3611_v42  ;;  %v1043_v37 = vsel %vm961_vm1, %v3676_v23, %v3678_v25 }
 0x2c8   : > { %1401 = vrot.lane.b32.xlu0 %v835_v12, %s3164_s13  ;;  %v971_v12 = vsel %vm3769_vm5, %v966_v6, %v937_v5  ;;  %v1051_v6 = vsel %vm3790_vm6, %v1018_v9, %v1046_v38  ;;  %v972_v38 = vsel %vm3716_vm3, %v963_v47, %v942_v54  ;;  %v1023_v42 = vsel %vm936_vm2, %v3671_v22, %v3669_v21 }
 0x2c9   : > { %1407 = vrot.lane.b32.xlu1 %v3638_v1, %s3164_s13  ;;  %v987_v5 = vadd.f32 %v971_v12, %v3497_v44  ;;  %v1061_v17 = vadd.f32 %v1053_v18, %v989_v8  ;;  %v943_v44 = vsel %vm936_vm2, %v3629_v59, %v3627_v58  ;;  %v1024_v12 = vsel %vm936_vm2, %v3685_v26, %v3683_v28 }
 0x2ca   : > { %v3763_v4 = vpop.permute.xlu0 %1157  ;;  %v974_v55 = vsel %vm3716_vm3, %v964_v16, %v943_v44  ;;  %v1052_v9 = vsel %vm3731_vm4, %v1023_v42, %v1043_v37  ;;  %v988_v18 = vadd.f32 %v972_v38, %v3499_v46  ;;  %v969_v21 = vsel %vm961_vm1, %v3651_v15, %v3649_v14 }
 0x2cb   : > { %v3777_v1 = vpop.permute.xlu1 %1133  ;;  %v1059_v33 = vadd.f32 %v1051_v6, %v987_v5  ;;  %v990_v25 = vadd.f32 %v974_v55, %v3505_v48  ;;  %v968_v48 = vsel %vm961_vm1, %v3635_v63, %v3633_v62  ;;  %v940_v46 = vsel %vm936_vm2, %v3641_v2, %v3643_v11 }
 0x2cc   : > { %1066 = vrot.lane.b32.xlu0 %v1058_v27, %s3166_s17  ;;  %v1060_v6 = vadd.f32 %v1052_v9, %v988_v18  ;;  %v1049_v16 = vsel %vm961_vm1, %v3708_v60, %v3704_v24  ;;  %v939_v62 = vsel %vm936_vm2, %v3627_v58, %v3629_v59  ;;  %v977_v63 = vsel %vm3769_vm5, %v969_v21, %v940_v46 }
 0x2cd   : > { %1385 = vrot.lane.b32.xlu1 %v3646_v13, %s3165_s14  ;;  %v975_v47 = vsel %vm3769_vm5, %v968_v48, %v939_v62  ;;  %v1020_v58 = vsel %vm936_vm2, %v3683_v28, %v3685_v26  ;;  %v993_v59 = vadd.f32 %v977_v63, %v3515_v51  ;;  %v965_v28 = vsel %vm961_vm1, %v3649_v14, %v3651_v15 }
 0x2ce   : > { %v3806_v3 = vpop.permute.xlu0 %1143  ;;  %v991_v54 = vadd.f32 %v975_v47, %v3509_v49  ;;  %v944_v49 = vsel %vm936_vm2, %v3643_v11, %v3641_v2  ;;  %v1045_v51 = vsel %vm961_vm1, %v3704_v24, %v3708_v60 }
 0x2cf   : > { %v3814_v19 = vpop.permute.xlu1 %1141  ;;  %v976_v14 = vsel %vm3716_vm3, %v965_v28, %v944_v49 }
 0x2d0   : > { %1090 = vrot.lane.b32.xlu0 %v1058_v27, %s3167_s18  ;;  %v992_v24 = vadd.f32 %v976_v14, %v3511_v50 }
 0x2d1   : > { %1409 = vrot.lane.b32.xlu1 %v3646_v13, %s3164_s13  ;;  %v1044_v13 = vsel %vm961_vm1, %v3689_v45, %v3691_v29 }
 0x2d2   : > { %v3827_v41 = vpop.permute.xlu0 %1167  ;;  %v1054_v52 = vsel %vm3731_vm4, %v1024_v12, %v1044_v13  ;;  %v1025_v12 = vsel %vm936_vm2, %v3697_v30, %v3695_v56 }
 0x2d3   : > { %v3833_v27 = vpop.permute.xlu1 %1165  ;;  %v1062_v22 = vadd.f32 %v1054_v52, %v990_v25  ;;  %v1056_v2 = vsel %vm3731_vm4, %v1025_v12, %v1045_v51 }
 0x2d4   : > { %1076 = vrot.lane.b32.xlu0 %v1061_v17, %s3166_s17  ;;  %v1064_v60 = vadd.f32 %v1056_v2, %v992_v24 }
 0x2d5   : > { %1074 = vrot.lane.b32.xlu1 %v1059_v33, %s3166_s17 }
 0x2d6   : > { %v3861_v61 = vpop.permute.xlu0 %1137 }
 0x2d7   : > { %v3869_v23 = vpop.permute.xlu1 %1135 }
 0x2d8   : > { %1100 = vrot.lane.b32.xlu0 %v1061_v17, %s3167_s18  ;;  %v1048_v17 = vsel %vm961_vm1, %v3691_v29, %v3689_v45 }
 0x2d9   : > { %1098 = vrot.lane.b32.xlu1 %v1059_v33, %s3167_s18  ;;  %v1021_v33 = vsel %vm936_vm2, %v3695_v56, %v3697_v30  ;;  %v1055_v13 = vsel %vm3790_vm6, %v1020_v58, %v1048_v17 }
 0x2da   : > { %v3881_v8 = vpop.permute.xlu0 %1161  ;;  %v1057_v45 = vsel %vm3790_vm6, %v1021_v33, %v1049_v16  ;;  %v1063_v26 = vadd.f32 %v1055_v13, %v991_v54 }
 0x2db   : > { %v3887_v5 = vpop.permute.xlu1 %1159  ;;  %v1065_v55 = vadd.f32 %v1057_v45, %v993_v59 }
 0x2dc   : > { %1070 = vrot.lane.b32.xlu0 %v1062_v22, %s3166_s17 }
 0x2dd   : > { %1068 = vrot.lane.b32.xlu1 %v1060_v6, %s3166_s17 }
 0x2de   : > { %v3915_v44 = vpop.permute.xlu0 %1211 }
 0x2df   : > { %v3923_v29 = vpop.permute.xlu1 %1145 }
 0x2e0   : > { %1094 = vrot.lane.b32.xlu0 %v1062_v22, %s3167_s18 }
 0x2e1   : > { %1092 = vrot.lane.b32.xlu1 %v1060_v6, %s3167_s18 }
 0x2e2   : > { %v3931_v37 = vpop.permute.xlu0 %1235 }
 0x2e3   : > { %v3937_v38 = vpop.permute.xlu1 %1169 }
 0x2e4   : > { %1080 = vrot.lane.b32.xlu0 %v1065_v55, %s3166_s17 }
 0x2e5   : > { %1078 = vrot.lane.b32.xlu1 %v1063_v26, %s3166_s17 }
 0x2e6   : > { %v3951_v15 = vpop.permute.xlu0 %1213 }
 0x2e7   : > { %v3957_v42 = vpop.permute.xlu1 %1219 }
 0x2e8   : > { %1104 = vrot.lane.b32.xlu0 %v1065_v55, %s3167_s18 }
 0x2e9   : > { %1102 = vrot.lane.b32.xlu1 %v1063_v26, %s3167_s18 }
 0x2ea   : > { %v3964_v11 = vpop.permute.xlu0 %1237 }
 0x2eb   : > { %v3966_v52 = vpop.permute.xlu1 %1243 }
 0x2ed   : > { %1072 = vrot.lane.b32.xlu1 %v1064_v60, %s3166_s17 }
 0x2ee   : > { %v3969_v25 = vpop.permute.xlu0 %1223 }
 0x2ef   : > { %5496 = vst [vmem:[#allocation20_spill] sm:$0xff] %v3969_v25  ;;  %v3971_v56 = vpop.permute.xlu1 %1221 }
 0x2f1   : > { %1096 = vrot.lane.b32.xlu1 %v1064_v60, %s3167_s18 }
 0x2f2   : > { %v3974_v30 = vpop.permute.xlu0 %1247 }
 0x2f3   : > { %5497 = vst [vmem:[#allocation21_spill] sm:$0xff] %v3974_v30  ;;  %v3976_v9 = vpop.permute.xlu1 %1245 }
 0x2f6   : > { %v3978_v50 = vpop.permute.xlu0 %1217 }
 0x2f7   : > { %5498 = vst [vmem:[#allocation22_spill] sm:$0xff] %v3978_v50  ;;  %v3980_v18 = vpop.permute.xlu1 %1215 }
 0x2f8   : > { %5499 = vst [vmem:[#allocation23_spill] sm:$0xff] %v3980_v18 }
 0x2fa   : > { %v3982_v21 = vpop.permute.xlu0 %1241 }
 0x2fb   : > { %5500 = vst [vmem:[#allocation24_spill] sm:$0xff] %v3982_v21  ;;  %v3984_v22 = vpop.permute.xlu1 %1239 }
 0x2fc   : > { %5501 = vst [vmem:[#allocation25_spill] sm:$0xff] %v3984_v22 }
 0x2fe   : > { %v1292_v48 = vpop.permute.xlu0 %1291 }
 0x2ff   : > { %v3986_v6 = vpop.permute.xlu1 %1225 }
 0x300   : > { %5502 = vst [vmem:[#allocation26_spill] sm:$0xff] %v3986_v6 }
 0x302   : > { %v1316_v46 = vpop.permute.xlu0 %1315 }
 0x303   : > { %v3988_v16 = vpop.permute.xlu1 %1249 }
 0x304   : > { %5503 = vst [vmem:[#allocation27_spill] sm:$0xff] %v3988_v16 }
 0x306   : > { %v1294_v62 = vpop.permute.xlu0 %1293 }
 0x307   : > { %v1300_v63 = vpop.permute.xlu1 %1299 }
 0x308   : > { %v1307_v60 = vsel %vm936_vm2, %v1292_v48, %v1300_v63  ;;  %v1311_v21 = vsel %vm936_vm2, %v1300_v63, %v1292_v48 }
 0x30a   : > { %v1318_v17 = vpop.permute.xlu0 %1317 }
 0x30b   : > { %v1324_v47 = vpop.permute.xlu1 %1323 }
 0x30c   : > { %v1331_v12 = vsel %vm961_vm1, %v1316_v46, %v1324_v47  ;;  %v1335_v2 = vsel %vm961_vm1, %v1324_v47, %v1316_v46 }
 0x30d   : > { %v1339_v50 = vsel %vm3716_vm3, %v1331_v12, %v1311_v21  ;;  %v1340_v6 = vsel %vm3769_vm5, %v1335_v2, %v1307_v60 }
 0x30e   : > { %v1296_v33 = vpop.permute.xlu0 %1295  ;;  %v1355_v22 = vadd.f32 %v1339_v50, %v3585_v31  ;;  %v1356_v30 = vadd.f32 %v1340_v6, %v3588_v32 }
 0x30f   : > { %v1302_v58 = vpop.permute.xlu1 %1301 }
 0x312   : > { %v1320_v45 = vpop.permute.xlu0 %1319 }
 0x313   : > { %v1326_v59 = vpop.permute.xlu1 %1325 }
 0x314   : > { %v1332_v63 = vsel %vm961_vm1, %v1318_v17, %v1326_v59  ;;  %v1336_v31 = vsel %vm961_vm1, %v1326_v59, %v1318_v17 }
 0x316   : > { %v3990_v13 = vpop.permute.xlu0 %1297 }
 0x317   : > { %v1304_v54 = vpop.permute.xlu1 %1303 }
 0x31a   : > { %v3992_v55 = vpop.permute.xlu0 %1321 }
 0x31b   : > { %v1328_v28 = vpop.permute.xlu1 %1327 }
 0x31e   : > { %v1372_v26 = vpop.permute.xlu0 %1371 }
 0x31f   : > { %v3994_v49 = vpop.permute.xlu1 %1305 }
 0x322   : > { %v1396_v51 = vpop.permute.xlu0 %1395 }
 0x323   : > { %v3996_v14 = vpop.permute.xlu1 %1329 }
 0x326   : > { %v1374_v24 = vpop.permute.xlu0 %1373 }
 0x327   : > { %v1380_v16 = vpop.permute.xlu1 %1379 }
 0x328   : > { %v1387_v47 = vsel %vm936_vm2, %v1372_v26, %v1380_v16  ;;  %v1391_v25 = vsel %vm936_vm2, %v1380_v16, %v1372_v26  ;;  %v1308_v26 = vsel %vm936_vm2, %v1294_v62, %v1302_v58 }
 0x329   : > { %v1342_v17 = vsel %vm3769_vm5, %v1336_v31, %v1308_v26 }
 0x32a   : > { %v1398_v18 = vpop.permute.xlu0 %1397 }
 0x32b   : > { %v1404_v46 = vpop.permute.xlu1 %1403 }
 0x32c   : > { %v1411_v48 = vsel %vm961_vm1, %v1396_v51, %v1404_v46  ;;  %v1415_v21 = vsel %vm961_vm1, %v1404_v46, %v1396_v51  ;;  %v1312_v51 = vsel %vm936_vm2, %v1302_v58, %v1294_v62 }
 0x32d   : > { %v1419_v32 = vsel %vm3731_vm4, %v1391_v25, %v1411_v48  ;;  %v1420_v50 = vsel %vm3790_vm6, %v1387_v47, %v1415_v21  ;;  %v1341_v2 = vsel %vm3716_vm3, %v1332_v63, %v1312_v51  ;;  %v1313_v63 = vsel %vm936_vm2, %v1304_v54, %v1296_v33 }
 0x32e   : > { %v1427_v6 = vadd.f32 %v1419_v32, %v1355_v22  ;;  %v1428_v16 = vadd.f32 %v1420_v50, %v1356_v30  ;;  %v1376_v25 = vpop.permute.xlu0 %1375  ;;  %v1357_v30 = vadd.f32 %v1341_v2, %v3595_v35  ;;  %v1358_v22 = vadd.f32 %v1342_v17, %v3598_v36 }
 0x32f   : > { %v1382_v12 = vpop.permute.xlu1 %1381  ;;  %v1333_v35 = vsel %vm961_vm1, %v1320_v45, %v1328_v28  ;;  %v1337_v36 = vsel %vm961_vm1, %v1328_v28, %v1320_v45 }
 0x330   : > { %1435 = vrot.lane.b32.xlu0 %v1427_v6, %s3166_s17  ;;  %1443 = vrot.lane.b32.xlu1 %v1428_v16, %s3166_s17  ;;  %v1388_v59 = vsel %vm936_vm2, %v1374_v24, %v1382_v12  ;;  %v1392_v58 = vsel %vm936_vm2, %v1382_v12, %v1374_v24  ;;  %v1343_v50 = vsel %vm3716_vm3, %v1333_v35, %v1313_v63  ;;  %v2962_v63 = vld [vmem:[%s5438_s3 + $0x28] sm:$0xff] }
 0x331   : > { %v1359_v28 = vadd.f32 %v1343_v50, %v3605_v39  ;;  %v1334_v39 = vsel %vm961_vm1, %v3992_v55, %v3996_v14  ;;  %v2963_v50 = vld [vmem:[%s5438_s3 + $0x30] sm:$0xff] }
 0x332   : > { %v1400_v31 = vpop.permute.xlu0 %1399 }
 0x333   : > { %v1406_v62 = vpop.permute.xlu1 %1405 }
 0x334   : > { %v1412_v60 = vsel %vm961_vm1, %v1398_v18, %v1406_v62  ;;  %v1416_v46 = vsel %vm961_vm1, %v1406_v62, %v1398_v18  ;;  %1459 = vrot.lane.b32.xlu0 %v1427_v6, %s3167_s18  ;;  %1467 = vrot.lane.b32.xlu1 %v1428_v16, %s3167_s18  ;;  %v1309_v18 = vsel %vm936_vm2, %v1296_v33, %v1304_v54 }
 0x335   : > { %v1421_v47 = vsel %vm3731_vm4, %v1392_v58, %v1412_v60  ;;  %v1422_v24 = vsel %vm3790_vm6, %v1388_v59, %v1416_v46  ;;  %v1344_v45 = vsel %vm3769_vm5, %v1337_v36, %v1309_v18  ;;  %v1314_v59 = vsel %vm936_vm2, %v3994_v49, %v3990_v13  ;;  %v5504_v60 = vld [vmem:[#allocation15_spill] sm:$0xff] }
 0x336   : > { %v1429_v48 = vadd.f32 %v1421_v47, %v1357_v30  ;;  %v1430_v21 = vadd.f32 %v1422_v24, %v1358_v22  ;;  %v1360_v6 = vadd.f32 %v1344_v45, %v3608_v40  ;;  %v1338_v40 = vsel %vm961_vm1, %v3996_v14, %v3992_v55  ;;  %v1378_v12 = vpop.permute.xlu0 %1377 }
 0x337   : > { %v1384_v32 = vpop.permute.xlu1 %1383  ;;  %v1310_v22 = vsel %vm936_vm2, %v3990_v13, %v3994_v49  ;;  %v1345_v14 = vsel %vm3716_vm3, %v1334_v39, %v1314_v59 }
 0x338   : > { %1445 = vrot.lane.b32.xlu0 %v1430_v21, %s3166_s17  ;;  %1437 = vrot.lane.b32.xlu1 %v1429_v48, %s3166_s17  ;;  %v1389_v16 = vsel %vm936_vm2, %v1376_v25, %v1384_v32  ;;  %v1393_v54 = vsel %vm936_vm2, %v1384_v32, %v1376_v25  ;;  %v1346_v62 = vsel %vm3769_vm5, %v1338_v40, %v1310_v22  ;;  %v2964_v32 = vld [vmem:[%s5438_s3 + $0x38] sm:$0xff] }
 0x339   : > { %v1361_v58 = vadd.f32 %v1345_v14, %v3615_v53  ;;  %v1362_v46 = vadd.f32 %v1346_v62, %v5504_v60  ;;  %v5507_v14 = vld [vmem:[#allocation18_spill] sm:$0xff] }
 0x33a   : > { %v1402_v35 = vpop.permute.xlu0 %1401 }
 0x33b   : > { %v1408_v33 = vpop.permute.xlu1 %1407 }
 0x33c   : > { %v1413_v26 = vsel %vm961_vm1, %v1400_v31, %v1408_v33  ;;  %v1417_v51 = vsel %vm961_vm1, %v1408_v33, %v1400_v31  ;;  %1469 = vrot.lane.b32.xlu0 %v1430_v21, %s3167_s18  ;;  %1461 = vrot.lane.b32.xlu1 %v1429_v48, %s3167_s18  ;;  %v2961_v31 = vld [vmem:[%s5438_s3 + $0x20] sm:$0xff] }
 0x33d   : > { %v1423_v2 = vsel %vm3731_vm4, %v1393_v54, %v1413_v26  ;;  %v1424_v17 = vsel %vm3790_vm6, %v1389_v16, %v1417_v51 }
 0x33e   : > { %v1431_v25 = vadd.f32 %v1423_v2, %v1359_v28  ;;  %v1432_v30 = vadd.f32 %v1424_v17, %v1360_v6  ;;  %v1067_v45 = vpop.permute.xlu0 %1066 }
 0x33f   : > { %v1386_v55 = vpop.permute.xlu1 %1385 }
 0x340   : > { %1439 = vrot.lane.b32.xlu0 %v1431_v25, %s3166_s17  ;;  %1447 = vrot.lane.b32.xlu1 %v1432_v30, %s3166_s17  ;;  %v1390_v36 = vsel %vm936_vm2, %v1378_v12, %v1386_v55  ;;  %v1394_v49 = vsel %vm936_vm2, %v1386_v55, %v1378_v12  ;;  %v5506_v55 = vld [vmem:[#allocation16_spill] sm:$0xff] }
 0x341   : > { %v1151_v62 = vsel %vm936_vm2, %v5507_v14, %v5506_v55 }
 0x342   : > { %v1091_v6 = vpop.permute.xlu0 %1090 }
 0x343   : > { %v1410_v13 = vpop.permute.xlu1 %1409 }
 0x344   : > { %v1414_v47 = vsel %vm961_vm1, %v1402_v35, %v1410_v13  ;;  %v1418_v24 = vsel %vm961_vm1, %v1410_v13, %v1402_v35  ;;  %1463 = vrot.lane.b32.xlu0 %v1431_v25, %s3167_s18  ;;  %1471 = vrot.lane.b32.xlu1 %v1432_v30, %s3167_s18  ;;  %v5505_v30 = vld [vmem:[#allocation19_spill] sm:$0xff] }
 0x345   : > { %v1425_v53 = vsel %vm3731_vm4, %v1394_v49, %v1414_v47  ;;  %v1426_v48 = vsel %vm3790_vm6, %v1390_v36, %v1418_v24  ;;  %v1171_v22 = vsel %vm961_vm1, %v5505_v30, %v3753_v7  ;;  %v1175_v59 = vsel %vm961_vm1, %v3753_v7, %v5505_v30 }
 0x346   : > { %v1433_v21 = vadd.f32 %v1425_v53, %v1361_v58  ;;  %v1434_v18 = vadd.f32 %v1426_v48, %v1362_v46  ;;  %v4138_v33 = vpop.permute.xlu0 %1076  ;;  %v1147_v58 = vsel %vm936_vm2, %v5506_v55, %v5507_v14  ;;  %v1179_v60 = vsel %vm3716_vm3, %v1171_v22, %v1151_v62 }
 0x347   : > { %v1075_v28 = vpop.permute.xlu1 %1074  ;;  %v1172_v7 = vsel %vm961_vm1, %v3763_v4, %v3833_v27  ;;  %v1251_v46 = vsel %vm961_vm1, %v3931_v37, %v3966_v52  ;;  %v1180_v13 = vsel %vm3769_vm5, %v1175_v59, %v1147_v58  ;;  %v1255_v49 = vsel %vm961_vm1, %v3966_v52, %v3931_v37 }
 0x348   : > { %1449 = vrot.lane.b32.xlu0 %v1434_v18, %s3166_s17  ;;  %1441 = vrot.lane.b32.xlu1 %v1433_v21, %s3166_s17  ;;  %v1152_v47 = vsel %vm936_vm2, %v3814_v19, %v3777_v1  ;;  %v1176_v24 = vsel %vm961_vm1, %v3833_v27, %v3763_v4  ;;  %v1231_v53 = vsel %vm936_vm2, %v3957_v42, %v3915_v44 }
 0x349   : > { %v1181_v52 = vsel %vm3716_vm3, %v1172_v7, %v1152_v47  ;;  %v1259_v4 = vsel %vm3731_vm4, %v1231_v53, %v1251_v46  ;;  %v1148_v27 = vsel %vm936_vm2, %v3777_v1, %v3814_v19  ;;  %v5510_v19 = vld [vmem:[#allocation5_spill] sm:$0xff]  ;;  %v1153_v22 = vsel %vm936_vm2, %v3806_v3, %v3869_v23 }
 0x34a   : > { %v1101_v26 = vpop.permute.xlu0 %1100  ;;  %v1197_v30 = vadd.f32 %v1181_v52, %v5510_v19  ;;  %v1082_v55 = vsel %vm249_vm8, %v1067_v45, %v1075_v28  ;;  %v1177_v14 = vsel %vm961_vm1, %v3827_v41, %v3887_v5 }
 0x34b   : > { %v1099_v16 = vpop.permute.xlu1 %1098 }
 0x34c   : > { %1473 = vrot.lane.b32.xlu0 %v1434_v18, %s3167_s18  ;;  %1465 = vrot.lane.b32.xlu1 %v1433_v21, %s3167_s18  ;;  %v1107_v48 = vsel %vm1106_vm7, %v1091_v6, %v1099_v16  ;;  %v5508_v21 = vld [vmem:[#allocation3_spill] sm:$0xff]  ;;  %v1227_v18 = vsel %vm936_vm2, %v3915_v44, %v3957_v42  ;;  %v1182_v16 = vsel %vm3769_vm5, %v1176_v24, %v1148_v27 }
 0x34d   : > { %v1195_v37 = vadd.f32 %v1179_v60, %v5508_v21  ;;  %v1228_v60 = vsel %vm936_vm2, %v3951_v15, %v3971_v56  ;;  %v1232_v24 = vsel %vm936_vm2, %v3971_v56, %v3951_v15  ;;  %v5511_v15 = vld [vmem:[#allocation6_spill] sm:$0xff]  ;;  %v5513_v27 = vld [vmem:[#allocation7_spill] sm:$0xff] }
 0x34e   : > { %v4142_v39 = vpop.permute.xlu0 %1070  ;;  %v1198_v56 = vadd.f32 %v1182_v16, %v5511_v15 }
 0x34f   : > { %v4140_v54 = vpop.permute.xlu1 %1068  ;;  %v1267_v59 = vadd.f32 %v1259_v4, %v1195_v37 }
 0x350   : > { %2730 = vperm.xlu0 %3144, %v2962_v63   ;;  %2725 = vperm.xlu1 %3145, %v2961_v31   ;;  %v1173_v63 = vsel %vm961_vm1, %v3887_v5, %v3827_v41  ;;  %v1260_v31 = vsel %vm3790_vm6, %v1227_v18, %v1255_v49  ;;  %v1256_v41 = vsel %vm961_vm1, %v3976_v9, %v3964_v11 }
 0x351   : > { %v1183_v62 = vsel %vm3716_vm3, %v1173_v63, %v1153_v22  ;;  %v1262_v37 = vsel %vm3790_vm6, %v1228_v60, %v1256_v41 }
 0x352   : > { %v4146_v12 = vpop.permute.xlu0 %1094  ;;  %v1199_v63 = vadd.f32 %v1183_v62, %v5513_v27 }
 0x353   : > { %v1093_v51 = vpop.permute.xlu1 %1092 }
 0x354   : > { %2740 = vperm.xlu0 %3144, %v2964_v32   ;;  %2735 = vperm.xlu1 %3145, %v2963_v50   ;;  %v1086_v32 = vsel %vm249_vm8, %v1075_v28, %v1067_v45  ;;  %v5509_v50 = vld [vmem:[#allocation4_spill] sm:$0xff]  ;;  %v1252_v45 = vsel %vm961_vm1, %v3964_v11, %v3976_v9  ;;  %v1108_v11 = vsel %vm1106_vm7, %v1093_v51, %v1101_v26 }
 0x355   : > { %v1196_v6 = vadd.f32 %v1180_v13, %v5509_v50  ;;  %v1115_v1 = vsel %vm249_vm8, %v1107_v48, %v1086_v32  ;;  %v1149_v48 = vsel %vm936_vm2, %v3869_v23, %v3806_v3  ;;  %v1261_v21 = vsel %vm3731_vm4, %v1232_v24, %v1252_v45  ;;  %v5512_v3 = vld [vmem:[#allocation11_spill] sm:$0xff] }
 0x356   : > { %v4150_v17 = vpop.permute.xlu0 %1080  ;;  %v1275_v5 = vadd.f32 %v1267_v59, %v1115_v1  ;;  %v1184_v26 = vsel %vm3769_vm5, %v1177_v14, %v1149_v48  ;;  %v1087_v51 = vsel %vm249_vm8, %v4138_v33, %v4140_v54  ;;  %v1269_v50 = vadd.f32 %v1261_v21, %v1197_v30  ;;  %v5516_v59 = vld [vmem:[#allocation21_spill] sm:$0xff] }
 0x357   : > { %v4144_v40 = vpop.permute.xlu1 %1078  ;;  %v1268_v58 = vadd.f32 %v1260_v31, %v1196_v6  ;;  %v1083_v31 = vsel %vm249_vm8, %v4140_v54, %v4138_v33  ;;  %v1117_v32 = vsel %vm249_vm8, %v1108_v11, %v1087_v51  ;;  %v1270_v6 = vadd.f32 %v1262_v37, %v1198_v56  ;;  %v5514_v33 = vld [vmem:[#allocation20_spill] sm:$0xff]  ;;  %v5515_v54 = vld [vmem:[#allocation23_spill] sm:$0xff] }
 0x358   : > { %v1174_v1 = vsel %vm961_vm1, %v3881_v8, %v3937_v38  ;;  %v1229_v19 = vsel %vm936_vm2, %v5515_v54, %v5514_v33  ;;  %v1233_v22 = vsel %vm936_vm2, %v5514_v33, %v5515_v54  ;;  %v1277_v60 = vadd.f32 %v1269_v50, %v1117_v32  ;;  %v3147_v11 = vld [vmem:[%s3241_s24] sm:$0xff]  ;;  %v5521_v56 = vld [vmem:[#allocation12_spill] sm:$0xff] }
 0x359   : > { %v1276_v46 = vadd.f32 %v1268_v58, %v1082_v55  ;;  %v5517_v55 = vld [vmem:[#allocation25_spill] sm:$0xff]  ;;  %v1278_v58 = vadd.f32 %v1270_v6, %v1083_v31  ;;  %v1088_v15 = vsel %vm249_vm8, %v4144_v40, %v4142_v39  ;;  %v5526_v50 = vld [vmem:[#allocation24_spill] sm:$0xff] }
 0x35a   : > { %v4181_v35 = vpop.permute.xlu0 %1104  ;;  %v1253_v14 = vsel %vm961_vm1, %v5517_v55, %v5516_v59  ;;  %v1257_v62 = vsel %vm961_vm1, %v5516_v59, %v5517_v55 }
 0x35b   : > { %v4148_v2 = vpop.permute.xlu1 %1102  ;;  %v1263_v48 = vsel %vm3731_vm4, %v1233_v22, %v1253_v14  ;;  %v1264_v21 = vsel %vm3790_vm6, %v1229_v19, %v1257_v62  ;;  %v3148_v22 = vld [vmem:[%s3241_s24 + $0x10] sm:$0xff]  ;;  %v3149_v62 = vld [vmem:[%s3241_s24 + $0x18] sm:$0xff] }
 0x35c   : > { %v1271_v27 = vadd.f32 %v1263_v48, %v1199_v63  ;;  %v5530_v48 = vld [vmem:[#allocation13_spill] sm:$0xff] }
 0x35f   : > { %v4152_v25 = vpop.permute.xlu1 %1072 }
 0x363   : > { %v4183_v36 = vpop.permute.xlu1 %1096 }
 0x3a2   : > { %v1436_v44 = vpop.permute.xlu0 %1435  ;;  %v1444_v42 = vpop.permute.xlu1 %1443 }
 0x3a3   : > { %v1451_v13 = vsel %vm249_vm8, %v1436_v44, %v1444_v42  ;;  %v1154_v42 = vsel %vm936_vm2, %v3923_v29, %v3861_v61 }
 0x3a6   : > { %v1460_v28 = vpop.permute.xlu0 %1459  ;;  %v1468_v7 = vpop.permute.xlu1 %1467 }
 0x3a7   : > { %v1475_v49 = vsel %vm1106_vm7, %v1460_v28, %v1468_v7  ;;  %v1479_v47 = vsel %vm1106_vm7, %v1468_v7, %v1460_v28 }
 0x3a8   : > { %v1484_v9 = vsel %vm252_vm9, %v1451_v13, %v1479_v47  ;;  %v1491_v53 = vadd.f32 %v1475_v49, %v1275_v5  ;;  %v1109_v49 = vsel %vm1106_vm7, %v4146_v12, %v4148_v2  ;;  %v5520_v12 = vld [vmem:[#allocation8_spill] sm:$0xff] }
 0x3a9   : > { %v1492_v52 = vadd.f32 %v1484_v9, %v1276_v46  ;;  %v3146_v46 = vld [vmem:[%s3241_s24 + $0x8] sm:$0xff]  ;;  %v1200_v2 = vadd.f32 %v1184_v26, %v5520_v12  ;;  %v1084_v26 = vsel %vm249_vm8, %v4142_v39, %v4144_v40  ;;  %v5525_v40 = vld [vmem:[#allocation27_spill] sm:$0xff] }
 0x3aa   : > { %v1446_v18 = vpop.permute.xlu0 %1445  ;;  %v1438_v4 = vpop.permute.xlu1 %1437  ;;  %v1523_v23 = vadd.f32 %v5512_v3, %v1491_v53  ;;  %v1178_v53 = vsel %vm961_vm1, %v3937_v38, %v3881_v8  ;;  %v1254_v6 = vsel %vm961_vm1, %v5526_v50, %v5525_v40  ;;  %v1258_v63 = vsel %vm961_vm1, %v5525_v40, %v5526_v50 }
 0x3ab   : > { %v1524_v44 = vadd.f32 %v5512_v3, %v1492_v52  ;;  %v1452_v5 = vsel %vm249_vm8, %v1438_v4, %v1446_v18  ;;  %v1185_v52 = vsel %vm3716_vm3, %v1174_v1, %v1154_v42  ;;  %v1150_v18 = vsel %vm936_vm2, %v3861_v61, %v3923_v29  ;;  %v5523_v29 = vld [vmem:[#allocation26_spill] sm:$0xff] }
 0x3ac   : > { %v1531_v16 = vmax.f32 %v1523_v23, 0.0  ;;  %v1119_v4 = vsel %vm249_vm8, %v1109_v49, %v1088_v15  ;;  %v1186_v23 = vsel %vm3769_vm5, %v1178_v53, %v1150_v18  ;;  %v1272_v31 = vadd.f32 %v1264_v21, %v1200_v2  ;;  %v5524_v42 = vld [vmem:[#allocation22_spill] sm:$0xff] }
 0x3ad   : > { %v1532_v30 = vmax.f32 %v1524_v44, 0.0  ;;  %v5522_v44 = vld [vmem:[#allocation9_spill] sm:$0xff]  ;;  %v1230_v39 = vsel %vm936_vm2, %v5524_v42, %v5523_v29  ;;  %v1279_v33 = vadd.f32 %v1271_v27, %v1119_v4 }
 0x3ae   : > { %v1470_v45 = vpop.permute.xlu0 %1469  ;;  %v1462_v41 = vpop.permute.xlu1 %1461  ;;  %v4336_v9 = vadd.f32 %v3147_v11, %v1531_v16  ;;  %v1201_v61 = vadd.f32 %v1185_v52, %v5522_v44  ;;  %v1280_v1 = vadd.f32 %v1272_v31, %v1084_v26 }
 0x3af   : > { %v1476_v28 = vsel %vm1106_vm7, %v1462_v41, %v1470_v45  ;;  %v1480_v7 = vsel %vm1106_vm7, %v1470_v45, %v1462_v41  ;;  %v4327_v13 = vadd.f32 %v3146_v46, %v1532_v30  ;;  %v1110_v45 = vsel %vm1106_vm7, %v4183_v36, %v4181_v35 }
 0x3b0   : > { %v1486_v47 = vsel %vm252_vm9, %v1452_v5, %v1480_v7  ;;  %v1493_v24 = vadd.f32 %v1476_v28, %v1277_v60  ;;  %5519 = vst [vmem:[#allocation19_spill] sm:$0xff] %v4336_v9  ;;  %v1234_v60 = vsel %vm936_vm2, %v5523_v29, %v5524_v42  ;;  %v1266_v7 = vsel %vm3790_vm6, %v1230_v39, %v1258_v63  ;;  %v5533_v29 = vld [vmem:[#allocation14_spill] sm:$0xff] }
 0x3b1   : > { %5518 = vst [vmem:[#allocation15_spill] sm:$0xff] %v4327_v13  ;;  %v1494_v37 = vadd.f32 %v1486_v47, %v1278_v58  ;;  %1611 = vmatprep.mubr.f32.mxu0 %v4327_v13  ;;  %v1265_v28 = vsel %vm3731_vm4, %v1234_v60, %v1254_v6  ;;  %v5529_v47 = vld [vmem:[#allocation10_spill] sm:$0xff]  ;;  %v1089_v35 = vsel %vm249_vm8, %v4150_v17, %v4152_v25  ;;  %v3152_v6 = vld [vmem:[%s3241_s24 + $0x30] sm:$0xff] }
 0x3b2   : > { %v1440_v8 = vpop.permute.xlu0 %1439  ;;  %1612 = vmatmul.mubr.f32.vlgmr.msra.gmra.mrb[0].mxu0 %v4336_v9  ;;  %v1448_v38 = vpop.permute.xlu1 %1447  ;;  %v1525_v51 = vadd.f32 %v5521_v56, %v1493_v24  ;;  %v1202_v24 = vadd.f32 %v1186_v23, %v5529_v47  ;;  %v1121_v12 = vsel %vm249_vm8, %v1110_v45, %v1089_v35  ;;  %v1273_v52 = vadd.f32 %v1265_v28, %v1201_v61  ;;  %v3153_v63 = vld [vmem:[%s3241_s24 + $0x38] sm:$0xff]  ;;  %v2890_v47 = vld [vmem:[%s5437_s2 + $0x128] sm:$0xff] }
 0x3b3   : > { %v1526_v3 = vadd.f32 %v5521_v56, %v1494_v37  ;;  %v1453_v59 = vsel %vm249_vm8, %v1440_v8, %v1448_v38  ;;  %v1085_v37 = vsel %vm249_vm8, %v4152_v25, %v4150_v17  ;;  %v2892_v35 = vld [vmem:[%s5437_s2 + $0x138] sm:$0xff] }
 0x3b4   : > { %v1533_v32 = vmax.f32 %v1525_v51, 0.0  ;;  %v1274_v15 = vadd.f32 %v1266_v7, %v1202_v24  ;;  %v1281_v51 = vadd.f32 %v1273_v52, %v1121_v12  ;;  %v2891_v24 = vld [vmem:[%s5437_s2 + $0x130] sm:$0xff]  ;;  %v2901_v52 = vld [vmem:[%s5437_s2 + $0x180] sm:$0xff] }
 0x3b5   : > { %v1534_v16 = vmax.f32 %v1526_v3, 0.0  ;;  %v3150_v3 = vld [vmem:[%s3241_s24 + $0x28] sm:$0xff]  ;;  %v2899_v12 = vld [vmem:[%s5437_s2 + $0x170] sm:$0xff] }
 0x3b6   : > { %v1464_v54 = vpop.permute.xlu0 %1463  ;;  %v1472_v19 = vpop.permute.xlu1 %1471  ;;  %v4383_v30 = vadd.f32 %v3148_v22, %v1533_v32  ;;  %v1282_v56 = vadd.f32 %v1274_v15, %v1085_v37  ;;  %v3151_v32 = vld [vmem:[%s3241_s24 + $0x20] sm:$0xff]  ;;  %v2898_v37 = vld [vmem:[%s5437_s2 + $0x168] sm:$0xff] }
 0x3b7   : > { %v1477_v55 = vsel %vm1106_vm7, %v1464_v54, %v1472_v19  ;;  %v1481_v14 = vsel %vm1106_vm7, %v1472_v19, %v1464_v54  ;;  %v4392_v58 = vadd.f32 %v3149_v62, %v1534_v16  ;;  %v5536_v19 = vmov 0.0   ;;  %v2902_v15 = vld [vmem:[%s5437_s2 + $0x188] sm:$0xff] }
 0x3b8   : > { %5527 = vst [vmem:[#allocation16_spill] sm:$0xff] %v4383_v30  ;;  %v1488_v41 = vsel %vm252_vm9, %v1453_v59, %v1481_v14  ;;  %v1495_v5 = vadd.f32 %v1477_v55, %v1279_v33  ;;  %v3116_v53 = vpack.c.bf16 %v4383_v30, %v4336_v9 }
 0x3b9   : > { %5528 = vst [vmem:[#allocation18_spill] sm:$0xff] %v4392_v58  ;;  %v1496_v46 = vadd.f32 %v1488_v41, %v1280_v1  ;;  %1617 = vmatprep.mubr.f32.mxu0 %v4392_v58  ;;  %v3114_v49 = vpack.c.bf16 %v4392_v58, %v4327_v13 }
 0x3ba   : > { %v1450_v36 = vpop.permute.xlu0 %1449  ;;  %1618 = vmatmul.mubr.f32.gmra.mrb[2].mxu0 %v4383_v30  ;;  %v1442_v11 = vpop.permute.xlu1 %1441  ;;  %v1527_v21 = vadd.f32 %v5530_v48, %v1495_v5 }
 0x3bb   : > { %3115 = vmatprep.subr.bf16.mxu0 %v3114_v49  ;;  %v1528_v2 = vadd.f32 %v5530_v48, %v1496_v46  ;;  %v1454_v17 = vsel %vm249_vm8, %v1442_v11, %v1450_v36  ;;  %v2889_v49 = vld [vmem:[%s5437_s2 + $0x120] sm:$0xff]  ;;  %v2894_v11 = vld [vmem:[%s5437_s2 + $0x148] sm:$0xff]  ;;  %v2896_v48 = vld [vmem:[%s5437_s2 + $0x158] sm:$0xff] }
 0x3bc   : > { %3117 = vmatpush1.bf16.msra.mxu0 %v3116_v53  ;;  %v1535_v8 = vmax.f32 %v1527_v21, 0.0  ;;  %v2893_v36 = vld [vmem:[%s5437_s2 + $0x140] sm:$0xff]  ;;  %v2895_v53 = vld [vmem:[%s5437_s2 + $0x150] sm:$0xff] }
 0x3bd   : > { %v1536_v38 = vmax.f32 %v1528_v2, 0.0  ;;  %v2897_v21 = vld [vmem:[%s5437_s2 + $0x160] sm:$0xff]  ;;  %v2900_v2 = vld [vmem:[%s5437_s2 + $0x178] sm:$0xff] }
 0x3be   : > { %v1474_v18 = vpop.permute.xlu0 %1473  ;;  %v1466_v26 = vpop.permute.xlu1 %1465  ;;  %v4439_v44 = vadd.f32 %v3151_v32, %v1535_v8  ;;  %v2903_v8 = vld [vmem:[%s5437_s2 + $0x190] sm:$0xff] }
 0x3bf   : > { %v1478_v25 = vsel %vm1106_vm7, %v1466_v26, %v1474_v18  ;;  %v1482_v4 = vsel %vm1106_vm7, %v1474_v18, %v1466_v26  ;;  %v4434_v23 = vadd.f32 %v3150_v3, %v1536_v38  ;;  %v2904_v38 = vld [vmem:[%s5437_s2 + $0x198] sm:$0xff]  ;;  %v2907_v18 = vld [vmem:[%s5437_s2 + $0x1b0] sm:$0xff] }
 0x3c0   : > { %v1490_v27 = vsel %vm252_vm9, %v1454_v17, %v1482_v4  ;;  %v1497_v31 = vadd.f32 %v1478_v25, %v1281_v51  ;;  %5532 = vst [vmem:[#allocation4_spill] sm:$0xff] %v4439_v44  ;;  %v2906_v51 = vld [vmem:[%s5437_s2 + $0x1a8] sm:$0xff]  ;;  %v2908_v26 = vld [vmem:[%s5437_s2 + $0x1b8] sm:$0xff]  ;;  %v2909_v17 = vld [vmem:[%s5437_s2 + $0x1c0] sm:$0xff] }
 0x3c1   : > { %5531 = vst [vmem:[#allocation3_spill] sm:$0xff] %v4434_v23  ;;  %v1498_v61 = vadd.f32 %v1490_v27, %v1282_v56  ;;  %1623 = vmatprep.mubr.f32.mxu0 %v4434_v23  ;;  %v2905_v56 = vld [vmem:[%s5437_s2 + $0x1a0] sm:$0xff]  ;;  %v2910_v25 = vld [vmem:[%s5437_s2 + $0x1c8] sm:$0xff]  ;;  %v2911_v4 = vld [vmem:[%s5437_s2 + $0x1d0] sm:$0xff] }
 0x3c2   : > { %1624 = vmatmul.mubr.f32.gmra.mrb[4].mxu0 %v4439_v44  ;;  %v1529_v42 = vadd.f32 %v5533_v29, %v1497_v31  ;;  %v2912_v3 = vld [vmem:[%s5437_s2 + $0x1d8] sm:$0xff]  ;;  %v2913_v27 = vld [vmem:[%s5437_s2 + $0x1e0] sm:$0xff]  ;;  %v2914_v31 = vld [vmem:[%s5437_s2 + $0x1e8] sm:$0xff] }
 0x3c3   : > { %v1530_v39 = vadd.f32 %v5533_v29, %v1498_v61  ;;  %v2915_v32 = vld [vmem:[%s5437_s2 + $0x1f0] sm:$0xff]  ;;  %v2916_v61 = vld [vmem:[%s5437_s2 + $0x1f8] sm:$0xff]  ;;  %v2917_v29 = vld [vmem:[%s5437_s2 + $0x200] sm:$0xff] }
 0x3c4   : > { %v1537_v40 = vmax.f32 %v1529_v42, 0.0  ;;  %v2918_v42 = vld [vmem:[%s5437_s2 + $0x208] sm:$0xff] }
 0x3c5   : > { %v1538_v50 = vmax.f32 %v1530_v39, 0.0  ;;  %v2919_v39 = vld [vmem:[%s5437_s2 + $0x210] sm:$0xff] }
 0x3c6   : > { %v4446_v16 = vadd.f32 %v3152_v6, %v1537_v40  ;;  %v2920_v40 = vld [vmem:[%s5437_s2 + $0x218] sm:$0xff]  ;;  %v2922_v6 = vld [vmem:[%s5437_s2 + $0x228] sm:$0xff] }
 0x3c7   : > { %v4449_v1 = vadd.f32 %v3153_v63, %v1538_v50  ;;  %v2921_v50 = vld [vmem:[%s5437_s2 + $0x220] sm:$0xff]  ;;  %v2923_v63 = vld [vmem:[%s5437_s2 + $0x230] sm:$0xff] }
 0x3c8   : > { %5534 = vst [vmem:[#allocation5_spill] sm:$0xff] %v4446_v16  ;;  %v3120_v54 = vpack.c.bf16 %v4446_v16, %v4439_v44 }
 0x3c9   : > { %5535 = vst [vmem:[#allocation6_spill] sm:$0xff] %v4449_v1  ;;  %1629 = vmatprep.mubr.f32.mxu0 %v4449_v1  ;;  %v3118_v33 = vpack.c.bf16 %v4449_v1, %v4434_v23 }
 0x3ca   : > { %1630 = vmatmul.mubr.f32.gmra.mrb[6].mxu0 %v4446_v16 }
 0x3cb   : > { %3119 = vmatprep.subr.bf16.mxu0 %v3118_v33  ;;  %1845 = vmatprep.mubr.f32.mxu0 %v5536_v19  ;;  %v2924_v33 = vld [vmem:[%s5437_s2 + $0x238] sm:$0xff] }
 0x3cc   : > { %3121 = vmatpush1.bf16.msra.mxu0 %v3120_v54 }
 0x485   : > { %v1613_v22 = vpop.f32.mrb[0].mxu0 }
 0x486   : > { %v1615_v59 = vpop.f32.mrb[1].mxu0 }
 0x48d   : > { %v1619_v55 = vpop.f32.mrb[2].mxu0 }
 0x48e   : > { %v3124_v14 = vpack.c.bf16 %v1619_v55, %v1613_v22  ;;  %v1621_v62 = vpop.f32.mrb[3].mxu0 }
 0x48f   : > { %v3122_v60 = vpack.c.bf16 %v1621_v62, %v1615_v59 }
 0x491   : > { %3123 = vmatprep.subr.bf16.mxu0 %v3122_v60 }
 0x492   : > { %3125 = vmatpush1.bf16.msra.mxu0 %v3124_v14 }
 0x495   : > { %v1625_v45 = vpop.f32.mrb[4].mxu0 }
 0x496   : > { %v1627_v41 = vpop.f32.mrb[5].mxu0 }
 0x49d   : > { %v1631_v5 = vpop.f32.mrb[6].mxu0 }
 0x49e   : > { %v3128_v28 = vpack.c.bf16 %v1631_v5, %v1625_v45  ;;  %v1633_v7 = vpop.f32.mrb[7].mxu0 }
 0x49f   : > { %v3126_v46 = vpack.c.bf16 %v1633_v7, %v1627_v41 }
 0x4a1   : > { %3127 = vmatprep.subr.bf16.mxu0 %v3126_v46 }
 0x4a2   : > { %3129 = vmatpush1.bf16.msra.mxu0 %v3128_v28 }
 0x4a5   : > { %2925 = vmatmul.mubr.msk.f32.vlgmr.msra.gmra.mrb[8].mxu0 %vm450_vm0, %v2889_v49 }
 0x4a6   : > { %1851 = vmatprep.mubr.f32.mxu0 %v5536_v19 }
 0x4a9   : > { %2926 = vmatmul.mubr.msk.f32.gmra.mrb[10].mxu0 %vm450_vm0, %v2890_v47 }
 0x4aa   : > { %1857 = vmatprep.mubr.f32.mxu0 %v5536_v19 }
 0x4ad   : > { %2927 = vmatmul.mubr.msk.f32.gmra.mrb[12].mxu0 %vm450_vm0, %v2891_v24 }
 0x4ae   : > { %1863 = vmatprep.mubr.f32.mxu0 %v5536_v19 }
 0x4b1   : > { %2928 = vmatmul.mubr.msk.f32.gmra.mrb[14].mxu0 %vm450_vm0, %v2892_v35 }
 0x4b2   : > { %1869 = vmatprep.mubr.f32.mxu0 %v5536_v19 }
 0x4b5   : > { %2929 = vmatmul.mubr.msk.f32.gmra.mrb[16].mxu0 %vm450_vm0, %v2893_v36 }
 0x4b6   : > { %1875 = vmatprep.mubr.f32.mxu0 %v5536_v19 }
 0x4b9   : > { %2930 = vmatmul.mubr.msk.f32.gmra.mrb[18].mxu0 %vm450_vm0, %v2894_v11 }
 0x4ba   : > { %1881 = vmatprep.mubr.f32.mxu0 %v5536_v19 }
 0x4bd   : > { %2931 = vmatmul.mubr.msk.f32.gmra.mrb[20].mxu0 %vm450_vm0, %v2895_v53 }
 0x4be   : > { %1887 = vmatprep.mubr.f32.mxu0 %v5536_v19 }
 0x4c1   : > { %2932 = vmatmul.mubr.msk.f32.gmra.mrb[22].mxu0 %vm450_vm0, %v2896_v48 }
 0x4c2   : > { %1893 = vmatprep.mubr.f32.mxu0 %v5536_v19 }
 0x4c5   : > { %2933 = vmatmul.mubr.msk.f32.gmra.mrb[24].mxu0 %vm450_vm0, %v2897_v21 }
 0x4c6   : > { %1899 = vmatprep.mubr.f32.mxu0 %v5536_v19 }
 0x4c9   : > { %2934 = vmatmul.mubr.msk.f32.gmra.mrb[26].mxu0 %vm450_vm0, %v2898_v37 }
 0x4ca   : > { %1905 = vmatprep.mubr.f32.mxu0 %v5536_v19 }
 0x4cd   : > { %2935 = vmatmul.mubr.msk.f32.gmra.mrb[28].mxu0 %vm450_vm0, %v2899_v12 }
 0x4ce   : > { %1911 = vmatprep.mubr.f32.mxu0 %v5536_v19 }
 0x4d1   : > { %2936 = vmatmul.mubr.msk.f32.gmra.mrb[30].mxu0 %vm450_vm0, %v2900_v2 }
 0x4d2   : > { %1917 = vmatprep.mubr.f32.mxu0 %v5536_v19 }
 0x4d5   : > { %2937 = vmatmul.mubr.msk.f32.gmra.mrb[32].mxu0 %vm450_vm0, %v2901_v52 }
 0x4d6   : > { %1923 = vmatprep.mubr.f32.mxu0 %v5536_v19 }
 0x4d9   : > { %2938 = vmatmul.mubr.msk.f32.gmra.mrb[34].mxu0 %vm450_vm0, %v2902_v15 }
 0x4da   : > { %1929 = vmatprep.mubr.f32.mxu0 %v5536_v19 }
 0x4dd   : > { %2939 = vmatmul.mubr.msk.f32.gmra.mrb[36].mxu0 %vm450_vm0, %v2903_v8 }
 0x4de   : > { %1935 = vmatprep.mubr.f32.mxu0 %v5536_v19 }
 0x4e1   : > { %2940 = vmatmul.mubr.msk.f32.gmra.mrb[38].mxu0 %vm450_vm0, %v2904_v38 }
 0x4e2   : > { %1941 = vmatprep.mubr.f32.mxu0 %v5536_v19 }
 0x4e5   : > { %2941 = vmatmul.mubr.msk.f32.gmra.mrb[40].mxu0 %vm450_vm0, %v2905_v56 }
 0x4e6   : > { %1947 = vmatprep.mubr.f32.mxu0 %v5536_v19 }
 0x4e9   : > { %2942 = vmatmul.mubr.msk.f32.gmra.mrb[42].mxu0 %vm450_vm0, %v2906_v51 }
 0x4ea   : > { %1953 = vmatprep.mubr.f32.mxu0 %v5536_v19 }
 0x4ed   : > { %2943 = vmatmul.mubr.msk.f32.gmra.mrb[44].mxu0 %vm450_vm0, %v2907_v18 }
 0x4ee   : > { %1959 = vmatprep.mubr.f32.mxu0 %v5536_v19 }
 0x4f1   : > { %2944 = vmatmul.mubr.msk.f32.gmra.mrb[46].mxu0 %vm450_vm0, %v2908_v26 }
 0x4f2   : > { %1965 = vmatprep.mubr.f32.mxu0 %v5536_v19 }
 0x4f5   : > { %2945 = vmatmul.mubr.msk.f32.gmra.mrb[48].mxu0 %vm450_vm0, %v2909_v17 }
 0x4f6   : > { %1971 = vmatprep.mubr.f32.mxu0 %v5536_v19 }
 0x4f9   : > { %2946 = vmatmul.mubr.msk.f32.gmra.mrb[50].mxu0 %vm450_vm0, %v2910_v25 }
 0x4fa   : > { %1977 = vmatprep.mubr.f32.mxu0 %v5536_v19 }
 0x4fd   : > { %2947 = vmatmul.mubr.msk.f32.gmra.mrb[52].mxu0 %vm450_vm0, %v2911_v4 }
 0x4fe   : > { %1983 = vmatprep.mubr.f32.mxu0 %v5536_v19 }
 0x501   : > { %2948 = vmatmul.mubr.msk.f32.gmra.mrb[54].mxu0 %vm450_vm0, %v2912_v3 }
 0x502   : > { %1989 = vmatprep.mubr.f32.mxu0 %v5536_v19 }
 0x505   : > { %2949 = vmatmul.mubr.msk.f32.gmra.mrb[56].mxu0 %vm450_vm0, %v2913_v27 }
 0x506   : > { %1995 = vmatprep.mubr.f32.mxu0 %v5536_v19 }
 0x509   : > { %2950 = vmatmul.mubr.msk.f32.gmra.mrb[58].mxu0 %vm450_vm0, %v2914_v31 }
 0x50a   : > { %2001 = vmatprep.mubr.f32.mxu0 %v5536_v19 }
 0x50d   : > { %2951 = vmatmul.mubr.msk.f32.gmra.mrb[60].mxu0 %vm450_vm0, %v2915_v32 }
 0x50e   : > { %2007 = vmatprep.mubr.f32.mxu0 %v5536_v19 }
 0x511   : > { %2952 = vmatmul.mubr.msk.f32.gmra.mrb[62].mxu0 %vm450_vm0, %v2916_v61 }
 0x512   : > { %2013 = vmatprep.mubr.f32.mxu0 %v5536_v19 }
 0x515   : > { %2953 = vmatmul.mubr.msk.f32.gmra.mrb[64].mxu0 %vm450_vm0, %v2917_v29 }
 0x516   : > { %2019 = vmatprep.mubr.f32.mxu0 %v5536_v19 }
 0x519   : > { %2954 = vmatmul.mubr.msk.f32.gmra.mrb[66].mxu0 %vm450_vm0, %v2918_v42 }
 0x51a   : > { %2025 = vmatprep.mubr.f32.mxu0 %v5536_v19 }
 0x51d   : > { %2955 = vmatmul.mubr.msk.f32.gmra.mrb[68].mxu0 %vm450_vm0, %v2919_v39 }
 0x51e   : > { %2031 = vmatprep.mubr.f32.mxu0 %v5536_v19 }
 0x521   : > { %2956 = vmatmul.mubr.msk.f32.gmra.mrb[70].mxu0 %vm450_vm0, %v2920_v40 }
 0x522   : > { %2037 = vmatprep.mubr.f32.mxu0 %v5536_v19 }
 0x525   : > { %2957 = vmatmul.mubr.msk.f32.gmra.mrb[72].mxu0 %vm450_vm0, %v2921_v50 }
 0x526   : > { %2043 = vmatprep.mubr.f32.mxu0 %v5536_v19 }
 0x529   : > { %2958 = vmatmul.mubr.msk.f32.gmra.mrb[74].mxu0 %vm450_vm0, %v2922_v6 }
 0x52a   : > { %2049 = vmatprep.mubr.f32.mxu0 %v5536_v19 }
 0x52d   : > { %2959 = vmatmul.mubr.msk.f32.gmra.mrb[76].mxu0 %vm450_vm0, %v2923_v63 }
 0x52e   : > { %2055 = vmatprep.mubr.f32.mxu0 %v5536_v19 }
 0x531   : > { %2960 = vmatmul.mubr.msk.f32.gmra.mrb[78].mxu0 %vm450_vm0, %v2924_v33 }
 0x578   : > { %v1847_v54 = vpop.f32.mrb[8].mxu0 }
 0x579   : > { %2142 = vrot.lane.b32.xlu1 %v1847_v54, %s3165_s14  ;;  %v1849_v22 = vpop.f32.mrb[9].mxu0 }
 0x57c   : > { %v1853_v59 = vpop.f32.mrb[10].mxu0 }
 0x57d   : > { %2166 = vrot.lane.b32.xlu1 %v1847_v54, %s3164_s13  ;;  %2144 = vrot.lane.b32.xlu0 %v1853_v59, %s3165_s14  ;;  %v1855_v55 = vpop.f32.mrb[11].mxu0 }
 0x580   : > { %v1859_v14 = vpop.f32.mrb[12].mxu0 }
 0x581   : > { %2150 = vrot.lane.b32.xlu1 %v1849_v22, %s3165_s14  ;;  %2168 = vrot.lane.b32.xlu0 %v1853_v59, %s3164_s13  ;;  %v1861_v19 = vpop.f32.mrb[13].mxu0 }
 0x584   : > { %v1865_v62 = vpop.f32.mrb[14].mxu0 }
 0x585   : > { %2174 = vrot.lane.b32.xlu1 %v1849_v22, %s3164_s13  ;;  %2152 = vrot.lane.b32.xlu0 %v1855_v55, %s3165_s14  ;;  %v1867_v60 = vpop.f32.mrb[15].mxu0 }
 0x588   : > { %v4644_v45 = vpop.f32.mrb[16].mxu0 }
 0x589   : > { %2176 = vrot.lane.b32.xlu0 %v1855_v55, %s3164_s13  ;;  %2146 = vrot.lane.b32.xlu1 %v1859_v14, %s3165_s14  ;;  %v4648_v41 = vpop.f32.mrb[17].mxu0  ;;  %v4720_v55 = vpop.permute.xlu1 %2725 }
 0x58a   : > { %5542 = vst [vmem:[#allocation25_spill] sm:$0xff] %v4720_v55 }
 0x58c   : > { %v4650_v5 = vpop.f32.mrb[18].mxu0 }
 0x58d   : > { %2170 = vrot.lane.b32.xlu1 %v1859_v14, %s3164_s13  ;;  %2148 = vrot.lane.b32.xlu0 %v1865_v62, %s3165_s14  ;;  %v4654_v28 = vpop.f32.mrb[19].mxu0 }
 0x590   : > { %v4656_v7 = vpop.f32.mrb[20].mxu0 }
 0x591   : > { %2154 = vrot.lane.b32.xlu1 %v1861_v19, %s3165_s14  ;;  %2172 = vrot.lane.b32.xlu0 %v1865_v62, %s3164_s13  ;;  %v4660_v46 = vpop.f32.mrb[21].mxu0  ;;  %v4726_v62 = vpop.permute.xlu0 %2730 }
 0x592   : > { %5543 = vst [vmem:[#allocation8_spill] sm:$0xff] %v4726_v62 }
 0x594   : > { %v4662_v49 = vpop.f32.mrb[22].mxu0 }
 0x595   : > { %2178 = vrot.lane.b32.xlu1 %v1861_v19, %s3164_s13  ;;  %2156 = vrot.lane.b32.xlu0 %v1867_v60, %s3165_s14  ;;  %v4666_v47 = vpop.f32.mrb[23].mxu0 }
 0x596   : > { %5537 = vst [vmem:[#allocation11_spill] sm:$0xff] %v4666_v47 }
 0x598   : > { %v1895_v24 = vpop.f32.mrb[24].mxu0 }
 0x599   : > { %2180 = vrot.lane.b32.xlu0 %v1867_v60, %s3164_s13  ;;  %2222 = vrot.lane.b32.xlu1 %v1895_v24, %s3165_s14  ;;  %v1897_v35 = vpop.f32.mrb[25].mxu0 }
 0x59c   : > { %v1901_v36 = vpop.f32.mrb[26].mxu0 }
 0x59d   : > { %2246 = vrot.lane.b32.xlu1 %v1895_v24, %s3164_s13  ;;  %2224 = vrot.lane.b32.xlu0 %v1901_v36, %s3165_s14  ;;  %v1903_v11 = vpop.f32.mrb[27].mxu0  ;;  %v4732_v24 = vpop.permute.xlu1 %2735 }
 0x59e   : > { %5544 = vst [vmem:[#allocation12_spill] sm:$0xff] %v4732_v24 }
 0x5a0   : > { %v1907_v53 = vpop.f32.mrb[28].mxu0 }
 0x5a1   : > { %2230 = vrot.lane.b32.xlu1 %v1897_v35, %s3165_s14  ;;  %2248 = vrot.lane.b32.xlu0 %v1901_v36, %s3164_s13  ;;  %v1909_v48 = vpop.f32.mrb[29].mxu0 }
 0x5a4   : > { %v1913_v21 = vpop.f32.mrb[30].mxu0 }
 0x5a5   : > { %2254 = vrot.lane.b32.xlu1 %v1897_v35, %s3164_s13  ;;  %2232 = vrot.lane.b32.xlu0 %v1903_v11, %s3165_s14  ;;  %v1915_v37 = vpop.f32.mrb[31].mxu0 }
 0x5a8   : > { %v1919_v12 = vpop.f32.mrb[32].mxu0 }
 0x5a9   : > { %2256 = vrot.lane.b32.xlu0 %v1903_v11, %s3164_s13  ;;  %2226 = vrot.lane.b32.xlu1 %v1907_v53, %s3165_s14  ;;  %v1921_v2 = vpop.f32.mrb[33].mxu0  ;;  %v4740_v11 = vpop.permute.xlu0 %2740 }
 0x5aa   : > { %5547 = vst [vmem:[#allocation22_spill] sm:$0xff] %v4740_v11 }
 0x5ac   : > { %v1925_v52 = vpop.f32.mrb[34].mxu0 }
 0x5ad   : > { %2250 = vrot.lane.b32.xlu1 %v1907_v53, %s3164_s13  ;;  %2228 = vrot.lane.b32.xlu0 %v1913_v21, %s3165_s14  ;;  %v1927_v15 = vpop.f32.mrb[35].mxu0 }
 0x5b0   : > { %v1931_v8 = vpop.f32.mrb[36].mxu0 }
 0x5b1   : > { %2234 = vrot.lane.b32.xlu1 %v1909_v48, %s3165_s14  ;;  %2252 = vrot.lane.b32.xlu0 %v1913_v21, %s3164_s13  ;;  %v1933_v38 = vpop.f32.mrb[37].mxu0 }
 0x5b4   : > { %v1937_v56 = vpop.f32.mrb[38].mxu0 }
 0x5b5   : > { %2258 = vrot.lane.b32.xlu1 %v1909_v48, %s3164_s13  ;;  %2236 = vrot.lane.b32.xlu0 %v1915_v37, %s3165_s14  ;;  %v1939_v51 = vpop.f32.mrb[39].mxu0 }
 0x5b8   : > { %v4684_v18 = vpop.f32.mrb[40].mxu0 }
 0x5b9   : > { %2260 = vrot.lane.b32.xlu0 %v1915_v37, %s3164_s13  ;;  %2350 = vrot.lane.b32.xlu1 %v1919_v12, %s3165_s14  ;;  %v4688_v26 = vpop.f32.mrb[41].mxu0 }
 0x5bc   : > { %v4690_v17 = vpop.f32.mrb[42].mxu0 }
 0x5bd   : > { %2374 = vrot.lane.b32.xlu1 %v1919_v12, %s3164_s13  ;;  %2352 = vrot.lane.b32.xlu0 %v1925_v52, %s3165_s14  ;;  %v4694_v25 = vpop.f32.mrb[43].mxu0 }
 0x5c0   : > { %v4696_v4 = vpop.f32.mrb[44].mxu0 }
 0x5c1   : > { %5538 = vst [vmem:[#allocation7_spill] sm:$0xff] %v4696_v4  ;;  %2358 = vrot.lane.b32.xlu1 %v1921_v2, %s3165_s14  ;;  %2376 = vrot.lane.b32.xlu0 %v1925_v52, %s3164_s13  ;;  %v4700_v3 = vpop.f32.mrb[45].mxu0 }
 0x5c2   : > { %5539 = vst [vmem:[#allocation20_spill] sm:$0xff] %v4700_v3 }
 0x5c4   : > { %v4702_v27 = vpop.f32.mrb[46].mxu0 }
 0x5c5   : > { %5540 = vst [vmem:[#allocation23_spill] sm:$0xff] %v4702_v27  ;;  %2382 = vrot.lane.b32.xlu1 %v1921_v2, %s3164_s13  ;;  %2360 = vrot.lane.b32.xlu0 %v1927_v15, %s3165_s14  ;;  %v4706_v31 = vpop.f32.mrb[47].mxu0 }
 0x5c6   : > { %5541 = vst [vmem:[#allocation21_spill] sm:$0xff] %v4706_v31 }
 0x5c8   : > { %v1967_v32 = vpop.f32.mrb[48].mxu0 }
 0x5c9   : > { %2384 = vrot.lane.b32.xlu0 %v1927_v15, %s3164_s13  ;;  %2354 = vrot.lane.b32.xlu1 %v1931_v8, %s3165_s14  ;;  %v1969_v61 = vpop.f32.mrb[49].mxu0 }
 0x5cc   : > { %v1973_v29 = vpop.f32.mrb[50].mxu0 }
 0x5cd   : > { %2378 = vrot.lane.b32.xlu1 %v1931_v8, %s3164_s13  ;;  %2356 = vrot.lane.b32.xlu0 %v1937_v56, %s3165_s14  ;;  %v1975_v42 = vpop.f32.mrb[51].mxu0 }
 0x5d0   : > { %v1979_v39 = vpop.f32.mrb[52].mxu0 }
 0x5d1   : > { %2362 = vrot.lane.b32.xlu1 %v1933_v38, %s3165_s14  ;;  %2380 = vrot.lane.b32.xlu0 %v1937_v56, %s3164_s13  ;;  %v1981_v40 = vpop.f32.mrb[53].mxu0 }
 0x5d4   : > { %v1985_v50 = vpop.f32.mrb[54].mxu0 }
 0x5d5   : > { %2386 = vrot.lane.b32.xlu1 %v1933_v38, %s3164_s13  ;;  %2364 = vrot.lane.b32.xlu0 %v1939_v51, %s3165_s14  ;;  %v1987_v6 = vpop.f32.mrb[55].mxu0 }
 0x5d8   : > { %v1991_v63 = vpop.f32.mrb[56].mxu0 }
 0x5d9   : > { %2388 = vrot.lane.b32.xlu0 %v1939_v51, %s3164_s13  ;;  %2430 = vrot.lane.b32.xlu1 %v1967_v32, %s3165_s14  ;;  %v1993_v33 = vpop.f32.mrb[57].mxu0 }
 0x5dc   : > { %v1997_v54 = vpop.f32.mrb[58].mxu0 }
 0x5dd   : > { %2454 = vrot.lane.b32.xlu1 %v1967_v32, %s3164_s13  ;;  %2432 = vrot.lane.b32.xlu0 %v1973_v29, %s3165_s14  ;;  %v1999_v22 = vpop.f32.mrb[59].mxu0 }
 0x5e0   : > { %v2003_v59 = vpop.f32.mrb[60].mxu0 }
 0x5e1   : > { %2438 = vrot.lane.b32.xlu1 %v1969_v61, %s3165_s14  ;;  %2456 = vrot.lane.b32.xlu0 %v1973_v29, %s3164_s13  ;;  %v4724_v14 = vpop.f32.mrb[61].mxu0 }
 0x5e4   : > { %v2009_v19 = vpop.f32.mrb[62].mxu0 }
 0x5e5   : > { %2462 = vrot.lane.b32.xlu1 %v1969_v61, %s3164_s13  ;;  %2440 = vrot.lane.b32.xlu0 %v1975_v42, %s3165_s14  ;;  %v4730_v60 = vpop.f32.mrb[63].mxu0 }
 0x5e8   : > { %v4734_v35 = vpop.f32.mrb[64].mxu0 }
 0x5e9   : > { %5545 = vst [vmem:[#allocation9_spill] sm:$0xff] %v4734_v35  ;;  %2464 = vrot.lane.b32.xlu0 %v1975_v42, %s3164_s13  ;;  %2434 = vrot.lane.b32.xlu1 %v1979_v39, %s3165_s14  ;;  %v4738_v36 = vpop.f32.mrb[65].mxu0 }
 0x5ea   : > { %5546 = vst [vmem:[#allocation26_spill] sm:$0xff] %v4738_v36 }
 0x5eb   : > { %v4742_v53 = vpop.permute.xlu1 %2142 }
 0x5ec   : > { %v4744_v48 = vpop.f32.mrb[66].mxu0 }
 0x5ed   : > { %5548 = vst [vmem:[#allocation27_spill] sm:$0xff] %v4744_v48  ;;  %2458 = vrot.lane.b32.xlu1 %v1979_v39, %s3164_s13  ;;  %2436 = vrot.lane.b32.xlu0 %v1985_v50, %s3165_s14  ;;  %v4748_v21 = vpop.f32.mrb[67].mxu0 }
 0x5ee   : > { %5549 = vst [vmem:[#allocation24_spill] sm:$0xff] %v4748_v21 }
 0x5ef   : > { %v4750_v37 = vpop.permute.xlu0 %2144  ;;  %v4752_v12 = vpop.permute.xlu1 %2166 }
 0x5f0   : > { %v4754_v2 = vpop.f32.mrb[68].mxu0 }
 0x5f1   : > { %5550 = vst [vmem:[#allocation10_spill] sm:$0xff] %v4754_v2  ;;  %2442 = vrot.lane.b32.xlu1 %v1981_v40, %s3165_s14  ;;  %2460 = vrot.lane.b32.xlu0 %v1985_v50, %s3164_s13  ;;  %v4758_v52 = vpop.f32.mrb[69].mxu0 }
 0x5f2   : > { %5551 = vst [vmem:[#allocation13_spill] sm:$0xff] %v4758_v52 }
 0x5f3   : > { %v4760_v15 = vpop.permute.xlu0 %2168  ;;  %v4762_v8 = vpop.permute.xlu1 %2150 }
 0x5f4   : > { %v4764_v38 = vpop.f32.mrb[70].mxu0 }
 0x5f5   : > { %5552 = vst [vmem:[#allocation14_spill] sm:$0xff] %v4764_v38  ;;  %2466 = vrot.lane.b32.xlu1 %v1981_v40, %s3164_s13  ;;  %2444 = vrot.lane.b32.xlu0 %v1987_v6, %s3165_s14  ;;  %v4768_v56 = vpop.f32.mrb[71].mxu0 }
 0x5f6   : > { %5553 = vst [vmem:[#allocation28_spill] sm:$0xff] %v4768_v56 }
 0x5f7   : > { %v4770_v51 = vpop.permute.xlu0 %2152  ;;  %v4772_v32 = vpop.permute.xlu1 %2174 }
 0x5f8   : > { %v2039_v61 = vpop.f32.mrb[72].mxu0 }
 0x5f9   : > { %2468 = vrot.lane.b32.xlu0 %v1987_v6, %s3164_s13  ;;  %2510 = vrot.lane.b32.xlu1 %v1991_v63, %s3165_s14  ;;  %v2041_v29 = vpop.f32.mrb[73].mxu0 }
 0x5fb   : > { %v4776_v42 = vpop.permute.xlu0 %2176  ;;  %v4778_v39 = vpop.permute.xlu1 %2146 }
 0x5fc   : > { %v2045_v50 = vpop.f32.mrb[74].mxu0  ;;  %v2183_v36 = vsel %vm961_vm1, %v4760_v15, %v4776_v42 }
 0x5fd   : > { %2534 = vrot.lane.b32.xlu1 %v1991_v63, %s3164_s13  ;;  %2512 = vrot.lane.b32.xlu0 %v1997_v54, %s3165_s14  ;;  %v2047_v40 = vpop.f32.mrb[75].mxu0 }
 0x5ff   : > { %v4782_v1 = vpop.permute.xlu0 %2148  ;;  %v4784_v16 = vpop.permute.xlu1 %2170 }
 0x600   : > { %v2051_v23 = vpop.f32.mrb[76].mxu0 }
 0x601   : > { %2518 = vrot.lane.b32.xlu1 %v1993_v33, %s3165_s14  ;;  %2536 = vrot.lane.b32.xlu0 %v1997_v54, %s3164_s13  ;;  %v4788_v6 = vpop.f32.mrb[77].mxu0 }
 0x603   : > { %v4790_v44 = vpop.permute.xlu0 %2172  ;;  %v4792_v11 = vpop.permute.xlu1 %2154 }
 0x604   : > { %v2057_v24 = vpop.f32.mrb[78].mxu0 }
 0x605   : > { %2542 = vrot.lane.b32.xlu1 %v1993_v33, %s3164_s13  ;;  %2520 = vrot.lane.b32.xlu0 %v1999_v22, %s3165_s14  ;;  %v4796_v63 = vpop.f32.mrb[79].mxu0 }
 0x607   : > { %v4798_v58 = vpop.permute.xlu0 %2156  ;;  %v4800_v30 = vpop.permute.xlu1 %2178 }
 0x609   : > { %2544 = vrot.lane.b32.xlu0 %v1999_v22, %s3164_s13  ;;  %2514 = vrot.lane.b32.xlu1 %v2003_v59, %s3165_s14 }
 0x60b   : > { %v4804_v54 = vpop.permute.xlu0 %2180  ;;  %v4806_v13 = vpop.permute.xlu1 %2222 }
 0x60d   : > { %2538 = vrot.lane.b32.xlu1 %v2003_v59, %s3164_s13  ;;  %2516 = vrot.lane.b32.xlu0 %v2009_v19, %s3165_s14 }
 0x60f   : > { %v4810_v33 = vpop.permute.xlu0 %2224  ;;  %v2247_v9 = vpop.permute.xlu1 %2246 }
 0x611   : > { %2522 = vrot.lane.b32.xlu1 %v4724_v14, %s3165_s14  ;;  %2540 = vrot.lane.b32.xlu0 %v2009_v19, %s3164_s13 }
 0x613   : > { %v4815_v62 = vpop.permute.xlu0 %2248  ;;  %v2231_v22 = vpop.permute.xlu1 %2230 }
 0x615   : > { %2546 = vrot.lane.b32.xlu1 %v4724_v14, %s3164_s13  ;;  %2524 = vrot.lane.b32.xlu0 %v4730_v60, %s3165_s14 }
 0x617   : > { %v4821_v59 = vpop.permute.xlu0 %2232  ;;  %v2255_v55 = vpop.permute.xlu1 %2254 }
 0x618   : > { %v2262_v35 = vsel %vm961_vm1, %v2247_v9, %v2255_v55 }
 0x619   : > { %2548 = vrot.lane.b32.xlu0 %v4730_v60, %s3164_s13  ;;  %2590 = vrot.lane.b32.xlu1 %v2039_v61, %s3165_s14 }
 0x61b   : > { %v2257_v0 = vpop.permute.xlu0 %2256  ;;  %v4826_v56 = vpop.permute.xlu1 %2226 }
 0x61d   : > { %2614 = vrot.lane.b32.xlu1 %v2039_v61, %s3164_s13  ;;  %2592 = vrot.lane.b32.xlu0 %v2045_v50, %s3165_s14 }
 0x61f   : > { %v4830_v19 = vpop.permute.xlu0 %2228  ;;  %v4832_v14 = vpop.permute.xlu1 %2250 }
 0x621   : > { %2598 = vrot.lane.b32.xlu1 %v2041_v29, %s3165_s14  ;;  %2616 = vrot.lane.b32.xlu0 %v2045_v50, %s3164_s13 }
 0x623   : > { %v4836_v52 = vpop.permute.xlu0 %2252  ;;  %v4838_v60 = vpop.permute.xlu1 %2234 }
 0x625   : > { %2622 = vrot.lane.b32.xlu1 %v2041_v29, %s3164_s13  ;;  %2600 = vrot.lane.b32.xlu0 %v2047_v40, %s3165_s14  ;;  %v2182_v29 = vsel %vm961_vm1, %v4752_v12, %v4772_v32 }
 0x627   : > { %v4842_v38 = vpop.permute.xlu0 %2236  ;;  %v4844_v61 = vpop.permute.xlu1 %2258 }
 0x629   : > { %2624 = vrot.lane.b32.xlu0 %v2047_v40, %s3164_s13  ;;  %2594 = vrot.lane.b32.xlu1 %v2051_v23, %s3165_s14  ;;  %v2186_v40 = vsel %vm961_vm1, %v4772_v32, %v4752_v12  ;;  %v2158_v12 = vsel %vm936_vm2, %v4742_v53, %v4762_v8  ;;  %v2163_v32 = vsel %vm936_vm2, %v4770_v51, %v4750_v37 }
 0x62a   : > { %v2191_v27 = vsel %vm3769_vm5, %v2186_v40, %v2158_v12  ;;  %v2192_v47 = vsel %vm3716_vm3, %v2183_v36, %v2163_v32 }
 0x62b   : > { %v4848_v2 = vpop.permute.xlu0 %2260  ;;  %v2351_v21 = vpop.permute.xlu1 %2350 }
 0x62d   : > { %2618 = vrot.lane.b32.xlu1 %v2051_v23, %s3164_s13  ;;  %2596 = vrot.lane.b32.xlu0 %v2057_v24, %s3165_s14  ;;  %v2162_v23 = vsel %vm936_vm2, %v4762_v8, %v4742_v53  ;;  %v2266_v53 = vsel %vm961_vm1, %v2255_v55, %v2247_v9  ;;  %v2159_v9 = vsel %vm936_vm2, %v4750_v37, %v4770_v51 }
 0x62e   : > { %v2190_v31 = vsel %vm3716_vm3, %v2182_v29, %v2162_v23  ;;  %v2263_v29 = vsel %vm961_vm1, %v4815_v62, %v2257_v0 }
 0x62f   : > { %v2353_v50 = vpop.permute.xlu0 %2352  ;;  %v2375_v48 = vpop.permute.xlu1 %2374  ;;  %v2206_v55 = vadd.f32 %v2190_v31, %v4644_v45  ;;  %v2243_v45 = vsel %vm936_vm2, %v4821_v59, %v4810_v33  ;;  %v2208_v31 = vadd.f32 %v2192_v47, %v4650_v5  ;;  %v2267_v47 = vsel %vm961_vm1, %v2257_v0, %v4815_v62 }
 0x630   : > { %v2239_v0 = vsel %vm936_vm2, %v4810_v33, %v4821_v59 }
 0x631   : > { %2602 = vrot.lane.b32.xlu1 %v4788_v6, %s3165_s14  ;;  %2620 = vrot.lane.b32.xlu0 %v2057_v24, %s3164_s13  ;;  %v2242_v24 = vsel %vm936_vm2, %v2231_v22, %v4806_v13 }
 0x632   : > { %v2270_v4 = vsel %vm3731_vm4, %v2242_v24, %v2262_v35  ;;  %v2207_v35 = vadd.f32 %v2191_v27, %v4648_v41  ;;  %v2272_v27 = vsel %vm3731_vm4, %v2243_v45, %v2263_v29  ;;  %v2273_v24 = vsel %vm3790_vm6, %v2239_v0, %v2267_v47 }
 0x633   : > { %v2377_v8 = vpop.permute.xlu0 %2376  ;;  %v2359_v3 = vpop.permute.xlu1 %2358  ;;  %v2278_v41 = vadd.f32 %v2270_v4, %v2206_v55  ;;  %v2280_v12 = vadd.f32 %v2272_v27, %v2208_v31  ;;  %v2188_v55 = vsel %vm961_vm1, %v4800_v30, %v4784_v16  ;;  %v2244_v31 = vsel %vm936_vm2, %v4838_v60, %v4826_v56 }
 0x634   : > { %v2366_v40 = vsel %vm936_vm2, %v2351_v21, %v2359_v3  ;;  %v2370_v36 = vsel %vm936_vm2, %v2359_v3, %v2351_v21  ;;  %v2187_v3 = vsel %vm961_vm1, %v4776_v42, %v4760_v15  ;;  %v2238_v21 = vsel %vm936_vm2, %v4806_v13, %v2231_v22 }
 0x635   : > { %2604 = vrot.lane.b32.xlu0 %v4796_v63, %s3165_s14  ;;  %2626 = vrot.lane.b32.xlu1 %v4788_v6, %s3164_s13  ;;  %v2271_v37 = vsel %vm3790_vm6, %v2238_v21, %v2266_v53  ;;  %v2265_v27 = vsel %vm961_vm1, %v4836_v52, %v4848_v2 }
 0x636   : > { %v2279_v62 = vadd.f32 %v2271_v37, %v2207_v35  ;;  %v2264_v35 = vsel %vm961_vm1, %v4832_v14, %v4844_v61 }
 0x637   : > { %v2361_v51 = vpop.permute.xlu0 %2360  ;;  %v2383_v15 = vpop.permute.xlu1 %2382 }
 0x638   : > { %v2367_v42 = vsel %vm936_vm2, %v2353_v50, %v2361_v51  ;;  %v2371_v13 = vsel %vm936_vm2, %v2361_v51, %v2353_v50  ;;  %v2390_v6 = vsel %vm961_vm1, %v2375_v48, %v2383_v15  ;;  %v2394_v5 = vsel %vm961_vm1, %v2383_v15, %v2375_v48 }
 0x639   : > { %v2398_v4 = vsel %vm3716_vm3, %v2390_v6, %v2370_v36  ;;  %v2399_v22 = vsel %vm3769_vm5, %v2394_v5, %v2366_v40  ;;  %2628 = vrot.lane.b32.xlu0 %v4796_v63, %s3164_s13  ;;  %2286 = vrot.lane.b32.xlu1 %v2278_v41, %s3166_s17  ;;  %v2193_v50 = vsel %vm3769_vm5, %v2187_v3, %v2159_v9 }
 0x63a   : > { %v4948_v48 = vadd.f32 %v2398_v4, %v4684_v18  ;;  %v4951_v23 = vadd.f32 %v2399_v22, %v4688_v26  ;;  %v2209_v26 = vadd.f32 %v2193_v50, %v4654_v28  ;;  %v2184_v28 = vsel %vm961_vm1, %v4784_v16, %v4800_v30 }
 0x63b   : > { %v2385_v32 = vpop.permute.xlu0 %2384  ;;  %v2355_v63 = vpop.permute.xlu1 %2354  ;;  %v2160_v30 = vsel %vm936_vm2, %v4778_v39, %v4792_v11  ;;  %v2165_v16 = vsel %vm936_vm2, %v4798_v58, %v4782_v1  ;;  %v2240_v6 = vsel %vm936_vm2, %v4826_v56, %v4838_v60  ;;  %v2269_v4 = vsel %vm961_vm1, %v4848_v2, %v4836_v52 }
 0x63c   : > { %v2391_v53 = vsel %vm961_vm1, %v2377_v8, %v2385_v32  ;;  %v2395_v18 = vsel %vm961_vm1, %v2385_v32, %v2377_v8  ;;  %v2281_v8 = vadd.f32 %v2273_v24, %v2209_v26  ;;  %v2195_v21 = vsel %vm3769_vm5, %v2188_v55, %v2160_v30  ;;  %v5555_v32 = vld [vmem:[#allocation20_spill] sm:$0xff]  ;;  %v5558_v55 = vld [vmem:[#allocation21_spill] sm:$0xff] }
 0x63d   : > { %v2400_v29 = vsel %vm3716_vm3, %v2391_v53, %v2371_v13  ;;  %v2401_v33 = vsel %vm3769_vm5, %v2395_v18, %v2367_v42  ;;  %2288 = vrot.lane.b32.xlu0 %v2280_v12, %s3166_s17  ;;  %2294 = vrot.lane.b32.xlu1 %v2279_v62, %s3166_s17  ;;  %v2211_v42 = vadd.f32 %v2195_v21, %v4660_v46 }
 0x63e   : > { %v4971_v59 = vadd.f32 %v2400_v29, %v4690_v17  ;;  %v4974_v40 = vadd.f32 %v2401_v33, %v4694_v25  ;;  %v2185_v17 = vsel %vm961_vm1, %v4790_v44, %v4804_v54  ;;  %v2164_v25 = vsel %vm936_vm2, %v4792_v11, %v4778_v39 }
 0x63f   : > { %v2357_v36 = vpop.permute.xlu0 %2356  ;;  %v2379_v9 = vpop.permute.xlu1 %2378  ;;  %v2194_v3 = vsel %vm3716_vm3, %v2184_v28, %v2164_v25  ;;  %v2196_v45 = vsel %vm3716_vm3, %v2185_v17, %v2165_v16  ;;  %v2268_v11 = vsel %vm961_vm1, %v4844_v61, %v4832_v14  ;;  %v2161_v14 = vsel %vm936_vm2, %v4782_v1, %v4798_v58  ;;  %v5556_v28 = vld [vmem:[#allocation11_spill] sm:$0xff] }
 0x640   : > { %v2210_v61 = vadd.f32 %v2194_v3, %v4656_v7  ;;  %v2189_v13 = vsel %vm961_vm1, %v4804_v54, %v4790_v44  ;;  %v2245_v58 = vsel %vm936_vm2, %v4842_v38, %v4830_v19  ;;  %v2212_v1 = vadd.f32 %v2196_v45, %v4662_v49 }
 0x641   : > { %2296 = vrot.lane.b32.xlu0 %v2281_v8, %s3166_s17  ;;  %2310 = vrot.lane.b32.xlu1 %v2278_v41, %s3167_s18  ;;  %v2274_v41 = vsel %vm3731_vm4, %v2244_v31, %v2264_v35  ;;  %v2275_v7 = vsel %vm3790_vm6, %v2240_v6, %v2268_v11  ;;  %v2276_v5 = vsel %vm3731_vm4, %v2245_v58, %v2265_v27 }
 0x642   : > { %v2282_v46 = vadd.f32 %v2274_v41, %v2210_v61  ;;  %v2197_v0 = vsel %vm3769_vm5, %v2189_v13, %v2161_v14  ;;  %v2241_v2 = vsel %vm936_vm2, %v4830_v19, %v4842_v38  ;;  %v2283_v52 = vadd.f32 %v2275_v7, %v2211_v42  ;;  %v5557_v19 = vld [vmem:[#allocation23_spill] sm:$0xff] }
 0x643   : > { %v2381_v39 = vpop.permute.xlu0 %2380  ;;  %v2363_v37 = vpop.permute.xlu1 %2362  ;;  %v2284_v24 = vadd.f32 %v2276_v5, %v2212_v1  ;;  %v2277_v26 = vsel %vm3790_vm6, %v2241_v2, %v2269_v4 }
 0x644   : > { %v2368_v51 = vsel %vm936_vm2, %v2355_v63, %v2363_v37  ;;  %v2372_v15 = vsel %vm936_vm2, %v2363_v37, %v2355_v63 }
 0x645   : > { %2312 = vrot.lane.b32.xlu0 %v2280_v12, %s3167_s18  ;;  %2318 = vrot.lane.b32.xlu1 %v2279_v62, %s3167_s18  ;;  %v5554_v62 = vld [vmem:[#allocation7_spill] sm:$0xff] }
 0x647   : > { %v2365_v44 = vpop.permute.xlu0 %2364  ;;  %v2387_v54 = vpop.permute.xlu1 %2386 }
 0x648   : > { %v2369_v47 = vsel %vm936_vm2, %v2357_v36, %v2365_v44  ;;  %v2373_v56 = vsel %vm936_vm2, %v2365_v44, %v2357_v36  ;;  %v2392_v60 = vsel %vm961_vm1, %v2379_v9, %v2387_v54  ;;  %v2396_v49 = vsel %vm961_vm1, %v2387_v54, %v2379_v9 }
 0x649   : > { %v2402_v22 = vsel %vm3716_vm3, %v2392_v60, %v2372_v15  ;;  %v2403_v50 = vsel %vm3769_vm5, %v2396_v49, %v2368_v51  ;;  %2320 = vrot.lane.b32.xlu0 %v2281_v8, %s3167_s18  ;;  %2290 = vrot.lane.b32.xlu1 %v2282_v46, %s3166_s17  ;;  %v2213_v8 = vadd.f32 %v2197_v0, %v5556_v28 }
 0x64a   : > { %v2418_v12 = vadd.f32 %v2402_v22, %v5554_v62  ;;  %v2419_v63 = vadd.f32 %v2403_v50, %v5555_v32 }
 0x64b   : > { %v2389_v53 = vpop.permute.xlu0 %2388  ;;  %v2431_v18 = vpop.permute.xlu1 %2430  ;;  %v2285_v25 = vadd.f32 %v2277_v26, %v2213_v8 }
 0x64c   : > { %v2393_v29 = vsel %vm961_vm1, %v2381_v39, %v2389_v53  ;;  %v2397_v33 = vsel %vm961_vm1, %v2389_v53, %v2381_v39 }
 0x64d   : > { %v2404_v36 = vsel %vm3716_vm3, %v2393_v29, %v2373_v56  ;;  %v2405_v38 = vsel %vm3769_vm5, %v2397_v33, %v2369_v47  ;;  %2292 = vrot.lane.b32.xlu0 %v2284_v24, %s3166_s17  ;;  %2298 = vrot.lane.b32.xlu1 %v2283_v52, %s3166_s17 }
 0x64e   : > { %v2420_v9 = vadd.f32 %v2404_v36, %v5557_v19  ;;  %v2421_v17 = vadd.f32 %v2405_v38, %v5558_v55 }
 0x64f   : > { %v2433_v35 = vpop.permute.xlu0 %2432  ;;  %v2455_v30 = vpop.permute.xlu1 %2454 }
 0x651   : > { %2300 = vrot.lane.b32.xlu0 %v2285_v25, %s3166_s17  ;;  %2314 = vrot.lane.b32.xlu1 %v2282_v46, %s3167_s18 }
 0x653   : > { %v2457_v16 = vpop.permute.xlu0 %2456  ;;  %v2439_v3 = vpop.permute.xlu1 %2438 }
 0x654   : > { %v2446_v21 = vsel %vm936_vm2, %v2431_v18, %v2439_v3  ;;  %v2450_v45 = vsel %vm936_vm2, %v2439_v3, %v2431_v18 }
 0x655   : > { %2316 = vrot.lane.b32.xlu0 %v2284_v24, %s3167_s18  ;;  %2322 = vrot.lane.b32.xlu1 %v2283_v52, %s3167_s18 }
 0x657   : > { %v2441_v31 = vpop.permute.xlu0 %2440  ;;  %v2463_v11 = vpop.permute.xlu1 %2462 }
 0x658   : > { %v2447_v39 = vsel %vm936_vm2, %v2433_v35, %v2441_v31  ;;  %v2451_v37 = vsel %vm936_vm2, %v2441_v31, %v2433_v35  ;;  %v2470_v41 = vsel %vm961_vm1, %v2455_v30, %v2463_v11  ;;  %v2474_v27 = vsel %vm961_vm1, %v2463_v11, %v2455_v30 }
 0x659   : > { %v2478_v51 = vsel %vm3731_vm4, %v2450_v45, %v2470_v41  ;;  %v2479_v15 = vsel %vm3790_vm6, %v2446_v21, %v2474_v27  ;;  %2324 = vrot.lane.b32.xlu0 %v2285_v25, %s3167_s18 }
 0x65a   : > { %v5118_v14 = vadd.f32 %v2478_v51, %v4948_v48  ;;  %v5121_v61 = vadd.f32 %v2479_v15, %v4951_v23 }
 0x65b   : > { %v2465_v42 = vpop.permute.xlu0 %2464  ;;  %v2435_v13 = vpop.permute.xlu1 %2434 }
 0x65c   : > { %v2471_v6 = vsel %vm961_vm1, %v2457_v16, %v2465_v42  ;;  %v2475_v58 = vsel %vm961_vm1, %v2465_v42, %v2457_v16 }
 0x65d   : > { %v2480_v1 = vsel %vm3731_vm4, %v2451_v37, %v2471_v6  ;;  %v2481_v7 = vsel %vm3790_vm6, %v2447_v39, %v2475_v58 }
 0x65e   : > { %v5132_v48 = vadd.f32 %v2480_v1, %v4971_v59  ;;  %v5135_v23 = vadd.f32 %v2481_v7, %v4974_v40  ;;  %v5559_v7 = vld [vmem:[#allocation9_spill] sm:$0xff] }
 0x65f   : > { %v2437_v46 = vpop.permute.xlu0 %2436  ;;  %v2459_v5 = vpop.permute.xlu1 %2458 }
 0x663   : > { %v2461_v44 = vpop.permute.xlu0 %2460  ;;  %v2443_v54 = vpop.permute.xlu1 %2442 }
 0x664   : > { %v2448_v47 = vsel %vm936_vm2, %v2435_v13, %v2443_v54  ;;  %v2452_v56 = vsel %vm936_vm2, %v2443_v54, %v2435_v13 }
 0x667   : > { %v2445_v60 = vpop.permute.xlu0 %2444  ;;  %v2467_v49 = vpop.permute.xlu1 %2466 }
 0x668   : > { %v2449_v4 = vsel %vm936_vm2, %v2437_v46, %v2445_v60  ;;  %v2453_v59 = vsel %vm936_vm2, %v2445_v60, %v2437_v46  ;;  %v2472_v40 = vsel %vm961_vm1, %v2459_v5, %v2467_v49  ;;  %v2476_v22 = vsel %vm961_vm1, %v2467_v49, %v2459_v5 }
 0x669   : > { %v2482_v50 = vsel %vm3731_vm4, %v2452_v56, %v2472_v40  ;;  %v2483_v0 = vsel %vm3790_vm6, %v2448_v47, %v2476_v22  ;;  %v5560_v40 = vld [vmem:[#allocation26_spill] sm:$0xff] }
 0x66a   : > { %v5153_v62 = vadd.f32 %v2482_v50, %v2418_v12  ;;  %v5155_v32 = vadd.f32 %v2483_v0, %v2419_v63 }
 0x66b   : > { %v2469_v2 = vpop.permute.xlu0 %2468  ;;  %v2511_v52 = vpop.permute.xlu1 %2510 }
 0x66c   : > { %v2473_v24 = vsel %vm961_vm1, %v2461_v44, %v2469_v2  ;;  %v2477_v53 = vsel %vm961_vm1, %v2469_v2, %v2461_v44 }
 0x66d   : > { %v2484_v18 = vsel %vm3731_vm4, %v2453_v59, %v2473_v24  ;;  %v2485_v26 = vsel %vm3790_vm6, %v2449_v4, %v2477_v53 }
 0x66e   : > { %v5165_v29 = vadd.f32 %v2484_v18, %v2420_v9  ;;  %v5167_v12 = vadd.f32 %v2485_v26, %v2421_v17 }
 0x66f   : > { %v2513_v63 = vpop.permute.xlu0 %2512  ;;  %v2535_v33 = vpop.permute.xlu1 %2534 }
 0x673   : > { %v2537_v28 = vpop.permute.xlu0 %2536  ;;  %v2519_v8 = vpop.permute.xlu1 %2518 }
 0x674   : > { %v2530_v41 = vsel %vm936_vm2, %v2519_v8, %v2511_v52  ;;  %v2526_v15 = vsel %vm936_vm2, %v2511_v52, %v2519_v8  ;;  %v5561_v52 = vld [vmem:[#allocation27_spill] sm:$0xff] }
 0x677   : > { %v2521_v36 = vpop.permute.xlu0 %2520  ;;  %v2543_v38 = vpop.permute.xlu1 %2542 }
 0x678   : > { %v2550_v11 = vsel %vm961_vm1, %v2535_v33, %v2543_v38  ;;  %v2554_v27 = vsel %vm961_vm1, %v2543_v38, %v2535_v33  ;;  %v2531_v13 = vsel %vm936_vm2, %v2521_v36, %v2513_v63  ;;  %v2527_v59 = vsel %vm936_vm2, %v2513_v63, %v2521_v36 }
 0x679   : > { %v2558_v51 = vsel %vm3716_vm3, %v2550_v11, %v2530_v41  ;;  %v2559_v6 = vsel %vm3769_vm5, %v2554_v27, %v2526_v15 }
 0x67a   : > { %v2574_v46 = vadd.f32 %v2558_v51, %v5559_v7  ;;  %v2575_v22 = vadd.f32 %v2559_v6, %v5560_v40 }
 0x67b   : > { %v2545_v19 = vpop.permute.xlu0 %2544  ;;  %v5169_v55 = vpop.permute.xlu1 %2514 }
 0x67c   : > { %v2551_v42 = vsel %vm961_vm1, %v2537_v28, %v2545_v19  ;;  %v2555_v60 = vsel %vm961_vm1, %v2545_v19, %v2537_v28 }
 0x67d   : > { %v2560_v47 = vsel %vm3716_vm3, %v2551_v42, %v2531_v13  ;;  %v2561_v63 = vsel %vm3769_vm5, %v2555_v60, %v2527_v59 }
 0x67e   : > { %v2576_v24 = vadd.f32 %v2560_v47, %v5561_v52 }
 0x67f   : > { %v5171_v25 = vpop.permute.xlu0 %2516  ;;  %v2539_v35 = vpop.permute.xlu1 %2538 }
 0x683   : > { %v5173_v30 = vpop.permute.xlu0 %2540  ;;  %v5175_v16 = vpop.permute.xlu1 %2522 }
 0x687   : > { %v5177_v9 = vpop.permute.xlu0 %2524  ;;  %v2547_v17 = vpop.permute.xlu1 %2546 }
 0x688   : > { %v2533_v42 = vsel %vm936_vm2, %v5177_v9, %v5171_v25  ;;  %v2556_v13 = vsel %vm961_vm1, %v2547_v17, %v2539_v35 }
 0x68b   : > { %v5179_v3 = vpop.permute.xlu0 %2548  ;;  %v2591_v21 = vpop.permute.xlu1 %2590 }
 0x68c   : > { %v2553_v15 = vsel %vm961_vm1, %v5173_v30, %v5179_v3  ;;  %v2557_v47 = vsel %vm961_vm1, %v5179_v3, %v5173_v30 }
 0x68f   : > { %v2593_v45 = vpop.permute.xlu0 %2592  ;;  %v2615_v31 = vpop.permute.xlu1 %2614 }
 0x693   : > { %v2617_v39 = vpop.permute.xlu0 %2616  ;;  %v2599_v37 = vpop.permute.xlu1 %2598 }
 0x694   : > { %v2610_v5 = vsel %vm936_vm2, %v2599_v37, %v2591_v21  ;;  %v2606_v49 = vsel %vm936_vm2, %v2591_v21, %v2599_v37 }
 0x697   : > { %v2601_v58 = vpop.permute.xlu0 %2600  ;;  %v2623_v1 = vpop.permute.xlu1 %2622 }
 0x698   : > { %v2630_v44 = vsel %vm961_vm1, %v2615_v31, %v2623_v1  ;;  %v2634_v54 = vsel %vm961_vm1, %v2623_v1, %v2615_v31  ;;  %v2611_v53 = vsel %vm936_vm2, %v2601_v58, %v2593_v45  ;;  %v2607_v28 = vsel %vm936_vm2, %v2593_v45, %v2601_v58  ;;  %v5562_v31 = vld [vmem:[#allocation24_spill] sm:$0xff]  ;;  %v5563_v1 = vld [vmem:[#allocation10_spill] sm:$0xff] }
 0x699   : > { %v2638_v56 = vsel %vm3731_vm4, %v2610_v5, %v2630_v44  ;;  %v2639_v50 = vsel %vm3790_vm6, %v2606_v49, %v2634_v54  ;;  %v2577_v11 = vadd.f32 %v2561_v63, %v5562_v31  ;;  %v2532_v45 = vsel %vm936_vm2, %v5175_v16, %v5169_v55 }
 0x69a   : > { %v2646_v4 = vadd.f32 %v2638_v56, %v2574_v46  ;;  %v2647_v8 = vadd.f32 %v2639_v50, %v2575_v22  ;;  %v2564_v46 = vsel %vm3716_vm3, %v2553_v15, %v2533_v42 }
 0x69b   : > { %v2625_v0 = vpop.permute.xlu0 %2624  ;;  %v2595_v2 = vpop.permute.xlu1 %2594 }
 0x69c   : > { %v2631_v18 = vsel %vm961_vm1, %v2617_v39, %v2625_v0  ;;  %v2635_v26 = vsel %vm961_vm1, %v2625_v0, %v2617_v39  ;;  %2654 = vrot.lane.b32.xlu1 %v2646_v4, %s3166_s17  ;;  %v2552_v39 = vsel %vm961_vm1, %v2539_v35, %v2547_v17  ;;  %v2528_v35 = vsel %vm936_vm2, %v5169_v55, %v5175_v16  ;;  %v5564_v16 = vld [vmem:[#allocation14_spill] sm:$0xff] }
 0x69d   : > { %v2640_v33 = vsel %vm3731_vm4, %v2611_v53, %v2631_v18  ;;  %v2641_v38 = vsel %vm3790_vm6, %v2607_v28, %v2635_v26  ;;  %v2562_v51 = vsel %vm3716_vm3, %v2552_v39, %v2532_v45  ;;  %v2563_v54 = vsel %vm3769_vm5, %v2556_v13, %v2528_v35  ;;  %v5566_v53 = vld [vmem:[#allocation28_spill] sm:$0xff] }
 0x69e   : > { %v2648_v36 = vadd.f32 %v2640_v33, %v2576_v24  ;;  %v2649_v37 = vadd.f32 %v2641_v38, %v2577_v11  ;;  %v2578_v7 = vadd.f32 %v2562_v51, %v5563_v1  ;;  %v2529_v55 = vsel %vm936_vm2, %v5171_v25, %v5177_v9  ;;  %v5565_v25 = vld [vmem:[#allocation13_spill] sm:$0xff] }
 0x69f   : > { %v2597_v19 = vpop.permute.xlu0 %2596  ;;  %v2619_v21 = vpop.permute.xlu1 %2618  ;;  %v2580_v60 = vadd.f32 %v2564_v46, %v5564_v16  ;;  %v2579_v9 = vadd.f32 %v2563_v54, %v5565_v25  ;;  %v2565_v22 = vsel %vm3769_vm5, %v2557_v47, %v2529_v55  ;;  %v5578_v16 = vld [vmem:[#allocation5_spill] sm:$0xff] }
 0x6a0   : > { %2656 = vrot.lane.b32.xlu0 %v2648_v36, %s3166_s17  ;;  %2662 = vrot.lane.b32.xlu1 %v2647_v8, %s3166_s17  ;;  %v2581_v18 = vadd.f32 %v2565_v22, %v5566_v53 }
 0x6a3   : > { %v2621_v41 = vpop.permute.xlu0 %2620  ;;  %v2603_v27 = vpop.permute.xlu1 %2602 }
 0x6a4   : > { %2664 = vrot.lane.b32.xlu0 %v2649_v37, %s3166_s17  ;;  %2678 = vrot.lane.b32.xlu1 %v2646_v4, %s3167_s18  ;;  %v2612_v5 = vsel %vm936_vm2, %v2603_v27, %v2595_v2  ;;  %v2608_v49 = vsel %vm936_vm2, %v2595_v2, %v2603_v27 }
 0x6a7   : > { %v2605_v6 = vpop.permute.xlu0 %2604  ;;  %v2627_v58 = vpop.permute.xlu1 %2626 }
 0x6a8   : > { %v2632_v44 = vsel %vm961_vm1, %v2619_v21, %v2627_v58  ;;  %2680 = vrot.lane.b32.xlu0 %v2648_v36, %s3167_s18  ;;  %v2636_v17 = vsel %vm961_vm1, %v2627_v58, %v2619_v21  ;;  %2686 = vrot.lane.b32.xlu1 %v2647_v8, %s3167_s18  ;;  %v2613_v59 = vsel %vm936_vm2, %v2605_v6, %v2597_v19 }
 0x6a9   : > { %v2642_v57 = vsel %vm3731_vm4, %v2612_v5, %v2632_v44  ;;  %v2643_v40 = vsel %vm3790_vm6, %v2608_v49, %v2636_v17  ;;  %v2609_v0 = vsel %vm936_vm2, %v2597_v19, %v2605_v6 }
 0x6aa   : > { %v2650_v56 = vadd.f32 %v2642_v57, %v2578_v7  ;;  %v2651_v52 = vadd.f32 %v2643_v40, %v2579_v9 }
 0x6ab   : > { %v2629_v4 = vpop.permute.xlu0 %2628  ;;  %v2287_v20 = vpop.permute.xlu1 %2286 }
 0x6ac   : > { %v2633_v30 = vsel %vm961_vm1, %v2621_v41, %v2629_v4  ;;  %v2637_v3 = vsel %vm961_vm1, %v2629_v4, %v2621_v41  ;;  %2688 = vrot.lane.b32.xlu0 %v2649_v37, %s3167_s18  ;;  %2658 = vrot.lane.b32.xlu1 %v2650_v56, %s3166_s17 }
 0x6ad   : > { %v2644_v50 = vsel %vm3731_vm4, %v2613_v59, %v2633_v30  ;;  %v2645_v24 = vsel %vm3790_vm6, %v2609_v0, %v2637_v3  ;;  %v5568_v30 = vld [vmem:[#allocation25_spill] sm:$0xff] }
 0x6ae   : > { %v2652_v2 = vadd.f32 %v2644_v50, %v2580_v60  ;;  %v2653_v43 = vadd.f32 %v2645_v24, %v2581_v18  ;;  %v5569_v24 = vld [vmem:[#allocation8_spill] sm:$0xff] }
 0x6af   : > { %v2289_v34 = vpop.permute.xlu0 %2288  ;;  %v2295_v26 = vpop.permute.xlu1 %2294 }
 0x6b0   : > { %2660 = vrot.lane.b32.xlu0 %v2652_v2, %s3166_s17  ;;  %2666 = vrot.lane.b32.xlu1 %v2651_v52, %s3166_s17  ;;  %v2306_v6 = vsel %vm249_vm8, %v2295_v26, %v2287_v20  ;;  %v2302_v7 = vsel %vm249_vm8, %v2287_v20, %v2295_v26 }
 0x6b1   : > { %v2495_v54 = vadd.f32 %v5121_v61, %v2302_v7 }
 0x6b3   : > { %v2297_v63 = vpop.permute.xlu0 %2296  ;;  %v2311_v33 = vpop.permute.xlu1 %2310 }
 0x6b4   : > { %2668 = vrot.lane.b32.xlu0 %v2653_v43, %s3166_s17  ;;  %2682 = vrot.lane.b32.xlu1 %v2650_v56, %s3167_s18  ;;  %v2307_v46 = vsel %vm249_vm8, %v2297_v63, %v2289_v34  ;;  %v2303_v44 = vsel %vm249_vm8, %v2289_v34, %v2297_v63  ;;  %s5364_s17 = scalar_lea.vmem %s5439_s4, %s2967_s21  ;;  %v5571_v63 = vld [vmem:[#allocation15_spill] sm:$0xff] }
 0x6b5   : > { %v2497_v4 = vadd.f32 %v5135_v23, %v2303_v44 }
 0x6b7   : > { %v2313_v28 = vpop.permute.xlu0 %2312  ;;  %v2319_v8 = vpop.permute.xlu1 %2318 }
 0x6b8   : > { %2684 = vrot.lane.b32.xlu0 %v2652_v2, %s3167_s18  ;;  %2690 = vrot.lane.b32.xlu1 %v2651_v52, %s3167_s18  ;;  %v2326_v15 = vsel %vm1106_vm7, %v2311_v33, %v2319_v8 }
 0x6b9   : > { %v2334_v58 = vsel %vm249_vm8, %v2326_v15, %v2306_v6 }
 0x6ba   : > { %v2494_v17 = vadd.f32 %v5118_v14, %v2334_v58 }
 0x6bb   : > { %v2321_v36 = vpop.permute.xlu0 %2320  ;;  %v5313_v38 = vpop.permute.xlu1 %2290 }
 0x6bc   : > { %2692 = vrot.lane.b32.xlu0 %v2653_v43, %s3167_s18  ;;  %v2327_v1 = vsel %vm1106_vm7, %v2313_v28, %v2321_v36  ;;  %v5570_v43 = vld [vmem:[#allocation19_spill] sm:$0xff] }
 0x6bd   : > { %v2336_v35 = vsel %vm249_vm8, %v2327_v1, %v2307_v46 }
 0x6be   : > { %v2496_v59 = vadd.f32 %v5132_v48, %v2336_v35 }
 0x6bf   : > { %v5315_v19 = vpop.permute.xlu0 %2292  ;;  %v5317_v21 = vpop.permute.xlu1 %2298 }
 0x6c0   : > { %v2308_v15 = vsel %vm249_vm8, %v5317_v21, %v5313_v38 }
 0x6c3   : > { %v5319_v31 = vpop.permute.xlu0 %2300  ;;  %v2315_v11 = vpop.permute.xlu1 %2314 }
 0x6c4   : > { %v2309_v1 = vsel %vm249_vm8, %v5319_v31, %v5315_v19  ;;  %v2305_v46 = vsel %vm249_vm8, %v5315_v19, %v5319_v31 }
 0x6c7   : > { %v2317_v39 = vpop.permute.xlu0 %2316  ;;  %v2323_v37 = vpop.permute.xlu1 %2322 }
 0x6c8   : > { %v2328_v8 = vsel %vm1106_vm7, %v2315_v11, %v2323_v37  ;;  %v2304_v37 = vsel %vm249_vm8, %v5313_v38, %v5317_v21 }
 0x6c9   : > { %v2338_v58 = vsel %vm249_vm8, %v2328_v8, %v2308_v15  ;;  %v2499_v38 = vadd.f32 %v5155_v32, %v2304_v37 }
 0x6cb   : > { %v2325_v41 = vpop.permute.xlu0 %2324 }
 0x6cc   : > { %v2329_v11 = vsel %vm1106_vm7, %v2317_v39, %v2325_v41  ;;  %v2498_v41 = vadd.f32 %v5153_v62, %v2338_v58 }
 0x6cd   : > { %v2340_v39 = vsel %vm249_vm8, %v2329_v11, %v2309_v1 }
 0x6ce   : > { %v2500_v62 = vadd.f32 %v5165_v29, %v2340_v39 }
 0x70e   : > { %v2655_v27 = vpop.permute.xlu1 %2654 }
 0x712   : > { %v2657_v45 = vpop.permute.xlu0 %2656  ;;  %v2663_v51 = vpop.permute.xlu1 %2662 }
 0x713   : > { %v2670_v47 = vsel %vm249_vm8, %v2655_v27, %v2663_v51  ;;  %v5572_v27 = vld [vmem:[#allocation16_spill] sm:$0xff] }
 0x716   : > { %v2665_v42 = vpop.permute.xlu0 %2664  ;;  %v2679_v13 = vpop.permute.xlu1 %2678 }
 0x717   : > { %v2671_v40 = vsel %vm249_vm8, %v2657_v45, %v2665_v42  ;;  %v5573_v42 = vld [vmem:[#allocation18_spill] sm:$0xff] }
 0x71a   : > { %v2681_v5 = vpop.permute.xlu0 %2680  ;;  %v2687_v57 = vpop.permute.xlu1 %2686 }
 0x71b   : > { %v2694_v56 = vsel %vm1106_vm7, %v2679_v13, %v2687_v57  ;;  %v2698_v55 = vsel %vm1106_vm7, %v2687_v57, %v2679_v13 }
 0x71c   : > { %v2703_v60 = vsel %vm252_vm9, %v2670_v47, %v2698_v55  ;;  %v2710_v49 = vadd.f32 %v2694_v56, %v2494_v17  ;;  %v2501_v17 = vadd.f32 %v5167_v12, %v2305_v46  ;;  %v5574_v47 = vld [vmem:[#allocation12_spill] sm:$0xff] }
 0x71d   : > { %v2711_v14 = vadd.f32 %v2703_v60, %v2495_v54 }
 0x71e   : > { %v2689_v61 = vpop.permute.xlu0 %2688  ;;  %v2743_v3 = vadd.f32 %v5568_v30, %v2710_v49  ;;  %v2659_v22 = vpop.permute.xlu1 %2658 }
 0x71f   : > { %v2695_v25 = vsel %vm1106_vm7, %v2681_v5, %v2689_v61  ;;  %v2699_v9 = vsel %vm1106_vm7, %v2689_v61, %v2681_v5  ;;  %v2744_v50 = vadd.f32 %v5568_v30, %v2711_v14  ;;  %v5575_v61 = vld [vmem:[#allocation22_spill] sm:$0xff]  ;;  %v5576_v30 = vld [vmem:[#allocation4_spill] sm:$0xff] }
 0x720   : > { %v2705_v23 = vsel %vm252_vm9, %v2671_v40, %v2699_v9  ;;  %v2712_v0 = vadd.f32 %v2695_v25, %v2496_v59  ;;  %v2751_v48 = vmax.f32 %v2743_v3, 0.0  ;;  %v5577_v9 = vld [vmem:[#allocation3_spill] sm:$0xff] }
 0x721   : > { %v2713_v2 = vadd.f32 %v2705_v23, %v2497_v4  ;;  %v2752_v52 = vmax.f32 %v2744_v50, 0.0 }
 0x722   : > { %v2745_v53 = vadd.f32 %v5569_v24, %v2712_v0  ;;  %v2661_v18 = vpop.permute.xlu0 %2660  ;;  %v2759_v20 = vadd.f32 %v2751_v48, %v5570_v43  ;;  %v2667_v26 = vpop.permute.xlu1 %2666  ;;  %v5579_v0 = vld [vmem:[#allocation6_spill] sm:$0xff] }
 0x723   : > { %v2746_v34 = vadd.f32 %v5569_v24, %v2713_v2  ;;  %v2760_v33 = vadd.f32 %v2752_v52, %v5571_v63  ;;  %v2672_v21 = vsel %vm249_vm8, %v2659_v22, %v2667_v26 }
 0x724   : > { %v2753_v28 = vmax.f32 %v2745_v53, 0.0  ;;  %2767 = vst [vmem:[%s5364_s17] sm:$0xff] %v2759_v20 }
 0x725   : > { %v2754_v36 = vmax.f32 %v2746_v34, 0.0  ;;  %2768 = vst [vmem:[%s5364_s17 + $0x8] sm:$0xff] %v2760_v33 }
 0x726   : > { %v2761_v45 = vadd.f32 %v2753_v28, %v5572_v27  ;;  %v2669_v51 = vpop.permute.xlu0 %2668  ;;  %v2683_v6 = vpop.permute.xlu1 %2682 }
 0x727   : > { %v2762_v13 = vadd.f32 %v2754_v36, %v5573_v42  ;;  %v2673_v32 = vsel %vm249_vm8, %v2661_v18, %v2669_v51 }
 0x728   : > { %2769 = vst [vmem:[%s5364_s17 + $0x10] sm:$0xff] %v2761_v45 }
 0x729   : > { %2770 = vst [vmem:[%s5364_s17 + $0x18] sm:$0xff] %v2762_v13 }
 0x72a   : > { %v2685_v7 = vpop.permute.xlu0 %2684  ;;  %v2691_v5 = vpop.permute.xlu1 %2690 }
 0x72b   : > { %v2696_v44 = vsel %vm1106_vm7, %v2683_v6, %v2691_v5  ;;  %v2700_v35 = vsel %vm1106_vm7, %v2691_v5, %v2683_v6 }
 0x72c   : > { %v2707_v19 = vsel %vm252_vm9, %v2672_v21, %v2700_v35  ;;  %v2714_v31 = vadd.f32 %v2696_v44, %v2498_v41 }
 0x72d   : > { %v2715_v57 = vadd.f32 %v2707_v19, %v2499_v38 }
 0x72e   : > { %v2693_v54 = vpop.permute.xlu0 %2692  ;;  %v2747_v56 = vadd.f32 %v5574_v47, %v2714_v31 }
 0x72f   : > { %v2697_v55 = vsel %vm1106_vm7, %v2685_v7, %v2693_v54  ;;  %v2701_v60 = vsel %vm1106_vm7, %v2693_v54, %v2685_v7  ;;  %v2748_v49 = vadd.f32 %v5574_v47, %v2715_v57 }
 0x730   : > { %v2709_v29 = vsel %vm252_vm9, %v2673_v32, %v2701_v60  ;;  %v2716_v12 = vadd.f32 %v2697_v55, %v2500_v62  ;;  %v2755_v4 = vmax.f32 %v2747_v56, 0.0 }
 0x731   : > { %v2717_v14 = vadd.f32 %v2709_v29, %v2501_v17  ;;  %v2756_v59 = vmax.f32 %v2748_v49, 0.0 }
 0x732   : > { %v2749_v40 = vadd.f32 %v5575_v61, %v2716_v12  ;;  %v2763_v3 = vadd.f32 %v2755_v4, %v5576_v30 }
 0x733   : > { %v2750_v25 = vadd.f32 %v5575_v61, %v2717_v14  ;;  %v2764_v10 = vadd.f32 %v2756_v59, %v5577_v9 }
 0x734   : > { %v2757_v22 = vmax.f32 %v2749_v40, 0.0  ;;  %2771 = vst [vmem:[%s5364_s17 + $0x20] sm:$0xff] %v2763_v3 }
 0x735   : > { %v2758_v50 = vmax.f32 %v2750_v25, 0.0  ;;  %2772 = vst [vmem:[%s5364_s17 + $0x28] sm:$0xff] %v2764_v10 }
 0x736   : > { %v2765_v23 = vadd.f32 %v2757_v22, %v5578_v16 }
 0x737   : > { %v2766_v48 = vadd.f32 %v2758_v50, %v5579_v0 }
 0x738   : > { %2773 = vst [vmem:[%s5364_s17 + $0x30] sm:$0xff] %v2765_v23 }
 0x739   : > { %2774 = vst [vmem:[%s5364_s17 + $0x38] sm:$0xff] %v2766_v48 }
 0x73a PF: > { %s14_s15 = sadd.s32 1, %s3160_s15  }
 0x73b   : > { %p11_p4 = scmp.ge.s32.totalorder %s14_s15, 4  }
 0x73d   :  { %13 = sbr.rel (!%p11_p4) target bundleno = 1 (0x1), region = 71 }

</bundles_post_ra>
